<compile_context>
chip_gen: v6e
topology: v6e:2x2x1
jax: 0.10.0
libtpu: 0.0.40
codegen_flags: <defaults>
</compile_context>

<pallas_src>
import math

import jax
import jax.numpy as jnp
from jax.experimental import pallas as pl
from jax.experimental.pallas import tpu as pltpu


# --------------------------- fused Pallas kernel --------------------------- #

def _build_cnn_kernel(n_groups, rows_img, grid_w, pad_rows, n_pos, feat_w,
                      n_mid, ksize, lanes):
    """Fused (depth+1)-layer CNN forward for one tile of n_groups*pack images."""
    m = n_groups * rows_img              # GEMM M dimension for the whole tile
    kk = ksize * ksize

    def kernel(*refs):
        lhs0_ref, w0_ref, b0_ref = refs[:3]
        idx = 3
        mids = refs[idx: idx + 2 * n_mid]          # (w, b) pairs, middle layers
        idx += 2 * n_mid
        wl_ref, bl_ref = refs[idx], refs[idx + 1]  # final (fused) layer
        idx += 2
        out_ref = refs[idx]
        act_a, act_b, stage, flhs = refs[idx + 1: idx + 5]

        f32, bf16 = jnp.float32, jnp.bfloat16

        # Keep the shared pad rows finite/deterministic once per grid step
        # (only garbage rows ever read them; safe under megacore "parallel").
        zpad = jnp.zeros((pad_rows, lanes), f32)
        act_a[pl.ds(m, pad_rows), :] = zpad
        act_b[pl.ds(m, pad_rows), :] = zpad

        # ---- layer 0 (stride 2): pre-im2col'd lane-packed LHS -> one GEMM ----
        acc0 = jnp.dot(lhs0_ref[...], w0_ref[...], preferred_element_type=f32)
        act_a[pl.ds(0, m), :] = jnp.maximum(acc0 + b0_ref[...], 0.0)

        # ---- middle stride-1 layers: stage kk shifted slices -> one GEMM ----
        # Valid output rows only ever read valid input rows of the shared grid;
        # garbage rows never contaminate them (pure shift-and-stage im2col).
        src, dst = act_a, act_b
        for _layer in range(n_mid):
            w_ref, b_ref = mids[2 * _layer], mids[2 * _layer + 1]
            for t in range(kk):
                kh, kw = divmod(t, ksize)
                off = kh * grid_w + kw                  # row shift of tap (kh,kw)
                stage[pl.ds(0, m), pl.ds(t * lanes, lanes)] = (
                    src[pl.ds(off, m), :].astype(bf16))
            acc = jnp.dot(stage[...], w_ref[...], preferred_element_type=f32)
            dst[pl.ds(0, m), :] = jnp.maximum(acc + b_ref[...], 0.0)
            src, dst = dst, src                          # result ends in `src`

        # ---- final layer fused with the output write (valid positions only) ----
        for g in range(n_groups):
            base = g * rows_img
            for p in range(n_pos):
                oh, ow = divmod(p, feat_w)
                row = g * n_pos + p
                for t in range(kk):
                    kh, kw = divmod(t, ksize)
                    srow = base + (oh + kh) * grid_w + (ow + kw)
                    flhs[pl.ds(row, 1), pl.ds(t * lanes, lanes)] = (
                        src[pl.ds(srow, 1), :])
        accl = jnp.dot(flhs[...].astype(bf16), wl_ref[...],
                       preferred_element_type=f32)
        out_ref[...] = jnp.maximum(accl + bl_ref[...], 0.0)

    return kernel


# ------------------------------ encoder class ------------------------------ #

class CNNEncoderPallas:
    """JAX/Pallas re-implementation of CNNEncoder.forward (default Eyes=CNN, pool=Flatten)."""

    IMAGES_PER_TILE = 32     # batch tile per grid step (multiple of `pack`)

    def __init__(self, obs_shape, out_channels=32, depth=3, kernel=3, key=None):
        self.obs_shape = tuple(obs_shape)                  # (C, H, W), NCHW convention
        assert len(self.obs_shape) == 3, "2d CNN path only"
        self.out_channels = out_channels
        self.kernel = kernel
        self.standardize = False                           # obs_spec has no mean/stddev
        self.normalize = False                             # obs_spec has no low/high
        key = key if key is not None else jax.random.PRNGKey(0)

        # Deterministic synthetic parameters (PyTorch Conv2d-like uniform init), f32.
        self.params = []
        c_in = self.obs_shape[0]
        for i in range(depth + 1):
            key, wk, bk = jax.random.split(key, 3)
            fan_in = c_in * kernel * kernel
            bound = 1.0 / math.sqrt(fan_in)
            w = jax.random.uniform(wk, (kernel, kernel, c_in, out_channels),
                                   jnp.float32, -bound, bound)
            b = jax.random.uniform(bk, (out_channels,), jnp.float32, -bound, bound)
            self.params.append((w, b, 2 if i == 0 else 1))
            c_in = out_channels
        assert len(self.params) >= 2, "kernel assumes >=1 stride-1 layer after layer 0"

        # feature_shape / repr_shape (as Utils.repr_shape would compute them).
        c, h, w_ = self.obs_shape
        for (wt, _, s) in self.params:
            h = (h - wt.shape[0]) // s + 1
            w_ = (w_ - wt.shape[1]) // s + 1
            c = wt.shape[3]
        self.feature_shape = (c, h, w_)
        self.repr_shape = (c * h * w_,)

        # Layer-0 output grid: all later layers live on this grid inside the kernel.
        _, H, W = self.obs_shape
        self.l1_oh = (H - kernel) // 2 + 1
        self.l1_ow = (W - kernel) // 2 + 1
        self.rows_img = self.l1_oh * self.l1_ow

        # Lane packing: `pack` images share one 128-lane row (block-diag weights).
        self.pack = max(1, 128 // out_channels)
        self.lanes = self.pack * out_channels
        self.tile_images = max(self.pack,
                               (self.IMAGES_PER_TILE // self.pack) * self.pack)

        # Kernel-format parameters, hoisted out of the traced forward:
        # block-diagonal bf16 MXU weights, f32 biases tiled across the lane packs.
        eye = jnp.eye(self.pack, dtype=jnp.float32)
        kk = kernel * kernel
        w0, b0, _ = self.params[0]
        c0 = self.obs_shape[0]
        w0_mat = w0.reshape(kk * c0, out_channels)                  # rows = (kh,kw,c)
        self.w0_packed = jnp.einsum('ij,po->ipjo', eye, w0_mat).reshape(
            self.pack * kk * c0, self.lanes).astype(jnp.bfloat16)
        self.b0_packed = jnp.tile(b0, self.pack).reshape(1, self.lanes)
        self.hid_w_packed, self.hid_b_packed = [], []
        for (w, b, _) in self.params[1:]:
            w_t = w.reshape(kk, out_channels, out_channels)         # (tap, c_in, c_out)
            wp = jnp.einsum('ij,tco->ticjo', eye, w_t).reshape(
                kk * self.lanes, self.lanes).astype(jnp.bfloat16)
            self.hid_w_packed.append(wp)
            self.hid_b_packed.append(jnp.tile(b, self.pack).reshape(1, self.lanes))

        self._forward = jax.jit(self._forward_impl, static_argnames=("pool",))

    # -------------------------- wrapper-side glue -------------------------- #

    def _im2col_layer0(self, x):
        """Stride-2 im2col + 4-image lane packing of the raw NCHW input, in bf16.

        Works directly on NCHW (no separate pre-transpose op) and emits bf16, so
        XLA fuses pad/slice/transpose/cast into one producer for the kernel DMA.
        """
        k, s = self.kernel, 2
        oh, ow = self.l1_oh, self.l1_ow
        bp, C = x.shape[0], x.shape[1]
        cols = [x[:, :, i:i + s * (oh - 1) + 1:s, j:j + s * (ow - 1) + 1:s]
                for i in range(k) for j in range(k)]             # (bp, C, oh, ow) each
        patches = jnp.stack(cols, axis=2)                        # (bp, C, kk, oh, ow)
        patches = jnp.transpose(patches, (0, 3, 4, 2, 1))        # (bp, oh, ow, kk, C)
        patches = patches.reshape(bp // self.pack, self.pack, oh * ow, k * k * C)
        patches = jnp.transpose(patches, (0, 2, 1, 3))           # (grp, rows, pack, kkC)
        return patches.reshape(bp // self.pack * oh * ow,
                               self.pack * k * k * C).astype(jnp.bfloat16)

    def _fused_cnn(self, lhs0, bp, tb):
        pk, lanes = self.pack, self.lanes
        n_tiles = bp // tb
        n_groups = tb // pk
        rows_img, grid_w = self.rows_img, self.l1_ow
        m = n_groups * rows_img
        kk = self.kernel * self.kernel
        max_off = (self.kernel - 1) * grid_w + (self.kernel - 1)  # largest tap shift
        pad_rows = max_off
        assert pad_rows >= max_off, "shifted slices must stay inside the zeroed pad"
        cf, hf, wf = self.feature_shape
        n_pos = hf * wf
        n_mid = len(self.hid_w_packed) - 1
        k0 = self.w0_packed.shape[0]

        kernel_fn = _build_cnn_kernel(n_groups, rows_img, grid_w, pad_rows, n_pos,
                                      wf, n_mid, self.kernel, lanes)

        in_specs = [pl.BlockSpec((m, k0), lambda i: (i, 0)),
                    pl.BlockSpec(self.w0_packed.shape, lambda i: (0, 0)),
                    pl.BlockSpec(self.b0_packed.shape, lambda i: (0, 0))]
        args = [lhs0, self.w0_packed, self.b0_packed]
        for w, b in zip(self.hid_w_packed, self.hid_b_packed):
            in_specs += [pl.BlockSpec(w.shape, lambda i: (0, 0)),
                         pl.BlockSpec(b.shape, lambda i: (0, 0))]
            args += [w, b]

        flops = n_tiles * (2 * m * k0 * lanes
                           + n_mid * 2 * m * kk * lanes * lanes
                           + 2 * n_groups * n_pos * kk * lanes * lanes)
        bytes_accessed = int(lhs0.size * lhs0.dtype.itemsize
                             + n_tiles * sum(a.size * a.dtype.itemsize
                                             for a in args[1:])
                             + n_tiles * n_groups * n_pos * lanes * 4)

        return pl.pallas_call(
            kernel_fn,
            out_shape=jax.ShapeDtypeStruct((n_tiles * n_groups * n_pos, lanes),
                                           jnp.float32),
            grid=(n_tiles,),
            in_specs=in_specs,
            out_specs=pl.BlockSpec((n_groups * n_pos, lanes), lambda i: (i, 0)),
            scratch_shapes=[pltpu.VMEM((m + pad_rows, lanes), jnp.float32),
                            pltpu.VMEM((m + pad_rows, lanes), jnp.float32),
                            pltpu.VMEM((m, kk * lanes), jnp.bfloat16),
                            pltpu.VMEM((n_groups * n_pos, kk * lanes), jnp.float32)],
            compiler_params=pltpu.CompilerParams(
                dimension_semantics=("parallel",)),
            cost_estimate=pl.CostEstimate(flops=flops, transcendentals=0,
                                          bytes_accessed=bytes_accessed),
        )(*args)

    def _forward_impl(self, obs, pool=True):
        # standardize / normalize branches are no-ops here (None stats in obs_spec)
        x = obs.reshape(-1, *self.obs_shape)               # (B, C, H, W)  NCHW
        b = x.shape[0]
        tb = self.tile_images
        bp = ((b + tb - 1) // tb) * tb                     # pad batch to a tile multiple
        if bp != b:
            x = jnp.pad(x, ((0, bp - b), (0, 0), (0, 0), (0, 0)))
        lhs0 = self._im2col_layer0(x)                      # (Bp/pk*rows, pk*kk*C) bf16
        out = self._fused_cnn(lhs0, bp, tb)                # (Bp/pk*n_pos, pk*Cout) f32
        cf, hf, wf = self.feature_shape
        n_pos = hf * wf
        h = out.reshape(bp // self.pack, n_pos, self.pack, cf)
        h = jnp.transpose(h, (0, 2, 1, 3)).reshape(bp, n_pos, cf)[:b]
        h = h.reshape(b, hf, wf, cf)
        h = jnp.transpose(h, (0, 3, 1, 2))                 # (B,) + feature_shape (NCHW)
        h = h.reshape(b, *self.feature_shape)
        if pool:                                           # pool = nn.Flatten()
            h = h.reshape(b, *self.repr_shape)
        return h

    def __call__(self, obs, pool=True):
        dims = len(self.obs_shape)
        batch_dims = obs.shape[:max(1, len(obs.shape) - dims)]
        h = self._forward(obs, pool=pool)
        return h.reshape(*batch_dims, *h.shape[1:])


# Pure-JAX reference of the same forward (for correctness checking only).
def _reference_forward(obs, enc):
    x = obs.reshape(-1, *enc.obs_shape)
    for (wt, b, stride) in enc.params:
        w_oihw = jnp.transpose(wt, (3, 2, 0, 1))
        x = jax.lax.conv_general_dilated(
            x, w_oihw, (stride, stride), 'VALID',
            dimension_numbers=('NCHW', 'OIHW', 'NCHW'),
            precision=jax.lax.Precision.HIGHEST)
        x = jnp.maximum(x + b.reshape(1, -1, 1, 1), 0.0)
    return x.reshape(x.shape[0], -1)


if __name__ == "__main__":
    key = jax.random.PRNGKey(0)
    k_obs, k_par, k_obs2 = jax.random.split(key, 3)

    obs_shape = (4, 16, 16)                                # (C, H, W)
    encoder = CNNEncoderPallas(obs_shape, key=k_par)

    # Small batch (matches the module's implied shapes); single grid step.
    obs = jax.random.normal(k_obs, (2, *obs_shape), jnp.float32)
    out = jax.block_until_ready(encoder(obs))
    assert out.shape == (2, *encoder.repr_shape), (out.shape, encoder.repr_shape)
    ref = jax.block_until_ready(_reference_forward(obs, encoder))
    err = float(jnp.max(jnp.abs(out - ref)))
    assert jnp.allclose(out, ref, rtol=2e-2, atol=2e-2), f"max abs err = {err}"

    # Larger batch exercising the multi-step "parallel" grid path + batch padding.
    obs2 = jax.random.normal(k_obs2, (40, *obs_shape), jnp.float32)
    out2 = jax.block_until_ready(encoder(obs2))
    assert out2.shape == (40, *encoder.repr_shape)
    ref2 = jax.block_until_ready(_reference_forward(obs2, encoder))
    err2 = float(jnp.max(jnp.abs(out2 - ref2)))
    assert jnp.allclose(out2, ref2, rtol=2e-2, atol=2e-2), f"max abs err = {err2}"

    print("KERNEL_OK")
</pallas_src>

<mosaic_0001>
module attributes {stable_mosaic.version = 11 : i64} {
  func.func @kernel(%arg0: i32, %arg1: memref<392x144xbf16, #tpu.memory_space<vmem>>, %arg2: memref<144x128xbf16, #tpu.memory_space<vmem>>, %arg3: memref<1x128xf32, #tpu.memory_space<vmem>>, %arg4: memref<1152x128xbf16, #tpu.memory_space<vmem>>, %arg5: memref<1x128xf32, #tpu.memory_space<vmem>>, %arg6: memref<1152x128xbf16, #tpu.memory_space<vmem>>, %arg7: memref<1x128xf32, #tpu.memory_space<vmem>>, %arg8: memref<1152x128xbf16, #tpu.memory_space<vmem>>, %arg9: memref<1x128xf32, #tpu.memory_space<vmem>>, %arg10: memref<8x128xf32, #tpu.memory_space<vmem>>, %arg11: memref<408x128xf32, #tpu.memory_space<vmem>>, %arg12: memref<408x128xf32, #tpu.memory_space<vmem>>, %arg13: memref<392x1152xbf16, #tpu.memory_space<vmem>>, %arg14: memref<8x1152xf32, #tpu.memory_space<vmem>>) attributes {dimension_semantics = [#tpu.dimension_semantics<parallel>], iteration_bounds = array<i64: 1>, scalar_prefetch = 0 : i64, scratch_operands = 4 : i64, tpu.core_type = #tpu.core_type<tc>, window_params = [{transform_indices = @transform_0, window_bounds = array<i64: 392, 144>}, {pipeline_mode = #tpu.pipeline_mode<synchronous>, transform_indices = @transform_1, window_bounds = array<i64: 144, 128>}, {pipeline_mode = #tpu.pipeline_mode<synchronous>, transform_indices = @transform_2, window_bounds = array<i64: 1, 128>}, {pipeline_mode = #tpu.pipeline_mode<synchronous>, transform_indices = @transform_3, window_bounds = array<i64: 1152, 128>}, {pipeline_mode = #tpu.pipeline_mode<synchronous>, transform_indices = @transform_4, window_bounds = array<i64: 1, 128>}, {pipeline_mode = #tpu.pipeline_mode<synchronous>, transform_indices = @transform_5, window_bounds = array<i64: 1152, 128>}, {pipeline_mode = #tpu.pipeline_mode<synchronous>, transform_indices = @transform_6, window_bounds = array<i64: 1, 128>}, {pipeline_mode = #tpu.pipeline_mode<synchronous>, transform_indices = @transform_7, window_bounds = array<i64: 1152, 128>}, {pipeline_mode = #tpu.pipeline_mode<synchronous>, transform_indices = @transform_8, window_bounds = array<i64: 1, 128>}, {transform_indices = @transform_9, window_bounds = array<i64: 8, 128>}]} {
    %cst = arith.constant 0.000000e+00 : f32
    %0 = vector.broadcast %cst : f32 to vector<16x128xf32>
    %c392 = arith.constant 392 : index
    %c0 = arith.constant 0 : index
    %1 = vector.load %arg11[%c392, %c0] : memref<408x128xf32, #tpu.memory_space<vmem>>, vector<16x128xf32>
    tpu.vector_store %arg11[%c392, %c0], %0 {strides = array<i32>} : memref<408x128xf32, #tpu.memory_space<vmem>>, vector<16x128xf32>,
    %c392_0 = arith.constant 392 : index
    %c0_1 = arith.constant 0 : index
    %2 = vector.load %arg12[%c392_0, %c0_1] : memref<408x128xf32, #tpu.memory_space<vmem>>, vector<16x128xf32>
    tpu.vector_store %arg12[%c392_0, %c0_1], %0 {strides = array<i32>} : memref<408x128xf32, #tpu.memory_space<vmem>>, vector<16x128xf32>,
    %c0_2 = arith.constant 0 : index
    %c0_3 = arith.constant 0 : index
    %3 = vector.load %arg1[%c0_2, %c0_3] : memref<392x144xbf16, #tpu.memory_space<vmem>>, vector<392x144xbf16>
    %c0_4 = arith.constant 0 : index
    %c0_5 = arith.constant 0 : index
    %4 = vector.load %arg2[%c0_4, %c0_5] : memref<144x128xbf16, #tpu.memory_space<vmem>>, vector<144x128xbf16>
    %cst_6 = arith.constant dense<0.000000e+00> : vector<392x128xf32>
    %5 = tpu.matmul %3, %4, %cst_6 {dimension_numbers = #tpu.dot_dimension_numbers<[1], [0], [0], [1], [0, 0, 1, 1], [], []>} : vector<392x144xbf16>, vector<144x128xbf16>, vector<392x128xf32> -> vector<392x128xf32>
    %c0_7 = arith.constant 0 : index
    %c0_8 = arith.constant 0 : index
    %6 = vector.load %arg3[%c0_7, %c0_8] : memref<1x128xf32, #tpu.memory_space<vmem>>, vector<1x128xf32>
    %7 = vector.broadcast %6 : vector<1x128xf32> to vector<392x128xf32>
    %8 = arith.addf %5, %7 : vector<392x128xf32>
    %cst_9 = arith.constant 0.000000e+00 : f32
    %9 = vector.broadcast %cst_9 : f32 to vector<392x128xf32>
    %10 = arith.maximumf %8, %9 : vector<392x128xf32>
    %c0_10 = arith.constant 0 : index
    %c0_11 = arith.constant 0 : index
    %11 = vector.load %arg11[%c0_10, %c0_11] : memref<408x128xf32, #tpu.memory_space<vmem>>, vector<392x128xf32>
    tpu.vector_store %arg11[%c0_10, %c0_11], %10 {strides = array<i32>} : memref<408x128xf32, #tpu.memory_space<vmem>>, vector<392x128xf32>,
    %c0_12 = arith.constant 0 : index
    %c0_13 = arith.constant 0 : index
    %12 = vector.load %arg11[%c0_12, %c0_13] : memref<408x128xf32, #tpu.memory_space<vmem>>, vector<392x128xf32>
    %13 = arith.truncf %12 : vector<392x128xf32> to vector<392x128xbf16>
    %c0_14 = arith.constant 0 : index
    %c0_15 = arith.constant 0 : index
    %14 = vector.load %arg13[%c0_14, %c0_15] : memref<392x1152xbf16, #tpu.memory_space<vmem>>, vector<392x128xbf16>
    tpu.vector_store %arg13[%c0_14, %c0_15], %13 {strides = array<i32>} : memref<392x1152xbf16, #tpu.memory_space<vmem>>, vector<392x128xbf16>,
    %c1 = arith.constant 1 : index
    %c0_16 = arith.constant 0 : index
    %15 = vector.load %arg11[%c1, %c0_16] : memref<408x128xf32, #tpu.memory_space<vmem>>, vector<392x128xf32>
    %16 = arith.truncf %15 : vector<392x128xf32> to vector<392x128xbf16>
    %c0_17 = arith.constant 0 : index
    %c128 = arith.constant 128 : index
    %17 = vector.load %arg13[%c0_17, %c128] : memref<392x1152xbf16, #tpu.memory_space<vmem>>, vector<392x128xbf16>
    tpu.vector_store %arg13[%c0_17, %c128], %16 {strides = array<i32>} : memref<392x1152xbf16, #tpu.memory_space<vmem>>, vector<392x128xbf16>,
    %c2 = arith.constant 2 : index
    %c0_18 = arith.constant 0 : index
    %18 = vector.load %arg11[%c2, %c0_18] : memref<408x128xf32, #tpu.memory_space<vmem>>, vector<392x128xf32>
    %19 = arith.truncf %18 : vector<392x128xf32> to vector<392x128xbf16>
    %c0_19 = arith.constant 0 : index
    %c256 = arith.constant 256 : index
    %20 = vector.load %arg13[%c0_19, %c256] : memref<392x1152xbf16, #tpu.memory_space<vmem>>, vector<392x128xbf16>
    tpu.vector_store %arg13[%c0_19, %c256], %19 {strides = array<i32>} : memref<392x1152xbf16, #tpu.memory_space<vmem>>, vector<392x128xbf16>,
    %c7 = arith.constant 7 : index
    %c0_20 = arith.constant 0 : index
    %21 = vector.load %arg11[%c7, %c0_20] : memref<408x128xf32, #tpu.memory_space<vmem>>, vector<392x128xf32>
    %22 = arith.truncf %21 : vector<392x128xf32> to vector<392x128xbf16>
    %c0_21 = arith.constant 0 : index
    %c384 = arith.constant 384 : index
    %23 = vector.load %arg13[%c0_21, %c384] : memref<392x1152xbf16, #tpu.memory_space<vmem>>, vector<392x128xbf16>
    tpu.vector_store %arg13[%c0_21, %c384], %22 {strides = array<i32>} : memref<392x1152xbf16, #tpu.memory_space<vmem>>, vector<392x128xbf16>,
    %c8 = arith.constant 8 : index
    %c0_22 = arith.constant 0 : index
    %24 = vector.load %arg11[%c8, %c0_22] : memref<408x128xf32, #tpu.memory_space<vmem>>, vector<392x128xf32>
    %25 = arith.truncf %24 : vector<392x128xf32> to vector<392x128xbf16>
    %c0_23 = arith.constant 0 : index
    %c512 = arith.constant 512 : index
    %26 = vector.load %arg13[%c0_23, %c512] : memref<392x1152xbf16, #tpu.memory_space<vmem>>, vector<392x128xbf16>
    tpu.vector_store %arg13[%c0_23, %c512], %25 {strides = array<i32>} : memref<392x1152xbf16, #tpu.memory_space<vmem>>, vector<392x128xbf16>,
    %c9 = arith.constant 9 : index
    %c0_24 = arith.constant 0 : index
    %27 = vector.load %arg11[%c9, %c0_24] : memref<408x128xf32, #tpu.memory_space<vmem>>, vector<392x128xf32>
    %28 = arith.truncf %27 : vector<392x128xf32> to vector<392x128xbf16>
    %c0_25 = arith.constant 0 : index
    %c640 = arith.constant 640 : index
    %29 = vector.load %arg13[%c0_25, %c640] : memref<392x1152xbf16, #tpu.memory_space<vmem>>, vector<392x128xbf16>
    tpu.vector_store %arg13[%c0_25, %c640], %28 {strides = array<i32>} : memref<392x1152xbf16, #tpu.memory_space<vmem>>, vector<392x128xbf16>,
    %c14 = arith.constant 14 : index
    %c0_26 = arith.constant 0 : index
    %30 = vector.load %arg11[%c14, %c0_26] : memref<408x128xf32, #tpu.memory_space<vmem>>, vector<392x128xf32>
    %31 = arith.truncf %30 : vector<392x128xf32> to vector<392x128xbf16>
    %c0_27 = arith.constant 0 : index
    %c768 = arith.constant 768 : index
    %32 = vector.load %arg13[%c0_27, %c768] : memref<392x1152xbf16, #tpu.memory_space<vmem>>, vector<392x128xbf16>
    tpu.vector_store %arg13[%c0_27, %c768], %31 {strides = array<i32>} : memref<392x1152xbf16, #tpu.memory_space<vmem>>, vector<392x128xbf16>,
    %c15 = arith.constant 15 : index
    %c0_28 = arith.constant 0 : index
    %33 = vector.load %arg11[%c15, %c0_28] : memref<408x128xf32, #tpu.memory_space<vmem>>, vector<392x128xf32>
    %34 = arith.truncf %33 : vector<392x128xf32> to vector<392x128xbf16>
    %c0_29 = arith.constant 0 : index
    %c896 = arith.constant 896 : index
    %35 = vector.load %arg13[%c0_29, %c896] : memref<392x1152xbf16, #tpu.memory_space<vmem>>, vector<392x128xbf16>
    tpu.vector_store %arg13[%c0_29, %c896], %34 {strides = array<i32>} : memref<392x1152xbf16, #tpu.memory_space<vmem>>, vector<392x128xbf16>,
    %c16 = arith.constant 16 : index
    %c0_30 = arith.constant 0 : index
    %36 = vector.load %arg11[%c16, %c0_30] : memref<408x128xf32, #tpu.memory_space<vmem>>, vector<392x128xf32>
    %37 = arith.truncf %36 : vector<392x128xf32> to vector<392x128xbf16>
    %c0_31 = arith.constant 0 : index
    %c1024 = arith.constant 1024 : index
    %38 = vector.load %arg13[%c0_31, %c1024] : memref<392x1152xbf16, #tpu.memory_space<vmem>>, vector<392x128xbf16>
    tpu.vector_store %arg13[%c0_31, %c1024], %37 {strides = array<i32>} : memref<392x1152xbf16, #tpu.memory_space<vmem>>, vector<392x128xbf16>,
    %c0_32 = arith.constant 0 : index
    %c0_33 = arith.constant 0 : index
    %39 = vector.load %arg13[%c0_32, %c0_33] : memref<392x1152xbf16, #tpu.memory_space<vmem>>, vector<392x1152xbf16>
    %c0_34 = arith.constant 0 : index
    %c0_35 = arith.constant 0 : index
    %40 = vector.load %arg4[%c0_34, %c0_35] : memref<1152x128xbf16, #tpu.memory_space<vmem>>, vector<1152x128xbf16>
    %cst_36 = arith.constant dense<0.000000e+00> : vector<392x128xf32>
    %41 = tpu.matmul %39, %40, %cst_36 {dimension_numbers = #tpu.dot_dimension_numbers<[1], [0], [0], [1], [0, 0, 1, 1], [], []>} : vector<392x1152xbf16>, vector<1152x128xbf16>, vector<392x128xf32> -> vector<392x128xf32>
    %c0_37 = arith.constant 0 : index
    %c0_38 = arith.constant 0 : index
    %42 = vector.load %arg5[%c0_37, %c0_38] : memref<1x128xf32, #tpu.memory_space<vmem>>, vector<1x128xf32>
    %43 = vector.broadcast %42 : vector<1x128xf32> to vector<392x128xf32>
    %44 = arith.addf %41, %43 : vector<392x128xf32>
    %cst_39 = arith.constant 0.000000e+00 : f32
    %45 = vector.broadcast %cst_39 : f32 to vector<392x128xf32>
    %46 = arith.maximumf %44, %45 : vector<392x128xf32>
    %c0_40 = arith.constant 0 : index
    %c0_41 = arith.constant 0 : index
    %47 = vector.load %arg12[%c0_40, %c0_41] : memref<408x128xf32, #tpu.memory_space<vmem>>, vector<392x128xf32>
    tpu.vector_store %arg12[%c0_40, %c0_41], %46 {strides = array<i32>} : memref<408x128xf32, #tpu.memory_space<vmem>>, vector<392x128xf32>,
    %c0_42 = arith.constant 0 : index
    %c0_43 = arith.constant 0 : index
    %48 = vector.load %arg12[%c0_42, %c0_43] : memref<408x128xf32, #tpu.memory_space<vmem>>, vector<392x128xf32>
    %49 = arith.truncf %48 : vector<392x128xf32> to vector<392x128xbf16>
    %c0_44 = arith.constant 0 : index
    %c0_45 = arith.constant 0 : index
    %50 = vector.load %arg13[%c0_44, %c0_45] : memref<392x1152xbf16, #tpu.memory_space<vmem>>, vector<392x128xbf16>
    tpu.vector_store %arg13[%c0_44, %c0_45], %49 {strides = array<i32>} : memref<392x1152xbf16, #tpu.memory_space<vmem>>, vector<392x128xbf16>,
    %c1_46 = arith.constant 1 : index
    %c0_47 = arith.constant 0 : index
    %51 = vector.load %arg12[%c1_46, %c0_47] : memref<408x128xf32, #tpu.memory_space<vmem>>, vector<392x128xf32>
    %52 = arith.truncf %51 : vector<392x128xf32> to vector<392x128xbf16>
    %c0_48 = arith.constant 0 : index
    %c128_49 = arith.constant 128 : index
    %53 = vector.load %arg13[%c0_48, %c128_49] : memref<392x1152xbf16, #tpu.memory_space<vmem>>, vector<392x128xbf16>
    tpu.vector_store %arg13[%c0_48, %c128_49], %52 {strides = array<i32>} : memref<392x1152xbf16, #tpu.memory_space<vmem>>, vector<392x128xbf16>,
    %c2_50 = arith.constant 2 : index
    %c0_51 = arith.constant 0 : index
    %54 = vector.load %arg12[%c2_50, %c0_51] : memref<408x128xf32, #tpu.memory_space<vmem>>, vector<392x128xf32>
    %55 = arith.truncf %54 : vector<392x128xf32> to vector<392x128xbf16>
    %c0_52 = arith.constant 0 : index
    %c256_53 = arith.constant 256 : index
    %56 = vector.load %arg13[%c0_52, %c256_53] : memref<392x1152xbf16, #tpu.memory_space<vmem>>, vector<392x128xbf16>
    tpu.vector_store %arg13[%c0_52, %c256_53], %55 {strides = array<i32>} : memref<392x1152xbf16, #tpu.memory_space<vmem>>, vector<392x128xbf16>,
    %c7_54 = arith.constant 7 : index
    %c0_55 = arith.constant 0 : index
    %57 = vector.load %arg12[%c7_54, %c0_55] : memref<408x128xf32, #tpu.memory_space<vmem>>, vector<392x128xf32>
    %58 = arith.truncf %57 : vector<392x128xf32> to vector<392x128xbf16>
    %c0_56 = arith.constant 0 : index
    %c384_57 = arith.constant 384 : index
    %59 = vector.load %arg13[%c0_56, %c384_57] : memref<392x1152xbf16, #tpu.memory_space<vmem>>, vector<392x128xbf16>
    tpu.vector_store %arg13[%c0_56, %c384_57], %58 {strides = array<i32>} : memref<392x1152xbf16, #tpu.memory_space<vmem>>, vector<392x128xbf16>,
    %c8_58 = arith.constant 8 : index
    %c0_59 = arith.constant 0 : index
    %60 = vector.load %arg12[%c8_58, %c0_59] : memref<408x128xf32, #tpu.memory_space<vmem>>, vector<392x128xf32>
    %61 = arith.truncf %60 : vector<392x128xf32> to vector<392x128xbf16>
    %c0_60 = arith.constant 0 : index
    %c512_61 = arith.constant 512 : index
    %62 = vector.load %arg13[%c0_60, %c512_61] : memref<392x1152xbf16, #tpu.memory_space<vmem>>, vector<392x128xbf16>
    tpu.vector_store %arg13[%c0_60, %c512_61], %61 {strides = array<i32>} : memref<392x1152xbf16, #tpu.memory_space<vmem>>, vector<392x128xbf16>,
    %c9_62 = arith.constant 9 : index
    %c0_63 = arith.constant 0 : index
    %63 = vector.load %arg12[%c9_62, %c0_63] : memref<408x128xf32, #tpu.memory_space<vmem>>, vector<392x128xf32>
    %64 = arith.truncf %63 : vector<392x128xf32> to vector<392x128xbf16>
    %c0_64 = arith.constant 0 : index
    %c640_65 = arith.constant 640 : index
    %65 = vector.load %arg13[%c0_64, %c640_65] : memref<392x1152xbf16, #tpu.memory_space<vmem>>, vector<392x128xbf16>
    tpu.vector_store %arg13[%c0_64, %c640_65], %64 {strides = array<i32>} : memref<392x1152xbf16, #tpu.memory_space<vmem>>, vector<392x128xbf16>,
    %c14_66 = arith.constant 14 : index
    %c0_67 = arith.constant 0 : index
    %66 = vector.load %arg12[%c14_66, %c0_67] : memref<408x128xf32, #tpu.memory_space<vmem>>, vector<392x128xf32>
    %67 = arith.truncf %66 : vector<392x128xf32> to vector<392x128xbf16>
    %c0_68 = arith.constant 0 : index
    %c768_69 = arith.constant 768 : index
    %68 = vector.load %arg13[%c0_68, %c768_69] : memref<392x1152xbf16, #tpu.memory_space<vmem>>, vector<392x128xbf16>
    tpu.vector_store %arg13[%c0_68, %c768_69], %67 {strides = array<i32>} : memref<392x1152xbf16, #tpu.memory_space<vmem>>, vector<392x128xbf16>,
    %c15_70 = arith.constant 15 : index
    %c0_71 = arith.constant 0 : index
    %69 = vector.load %arg12[%c15_70, %c0_71] : memref<408x128xf32, #tpu.memory_space<vmem>>, vector<392x128xf32>
    %70 = arith.truncf %69 : vector<392x128xf32> to vector<392x128xbf16>
    %c0_72 = arith.constant 0 : index
    %c896_73 = arith.constant 896 : index
    %71 = vector.load %arg13[%c0_72, %c896_73] : memref<392x1152xbf16, #tpu.memory_space<vmem>>, vector<392x128xbf16>
    tpu.vector_store %arg13[%c0_72, %c896_73], %70 {strides = array<i32>} : memref<392x1152xbf16, #tpu.memory_space<vmem>>, vector<392x128xbf16>,
    %c16_74 = arith.constant 16 : index
    %c0_75 = arith.constant 0 : index
    %72 = vector.load %arg12[%c16_74, %c0_75] : memref<408x128xf32, #tpu.memory_space<vmem>>, vector<392x128xf32>
    %73 = arith.truncf %72 : vector<392x128xf32> to vector<392x128xbf16>
    %c0_76 = arith.constant 0 : index
    %c1024_77 = arith.constant 1024 : index
    %74 = vector.load %arg13[%c0_76, %c1024_77] : memref<392x1152xbf16, #tpu.memory_space<vmem>>, vector<392x128xbf16>
    tpu.vector_store %arg13[%c0_76, %c1024_77], %73 {strides = array<i32>} : memref<392x1152xbf16, #tpu.memory_space<vmem>>, vector<392x128xbf16>,
    %c0_78 = arith.constant 0 : index
    %c0_79 = arith.constant 0 : index
    %75 = vector.load %arg13[%c0_78, %c0_79] : memref<392x1152xbf16, #tpu.memory_space<vmem>>, vector<392x1152xbf16>
    %c0_80 = arith.constant 0 : index
    %c0_81 = arith.constant 0 : index
    %76 = vector.load %arg6[%c0_80, %c0_81] : memref<1152x128xbf16, #tpu.memory_space<vmem>>, vector<1152x128xbf16>
    %cst_82 = arith.constant dense<0.000000e+00> : vector<392x128xf32>
    %77 = tpu.matmul %75, %76, %cst_82 {dimension_numbers = #tpu.dot_dimension_numbers<[1], [0], [0], [1], [0, 0, 1, 1], [], []>} : vector<392x1152xbf16>, vector<1152x128xbf16>, vector<392x128xf32> -> vector<392x128xf32>
    %c0_83 = arith.constant 0 : index
    %c0_84 = arith.constant 0 : index
    %78 = vector.load %arg7[%c0_83, %c0_84] : memref<1x128xf32, #tpu.memory_space<vmem>>, vector<1x128xf32>
    %79 = vector.broadcast %78 : vector<1x128xf32> to vector<392x128xf32>
    %80 = arith.addf %77, %79 : vector<392x128xf32>
    %cst_85 = arith.constant 0.000000e+00 : f32
    %81 = vector.broadcast %cst_85 : f32 to vector<392x128xf32>
    %82 = arith.maximumf %80, %81 : vector<392x128xf32>
    %c0_86 = arith.constant 0 : index
    %c0_87 = arith.constant 0 : index
    %83 = vector.load %arg11[%c0_86, %c0_87] : memref<408x128xf32, #tpu.memory_space<vmem>>, vector<392x128xf32>
    tpu.vector_store %arg11[%c0_86, %c0_87], %82 {strides = array<i32>} : memref<408x128xf32, #tpu.memory_space<vmem>>, vector<392x128xf32>,
    %c0_88 = arith.constant 0 : index
    %c0_89 = arith.constant 0 : index
    %84 = vector.load %arg11[%c0_88, %c0_89] : memref<408x128xf32, #tpu.memory_space<vmem>>, vector<1x128xf32>
    %c0_90 = arith.constant 0 : index
    %c0_91 = arith.constant 0 : index
    %85 = vector.load %arg14[%c0_90, %c0_91] : memref<8x1152xf32, #tpu.memory_space<vmem>>, vector<1x128xf32>
    tpu.vector_store %arg14[%c0_90, %c0_91], %84 {strides = array<i32>} : memref<8x1152xf32, #tpu.memory_space<vmem>>, vector<1x128xf32>,
    %c1_92 = arith.constant 1 : index
    %c0_93 = arith.constant 0 : index
    %86 = vector.load %arg11[%c1_92, %c0_93] : memref<408x128xf32, #tpu.memory_space<vmem>>, vector<1x128xf32>
    %c0_94 = arith.constant 0 : index
    %c128_95 = arith.constant 128 : index
    %87 = vector.load %arg14[%c0_94, %c128_95] : memref<8x1152xf32, #tpu.memory_space<vmem>>, vector<1x128xf32>
    tpu.vector_store %arg14[%c0_94, %c128_95], %86 {strides = array<i32>} : memref<8x1152xf32, #tpu.memory_space<vmem>>, vector<1x128xf32>,
    %c2_96 = arith.constant 2 : index
    %c0_97 = arith.constant 0 : index
    %88 = vector.load %arg11[%c2_96, %c0_97] : memref<408x128xf32, #tpu.memory_space<vmem>>, vector<1x128xf32>
    %c0_98 = arith.constant 0 : index
    %c256_99 = arith.constant 256 : index
    %89 = vector.load %arg14[%c0_98, %c256_99] : memref<8x1152xf32, #tpu.memory_space<vmem>>, vector<1x128xf32>
    tpu.vector_store %arg14[%c0_98, %c256_99], %88 {strides = array<i32>} : memref<8x1152xf32, #tpu.memory_space<vmem>>, vector<1x128xf32>,
    %c7_100 = arith.constant 7 : index
    %c0_101 = arith.constant 0 : index
    %90 = vector.load %arg11[%c7_100, %c0_101] : memref<408x128xf32, #tpu.memory_space<vmem>>, vector<1x128xf32>
    %c0_102 = arith.constant 0 : index
    %c384_103 = arith.constant 384 : index
    %91 = vector.load %arg14[%c0_102, %c384_103] : memref<8x1152xf32, #tpu.memory_space<vmem>>, vector<1x128xf32>
    tpu.vector_store %arg14[%c0_102, %c384_103], %90 {strides = array<i32>} : memref<8x1152xf32, #tpu.memory_space<vmem>>, vector<1x128xf32>,
    %c8_104 = arith.constant 8 : index
    %c0_105 = arith.constant 0 : index
    %92 = vector.load %arg11[%c8_104, %c0_105] : memref<408x128xf32, #tpu.memory_space<vmem>>, vector<1x128xf32>
    %c0_106 = arith.constant 0 : index
    %c512_107 = arith.constant 512 : index
    %93 = vector.load %arg14[%c0_106, %c512_107] : memref<8x1152xf32, #tpu.memory_space<vmem>>, vector<1x128xf32>
    tpu.vector_store %arg14[%c0_106, %c512_107], %92 {strides = array<i32>} : memref<8x1152xf32, #tpu.memory_space<vmem>>, vector<1x128xf32>,
    %c9_108 = arith.constant 9 : index
    %c0_109 = arith.constant 0 : index
    %94 = vector.load %arg11[%c9_108, %c0_109] : memref<408x128xf32, #tpu.memory_space<vmem>>, vector<1x128xf32>
    %c0_110 = arith.constant 0 : index
    %c640_111 = arith.constant 640 : index
    %95 = vector.load %arg14[%c0_110, %c640_111] : memref<8x1152xf32, #tpu.memory_space<vmem>>, vector<1x128xf32>
    tpu.vector_store %arg14[%c0_110, %c640_111], %94 {strides = array<i32>} : memref<8x1152xf32, #tpu.memory_space<vmem>>, vector<1x128xf32>,
    %c14_112 = arith.constant 14 : index
    %c0_113 = arith.constant 0 : index
    %96 = vector.load %arg11[%c14_112, %c0_113] : memref<408x128xf32, #tpu.memory_space<vmem>>, vector<1x128xf32>
    %c0_114 = arith.constant 0 : index
    %c768_115 = arith.constant 768 : index
    %97 = vector.load %arg14[%c0_114, %c768_115] : memref<8x1152xf32, #tpu.memory_space<vmem>>, vector<1x128xf32>
    tpu.vector_store %arg14[%c0_114, %c768_115], %96 {strides = array<i32>} : memref<8x1152xf32, #tpu.memory_space<vmem>>, vector<1x128xf32>,
    %c15_116 = arith.constant 15 : index
    %c0_117 = arith.constant 0 : index
    %98 = vector.load %arg11[%c15_116, %c0_117] : memref<408x128xf32, #tpu.memory_space<vmem>>, vector<1x128xf32>
    %c0_118 = arith.constant 0 : index
    %c896_119 = arith.constant 896 : index
    %99 = vector.load %arg14[%c0_118, %c896_119] : memref<8x1152xf32, #tpu.memory_space<vmem>>, vector<1x128xf32>
    tpu.vector_store %arg14[%c0_118, %c896_119], %98 {strides = array<i32>} : memref<8x1152xf32, #tpu.memory_space<vmem>>, vector<1x128xf32>,
    %c16_120 = arith.constant 16 : index
    %c0_121 = arith.constant 0 : index
    %100 = vector.load %arg11[%c16_120, %c0_121] : memref<408x128xf32, #tpu.memory_space<vmem>>, vector<1x128xf32>
    %c0_122 = arith.constant 0 : index
    %c1024_123 = arith.constant 1024 : index
    %101 = vector.load %arg14[%c0_122, %c1024_123] : memref<8x1152xf32, #tpu.memory_space<vmem>>, vector<1x128xf32>
    tpu.vector_store %arg14[%c0_122, %c1024_123], %100 {strides = array<i32>} : memref<8x1152xf32, #tpu.memory_space<vmem>>, vector<1x128xf32>,
    %c49 = arith.constant 49 : index
    %c0_124 = arith.constant 0 : index
    %102 = vector.load %arg11[%c49, %c0_124] : memref<408x128xf32, #tpu.memory_space<vmem>>, vector<1x128xf32>
    %c1_125 = arith.constant 1 : index
    %c0_126 = arith.constant 0 : index
    %103 = vector.load %arg14[%c1_125, %c0_126] : memref<8x1152xf32, #tpu.memory_space<vmem>>, vector<1x128xf32>
    tpu.vector_store %arg14[%c1_125, %c0_126], %102 {strides = array<i32>} : memref<8x1152xf32, #tpu.memory_space<vmem>>, vector<1x128xf32>,
    %c50 = arith.constant 50 : index
    %c0_127 = arith.constant 0 : index
    %104 = vector.load %arg11[%c50, %c0_127] : memref<408x128xf32, #tpu.memory_space<vmem>>, vector<1x128xf32>
    %c1_128 = arith.constant 1 : index
    %c128_129 = arith.constant 128 : index
    %105 = vector.load %arg14[%c1_128, %c128_129] : memref<8x1152xf32, #tpu.memory_space<vmem>>, vector<1x128xf32>
    tpu.vector_store %arg14[%c1_128, %c128_129], %104 {strides = array<i32>} : memref<8x1152xf32, #tpu.memory_space<vmem>>, vector<1x128xf32>,
    %c51 = arith.constant 51 : index
    %c0_130 = arith.constant 0 : index
    %106 = vector.load %arg11[%c51, %c0_130] : memref<408x128xf32, #tpu.memory_space<vmem>>, vector<1x128xf32>
    %c1_131 = arith.constant 1 : index
    %c256_132 = arith.constant 256 : index
    %107 = vector.load %arg14[%c1_131, %c256_132] : memref<8x1152xf32, #tpu.memory_space<vmem>>, vector<1x128xf32>
    tpu.vector_store %arg14[%c1_131, %c256_132], %106 {strides = array<i32>} : memref<8x1152xf32, #tpu.memory_space<vmem>>, vector<1x128xf32>,
    %c56 = arith.constant 56 : index
    %c0_133 = arith.constant 0 : index
    %108 = vector.load %arg11[%c56, %c0_133] : memref<408x128xf32, #tpu.memory_space<vmem>>, vector<1x128xf32>
    %c1_134 = arith.constant 1 : index
    %c384_135 = arith.constant 384 : index
    %109 = vector.load %arg14[%c1_134, %c384_135] : memref<8x1152xf32, #tpu.memory_space<vmem>>, vector<1x128xf32>
    tpu.vector_store %arg14[%c1_134, %c384_135], %108 {strides = array<i32>} : memref<8x1152xf32, #tpu.memory_space<vmem>>, vector<1x128xf32>,
    %c57 = arith.constant 57 : index
    %c0_136 = arith.constant 0 : index
    %110 = vector.load %arg11[%c57, %c0_136] : memref<408x128xf32, #tpu.memory_space<vmem>>, vector<1x128xf32>
    %c1_137 = arith.constant 1 : index
    %c512_138 = arith.constant 512 : index
    %111 = vector.load %arg14[%c1_137, %c512_138] : memref<8x1152xf32, #tpu.memory_space<vmem>>, vector<1x128xf32>
    tpu.vector_store %arg14[%c1_137, %c512_138], %110 {strides = array<i32>} : memref<8x1152xf32, #tpu.memory_space<vmem>>, vector<1x128xf32>,
    %c58 = arith.constant 58 : index
    %c0_139 = arith.constant 0 : index
    %112 = vector.load %arg11[%c58, %c0_139] : memref<408x128xf32, #tpu.memory_space<vmem>>, vector<1x128xf32>
    %c1_140 = arith.constant 1 : index
    %c640_141 = arith.constant 640 : index
    %113 = vector.load %arg14[%c1_140, %c640_141] : memref<8x1152xf32, #tpu.memory_space<vmem>>, vector<1x128xf32>
    tpu.vector_store %arg14[%c1_140, %c640_141], %112 {strides = array<i32>} : memref<8x1152xf32, #tpu.memory_space<vmem>>, vector<1x128xf32>,
    %c63 = arith.constant 63 : index
    %c0_142 = arith.constant 0 : index
    %114 = vector.load %arg11[%c63, %c0_142] : memref<408x128xf32, #tpu.memory_space<vmem>>, vector<1x128xf32>
    %c1_143 = arith.constant 1 : index
    %c768_144 = arith.constant 768 : index
    %115 = vector.load %arg14[%c1_143, %c768_144] : memref<8x1152xf32, #tpu.memory_space<vmem>>, vector<1x128xf32>
    tpu.vector_store %arg14[%c1_143, %c768_144], %114 {strides = array<i32>} : memref<8x1152xf32, #tpu.memory_space<vmem>>, vector<1x128xf32>,
    %c64 = arith.constant 64 : index
    %c0_145 = arith.constant 0 : index
    %116 = vector.load %arg11[%c64, %c0_145] : memref<408x128xf32, #tpu.memory_space<vmem>>, vector<1x128xf32>
    %c1_146 = arith.constant 1 : index
    %c896_147 = arith.constant 896 : index
    %117 = vector.load %arg14[%c1_146, %c896_147] : memref<8x1152xf32, #tpu.memory_space<vmem>>, vector<1x128xf32>
    tpu.vector_store %arg14[%c1_146, %c896_147], %116 {strides = array<i32>} : memref<8x1152xf32, #tpu.memory_space<vmem>>, vector<1x128xf32>,
    %c65 = arith.constant 65 : index
    %c0_148 = arith.constant 0 : index
    %118 = vector.load %arg11[%c65, %c0_148] : memref<408x128xf32, #tpu.memory_space<vmem>>, vector<1x128xf32>
    %c1_149 = arith.constant 1 : index
    %c1024_150 = arith.constant 1024 : index
    %119 = vector.load %arg14[%c1_149, %c1024_150] : memref<8x1152xf32, #tpu.memory_space<vmem>>, vector<1x128xf32>
    tpu.vector_store %arg14[%c1_149, %c1024_150], %118 {strides = array<i32>} : memref<8x1152xf32, #tpu.memory_space<vmem>>, vector<1x128xf32>,
    %c98 = arith.constant 98 : index
    %c0_151 = arith.constant 0 : index
    %120 = vector.load %arg11[%c98, %c0_151] : memref<408x128xf32, #tpu.memory_space<vmem>>, vector<1x128xf32>
    %c2_152 = arith.constant 2 : index
    %c0_153 = arith.constant 0 : index
    %121 = vector.load %arg14[%c2_152, %c0_153] : memref<8x1152xf32, #tpu.memory_space<vmem>>, vector<1x128xf32>
    tpu.vector_store %arg14[%c2_152, %c0_153], %120 {strides = array<i32>} : memref<8x1152xf32, #tpu.memory_space<vmem>>, vector<1x128xf32>,
    %c99 = arith.constant 99 : index
    %c0_154 = arith.constant 0 : index
    %122 = vector.load %arg11[%c99, %c0_154] : memref<408x128xf32, #tpu.memory_space<vmem>>, vector<1x128xf32>
    %c2_155 = arith.constant 2 : index
    %c128_156 = arith.constant 128 : index
    %123 = vector.load %arg14[%c2_155, %c128_156] : memref<8x1152xf32, #tpu.memory_space<vmem>>, vector<1x128xf32>
    tpu.vector_store %arg14[%c2_155, %c128_156], %122 {strides = array<i32>} : memref<8x1152xf32, #tpu.memory_space<vmem>>, vector<1x128xf32>,
    %c100 = arith.constant 100 : index
    %c0_157 = arith.constant 0 : index
    %124 = vector.load %arg11[%c100, %c0_157] : memref<408x128xf32, #tpu.memory_space<vmem>>, vector<1x128xf32>
    %c2_158 = arith.constant 2 : index
    %c256_159 = arith.constant 256 : index
    %125 = vector.load %arg14[%c2_158, %c256_159] : memref<8x1152xf32, #tpu.memory_space<vmem>>, vector<1x128xf32>
    tpu.vector_store %arg14[%c2_158, %c256_159], %124 {strides = array<i32>} : memref<8x1152xf32, #tpu.memory_space<vmem>>, vector<1x128xf32>,
    %c105 = arith.constant 105 : index
    %c0_160 = arith.constant 0 : index
    %126 = vector.load %arg11[%c105, %c0_160] : memref<408x128xf32, #tpu.memory_space<vmem>>, vector<1x128xf32>
    %c2_161 = arith.constant 2 : index
    %c384_162 = arith.constant 384 : index
    %127 = vector.load %arg14[%c2_161, %c384_162] : memref<8x1152xf32, #tpu.memory_space<vmem>>, vector<1x128xf32>
    tpu.vector_store %arg14[%c2_161, %c384_162], %126 {strides = array<i32>} : memref<8x1152xf32, #tpu.memory_space<vmem>>, vector<1x128xf32>,
    %c106 = arith.constant 106 : index
    %c0_163 = arith.constant 0 : index
    %128 = vector.load %arg11[%c106, %c0_163] : memref<408x128xf32, #tpu.memory_space<vmem>>, vector<1x128xf32>
    %c2_164 = arith.constant 2 : index
    %c512_165 = arith.constant 512 : index
    %129 = vector.load %arg14[%c2_164, %c512_165] : memref<8x1152xf32, #tpu.memory_space<vmem>>, vector<1x128xf32>
    tpu.vector_store %arg14[%c2_164, %c512_165], %128 {strides = array<i32>} : memref<8x1152xf32, #tpu.memory_space<vmem>>, vector<1x128xf32>,
    %c107 = arith.constant 107 : index
    %c0_166 = arith.constant 0 : index
    %130 = vector.load %arg11[%c107, %c0_166] : memref<408x128xf32, #tpu.memory_space<vmem>>, vector<1x128xf32>
    %c2_167 = arith.constant 2 : index
    %c640_168 = arith.constant 640 : index
    %131 = vector.load %arg14[%c2_167, %c640_168] : memref<8x1152xf32, #tpu.memory_space<vmem>>, vector<1x128xf32>
    tpu.vector_store %arg14[%c2_167, %c640_168], %130 {strides = array<i32>} : memref<8x1152xf32, #tpu.memory_space<vmem>>, vector<1x128xf32>,
    %c112 = arith.constant 112 : index
    %c0_169 = arith.constant 0 : index
    %132 = vector.load %arg11[%c112, %c0_169] : memref<408x128xf32, #tpu.memory_space<vmem>>, vector<1x128xf32>
    %c2_170 = arith.constant 2 : index
    %c768_171 = arith.constant 768 : index
    %133 = vector.load %arg14[%c2_170, %c768_171] : memref<8x1152xf32, #tpu.memory_space<vmem>>, vector<1x128xf32>
    tpu.vector_store %arg14[%c2_170, %c768_171], %132 {strides = array<i32>} : memref<8x1152xf32, #tpu.memory_space<vmem>>, vector<1x128xf32>,
    %c113 = arith.constant 113 : index
    %c0_172 = arith.constant 0 : index
    %134 = vector.load %arg11[%c113, %c0_172] : memref<408x128xf32, #tpu.memory_space<vmem>>, vector<1x128xf32>
    %c2_173 = arith.constant 2 : index
    %c896_174 = arith.constant 896 : index
    %135 = vector.load %arg14[%c2_173, %c896_174] : memref<8x1152xf32, #tpu.memory_space<vmem>>, vector<1x128xf32>
    tpu.vector_store %arg14[%c2_173, %c896_174], %134 {strides = array<i32>} : memref<8x1152xf32, #tpu.memory_space<vmem>>, vector<1x128xf32>,
    %c114 = arith.constant 114 : index
    %c0_175 = arith.constant 0 : index
    %136 = vector.load %arg11[%c114, %c0_175] : memref<408x128xf32, #tpu.memory_space<vmem>>, vector<1x128xf32>
    %c2_176 = arith.constant 2 : index
    %c1024_177 = arith.constant 1024 : index
    %137 = vector.load %arg14[%c2_176, %c1024_177] : memref<8x1152xf32, #tpu.memory_space<vmem>>, vector<1x128xf32>
    tpu.vector_store %arg14[%c2_176, %c1024_177], %136 {strides = array<i32>} : memref<8x1152xf32, #tpu.memory_space<vmem>>, vector<1x128xf32>,
    %c147 = arith.constant 147 : index
    %c0_178 = arith.constant 0 : index
    %138 = vector.load %arg11[%c147, %c0_178] : memref<408x128xf32, #tpu.memory_space<vmem>>, vector<1x128xf32>
    %c3 = arith.constant 3 : index
    %c0_179 = arith.constant 0 : index
    %139 = vector.load %arg14[%c3, %c0_179] : memref<8x1152xf32, #tpu.memory_space<vmem>>, vector<1x128xf32>
    tpu.vector_store %arg14[%c3, %c0_179], %138 {strides = array<i32>} : memref<8x1152xf32, #tpu.memory_space<vmem>>, vector<1x128xf32>,
    %c148 = arith.constant 148 : index
    %c0_180 = arith.constant 0 : index
    %140 = vector.load %arg11[%c148, %c0_180] : memref<408x128xf32, #tpu.memory_space<vmem>>, vector<1x128xf32>
    %c3_181 = arith.constant 3 : index
    %c128_182 = arith.constant 128 : index
    %141 = vector.load %arg14[%c3_181, %c128_182] : memref<8x1152xf32, #tpu.memory_space<vmem>>, vector<1x128xf32>
    tpu.vector_store %arg14[%c3_181, %c128_182], %140 {strides = array<i32>} : memref<8x1152xf32, #tpu.memory_space<vmem>>, vector<1x128xf32>,
    %c149 = arith.constant 149 : index
    %c0_183 = arith.constant 0 : index
    %142 = vector.load %arg11[%c149, %c0_183] : memref<408x128xf32, #tpu.memory_space<vmem>>, vector<1x128xf32>
    %c3_184 = arith.constant 3 : index
    %c256_185 = arith.constant 256 : index
    %143 = vector.load %arg14[%c3_184, %c256_185] : memref<8x1152xf32, #tpu.memory_space<vmem>>, vector<1x128xf32>
    tpu.vector_store %arg14[%c3_184, %c256_185], %142 {strides = array<i32>} : memref<8x1152xf32, #tpu.memory_space<vmem>>, vector<1x128xf32>,
    %c154 = arith.constant 154 : index
    %c0_186 = arith.constant 0 : index
    %144 = vector.load %arg11[%c154, %c0_186] : memref<408x128xf32, #tpu.memory_space<vmem>>, vector<1x128xf32>
    %c3_187 = arith.constant 3 : index
    %c384_188 = arith.constant 384 : index
    %145 = vector.load %arg14[%c3_187, %c384_188] : memref<8x1152xf32, #tpu.memory_space<vmem>>, vector<1x128xf32>
    tpu.vector_store %arg14[%c3_187, %c384_188], %144 {strides = array<i32>} : memref<8x1152xf32, #tpu.memory_space<vmem>>, vector<1x128xf32>,
    %c155 = arith.constant 155 : index
    %c0_189 = arith.constant 0 : index
    %146 = vector.load %arg11[%c155, %c0_189] : memref<408x128xf32, #tpu.memory_space<vmem>>, vector<1x128xf32>
    %c3_190 = arith.constant 3 : index
    %c512_191 = arith.constant 512 : index
    %147 = vector.load %arg14[%c3_190, %c512_191] : memref<8x1152xf32, #tpu.memory_space<vmem>>, vector<1x128xf32>
    tpu.vector_store %arg14[%c3_190, %c512_191], %146 {strides = array<i32>} : memref<8x1152xf32, #tpu.memory_space<vmem>>, vector<1x128xf32>,
    %c156 = arith.constant 156 : index
    %c0_192 = arith.constant 0 : index
    %148 = vector.load %arg11[%c156, %c0_192] : memref<408x128xf32, #tpu.memory_space<vmem>>, vector<1x128xf32>
    %c3_193 = arith.constant 3 : index
    %c640_194 = arith.constant 640 : index
    %149 = vector.load %arg14[%c3_193, %c640_194] : memref<8x1152xf32, #tpu.memory_space<vmem>>, vector<1x128xf32>
    tpu.vector_store %arg14[%c3_193, %c640_194], %148 {strides = array<i32>} : memref<8x1152xf32, #tpu.memory_space<vmem>>, vector<1x128xf32>,
    %c161 = arith.constant 161 : index
    %c0_195 = arith.constant 0 : index
    %150 = vector.load %arg11[%c161, %c0_195] : memref<408x128xf32, #tpu.memory_space<vmem>>, vector<1x128xf32>
    %c3_196 = arith.constant 3 : index
    %c768_197 = arith.constant 768 : index
    %151 = vector.load %arg14[%c3_196, %c768_197] : memref<8x1152xf32, #tpu.memory_space<vmem>>, vector<1x128xf32>
    tpu.vector_store %arg14[%c3_196, %c768_197], %150 {strides = array<i32>} : memref<8x1152xf32, #tpu.memory_space<vmem>>, vector<1x128xf32>,
    %c162 = arith.constant 162 : index
    %c0_198 = arith.constant 0 : index
    %152 = vector.load %arg11[%c162, %c0_198] : memref<408x128xf32, #tpu.memory_space<vmem>>, vector<1x128xf32>
    %c3_199 = arith.constant 3 : index
    %c896_200 = arith.constant 896 : index
    %153 = vector.load %arg14[%c3_199, %c896_200] : memref<8x1152xf32, #tpu.memory_space<vmem>>, vector<1x128xf32>
    tpu.vector_store %arg14[%c3_199, %c896_200], %152 {strides = array<i32>} : memref<8x1152xf32, #tpu.memory_space<vmem>>, vector<1x128xf32>,
    %c163 = arith.constant 163 : index
    %c0_201 = arith.constant 0 : index
    %154 = vector.load %arg11[%c163, %c0_201] : memref<408x128xf32, #tpu.memory_space<vmem>>, vector<1x128xf32>
    %c3_202 = arith.constant 3 : index
    %c1024_203 = arith.constant 1024 : index
    %155 = vector.load %arg14[%c3_202, %c1024_203] : memref<8x1152xf32, #tpu.memory_space<vmem>>, vector<1x128xf32>
    tpu.vector_store %arg14[%c3_202, %c1024_203], %154 {strides = array<i32>} : memref<8x1152xf32, #tpu.memory_space<vmem>>, vector<1x128xf32>,
    %c196 = arith.constant 196 : index
    %c0_204 = arith.constant 0 : index
    %156 = vector.load %arg11[%c196, %c0_204] : memref<408x128xf32, #tpu.memory_space<vmem>>, vector<1x128xf32>
    %c4 = arith.constant 4 : index
    %c0_205 = arith.constant 0 : index
    %157 = vector.load %arg14[%c4, %c0_205] : memref<8x1152xf32, #tpu.memory_space<vmem>>, vector<1x128xf32>
    tpu.vector_store %arg14[%c4, %c0_205], %156 {strides = array<i32>} : memref<8x1152xf32, #tpu.memory_space<vmem>>, vector<1x128xf32>,
    %c197 = arith.constant 197 : index
    %c0_206 = arith.constant 0 : index
    %158 = vector.load %arg11[%c197, %c0_206] : memref<408x128xf32, #tpu.memory_space<vmem>>, vector<1x128xf32>
    %c4_207 = arith.constant 4 : index
    %c128_208 = arith.constant 128 : index
    %159 = vector.load %arg14[%c4_207, %c128_208] : memref<8x1152xf32, #tpu.memory_space<vmem>>, vector<1x128xf32>
    tpu.vector_store %arg14[%c4_207, %c128_208], %158 {strides = array<i32>} : memref<8x1152xf32, #tpu.memory_space<vmem>>, vector<1x128xf32>,
    %c198 = arith.constant 198 : index
    %c0_209 = arith.constant 0 : index
    %160 = vector.load %arg11[%c198, %c0_209] : memref<408x128xf32, #tpu.memory_space<vmem>>, vector<1x128xf32>
    %c4_210 = arith.constant 4 : index
    %c256_211 = arith.constant 256 : index
    %161 = vector.load %arg14[%c4_210, %c256_211] : memref<8x1152xf32, #tpu.memory_space<vmem>>, vector<1x128xf32>
    tpu.vector_store %arg14[%c4_210, %c256_211], %160 {strides = array<i32>} : memref<8x1152xf32, #tpu.memory_space<vmem>>, vector<1x128xf32>,
    %c203 = arith.constant 203 : index
    %c0_212 = arith.constant 0 : index
    %162 = vector.load %arg11[%c203, %c0_212] : memref<408x128xf32, #tpu.memory_space<vmem>>, vector<1x128xf32>
    %c4_213 = arith.constant 4 : index
    %c384_214 = arith.constant 384 : index
    %163 = vector.load %arg14[%c4_213, %c384_214] : memref<8x1152xf32, #tpu.memory_space<vmem>>, vector<1x128xf32>
    tpu.vector_store %arg14[%c4_213, %c384_214], %162 {strides = array<i32>} : memref<8x1152xf32, #tpu.memory_space<vmem>>, vector<1x128xf32>,
    %c204 = arith.constant 204 : index
    %c0_215 = arith.constant 0 : index
    %164 = vector.load %arg11[%c204, %c0_215] : memref<408x128xf32, #tpu.memory_space<vmem>>, vector<1x128xf32>
    %c4_216 = arith.constant 4 : index
    %c512_217 = arith.constant 512 : index
    %165 = vector.load %arg14[%c4_216, %c512_217] : memref<8x1152xf32, #tpu.memory_space<vmem>>, vector<1x128xf32>
    tpu.vector_store %arg14[%c4_216, %c512_217], %164 {strides = array<i32>} : memref<8x1152xf32, #tpu.memory_space<vmem>>, vector<1x128xf32>,
    %c205 = arith.constant 205 : index
    %c0_218 = arith.constant 0 : index
    %166 = vector.load %arg11[%c205, %c0_218] : memref<408x128xf32, #tpu.memory_space<vmem>>, vector<1x128xf32>
    %c4_219 = arith.constant 4 : index
    %c640_220 = arith.constant 640 : index
    %167 = vector.load %arg14[%c4_219, %c640_220] : memref<8x1152xf32, #tpu.memory_space<vmem>>, vector<1x128xf32>
    tpu.vector_store %arg14[%c4_219, %c640_220], %166 {strides = array<i32>} : memref<8x1152xf32, #tpu.memory_space<vmem>>, vector<1x128xf32>,
    %c210 = arith.constant 210 : index
    %c0_221 = arith.constant 0 : index
    %168 = vector.load %arg11[%c210, %c0_221] : memref<408x128xf32, #tpu.memory_space<vmem>>, vector<1x128xf32>
    %c4_222 = arith.constant 4 : index
    %c768_223 = arith.constant 768 : index
    %169 = vector.load %arg14[%c4_222, %c768_223] : memref<8x1152xf32, #tpu.memory_space<vmem>>, vector<1x128xf32>
    tpu.vector_store %arg14[%c4_222, %c768_223], %168 {strides = array<i32>} : memref<8x1152xf32, #tpu.memory_space<vmem>>, vector<1x128xf32>,
    %c211 = arith.constant 211 : index
    %c0_224 = arith.constant 0 : index
    %170 = vector.load %arg11[%c211, %c0_224] : memref<408x128xf32, #tpu.memory_space<vmem>>, vector<1x128xf32>
    %c4_225 = arith.constant 4 : index
    %c896_226 = arith.constant 896 : index
    %171 = vector.load %arg14[%c4_225, %c896_226] : memref<8x1152xf32, #tpu.memory_space<vmem>>, vector<1x128xf32>
    tpu.vector_store %arg14[%c4_225, %c896_226], %170 {strides = array<i32>} : memref<8x1152xf32, #tpu.memory_space<vmem>>, vector<1x128xf32>,
    %c212 = arith.constant 212 : index
    %c0_227 = arith.constant 0 : index
    %172 = vector.load %arg11[%c212, %c0_227] : memref<408x128xf32, #tpu.memory_space<vmem>>, vector<1x128xf32>
    %c4_228 = arith.constant 4 : index
    %c1024_229 = arith.constant 1024 : index
    %173 = vector.load %arg14[%c4_228, %c1024_229] : memref<8x1152xf32, #tpu.memory_space<vmem>>, vector<1x128xf32>
    tpu.vector_store %arg14[%c4_228, %c1024_229], %172 {strides = array<i32>} : memref<8x1152xf32, #tpu.memory_space<vmem>>, vector<1x128xf32>,
    %c245 = arith.constant 245 : index
    %c0_230 = arith.constant 0 : index
    %174 = vector.load %arg11[%c245, %c0_230] : memref<408x128xf32, #tpu.memory_space<vmem>>, vector<1x128xf32>
    %c5 = arith.constant 5 : index
    %c0_231 = arith.constant 0 : index
    %175 = vector.load %arg14[%c5, %c0_231] : memref<8x1152xf32, #tpu.memory_space<vmem>>, vector<1x128xf32>
    tpu.vector_store %arg14[%c5, %c0_231], %174 {strides = array<i32>} : memref<8x1152xf32, #tpu.memory_space<vmem>>, vector<1x128xf32>,
    %c246 = arith.constant 246 : index
    %c0_232 = arith.constant 0 : index
    %176 = vector.load %arg11[%c246, %c0_232] : memref<408x128xf32, #tpu.memory_space<vmem>>, vector<1x128xf32>
    %c5_233 = arith.constant 5 : index
    %c128_234 = arith.constant 128 : index
    %177 = vector.load %arg14[%c5_233, %c128_234] : memref<8x1152xf32, #tpu.memory_space<vmem>>, vector<1x128xf32>
    tpu.vector_store %arg14[%c5_233, %c128_234], %176 {strides = array<i32>} : memref<8x1152xf32, #tpu.memory_space<vmem>>, vector<1x128xf32>,
    %c247 = arith.constant 247 : index
    %c0_235 = arith.constant 0 : index
    %178 = vector.load %arg11[%c247, %c0_235] : memref<408x128xf32, #tpu.memory_space<vmem>>, vector<1x128xf32>
    %c5_236 = arith.constant 5 : index
    %c256_237 = arith.constant 256 : index
    %179 = vector.load %arg14[%c5_236, %c256_237] : memref<8x1152xf32, #tpu.memory_space<vmem>>, vector<1x128xf32>
    tpu.vector_store %arg14[%c5_236, %c256_237], %178 {strides = array<i32>} : memref<8x1152xf32, #tpu.memory_space<vmem>>, vector<1x128xf32>,
    %c252 = arith.constant 252 : index
    %c0_238 = arith.constant 0 : index
    %180 = vector.load %arg11[%c252, %c0_238] : memref<408x128xf32, #tpu.memory_space<vmem>>, vector<1x128xf32>
    %c5_239 = arith.constant 5 : index
    %c384_240 = arith.constant 384 : index
    %181 = vector.load %arg14[%c5_239, %c384_240] : memref<8x1152xf32, #tpu.memory_space<vmem>>, vector<1x128xf32>
    tpu.vector_store %arg14[%c5_239, %c384_240], %180 {strides = array<i32>} : memref<8x1152xf32, #tpu.memory_space<vmem>>, vector<1x128xf32>,
    %c253 = arith.constant 253 : index
    %c0_241 = arith.constant 0 : index
    %182 = vector.load %arg11[%c253, %c0_241] : memref<408x128xf32, #tpu.memory_space<vmem>>, vector<1x128xf32>
    %c5_242 = arith.constant 5 : index
    %c512_243 = arith.constant 512 : index
    %183 = vector.load %arg14[%c5_242, %c512_243] : memref<8x1152xf32, #tpu.memory_space<vmem>>, vector<1x128xf32>
    tpu.vector_store %arg14[%c5_242, %c512_243], %182 {strides = array<i32>} : memref<8x1152xf32, #tpu.memory_space<vmem>>, vector<1x128xf32>,
    %c254 = arith.constant 254 : index
    %c0_244 = arith.constant 0 : index
    %184 = vector.load %arg11[%c254, %c0_244] : memref<408x128xf32, #tpu.memory_space<vmem>>, vector<1x128xf32>
    %c5_245 = arith.constant 5 : index
    %c640_246 = arith.constant 640 : index
    %185 = vector.load %arg14[%c5_245, %c640_246] : memref<8x1152xf32, #tpu.memory_space<vmem>>, vector<1x128xf32>
    tpu.vector_store %arg14[%c5_245, %c640_246], %184 {strides = array<i32>} : memref<8x1152xf32, #tpu.memory_space<vmem>>, vector<1x128xf32>,
    %c259 = arith.constant 259 : index
    %c0_247 = arith.constant 0 : index
    %186 = vector.load %arg11[%c259, %c0_247] : memref<408x128xf32, #tpu.memory_space<vmem>>, vector<1x128xf32>
    %c5_248 = arith.constant 5 : index
    %c768_249 = arith.constant 768 : index
    %187 = vector.load %arg14[%c5_248, %c768_249] : memref<8x1152xf32, #tpu.memory_space<vmem>>, vector<1x128xf32>
    tpu.vector_store %arg14[%c5_248, %c768_249], %186 {strides = array<i32>} : memref<8x1152xf32, #tpu.memory_space<vmem>>, vector<1x128xf32>,
    %c260 = arith.constant 260 : index
    %c0_250 = arith.constant 0 : index
    %188 = vector.load %arg11[%c260, %c0_250] : memref<408x128xf32, #tpu.memory_space<vmem>>, vector<1x128xf32>
    %c5_251 = arith.constant 5 : index
    %c896_252 = arith.constant 896 : index
    %189 = vector.load %arg14[%c5_251, %c896_252] : memref<8x1152xf32, #tpu.memory_space<vmem>>, vector<1x128xf32>
    tpu.vector_store %arg14[%c5_251, %c896_252], %188 {strides = array<i32>} : memref<8x1152xf32, #tpu.memory_space<vmem>>, vector<1x128xf32>,
    %c261 = arith.constant 261 : index
    %c0_253 = arith.constant 0 : index
    %190 = vector.load %arg11[%c261, %c0_253] : memref<408x128xf32, #tpu.memory_space<vmem>>, vector<1x128xf32>
    %c5_254 = arith.constant 5 : index
    %c1024_255 = arith.constant 1024 : index
    %191 = vector.load %arg14[%c5_254, %c1024_255] : memref<8x1152xf32, #tpu.memory_space<vmem>>, vector<1x128xf32>
    tpu.vector_store %arg14[%c5_254, %c1024_255], %190 {strides = array<i32>} : memref<8x1152xf32, #tpu.memory_space<vmem>>, vector<1x128xf32>,
    %c294 = arith.constant 294 : index
    %c0_256 = arith.constant 0 : index
    %192 = vector.load %arg11[%c294, %c0_256] : memref<408x128xf32, #tpu.memory_space<vmem>>, vector<1x128xf32>
    %c6 = arith.constant 6 : index
    %c0_257 = arith.constant 0 : index
    %193 = vector.load %arg14[%c6, %c0_257] : memref<8x1152xf32, #tpu.memory_space<vmem>>, vector<1x128xf32>
    tpu.vector_store %arg14[%c6, %c0_257], %192 {strides = array<i32>} : memref<8x1152xf32, #tpu.memory_space<vmem>>, vector<1x128xf32>,
    %c295 = arith.constant 295 : index
    %c0_258 = arith.constant 0 : index
    %194 = vector.load %arg11[%c295, %c0_258] : memref<408x128xf32, #tpu.memory_space<vmem>>, vector<1x128xf32>
    %c6_259 = arith.constant 6 : index
    %c128_260 = arith.constant 128 : index
    %195 = vector.load %arg14[%c6_259, %c128_260] : memref<8x1152xf32, #tpu.memory_space<vmem>>, vector<1x128xf32>
    tpu.vector_store %arg14[%c6_259, %c128_260], %194 {strides = array<i32>} : memref<8x1152xf32, #tpu.memory_space<vmem>>, vector<1x128xf32>,
    %c296 = arith.constant 296 : index
    %c0_261 = arith.constant 0 : index
    %196 = vector.load %arg11[%c296, %c0_261] : memref<408x128xf32, #tpu.memory_space<vmem>>, vector<1x128xf32>
    %c6_262 = arith.constant 6 : index
    %c256_263 = arith.constant 256 : index
    %197 = vector.load %arg14[%c6_262, %c256_263] : memref<8x1152xf32, #tpu.memory_space<vmem>>, vector<1x128xf32>
    tpu.vector_store %arg14[%c6_262, %c256_263], %196 {strides = array<i32>} : memref<8x1152xf32, #tpu.memory_space<vmem>>, vector<1x128xf32>,
    %c301 = arith.constant 301 : index
    %c0_264 = arith.constant 0 : index
    %198 = vector.load %arg11[%c301, %c0_264] : memref<408x128xf32, #tpu.memory_space<vmem>>, vector<1x128xf32>
    %c6_265 = arith.constant 6 : index
    %c384_266 = arith.constant 384 : index
    %199 = vector.load %arg14[%c6_265, %c384_266] : memref<8x1152xf32, #tpu.memory_space<vmem>>, vector<1x128xf32>
    tpu.vector_store %arg14[%c6_265, %c384_266], %198 {strides = array<i32>} : memref<8x1152xf32, #tpu.memory_space<vmem>>, vector<1x128xf32>,
    %c302 = arith.constant 302 : index
    %c0_267 = arith.constant 0 : index
    %200 = vector.load %arg11[%c302, %c0_267] : memref<408x128xf32, #tpu.memory_space<vmem>>, vector<1x128xf32>
    %c6_268 = arith.constant 6 : index
    %c512_269 = arith.constant 512 : index
    %201 = vector.load %arg14[%c6_268, %c512_269] : memref<8x1152xf32, #tpu.memory_space<vmem>>, vector<1x128xf32>
    tpu.vector_store %arg14[%c6_268, %c512_269], %200 {strides = array<i32>} : memref<8x1152xf32, #tpu.memory_space<vmem>>, vector<1x128xf32>,
    %c303 = arith.constant 303 : index
    %c0_270 = arith.constant 0 : index
    %202 = vector.load %arg11[%c303, %c0_270] : memref<408x128xf32, #tpu.memory_space<vmem>>, vector<1x128xf32>
    %c6_271 = arith.constant 6 : index
    %c640_272 = arith.constant 640 : index
    %203 = vector.load %arg14[%c6_271, %c640_272] : memref<8x1152xf32, #tpu.memory_space<vmem>>, vector<1x128xf32>
    tpu.vector_store %arg14[%c6_271, %c640_272], %202 {strides = array<i32>} : memref<8x1152xf32, #tpu.memory_space<vmem>>, vector<1x128xf32>,
    %c308 = arith.constant 308 : index
    %c0_273 = arith.constant 0 : index
    %204 = vector.load %arg11[%c308, %c0_273] : memref<408x128xf32, #tpu.memory_space<vmem>>, vector<1x128xf32>
    %c6_274 = arith.constant 6 : index
    %c768_275 = arith.constant 768 : index
    %205 = vector.load %arg14[%c6_274, %c768_275] : memref<8x1152xf32, #tpu.memory_space<vmem>>, vector<1x128xf32>
    tpu.vector_store %arg14[%c6_274, %c768_275], %204 {strides = array<i32>} : memref<8x1152xf32, #tpu.memory_space<vmem>>, vector<1x128xf32>,
    %c309 = arith.constant 309 : index
    %c0_276 = arith.constant 0 : index
    %206 = vector.load %arg11[%c309, %c0_276] : memref<408x128xf32, #tpu.memory_space<vmem>>, vector<1x128xf32>
    %c6_277 = arith.constant 6 : index
    %c896_278 = arith.constant 896 : index
    %207 = vector.load %arg14[%c6_277, %c896_278] : memref<8x1152xf32, #tpu.memory_space<vmem>>, vector<1x128xf32>
    tpu.vector_store %arg14[%c6_277, %c896_278], %206 {strides = array<i32>} : memref<8x1152xf32, #tpu.memory_space<vmem>>, vector<1x128xf32>,
    %c310 = arith.constant 310 : index
    %c0_279 = arith.constant 0 : index
    %208 = vector.load %arg11[%c310, %c0_279] : memref<408x128xf32, #tpu.memory_space<vmem>>, vector<1x128xf32>
    %c6_280 = arith.constant 6 : index
    %c1024_281 = arith.constant 1024 : index
    %209 = vector.load %arg14[%c6_280, %c1024_281] : memref<8x1152xf32, #tpu.memory_space<vmem>>, vector<1x128xf32>
    tpu.vector_store %arg14[%c6_280, %c1024_281], %208 {strides = array<i32>} : memref<8x1152xf32, #tpu.memory_space<vmem>>, vector<1x128xf32>,
    %c343 = arith.constant 343 : index
    %c0_282 = arith.constant 0 : index
    %210 = vector.load %arg11[%c343, %c0_282] : memref<408x128xf32, #tpu.memory_space<vmem>>, vector<1x128xf32>
    %c7_283 = arith.constant 7 : index
    %c0_284 = arith.constant 0 : index
    %211 = vector.load %arg14[%c7_283, %c0_284] : memref<8x1152xf32, #tpu.memory_space<vmem>>, vector<1x128xf32>
    tpu.vector_store %arg14[%c7_283, %c0_284], %210 {strides = array<i32>} : memref<8x1152xf32, #tpu.memory_space<vmem>>, vector<1x128xf32>,
    %c344 = arith.constant 344 : index
    %c0_285 = arith.constant 0 : index
    %212 = vector.load %arg11[%c344, %c0_285] : memref<408x128xf32, #tpu.memory_space<vmem>>, vector<1x128xf32>
    %c7_286 = arith.constant 7 : index
    %c128_287 = arith.constant 128 : index
    %213 = vector.load %arg14[%c7_286, %c128_287] : memref<8x1152xf32, #tpu.memory_space<vmem>>, vector<1x128xf32>
    tpu.vector_store %arg14[%c7_286, %c128_287], %212 {strides = array<i32>} : memref<8x1152xf32, #tpu.memory_space<vmem>>, vector<1x128xf32>,
    %c345 = arith.constant 345 : index
    %c0_288 = arith.constant 0 : index
    %214 = vector.load %arg11[%c345, %c0_288] : memref<408x128xf32, #tpu.memory_space<vmem>>, vector<1x128xf32>
    %c7_289 = arith.constant 7 : index
    %c256_290 = arith.constant 256 : index
    %215 = vector.load %arg14[%c7_289, %c256_290] : memref<8x1152xf32, #tpu.memory_space<vmem>>, vector<1x128xf32>
    tpu.vector_store %arg14[%c7_289, %c256_290], %214 {strides = array<i32>} : memref<8x1152xf32, #tpu.memory_space<vmem>>, vector<1x128xf32>,
    %c350 = arith.constant 350 : index
    %c0_291 = arith.constant 0 : index
    %216 = vector.load %arg11[%c350, %c0_291] : memref<408x128xf32, #tpu.memory_space<vmem>>, vector<1x128xf32>
    %c7_292 = arith.constant 7 : index
    %c384_293 = arith.constant 384 : index
    %217 = vector.load %arg14[%c7_292, %c384_293] : memref<8x1152xf32, #tpu.memory_space<vmem>>, vector<1x128xf32>
    tpu.vector_store %arg14[%c7_292, %c384_293], %216 {strides = array<i32>} : memref<8x1152xf32, #tpu.memory_space<vmem>>, vector<1x128xf32>,
    %c351 = arith.constant 351 : index
    %c0_294 = arith.constant 0 : index
    %218 = vector.load %arg11[%c351, %c0_294] : memref<408x128xf32, #tpu.memory_space<vmem>>, vector<1x128xf32>
    %c7_295 = arith.constant 7 : index
    %c512_296 = arith.constant 512 : index
    %219 = vector.load %arg14[%c7_295, %c512_296] : memref<8x1152xf32, #tpu.memory_space<vmem>>, vector<1x128xf32>
    tpu.vector_store %arg14[%c7_295, %c512_296], %218 {strides = array<i32>} : memref<8x1152xf32, #tpu.memory_space<vmem>>, vector<1x128xf32>,
    %c352 = arith.constant 352 : index
    %c0_297 = arith.constant 0 : index
    %220 = vector.load %arg11[%c352, %c0_297] : memref<408x128xf32, #tpu.memory_space<vmem>>, vector<1x128xf32>
    %c7_298 = arith.constant 7 : index
    %c640_299 = arith.constant 640 : index
    %221 = vector.load %arg14[%c7_298, %c640_299] : memref<8x1152xf32, #tpu.memory_space<vmem>>, vector<1x128xf32>
    tpu.vector_store %arg14[%c7_298, %c640_299], %220 {strides = array<i32>} : memref<8x1152xf32, #tpu.memory_space<vmem>>, vector<1x128xf32>,
    %c357 = arith.constant 357 : index
    %c0_300 = arith.constant 0 : index
    %222 = vector.load %arg11[%c357, %c0_300] : memref<408x128xf32, #tpu.memory_space<vmem>>, vector<1x128xf32>
    %c7_301 = arith.constant 7 : index
    %c768_302 = arith.constant 768 : index
    %223 = vector.load %arg14[%c7_301, %c768_302] : memref<8x1152xf32, #tpu.memory_space<vmem>>, vector<1x128xf32>
    tpu.vector_store %arg14[%c7_301, %c768_302], %222 {strides = array<i32>} : memref<8x1152xf32, #tpu.memory_space<vmem>>, vector<1x128xf32>,
    %c358 = arith.constant 358 : index
    %c0_303 = arith.constant 0 : index
    %224 = vector.load %arg11[%c358, %c0_303] : memref<408x128xf32, #tpu.memory_space<vmem>>, vector<1x128xf32>
    %c7_304 = arith.constant 7 : index
    %c896_305 = arith.constant 896 : index
    %225 = vector.load %arg14[%c7_304, %c896_305] : memref<8x1152xf32, #tpu.memory_space<vmem>>, vector<1x128xf32>
    tpu.vector_store %arg14[%c7_304, %c896_305], %224 {strides = array<i32>} : memref<8x1152xf32, #tpu.memory_space<vmem>>, vector<1x128xf32>,
    %c359 = arith.constant 359 : index
    %c0_306 = arith.constant 0 : index
    %226 = vector.load %arg11[%c359, %c0_306] : memref<408x128xf32, #tpu.memory_space<vmem>>, vector<1x128xf32>
    %c7_307 = arith.constant 7 : index
    %c1024_308 = arith.constant 1024 : index
    %227 = vector.load %arg14[%c7_307, %c1024_308] : memref<8x1152xf32, #tpu.memory_space<vmem>>, vector<1x128xf32>
    tpu.vector_store %arg14[%c7_307, %c1024_308], %226 {strides = array<i32>} : memref<8x1152xf32, #tpu.memory_space<vmem>>, vector<1x128xf32>,
    %c0_309 = arith.constant 0 : index
    %c0_310 = arith.constant 0 : index
    %228 = vector.load %arg14[%c0_309, %c0_310] : memref<8x1152xf32, #tpu.memory_space<vmem>>, vector<8x1152xf32>
    %229 = arith.truncf %228 : vector<8x1152xf32> to vector<8x1152xbf16>
    %c0_311 = arith.constant 0 : index
    %c0_312 = arith.constant 0 : index
    %230 = vector.load %arg8[%c0_311, %c0_312] : memref<1152x128xbf16, #tpu.memory_space<vmem>>, vector<1152x128xbf16>
    %cst_313 = arith.constant dense<0.000000e+00> : vector<8x128xf32>
    %231 = tpu.matmul %229, %230, %cst_313 {dimension_numbers = #tpu.dot_dimension_numbers<[1], [0], [0], [1], [0, 0, 1, 1], [], []>} : vector<8x1152xbf16>, vector<1152x128xbf16>, vector<8x128xf32> -> vector<8x128xf32>
    %c0_314 = arith.constant 0 : index
    %c0_315 = arith.constant 0 : index
    %232 = vector.load %arg9[%c0_314, %c0_315] : memref<1x128xf32, #tpu.memory_space<vmem>>, vector<1x128xf32>
    %233 = vector.broadcast %232 : vector<1x128xf32> to vector<8x128xf32>
    %234 = arith.addf %231, %233 : vector<8x128xf32>
    %cst_316 = arith.constant 0.000000e+00 : f32
    %235 = vector.broadcast %cst_316 : f32 to vector<8x128xf32>
    %236 = arith.maximumf %234, %235 : vector<8x128xf32>
    %c0_317 = arith.constant 0 : index
    %c0_318 = arith.constant 0 : index
    %237 = vector.load %arg10[%c0_317, %c0_318] : memref<8x128xf32, #tpu.memory_space<vmem>>, vector<8x128xf32>
    tpu.vector_store %arg10[%c0_317, %c0_318], %236 {strides = array<i32>} : memref<8x128xf32, #tpu.memory_space<vmem>>, vector<8x128xf32>,
    return
  }
  func.func @transform_0(%arg0: i32) -> (i32, i32) {
    %c0_i32 = arith.constant 0 : i32
    %c0_i32_0 = arith.constant 0 : i32
    return %arg0, %c0_i32 : i32, i32
  }
  func.func @transform_1(%arg0: i32) -> (i32, i32) {
    %c0_i32 = arith.constant 0 : i32
    %c0_i32_0 = arith.constant 0 : i32
    %c0_i32_1 = arith.constant 0 : i32
    return %c0_i32, %c0_i32_0 : i32, i32
  }
  func.func @transform_2(%arg0: i32) -> (i32, i32) {
    %c0_i32 = arith.constant 0 : i32
    %c0_i32_0 = arith.constant 0 : i32
    %c0_i32_1 = arith.constant 0 : i32
    return %c0_i32, %c0_i32_0 : i32, i32
  }
  func.func @transform_3(%arg0: i32) -> (i32, i32) {
    %c0_i32 = arith.constant 0 : i32
    %c0_i32_0 = arith.constant 0 : i32
    %c0_i32_1 = arith.constant 0 : i32
    return %c0_i32, %c0_i32_0 : i32, i32
  }
  func.func @transform_4(%arg0: i32) -> (i32, i32) {
    %c0_i32 = arith.constant 0 : i32
    %c0_i32_0 = arith.constant 0 : i32
    %c0_i32_1 = arith.constant 0 : i32
    return %c0_i32, %c0_i32_0 : i32, i32
  }
  func.func @transform_5(%arg0: i32) -> (i32, i32) {
    %c0_i32 = arith.constant 0 : i32
    %c0_i32_0 = arith.constant 0 : i32
    %c0_i32_1 = arith.constant 0 : i32
    return %c0_i32, %c0_i32_0 : i32, i32
  }
  func.func @transform_6(%arg0: i32) -> (i32, i32) {
    %c0_i32 = arith.constant 0 : i32
    %c0_i32_0 = arith.constant 0 : i32
    %c0_i32_1 = arith.constant 0 : i32
    return %c0_i32, %c0_i32_0 : i32, i32
  }
  func.func @transform_7(%arg0: i32) -> (i32, i32) {
    %c0_i32 = arith.constant 0 : i32
    %c0_i32_0 = arith.constant 0 : i32
    %c0_i32_1 = arith.constant 0 : i32
    return %c0_i32, %c0_i32_0 : i32, i32
  }
  func.func @transform_8(%arg0: i32) -> (i32, i32) {
    %c0_i32 = arith.constant 0 : i32
    %c0_i32_0 = arith.constant 0 : i32
    %c0_i32_1 = arith.constant 0 : i32
    return %c0_i32, %c0_i32_0 : i32, i32
  }
  func.func @transform_9(%arg0: i32) -> (i32, i32) {
    %c0_i32 = arith.constant 0 : i32
    %c0_i32_0 = arith.constant 0 : i32
    return %arg0, %c0_i32 : i32, i32
  }
}

</mosaic_0001>

<bundles_post_ra>
// kernel: _forward_impl.1
= control target key start
LH: loop header
LB: loop body
LE: loop exit
PB: predicated region body
PF: predicated region fallthrough
CT: control target
= control target key end

     0   :  { %v19356_v0 = vmov 0   ;;  %vm387_vm0 = vcmask 130048   ;;  %vm17385_vm1 = vmmov 0   ;;  %s19346_s1 = inlined_call_operand.vmem [shape: bf16[144,128], index: 1, kind: input, shape index: {}]   ;;  %s19347_s0 = inlined_call_operand.vmem [shape: bf16[392,144], index: 0, kind: input, shape index: {}]   ;;  %s19348_s3 = inlined_call_operand.vmem [shape: bf16[1152,128], index: 3, kind: input, shape index: {}]   ;;  %s19349_s2 = inlined_call_operand.vmem [shape: f32[1,128], index: 2, kind: input, shape index: {}]   ;;  %s19350_s4 = inlined_call_operand.vmem [shape: f32[1,128], index: 4, kind: input, shape index: {}]   ;;  %s19351_s5 = inlined_call_operand.vmem [shape: bf16[1152,128], index: 5, kind: input, shape index: {}]   ;;  %s19352_s6 = inlined_call_operand.vmem [shape: f32[1,128], index: 6, kind: input, shape index: {}]   ;;  %s19353_s7 = inlined_call_operand.vmem [shape: bf16[1152,128], index: 7, kind: input, shape index: {}]   ;;  %s19354_s8 = inlined_call_operand.vmem [shape: f32[1,128], index: 8, kind: input, shape index: {}]   ;;  %s19355_s9 = inlined_call_operand.vmem [shape: f32[8,128], index: 9, kind: output, shape index: {}]  }
   0x1   :  { %463 = vmatprep.subr.bf16.mxu0 %v19356_v0  ;;  %v16434_v1 = vld [vmem:[%s19346_s1 + $0x38] sm:$0xff]   ;;  %5412 = vmatprep.subr.bf16.mxu1 %v19356_v0  ;;  %v16435_v2 = vld [vmem:[%s19346_s1 + $0x30] sm:$0xff]   ;;  %v16436_v3 = vld [vmem:[%s19346_s1 + $0x28] sm:$0xff]  }
   0x2   :  { %464 = vmatpush1.bf16.msra.mxu0 %v16434_v1  ;;  %v16437_v4 = vld [vmem:[%s19346_s1 + $0x20] sm:$0xff]   ;;  %v16438_v6 = vld [vmem:[%s19346_s1 + $0x18] sm:$0xff]   ;;  %v16439_v7 = vld [vmem:[%s19346_s1 + $0x10] sm:$0xff]  }
   0x3   :  { %465 = vmatprep.subr.bf16.mxu0 %v19356_v0  ;;  %v16445_v5 = vld [vmem:[%s19347_s0 + $0x4] ss:$8 sps:$4 sm:$0xff]   ;;  %v16443_v11 = vld [vmem:[%s19347_s0] ss:$8 sps:$4 sm:$0xff]   ;;  %v16446_v12 = vld [vmem:[%s19347_s0 + $0x14] ss:$8 sps:$4 sm:$0xff]  }
   0x4   :  { %13558 = vmatprep.mubr.msk.bf16.mxu0 %vm387_vm0, %v16445_v5  ;;  %v16440_v8 = vld [vmem:[%s19346_s1 + $0x8] sm:$0xff]   ;;  %v16441_v9 = vld [vmem:[%s19346_s1] sm:$0xff]   ;;  %v16448_v13 = vld [vmem:[%s19347_s0 + $0x10] ss:$8 sps:$4 sm:$0xff]  }
   0x5   :  { %v16442_v10 = vld [vmem:[%s19346_s1 + $0x40] sm:$0xff]   ;;  %v16452_v16 = vld [vmem:[%s19347_s0 + $0x34] ss:$8 sps:$4 sm:$0xff]   ;;  %v16454_v17 = vld [vmem:[%s19347_s0 + $0x30] ss:$8 sps:$4 sm:$0xff]  }
   0x6   :  { %466 = vmatpush1.bf16.msra.mxu0 %v16435_v2  ;;  %v16449_v14 = vld [vmem:[%s19347_s0 + $0x24] ss:$8 sps:$4 sm:$0xff]   ;;  %v16451_v15 = vld [vmem:[%s19347_s0 + $0x20] ss:$8 sps:$4 sm:$0xff]   ;;  %v16458_v20 = vld [vmem:[%s19347_s0 + $0x54] ss:$8 sps:$4 sm:$0xff]  }
   0x7   :  { %467 = vmatprep.subr.bf16.mxu0 %v19356_v0  ;;  %v16455_v18 = vld [vmem:[%s19347_s0 + $0x44] ss:$8 sps:$4 sm:$0xff]   ;;  %v16457_v19 = vld [vmem:[%s19347_s0 + $0x40] ss:$8 sps:$4 sm:$0xff]   ;;  %v16506_v21 = vld [vmem:[%s19348_s3 + $0x38] sm:$0xff]  }
   0x8   :  { %v16507_v22 = vld [vmem:[%s19348_s3 + $0xb8] sm:$0xff]   ;;  %5413 = vmatpush1.bf16.msra.mxu1 %v16506_v21  ;;  %v16508_v23 = vld [vmem:[%s19348_s3 + $0x30] sm:$0xff]   ;;  %v16461_v25 = vld [vmem:[%s19347_s0 + $0x64] ss:$8 sps:$4 sm:$0xff]  }
   0x9   :  { %v16460_v24 = vld [vmem:[%s19347_s0 + $0x50] ss:$8 sps:$4 sm:$0xff]   ;;  %5414 = vmatprep.subr.bf16.mxu1 %v19356_v0  ;;  %v16513_v27 = vld [vmem:[%s19348_s3 + $0x28] sm:$0xff]   ;;  %v16515_v29 = vld [vmem:[%s19348_s3 + $0x20] sm:$0xff]  }
   0xa   :  { %468 = vmatpush1.bf16.msra.mxu0 %v16436_v3  ;;  %v16511_v26 = vld [vmem:[%s19348_s3 + $0xb0] sm:$0xff]   ;;  %v16514_v28 = vld [vmem:[%s19348_s3 + $0xa8] sm:$0xff]   ;;  %v16518_v30 = vld [vmem:[%s19348_s3 + $0xa0] sm:$0xff]  }
   0xb   :  { %469 = vmatprep.subr.bf16.mxu0 %v19356_v0  ;;  %v16463_v31 = vld [vmem:[%s19347_s0 + $0x60] ss:$8 sps:$4 sm:$0xff]   ;;  %v16464_v32 = vld [vmem:[%s19347_s0 + $0x74] ss:$8 sps:$4 sm:$0xff]   ;;  %v16466_v37 = vld [vmem:[%s19347_s0 + $0x70] ss:$8 sps:$4 sm:$0xff]  }
   0xc   :  { %5415 = vmatpush1.bf16.msra.mxu1 %v16508_v23  ;;  %v16520_v33 = vld [vmem:[%s19348_s3 + $0x18] sm:$0xff]   ;;  %v16522_v35 = vld [vmem:[%s19348_s3 + $0x10] sm:$0xff]   ;;  %v16467_v38 = vld [vmem:[%s19347_s0 + $0x84] ss:$8 sps:$4 sm:$0xff]  }
   0xd   :  { %5416 = vmatprep.subr.bf16.mxu1 %v19356_v0  ;;  %v16521_v34 = vld [vmem:[%s19348_s3 + $0x98] sm:$0xff]   ;;  %v16525_v36 = vld [vmem:[%s19348_s3 + $0x90] sm:$0xff]   ;;  %v16527_v39 = vld [vmem:[%s19348_s3 + $0x8] sm:$0xff]  }
   0xe   :  { %470 = vmatpush1.bf16.msra.mxu0 %v16437_v4  ;;  %v16528_v40 = vld [vmem:[%s19348_s3 + $0x88] sm:$0xff]   ;;  %v16529_v41 = vld [vmem:[%s19348_s3] sm:$0xff]   ;;  %v16470_v44 = vld [vmem:[%s19347_s0 + $0x94] ss:$8 sps:$4 sm:$0xff]  }
   0xf   :  { %471 = vmatprep.subr.bf16.mxu0 %v19356_v0  ;;  %v16469_v42 = vld [vmem:[%s19347_s0 + $0x80] ss:$8 sps:$4 sm:$0xff]   ;;  %v16533_v45 = vld [vmem:[%s19348_s3 + $0x78] sm:$0xff]   ;;  %v16473_v48 = vld [vmem:[%s19347_s0 + $0xa4] ss:$8 sps:$4 sm:$0xff]  }
  0x10   :  { %5417 = vmatpush1.bf16.msra.mxu1 %v16513_v27  ;;  %v16531_v43 = vld [vmem:[%s19348_s3 + $0x80] sm:$0xff]   ;;  %v16534_v46 = vld [vmem:[%s19348_s3 + $0xf8] sm:$0xff]   ;;  %v16535_v49 = vld [vmem:[%s19348_s3 + $0x70] sm:$0xff]  }
  0x11   :  { %5418 = vmatprep.subr.bf16.mxu1 %v19356_v0  ;;  %v16472_v47 = vld [vmem:[%s19347_s0 + $0x90] ss:$8 sps:$4 sm:$0xff]   ;;  %v16537_v51 = vld [vmem:[%s19348_s3 + $0x68] sm:$0xff]   ;;  %v16476_v54 = vld [vmem:[%s19347_s0 + $0xb4] ss:$8 sps:$4 sm:$0xff]  }
  0x12   :  { %472 = vmatpush1.bf16.msra.mxu0 %v16438_v6  ;;  %v16536_v50 = vld [vmem:[%s19348_s3 + $0xf0] sm:$0xff]   ;;  %v16538_v52 = vld [vmem:[%s19348_s3 + $0xe8] sm:$0xff]   ;;  %v16539_v55 = vld [vmem:[%s19348_s3 + $0x60] sm:$0xff]  }
  0x13   :  { %473 = vmatprep.subr.bf16.mxu0 %v19356_v0  ;;  %v16475_v53 = vld [vmem:[%s19347_s0 + $0xa0] ss:$8 sps:$4 sm:$0xff]   ;;  %v16478_v57 = vld [vmem:[%s19347_s0 + $0xb0] ss:$8 sps:$4 sm:$0xff]   ;;  %v16479_v60 = vld [vmem:[%s19347_s0 + $0xc4] ss:$8 sps:$4 sm:$0xff]  }
  0x14   :  { %5419 = vmatpush1.bf16.msra.mxu1 %v16515_v29  ;;  %v16540_v56 = vld [vmem:[%s19348_s3 + $0xe0] sm:$0xff]   ;;  %v16541_v58 = vld [vmem:[%s19348_s3 + $0x58] sm:$0xff]   ;;  %v16543_v61 = vld [vmem:[%s19348_s3 + $0x50] sm:$0xff]  }
  0x15   :  { %5420 = vmatprep.subr.bf16.mxu1 %v19356_v0  ;;  %v16542_v59 = vld [vmem:[%s19348_s3 + $0xd8] sm:$0xff]   ;;  %v16544_v62 = vld [vmem:[%s19348_s3 + $0xd0] sm:$0xff]   ;;  %v16545_v63 = vld [vmem:[%s19348_s3 + $0x48] sm:$0xff]  }
  0x16   :  { %474 = vmatpush1.bf16.msra.mxu0 %v16439_v7  ;;  %v16546_v1 = vld [vmem:[%s19348_s3 + $0xc8] sm:$0xff]   ;;  %v16482_v3 = vld [vmem:[%s19347_s0 + $0xd4] ss:$8 sps:$4 sm:$0xff]   ;;  %v16547_v4 = vld [vmem:[%s19348_s3 + $0x40] sm:$0xff]  }
  0x17   :  { %475 = vmatprep.subr.bf16.mxu0 %v19356_v0  ;;  %v16481_v2 = vld [vmem:[%s19347_s0 + $0xc0] ss:$8 sps:$4 sm:$0xff]   ;;  %v16484_v6 = vld [vmem:[%s19347_s0 + $0xd0] ss:$8 sps:$4 sm:$0xff]   ;;  %v16485_v7 = vld [vmem:[%s19347_s0 + $0xe4] ss:$8 sps:$4 sm:$0xff]  }
  0x18   :  { %5421 = vmatpush1.bf16.msra.mxu1 %v16520_v33  ;;  %v16548_v5 = vld [vmem:[%s19348_s3 + $0xc0] sm:$0xff]   ;;  %v16509_v21 = vld [vmem:[%s19347_s0 + $0x154] ss:$8 sps:$4 sm:$0xff]   ;;  %v16526_v27 = vld [vmem:[%s19347_s0 + $0x170] ss:$8 sps:$4 sm:$0xff]  }
  0x19   :  { %5422 = vmatprep.subr.bf16.mxu1 %v19356_v0  ;;  %v16516_v23 = vld [vmem:[%s19347_s0 + $0x164] ss:$8 sps:$4 sm:$0xff]  }
  0x1a   :  { %476 = vmatpush1.bf16.msra.mxu0 %v16440_v8  ;;  %v16487_v8 = vld [vmem:[%s19347_s0 + $0xe0] ss:$8 sps:$4 sm:$0xff]  }
  0x1b   :  { %477 = vmatprep.subr.bf16.mxu0 %v19356_v0 }
  0x1c   :  { %5423 = vmatpush1.bf16.msra.mxu1 %v16522_v35 }
  0x1d   :  { %5424 = vmatprep.subr.bf16.mxu1 %v19356_v0 }
  0x1e   :  { %478 = vmatpush1.bf16.msra.mxu0 %v16441_v9  ;;  %v16488_v9 = vld [vmem:[%s19347_s0 + $0xf4] ss:$8 sps:$4 sm:$0xff]  }
  0x1f   :  { %493 = vmatprep.subr.bf16.mxu0 %v19356_v0 }
  0x20   :  { %5425 = vmatpush1.bf16.msra.mxu1 %v16527_v39 }
  0x21   :  { %5426 = vmatprep.subr.bf16.mxu1 %v19356_v0 }
  0x22   :  { %494 = vmatpush2.bf16.msra.mxu0 %v16442_v10  ;;  %v16490_v10 = vld [vmem:[%s19347_s0 + $0xf0] ss:$8 sps:$4 sm:$0xff]  }
  0x23   :  { %5644 = vmatprep.subr.bf16.mxu0 %v19356_v0 }
  0x24   :  { %5427 = vmatpush1.bf16.msra.mxu1 %v16529_v41 }
  0x25   :  { %496 = vmatmul.mubr.bf16.vlgmr.msra.gmra.mxu0 %v16443_v11  ;;  %5428 = vmatprep.subr.bf16.mxu1 %v19356_v0  ;;  %v16491_v11 = vld [vmem:[%s19347_s0 + $0x104] ss:$8 sps:$4 sm:$0xff]  }
  0x26   :  { %13559 = vmatprep.mubr.msk.bf16.mxu0 %vm387_vm0, %v16446_v12  ;;  %5645 = vmatpush1.bf16.msra.mxu0 %v16507_v22  ;;  %v16493_v12 = vld [vmem:[%s19347_s0 + $0x100] ss:$8 sps:$4 sm:$0xff]   ;;  %v16512_v22 = vld [vmem:[%s19347_s0 + $0x150] ss:$8 sps:$4 sm:$0xff]  }
  0x27   :  { %5646 = vmatprep.subr.bf16.mxu0 %v19356_v0 }
  0x28   :  { %5429 = vmatpush2.bf16.msra.mxu1 %v16533_v45 }
  0x29   :  { %5430 = vmatprep.subr.bf16.mxu1 %v19356_v0 }
  0x2a   :  { %5647 = vmatpush1.bf16.msra.mxu0 %v16511_v26  ;;  %v85_v26 = vld [vmem:[%s19347_s0 + $0x180] sm:$0xff] }
  0x2b   :  { %5648 = vmatprep.subr.bf16.mxu0 %v19356_v0  ;;  %v13547_v29 = vcombine.low %v85_v26, %v85_v26 }
  0x2c   :  { %5431 = vmatpush2.bf16.msra.mxu1 %v16535_v49 }
  0x2d   :  { %504 = vmatmul.mubr.bf16.gmra.mxu0 %v16448_v13  ;;  %5432 = vmatprep.subr.bf16.mxu1 %v19356_v0  ;;  %v16494_v13 = vld [vmem:[%s19347_s0 + $0x114] ss:$8 sps:$4 sm:$0xff]  }
  0x2e   :  { %13560 = vmatprep.mubr.msk.bf16.mxu0 %vm387_vm0, %v16449_v14  ;;  %5649 = vmatpush1.bf16.msra.mxu0 %v16514_v28  ;;  %v16496_v14 = vld [vmem:[%s19347_s0 + $0x110] ss:$8 sps:$4 sm:$0xff]   ;;  %v13548_v28 = vcombine.high %v85_v26, %v85_v26 }
  0x2f   :  { %5650 = vmatprep.subr.bf16.mxu0 %v19356_v0 }
  0x30   :  { %5433 = vmatpush2.bf16.msra.mxu1 %v16537_v51 }
  0x31   :  { %5434 = vmatprep.subr.bf16.mxu1 %v19356_v0 }
  0x32   :  { %5651 = vmatpush1.bf16.msra.mxu0 %v16518_v30  ;;  %v17777_v30 = vld [vmem:[%s19349_s2] ss:$0 sm:$0xff] }
  0x33   :  { %5652 = vmatprep.subr.bf16.mxu0 %v19356_v0 }
  0x34   :  { %5435 = vmatpush2.bf16.msra.mxu1 %v16539_v55 }
  0x35   :  { %512 = vmatmul.mubr.bf16.gmra.mxu0 %v16451_v15  ;;  %5436 = vmatprep.subr.bf16.mxu1 %v19356_v0  ;;  %v16497_v15 = vld [vmem:[%s19347_s0 + $0x124] ss:$8 sps:$4 sm:$0xff]  }
  0x36   :  { %13561 = vmatprep.mubr.msk.bf16.mxu0 %vm387_vm0, %v16452_v16  ;;  %5653 = vmatpush1.bf16.msra.mxu0 %v16521_v34  ;;  %v16499_v16 = vld [vmem:[%s19347_s0 + $0x120] ss:$8 sps:$4 sm:$0xff]  }
  0x37   :  { %5654 = vmatprep.subr.bf16.mxu0 %v19356_v0 }
  0x38   :  { %5437 = vmatpush2.bf16.msra.mxu1 %v16541_v58 }
  0x39   :  { %5438 = vmatprep.subr.bf16.mxu1 %v19356_v0 }
  0x3a   :  { %5655 = vmatpush1.bf16.msra.mxu0 %v16525_v36 }
  0x3b   :  { %5656 = vmatprep.subr.bf16.mxu0 %v19356_v0 }
  0x3c   :  { %5439 = vmatpush2.bf16.msra.mxu1 %v16543_v61 }
  0x3d   :  { %520 = vmatmul.mubr.bf16.gmra.mxu0 %v16454_v17  ;;  %5440 = vmatprep.subr.bf16.mxu1 %v19356_v0  ;;  %v16500_v17 = vld [vmem:[%s19347_s0 + $0x134] ss:$8 sps:$4 sm:$0xff]  }
  0x3e   :  { %13562 = vmatprep.mubr.msk.bf16.mxu0 %vm387_vm0, %v16455_v18  ;;  %5657 = vmatpush1.bf16.msra.mxu0 %v16528_v40  ;;  %v16502_v18 = vld [vmem:[%s19347_s0 + $0x130] ss:$8 sps:$4 sm:$0xff]  }
  0x3f   :  { %5658 = vmatprep.subr.bf16.mxu0 %v19356_v0 }
  0x40   :  { %5441 = vmatpush2.bf16.msra.mxu1 %v16545_v63 }
  0x41   :  { %5442 = vmatprep.subr.bf16.mxu1 %v19356_v0 }
  0x42   :  { %5659 = vmatpush1.bf16.msra.mxu0 %v16531_v43 }
  0x43   :  { %5660 = vmatprep.subr.bf16.mxu0 %v19356_v0 }
  0x44   :  { %5443 = vmatpush2.bf16.msra.mxu1 %v16547_v4 }
  0x45   :  { %528 = vmatmul.mubr.bf16.gmra.mxu0 %v16457_v19  ;;  %5876 = vmatprep.subr.bf16.mxu1 %v19356_v0  ;;  %v16503_v19 = vld [vmem:[%s19347_s0 + $0x144] ss:$8 sps:$4 sm:$0xff]  }
  0x46   :  { %13563 = vmatprep.mubr.msk.bf16.mxu0 %vm387_vm0, %v16458_v20  ;;  %5661 = vmatpush2.bf16.msra.mxu0 %v16534_v46  ;;  %v16505_v20 = vld [vmem:[%s19347_s0 + $0x140] ss:$8 sps:$4 sm:$0xff]  }
  0x47   :  { %5662 = vmatprep.subr.bf16.mxu0 %v19356_v0 }
  0x4a   :  { %5663 = vmatpush2.bf16.msra.mxu0 %v16536_v50 }
  0x4b   :  { %5664 = vmatprep.subr.bf16.mxu0 %v19356_v0 }
  0x4d   :  { %536 = vmatmul.mubr.bf16.gmra.mxu0 %v16460_v24  ;;  %v16519_v24 = vld [vmem:[%s19347_s0 + $0x160] ss:$8 sps:$4 sm:$0xff]  }
  0x4e   :  { %13564 = vmatprep.mubr.msk.bf16.mxu0 %vm387_vm0, %v16461_v25  ;;  %5665 = vmatpush2.bf16.msra.mxu0 %v16538_v52  ;;  %v16523_v25 = vld [vmem:[%s19347_s0 + $0x174] ss:$8 sps:$4 sm:$0xff]  }
  0x4f   :  { %5666 = vmatprep.subr.bf16.mxu0 %v19356_v0 }
  0x52   :  { %5667 = vmatpush2.bf16.msra.mxu0 %v16540_v56 }
  0x53   :  { %5668 = vmatprep.subr.bf16.mxu0 %v19356_v0 }
  0x55   :  { %544 = vmatmul.mubr.bf16.gmra.mxu0 %v16463_v31 }
  0x56   :  { %13565 = vmatprep.mubr.msk.bf16.mxu0 %vm387_vm0, %v16464_v32  ;;  %5669 = vmatpush2.bf16.msra.mxu0 %v16542_v59 }
  0x57   :  { %5670 = vmatprep.subr.bf16.mxu0 %v19356_v0 }
  0x5a   :  { %5671 = vmatpush2.bf16.msra.mxu0 %v16544_v62 }
  0x5b   :  { %5672 = vmatprep.subr.bf16.mxu0 %v19356_v0 }
  0x5d   :  { %552 = vmatmul.mubr.bf16.gmra.mxu0 %v16466_v37 }
  0x5e   :  { %13566 = vmatprep.mubr.msk.bf16.mxu0 %vm387_vm0, %v16467_v38  ;;  %5673 = vmatpush2.bf16.msra.mxu0 %v16546_v1 }
  0x5f   :  { %5674 = vmatprep.subr.bf16.mxu0 %v19356_v0 }
  0x62   :  { %5675 = vmatpush2.bf16.msra.mxu0 %v16548_v5 }
  0x63   :  { %6108 = vmatprep.subr.bf16.mxu0 %v19356_v0 }
  0x65   :  { %560 = vmatmul.mubr.bf16.gmra.mxu0 %v16469_v42 }
  0x66   :  { %13567 = vmatprep.mubr.msk.bf16.mxu0 %vm387_vm0, %v16470_v44 }
  0x6d   :  { %568 = vmatmul.mubr.bf16.gmra.mxu0 %v16472_v47 }
  0x6e   :  { %13568 = vmatprep.mubr.msk.bf16.mxu0 %vm387_vm0, %v16473_v48 }
  0x75   :  { %576 = vmatmul.mubr.bf16.gmra.mxu0 %v16475_v53 }
  0x76   :  { %13569 = vmatprep.mubr.msk.bf16.mxu0 %vm387_vm0, %v16476_v54 }
  0x7d   :  { %584 = vmatmul.mubr.bf16.gmra.mxu0 %v16478_v57 }
  0x7e   :  { %13570 = vmatprep.mubr.msk.bf16.mxu0 %vm387_vm0, %v16479_v60 }
  0x85   :  { %592 = vmatmul.mubr.bf16.gmra.mxu0 %v16481_v2 }
  0x86   :  { %13571 = vmatprep.mubr.msk.bf16.mxu0 %vm387_vm0, %v16482_v3 }
  0x8d   :  { %600 = vmatmul.mubr.bf16.gmra.mxu0 %v16484_v6 }
  0x8e   :  { %13572 = vmatprep.mubr.msk.bf16.mxu0 %vm387_vm0, %v16485_v7 }
  0x95   :  { %608 = vmatmul.mubr.bf16.gmra.mxu0 %v16487_v8 }
  0x96   :  { %13573 = vmatprep.mubr.msk.bf16.mxu0 %vm387_vm0, %v16488_v9 }
  0x9d   :  { %616 = vmatmul.mubr.bf16.gmra.mxu0 %v16490_v10 }
  0x9e   :  { %13574 = vmatprep.mubr.msk.bf16.mxu0 %vm387_vm0, %v16491_v11 }
  0xa5   :  { %624 = vmatmul.mubr.bf16.gmra.mxu0 %v16493_v12 }
  0xa6   :  { %13575 = vmatprep.mubr.msk.bf16.mxu0 %vm387_vm0, %v16494_v13 }
  0xad   :  { %632 = vmatmul.mubr.bf16.gmra.mxu0 %v16496_v14 }
  0xae   :  { %13576 = vmatprep.mubr.msk.bf16.mxu0 %vm387_vm0, %v16497_v15 }
  0xb5   :  { %640 = vmatmul.mubr.bf16.gmra.mxu0 %v16499_v16 }
  0xb6   :  { %13577 = vmatprep.mubr.msk.bf16.mxu0 %vm387_vm0, %v16500_v17 }
  0xbd   :  { %648 = vmatmul.mubr.bf16.gmra.mxu0 %v16502_v18 }
  0xbe   :  { %13578 = vmatprep.mubr.msk.bf16.mxu0 %vm387_vm0, %v16503_v19 }
  0xc5   :  { %656 = vmatmul.mubr.bf16.gmra.mxu0 %v16505_v20 }
  0xc6   :  { %13579 = vmatprep.mubr.msk.bf16.mxu0 %vm387_vm0, %v16509_v21 }
  0xcd   :  { %664 = vmatmul.mubr.bf16.gmra.mxu0 %v16512_v22 }
  0xce   :  { %13580 = vmatprep.mubr.msk.bf16.mxu0 %vm387_vm0, %v16516_v23 }
  0xd5   :  { %672 = vmatmul.mubr.bf16.gmra.mxu0 %v16519_v24 }
  0xd6   :  { %13581 = vmatprep.mubr.msk.bf16.mxu0 %vm387_vm0, %v16523_v25 }
  0xdd   :  { %680 = vmatmul.mubr.bf16.gmra.mxu0 %v16526_v27 }
  0xde   :  { %13582 = vmatprep.mubr.msk.bf16.mxu0 %vm387_vm0, %v13548_v28 }
  0xe5   :  { %v497_v31 = vpop.f32.mrf.mxu0  ;;  %688 = vmatmul.mubr.bf16.gmra.mxu0 %v13547_v29  ;;  %v16555_v29 = vld [vmem:[%s19348_s3 + $0x138] sm:$0xff]  }
  0xe6   :  { %v498_v32 = vadd.f32 %v17777_v30, %v497_v31 }
  0xe7   :  { %v499_v33 = vpop.f32.mrf.mxu0 }
  0xe8   :  { %v695_v34 = vmax.f32 %v498_v32, 0.0 }
  0xe9   :  { %v500_v35 = vpop.f32.mrf.mxu0 }
  0xea   :  { %744 = vst [vmem:[#allocation2] sm:$0xff] %v695_v34  ;;  %v15134_v36 = vpack.c.bf16 %v695_v34, %v695_v34  ;;  %v501_v37 = vadd.f32 %v17777_v30, %v500_v35 }
  0xeb   :  { %v502_v38 = vpop.f32.mrf.mxu0 }
  0xec   :  { %1039 = vst [vmem:[#allocation4] sm:$0xf] %v15134_v36  ;;  %v696_v39 = vmax.f32 %v501_v37, 0.0 }
  0xed   :  { %v505_v40 = vpop.f32.mrf.mxu0 }
  0xee   :  { %745 = vst [vmem:[#allocation2 + $0x8] sm:$0xff] %v696_v39  ;;  %v15135_v41 = vpack.c.bf16 %v696_v39, %v696_v39  ;;  %v506_v42 = vadd.f32 %v17777_v30, %v505_v40 }
  0xef   :  { %v507_v43 = vpop.f32.mrf.mxu0 }
  0xf0   :  { %1040 = vst [vmem:[#allocation4 + $0x24] sm:$0xf] %v15135_v41  ;;  %2219 = vst [vmem:[#allocation4 + $0x10] sm:$0xf] %v15135_v41  ;;  %v697_v44 = vmax.f32 %v506_v42, 0.0 }
  0xf1   :  { %v508_v45 = vpop.f32.mrf.mxu0 }
  0xf2   :  { %746 = vst [vmem:[#allocation2 + $0x10] sm:$0xff] %v697_v44  ;;  %v15136_v46 = vpack.c.bf16 %v697_v44, %v697_v44  ;;  %v509_v47 = vadd.f32 %v17777_v30, %v508_v45 }
  0xf3   :  { %v510_v48 = vpop.f32.mrf.mxu0 }
  0xf4   :  { %1041 = vst [vmem:[#allocation4 + $0x48] sm:$0xf] %v15136_v46  ;;  %2220 = vst [vmem:[#allocation4 + $0x34] sm:$0xf] %v15136_v46  ;;  %v698_v49 = vmax.f32 %v509_v47, 0.0 }
  0xf5   :  { %3399 = vst [vmem:[#allocation4 + $0x20] sm:$0xf] %v15136_v46  ;;  %v1088_v50 = vld [vmem:[#allocation2 + $0x1] sm:$0xff]  ;;  %v513_v53 = vpop.f32.mrf.mxu0 }
  0xf6   :  { %v1383_v51 = vld [vmem:[#allocation2 + $0x2] sm:$0xff]  ;;  %v15183_v54 = vpack.c.bf16 %v1088_v50, %v1088_v50  ;;  %747 = vst [vmem:[#allocation2 + $0x18] sm:$0xff] %v698_v49  ;;  %v15137_v57 = vpack.c.bf16 %v698_v49, %v698_v49  ;;  %v514_v58 = vadd.f32 %v17777_v30, %v513_v53 }
  0xf7   :  { %v1678_v52 = vld [vmem:[#allocation2 + $0x7] sm:$0xff]  ;;  %v15232_v55 = vpack.c.bf16 %v1383_v51, %v1383_v51  ;;  %v515_v59 = vpop.f32.mrf.mxu0  ;;  %v16553_v41 = vld [vmem:[#allocation4] ss:$36 sps:$4 sm:$0xff]  }
  0xf8   :  { %v15281_v56 = vpack.c.bf16 %v1678_v52, %v1678_v52  ;;  %1334 = vst [vmem:[#allocation4 + $0x4] sm:$0xf] %v15183_v54  ;;  %1042 = vst [vmem:[#allocation4 + $0x6c] sm:$0xf] %v15137_v57  ;;  %v699_v63 = vmax.f32 %v514_v58, 0.0 }
  0xf9   :  { %1629 = vst [vmem:[#allocation4 + $0x8] sm:$0xf] %v15232_v55  ;;  %2221 = vst [vmem:[#allocation4 + $0x58] sm:$0xf] %v15137_v57  ;;  %v1089_v60 = vld [vmem:[#allocation2 + $0x9] sm:$0xff]  ;;  %v516_v1 = vpop.f32.mrf.mxu0 }
  0xfa   :  { %1924 = vst [vmem:[#allocation4 + $0xc] sm:$0xf] %v15281_v56  ;;  %3400 = vst [vmem:[#allocation4 + $0x44] sm:$0xf] %v15137_v57  ;;  %v1384_v61 = vld [vmem:[#allocation2 + $0xa] sm:$0xff]  ;;  %v15184_v2 = vpack.c.bf16 %v1089_v60, %v1089_v60  ;;  %v517_v6 = vadd.f32 %v17777_v30, %v516_v1  ;;  %v15138_v8 = vpack.c.bf16 %v699_v63, %v699_v63 }
  0xfb   :  { %v1679_v62 = vld [vmem:[#allocation2 + $0xf] sm:$0xff]  ;;  %v15233_v3 = vpack.c.bf16 %v1384_v61, %v1384_v61  ;;  %748 = vst [vmem:[#allocation2 + $0x20] sm:$0xff] %v699_v63  ;;  %v518_v9 = vpop.f32.mrf.mxu0 }
  0xfc   :  { %v15282_v4 = vpack.c.bf16 %v1679_v62, %v1679_v62  ;;  %v2563_v5 = vld [vmem:[#allocation2 + $0xe] sm:$0xff]  ;;  %2514 = vst [vmem:[#allocation4 + $0x14] sm:$0xf] %v15184_v2  ;;  %1335 = vst [vmem:[#allocation4 + $0x28] sm:$0xf] %v15184_v2  ;;  %v700_v10 = vmax.f32 %v517_v6, 0.0 }
  0xfd   :  { %v15428_v7 = vpack.c.bf16 %v2563_v5, %v2563_v5  ;;  %1630 = vst [vmem:[#allocation4 + $0x2c] sm:$0xf] %v15233_v3  ;;  %v1090_v11 = vld [vmem:[#allocation2 + $0x11] sm:$0xff]  ;;  %1043 = vst [vmem:[#allocation4 + $0x90] sm:$0xf] %v15138_v8  ;;  %v521_v14 = vpop.f32.mrf.mxu0  ;;  %v16575_v5 = vld [vmem:[%s19348_s3 + $0x128] sm:$0xff]  }
  0xfe   :  { %1925 = vst [vmem:[#allocation4 + $0x30] sm:$0xf] %v15282_v4  ;;  %3104 = vst [vmem:[#allocation4 + $0x1c] sm:$0xf] %v15282_v4  ;;  %v1385_v12 = vld [vmem:[#allocation2 + $0x12] sm:$0xff]  ;;  %v15185_v15 = vpack.c.bf16 %v1090_v11, %v1090_v11  ;;  %v15139_v19 = vpack.c.bf16 %v700_v10, %v700_v10  ;;  %v522_v21 = vadd.f32 %v17777_v30, %v521_v14 }
  0xff   :  { %2809 = vst [vmem:[#allocation4 + $0x18] sm:$0xf] %v15428_v7  ;;  %v1680_v13 = vld [vmem:[#allocation2 + $0x17] sm:$0xff]  ;;  %2222 = vst [vmem:[#allocation4 + $0x7c] sm:$0xf] %v15138_v8  ;;  %v15234_v16 = vpack.c.bf16 %v1385_v12, %v1385_v12  ;;  %v523_v22 = vpop.f32.mrf.mxu0 }
 0x100   :  { %3401 = vst [vmem:[#allocation4 + $0x68] sm:$0xf] %v15138_v8  ;;  %v15283_v17 = vpack.c.bf16 %v1680_v13, %v1680_v13  ;;  %v2564_v18 = vld [vmem:[#allocation2 + $0x16] sm:$0xff]  ;;  %749 = vst [vmem:[#allocation2 + $0x28] sm:$0xff] %v700_v10  ;;  %v701_v23 = vmax.f32 %v522_v21, 0.0 }
 0x101   :  { %v15429_v20 = vpack.c.bf16 %v2564_v18, %v2564_v18  ;;  %1336 = vst [vmem:[#allocation4 + $0x4c] sm:$0xf] %v15185_v15  ;;  %1631 = vst [vmem:[#allocation4 + $0x50] sm:$0xf] %v15234_v16  ;;  %v524_v24 = vpop.f32.mrf.mxu0  ;;  %v16562_v55 = vld [vmem:[%s19348_s3 + $0x130] sm:$0xff]  }
 0x102   :  { %1926 = vst [vmem:[#allocation4 + $0x54] sm:$0xf] %v15283_v17  ;;  %2515 = vst [vmem:[#allocation4 + $0x38] sm:$0xf] %v15185_v15  ;;  %v1091_v25 = vld [vmem:[#allocation2 + $0x19] sm:$0xff]  ;;  %v525_v28 = vadd.f32 %v17777_v30, %v524_v24  ;;  %v15140_v35 = vpack.c.bf16 %v701_v23, %v701_v23 }
 0x103   :  { %3105 = vst [vmem:[#allocation4 + $0x40] sm:$0xf] %v15283_v17  ;;  %1044 = vst [vmem:[#allocation4 + $0xb4] sm:$0xf] %v15139_v19  ;;  %v1386_v26 = vld [vmem:[#allocation2 + $0x1a] sm:$0xff]  ;;  %v15186_v31 = vpack.c.bf16 %v1091_v25, %v1091_v25  ;;  %v526_v36 = vpop.f32.mrf.mxu0 }
 0x104   :  { %2223 = vst [vmem:[#allocation4 + $0xa0] sm:$0xf] %v15139_v19  ;;  %3402 = vst [vmem:[#allocation4 + $0x8c] sm:$0xf] %v15139_v19  ;;  %v1681_v27 = vld [vmem:[#allocation2 + $0x1f] sm:$0xff]  ;;  %v15235_v32 = vpack.c.bf16 %v1386_v26, %v1386_v26  ;;  %v702_v39 = vmax.f32 %v525_v28, 0.0 }
 0x105   :  { %2810 = vst [vmem:[#allocation4 + $0x3c] sm:$0xf] %v15429_v20  ;;  %v15284_v33 = vpack.c.bf16 %v1681_v27, %v1681_v27  ;;  %v2565_v34 = vld [vmem:[#allocation2 + $0x1e] sm:$0xff]  ;;  %750 = vst [vmem:[#allocation2 + $0x30] sm:$0xff] %v701_v23  ;;  %v16549_v37 = vld [vmem:[#allocation4 + $0x4] ss:$36 sps:$4 sm:$0xff]   ;;  %v529_v45 = vpop.f32.mrf.mxu0 }
 0x106   :  { %v15430_v38 = vpack.c.bf16 %v2565_v34, %v2565_v34  ;;  %v16551_v40 = vld [vmem:[#allocation4 + $0xc] ss:$36 sps:$4 sm:$0xff]   ;;  %1337 = vst [vmem:[#allocation4 + $0x70] sm:$0xf] %v15186_v31  ;;  %1632 = vst [vmem:[#allocation4 + $0x74] sm:$0xf] %v15235_v32  ;;  %5444 = vmatprep.mubr.bf16.mxu1 %v16549_v37  ;;  %v15141_v50 = vpack.c.bf16 %v702_v39, %v702_v39  ;;  %v530_v53 = vadd.f32 %v17777_v30, %v529_v45 }
 0x107   :  { %1927 = vst [vmem:[#allocation4 + $0x78] sm:$0xf] %v15284_v33  ;;  %2516 = vst [vmem:[#allocation4 + $0x5c] sm:$0xf] %v15186_v31  ;;  %v1092_v42 = vld [vmem:[#allocation2 + $0x21] sm:$0xff]  ;;  %5676 = vmatprep.mubr.bf16.mxu0 %v16551_v40  ;;  %v531_v54 = vpop.f32.mrf.mxu0  ;;  %5445 = vmatmul.mubr.bf16.vlgmr.msra.gmra.mxu1 %v16553_v41  ;;  %v16668_v27 = vld [vmem:[%s19348_s3 + $0x1b8] sm:$0xff]  }
 0x108   :  { %3106 = vst [vmem:[#allocation4 + $0x64] sm:$0xf] %v15284_v33  ;;  %v1387_v43 = vld [vmem:[#allocation2 + $0x22] sm:$0xff]  ;;  %1045 = vst [vmem:[#allocation4 + $0xd8] sm:$0xf] %v15140_v35  ;;  %v15187_v46 = vpack.c.bf16 %v1092_v42, %v1092_v42  ;;  %5877 = vmatpush1.bf16.msra.mxu1 %v16555_v29  ;;  %v703_v56 = vmax.f32 %v530_v53, 0.0 }
 0x109   :  { %v1682_v44 = vld [vmem:[#allocation2 + $0x27] sm:$0xff]  ;;  %2224 = vst [vmem:[#allocation4 + $0xc4] sm:$0xf] %v15140_v35  ;;  %3403 = vst [vmem:[#allocation4 + $0xb0] sm:$0xf] %v15140_v35  ;;  %v15236_v47 = vpack.c.bf16 %v1387_v43, %v1387_v43  ;;  %v532_v57 = vpop.f32.mrf.mxu0  ;;  %5878 = vmatprep.subr.bf16.mxu1 %v19356_v0 }
 0x10a   :  { %2811 = vst [vmem:[#allocation4 + $0x60] sm:$0xf] %v15430_v38  ;;  %v15285_v48 = vpack.c.bf16 %v1682_v44, %v1682_v44  ;;  %v2566_v49 = vld [vmem:[#allocation2 + $0x26] sm:$0xff]  ;;  %751 = vst [vmem:[#allocation2 + $0x38] sm:$0xff] %v702_v39  ;;  %v16554_v51 = vld [vmem:[#allocation4 + $0x8] ss:$36 sps:$4 sm:$0xff]   ;;  %v533_v61 = vadd.f32 %v17777_v30, %v532_v57  ;;  %v15142_v3 = vpack.c.bf16 %v703_v56, %v703_v56 }
 0x10b   :  { %v15431_v52 = vpack.c.bf16 %v2566_v49, %v2566_v49  ;;  %1338 = vst [vmem:[#allocation4 + $0x94] sm:$0xf] %v15187_v46  ;;  %1633 = vst [vmem:[#allocation4 + $0x98] sm:$0xf] %v15236_v47  ;;  %5677 = vmatmul.mubr.bf16.vlgmr.msra.gmra.mxu0 %v16554_v51  ;;  %v534_v4 = vpop.f32.mrf.mxu0  ;;  %v16560_v19 = vld [vmem:[#allocation4 + $0x48] ss:$36 sps:$4 sm:$0xff]  }
 0x10c   :  { %1928 = vst [vmem:[#allocation4 + $0x9c] sm:$0xf] %v15285_v48  ;;  %2517 = vst [vmem:[#allocation4 + $0x80] sm:$0xf] %v15187_v46  ;;  %v1093_v58 = vld [vmem:[#allocation2 + $0x29] sm:$0xff]  ;;  %v704_v7 = vmax.f32 %v533_v61, 0.0  ;;  %5879 = vmatpush1.bf16.msra.mxu1 %v16562_v55  ;;  %6109 = vmatpush1.bf16.msra.mxu0 %v16668_v27 }
 0x10d   :  { %3107 = vst [vmem:[#allocation4 + $0x88] sm:$0xf] %v15285_v48  ;;  %1046 = vst [vmem:[#allocation4 + $0xfc] sm:$0xf] %v15141_v50  ;;  %v1388_v59 = vld [vmem:[#allocation2 + $0x2a] sm:$0xff]  ;;  %v15188_v62 = vpack.c.bf16 %v1093_v58, %v1093_v58  ;;  %v537_v12 = vpop.f32.mrf.mxu0  ;;  %5880 = vmatprep.subr.bf16.mxu1 %v19356_v0  ;;  %v16582_v26 = vld [vmem:[%s19348_s3 + $0x120] sm:$0xff]   ;;  %6110 = vmatprep.subr.bf16.mxu0 %v19356_v0 }
 0x10e   :  { %2225 = vst [vmem:[#allocation4 + $0xe8] sm:$0xf] %v15141_v50  ;;  %3404 = vst [vmem:[#allocation4 + $0xd4] sm:$0xf] %v15141_v50  ;;  %v1683_v60 = vld [vmem:[#allocation2 + $0x2f] sm:$0xff]  ;;  %v15237_v63 = vpack.c.bf16 %v1388_v59, %v1388_v59  ;;  %v15143_v17 = vpack.c.bf16 %v704_v7, %v704_v7  ;;  %v538_v21 = vadd.f32 %v17777_v30, %v537_v12  ;;  %v16595_v39 = vld [vmem:[%s19348_s3 + $0x118] sm:$0xff]  }
 0x10f   :  { %2812 = vst [vmem:[#allocation4 + $0x84] sm:$0xf] %v15431_v52  ;;  %v15286_v1 = vpack.c.bf16 %v1683_v60, %v1683_v60  ;;  %v2567_v2 = vld [vmem:[#allocation2 + $0x2e] sm:$0xff]  ;;  %752 = vst [vmem:[#allocation2 + $0x40] sm:$0xff] %v703_v56  ;;  %v16556_v8 = vld [vmem:[#allocation4 + $0x4c] ss:$36 sps:$4 sm:$0xff]   ;;  %v539_v22 = vpop.f32.mrf.mxu0 }
 0x110   :  { %v15432_v6 = vpack.c.bf16 %v2567_v2, %v2567_v2  ;;  %1339 = vst [vmem:[#allocation4 + $0xb8] sm:$0xf] %v15188_v62  ;;  %1634 = vst [vmem:[#allocation4 + $0xbc] sm:$0xf] %v15237_v63  ;;  %5452 = vmatprep.mubr.bf16.mxu1 %v16556_v8  ;;  %v16558_v18 = vld [vmem:[#allocation4 + $0x54] ss:$36 sps:$4 sm:$0xff]   ;;  %5881 = vmatpush1.bf16.msra.mxu1 %v16575_v5 }
 0x111   :  { %1929 = vst [vmem:[#allocation4 + $0xc0] sm:$0xf] %v15286_v1  ;;  %2518 = vst [vmem:[#allocation4 + $0xa4] sm:$0xf] %v15188_v62  ;;  %v1094_v9 = vld [vmem:[#allocation2 + $0x31] sm:$0xff]  ;;  %5684 = vmatprep.mubr.bf16.mxu0 %v16558_v18  ;;  %5453 = vmatmul.mubr.bf16.gmra.mxu1 %v16560_v19  ;;  %v705_v24 = vmax.f32 %v538_v21, 0.0  ;;  %v540_v25 = vpop.f32.mrf.mxu0 }
 0x112   :  { %3108 = vst [vmem:[#allocation4 + $0xac] sm:$0xf] %v15286_v1  ;;  %v1389_v10 = vld [vmem:[#allocation2 + $0x32] sm:$0xff]  ;;  %1047 = vst [vmem:[#allocation4 + $0x120] sm:$0xf] %v15142_v3  ;;  %v15189_v13 = vpack.c.bf16 %v1094_v9, %v1094_v9  ;;  %v541_v32 = vadd.f32 %v17777_v30, %v540_v25  ;;  %5882 = vmatprep.subr.bf16.mxu1 %v19356_v0  ;;  %v16615_v9 = vld [vmem:[%s19348_s3 + $0x108] sm:$0xff]  }
 0x113   :  { %v1684_v11 = vld [vmem:[#allocation2 + $0x37] sm:$0xff]  ;;  %2226 = vst [vmem:[#allocation4 + $0x10c] sm:$0xf] %v15142_v3  ;;  %3405 = vst [vmem:[#allocation4 + $0xf8] sm:$0xf] %v15142_v3  ;;  %v15238_v14 = vpack.c.bf16 %v1389_v10, %v1389_v10  ;;  %v15144_v37 = vpack.c.bf16 %v705_v24, %v705_v24  ;;  %v542_v38 = vpop.f32.mrf.mxu0  ;;  %v16677_v10 = vld [vmem:[%s19348_s3 + $0x1a8] sm:$0xff]  }
 0x114   :  { %2813 = vst [vmem:[#allocation4 + $0xa8] sm:$0xf] %v15432_v6  ;;  %v15287_v15 = vpack.c.bf16 %v1684_v11, %v1684_v11  ;;  %v2568_v16 = vld [vmem:[#allocation2 + $0x36] sm:$0xff]  ;;  %753 = vst [vmem:[#allocation2 + $0x48] sm:$0xff] %v704_v7  ;;  %v16561_v23 = vld [vmem:[#allocation4 + $0x50] ss:$36 sps:$4 sm:$0xff]   ;;  %5883 = vmatpush1.bf16.msra.mxu1 %v16582_v26 }
 0x115   :  { %v15433_v20 = vpack.c.bf16 %v2568_v16, %v2568_v16  ;;  %1340 = vst [vmem:[#allocation4 + $0xdc] sm:$0xf] %v15189_v13  ;;  %1635 = vst [vmem:[#allocation4 + $0xe0] sm:$0xf] %v15238_v14  ;;  %5685 = vmatmul.mubr.bf16.gmra.mxu0 %v16561_v23  ;;  %v706_v41 = vmax.f32 %v541_v32, 0.0  ;;  %v545_v46 = vpop.f32.mrf.mxu0  ;;  %5884 = vmatprep.subr.bf16.mxu1 %v19356_v0  ;;  %v16670_v58 = vld [vmem:[%s19348_s3 + $0x1b0] sm:$0xff]  }
 0x116   :  { %1930 = vst [vmem:[#allocation4 + $0xe4] sm:$0xf] %v15287_v15  ;;  %2519 = vst [vmem:[#allocation4 + $0xc8] sm:$0xf] %v15189_v13  ;;  %v1095_v28 = vld [vmem:[#allocation2 + $0x39] sm:$0xff]  ;;  %v546_v55 = vadd.f32 %v17777_v30, %v545_v46  ;;  %v16606_v61 = vld [vmem:[%s19348_s3 + $0x110] sm:$0xff]   ;;  %6111 = vmatpush1.bf16.msra.mxu0 %v16670_v58 }
 0x117   :  { %3109 = vst [vmem:[#allocation4 + $0xd0] sm:$0xf] %v15287_v15  ;;  %1048 = vst [vmem:[#allocation4 + $0x144] sm:$0xf] %v15143_v17  ;;  %v1390_v29 = vld [vmem:[#allocation2 + $0x3a] sm:$0xff]  ;;  %v15190_v33 = vpack.c.bf16 %v1095_v28, %v1095_v28  ;;  %v15145_v51 = vpack.c.bf16 %v706_v41, %v706_v41  ;;  %v547_v56 = vpop.f32.mrf.mxu0  ;;  %6112 = vmatprep.subr.bf16.mxu0 %v19356_v0 }
 0x118   :  { %2227 = vst [vmem:[#allocation4 + $0x130] sm:$0xf] %v15143_v17  ;;  %3406 = vst [vmem:[#allocation4 + $0x11c] sm:$0xf] %v15143_v17  ;;  %v1685_v31 = vld [vmem:[#allocation2 + $0x3f] sm:$0xff]  ;;  %v15239_v34 = vpack.c.bf16 %v1390_v29, %v1390_v29  ;;  %v707_v59 = vmax.f32 %v546_v55, 0.0  ;;  %5885 = vmatpush1.bf16.msra.mxu1 %v16595_v39 }
 0x119   :  { %2814 = vst [vmem:[#allocation4 + $0xcc] sm:$0xf] %v15433_v20  ;;  %v15288_v35 = vpack.c.bf16 %v1685_v31, %v1685_v31  ;;  %v2569_v36 = vld [vmem:[#allocation2 + $0x3e] sm:$0xff]  ;;  %754 = vst [vmem:[#allocation2 + $0x50] sm:$0xff] %v705_v24  ;;  %v16565_v52 = vld [vmem:[#allocation4 + $0x9c] ss:$36 sps:$4 sm:$0xff]   ;;  %v548_v60 = vpop.f32.mrf.mxu0  ;;  %5886 = vmatprep.subr.bf16.mxu1 %v19356_v0 }
 0x11a   :  { %v15434_v40 = vpack.c.bf16 %v2569_v36, %v2569_v36  ;;  %v16563_v42 = vld [vmem:[#allocation4 + $0x94] ss:$36 sps:$4 sm:$0xff]   ;;  %1341 = vst [vmem:[#allocation4 + $0x100] sm:$0xf] %v15190_v33  ;;  %1636 = vst [vmem:[#allocation4 + $0x104] sm:$0xf] %v15239_v34  ;;  %5692 = vmatprep.mubr.bf16.mxu0 %v16565_v52  ;;  %v549_v2 = vadd.f32 %v17777_v30, %v548_v60  ;;  %v15146_v7 = vpack.c.bf16 %v707_v59, %v707_v59 }
 0x11b   :  { %1931 = vst [vmem:[#allocation4 + $0x108] sm:$0xf] %v15288_v35  ;;  %2520 = vst [vmem:[#allocation4 + $0xec] sm:$0xf] %v15190_v33  ;;  %v1096_v43 = vld [vmem:[#allocation2 + $0x41] sm:$0xff]  ;;  %5460 = vmatprep.mubr.bf16.mxu1 %v16563_v42  ;;  %v550_v8 = vpop.f32.mrf.mxu0  ;;  %6113 = vmatpush1.bf16.msra.mxu0 %v16677_v10 }
 0x11c   :  { %3110 = vst [vmem:[#allocation4 + $0xf4] sm:$0xf] %v15288_v35  ;;  %v1391_v44 = vld [vmem:[#allocation2 + $0x42] sm:$0xff]  ;;  %1049 = vst [vmem:[#allocation4 + $0x168] sm:$0xf] %v15144_v37  ;;  %v15191_v47 = vpack.c.bf16 %v1096_v43, %v1096_v43  ;;  %v708_v12 = vmax.f32 %v549_v2, 0.0  ;;  %5887 = vmatpush1.bf16.msra.mxu1 %v16606_v61  ;;  %6114 = vmatprep.subr.bf16.mxu0 %v19356_v0 }
 0x11d   :  { %v1686_v45 = vld [vmem:[#allocation2 + $0x47] sm:$0xff]  ;;  %2228 = vst [vmem:[#allocation4 + $0x154] sm:$0xf] %v15144_v37  ;;  %3407 = vst [vmem:[#allocation4 + $0x140] sm:$0xf] %v15144_v37  ;;  %v15240_v48 = vpack.c.bf16 %v1391_v44, %v1391_v44  ;;  %v553_v17 = vpop.f32.mrf.mxu0  ;;  %5888 = vmatprep.subr.bf16.mxu1 %v19356_v0  ;;  %v16635_v44 = vld [vmem:[%s19348_s3 + $0x178] sm:$0xff]  }
 0x11e   :  { %2815 = vst [vmem:[#allocation4 + $0xf0] sm:$0xf] %v15434_v40  ;;  %v15289_v49 = vpack.c.bf16 %v1686_v45, %v1686_v45  ;;  %v2570_v50 = vld [vmem:[#allocation2 + $0x46] sm:$0xff]  ;;  %755 = vst [vmem:[#allocation2 + $0x58] sm:$0xff] %v706_v41  ;;  %v15147_v22 = vpack.c.bf16 %v708_v12, %v708_v12  ;;  %v554_v26 = vadd.f32 %v17777_v30, %v553_v17  ;;  %v16686_v45 = vld [vmem:[%s19348_s3 + $0x198] sm:$0xff]  }
 0x11f   :  { %v16567_v53 = vld [vmem:[#allocation4 + $0x90] ss:$36 sps:$4 sm:$0xff]   ;;  %v15435_v54 = vpack.c.bf16 %v2570_v50, %v2570_v50  ;;  %v16568_v57 = vld [vmem:[#allocation4 + $0x98] ss:$36 sps:$4 sm:$0xff]   ;;  %1342 = vst [vmem:[#allocation4 + $0x124] sm:$0xf] %v15191_v47  ;;  %v555_v27 = vpop.f32.mrf.mxu0 }
 0x120   :  { %1637 = vst [vmem:[#allocation4 + $0x128] sm:$0xf] %v15240_v48  ;;  %1932 = vst [vmem:[#allocation4 + $0x12c] sm:$0xf] %v15289_v49  ;;  %5461 = vmatmul.mubr.bf16.gmra.mxu1 %v16567_v53  ;;  %5693 = vmatmul.mubr.bf16.gmra.mxu0 %v16568_v57  ;;  %v1097_v62 = vld [vmem:[#allocation2 + $0x49] sm:$0xff]  ;;  %v16678_v29 = vld [vmem:[%s19348_s3 + $0x1a0] sm:$0xff]  }
 0x121   :  { %2521 = vst [vmem:[#allocation4 + $0x110] sm:$0xf] %v15191_v47  ;;  %3111 = vst [vmem:[#allocation4 + $0x118] sm:$0xf] %v15289_v49  ;;  %v1392_v63 = vld [vmem:[#allocation2 + $0x4a] sm:$0xff]  ;;  %v15192_v3 = vpack.c.bf16 %v1097_v62, %v1097_v62  ;;  %v709_v31 = vmax.f32 %v554_v26, 0.0  ;;  %v556_v32 = vpop.f32.mrf.mxu0  ;;  %5889 = vmatpush1.bf16.msra.mxu1 %v16615_v9  ;;  %6115 = vmatpush1.bf16.msra.mxu0 %v16678_v29 }
 0x122   :  { %1050 = vst [vmem:[#allocation4 + $0x18c] sm:$0xf] %v15145_v51  ;;  %2229 = vst [vmem:[#allocation4 + $0x178] sm:$0xf] %v15145_v51  ;;  %v1687_v1 = vld [vmem:[#allocation2 + $0x4f] sm:$0xff]  ;;  %v15241_v4 = vpack.c.bf16 %v1392_v63, %v1392_v63  ;;  %v16628_v33 = vld [vmem:[%s19348_s3 + $0x100] sm:$0xff]   ;;  %v557_v37 = vadd.f32 %v17777_v30, %v556_v32  ;;  %5890 = vmatprep.subr.bf16.mxu1 %v19356_v0  ;;  %6116 = vmatprep.subr.bf16.mxu0 %v19356_v0 }
 0x123   :  { %3408 = vst [vmem:[#allocation4 + $0x164] sm:$0xf] %v15145_v51  ;;  %2816 = vst [vmem:[#allocation4 + $0x114] sm:$0xf] %v15435_v54  ;;  %v15290_v5 = vpack.c.bf16 %v1687_v1, %v1687_v1  ;;  %v2571_v6 = vld [vmem:[#allocation2 + $0x4e] sm:$0xff]  ;;  %v15148_v42 = vpack.c.bf16 %v709_v31, %v709_v31  ;;  %v558_v43 = vpop.f32.mrf.mxu0  ;;  %v17384_v32 = vmov 0.0  }
 0x124   :  { %756 = vst [vmem:[#allocation2 + $0x60] sm:$0xff] %v707_v59  ;;  %v15436_v11 = vpack.c.bf16 %v2571_v6, %v2571_v6  ;;  %v16569_v13 = vld [vmem:[#allocation4 + $0xdc] ss:$36 sps:$4 sm:$0xff]   ;;  %1343 = vst [vmem:[#allocation4 + $0x148] sm:$0xf] %v15192_v3  ;;  %v710_v47 = vmax.f32 %v557_v37, 0.0 }
 0x125   :  { %1638 = vst [vmem:[#allocation4 + $0x14c] sm:$0xf] %v15241_v4  ;;  %1933 = vst [vmem:[#allocation4 + $0x150] sm:$0xf] %v15290_v5  ;;  %v1098_v14 = vld [vmem:[#allocation2 + $0x51] sm:$0xff]  ;;  %5468 = vmatprep.mubr.bf16.mxu1 %v16569_v13  ;;  %v561_v52 = vpop.f32.mrf.mxu0  ;;  %5891 = vmatpush1.bf16.msra.mxu1 %v16628_v33  ;;  %v16696_v37 = vld [vmem:[%s19348_s3 + $0x180] sm:$0xff]  }
 0x126   :  { %2522 = vst [vmem:[#allocation4 + $0x134] sm:$0xf] %v15192_v3  ;;  %3112 = vst [vmem:[#allocation4 + $0x13c] sm:$0xf] %v15290_v5  ;;  %v1393_v15 = vld [vmem:[#allocation2 + $0x52] sm:$0xff]  ;;  %v15193_v18 = vpack.c.bf16 %v1098_v14, %v1098_v14  ;;  %v15149_v57 = vpack.c.bf16 %v710_v47, %v710_v47  ;;  %v562_v61 = vadd.f32 %v17777_v30, %v561_v52  ;;  %5892 = vmatprep.subr.bf16.mxu1 %v19356_v0 }
 0x127   :  { %v1688_v16 = vld [vmem:[#allocation2 + $0x57] sm:$0xff]  ;;  %1051 = vst [vmem:[#allocation4 + $0x1b0] sm:$0xf] %v15146_v7  ;;  %2230 = vst [vmem:[#allocation4 + $0x19c] sm:$0xf] %v15146_v7  ;;  %v15242_v19 = vpack.c.bf16 %v1393_v15, %v1393_v15  ;;  %v563_v62 = vpop.f32.mrf.mxu0  ;;  %6117 = vmatpush1.bf16.msra.mxu0 %v16686_v45  ;;  %v16655_v15 = vld [vmem:[%s19348_s3 + $0x168] sm:$0xff]  }
 0x128   :  { %3409 = vst [vmem:[#allocation4 + $0x188] sm:$0xf] %v15146_v7  ;;  %2817 = vst [vmem:[#allocation4 + $0x138] sm:$0xf] %v15436_v11  ;;  %v15291_v20 = vpack.c.bf16 %v1688_v16, %v1688_v16  ;;  %v2572_v21 = vld [vmem:[#allocation2 + $0x56] sm:$0xff]  ;;  %v711_v2 = vmax.f32 %v562_v61, 0.0  ;;  %6118 = vmatprep.subr.bf16.mxu0 %v19356_v0 }
 0x129   :  { %757 = vst [vmem:[#allocation2 + $0x68] sm:$0xff] %v708_v12  ;;  %v16571_v23 = vld [vmem:[#allocation4 + $0xe4] ss:$36 sps:$4 sm:$0xff]   ;;  %v16573_v24 = vld [vmem:[#allocation4 + $0xd8] ss:$36 sps:$4 sm:$0xff]   ;;  %v15437_v25 = vpack.c.bf16 %v2572_v21, %v2572_v21  ;;  %758 = vst [vmem:[#allocation2 + $0x70] sm:$0xff] %v709_v31  ;;  %v564_v3 = vpop.f32.mrf.mxu0  ;;  %5893 = vmatpush2.bf16.msra.mxu1 %v16635_v44 }
 0x12a   :  { %v16574_v28 = vld [vmem:[#allocation4 + $0xe0] ss:$36 sps:$4 sm:$0xff]   ;;  %1344 = vst [vmem:[#allocation4 + $0x16c] sm:$0xf] %v15193_v18  ;;  %1639 = vst [vmem:[#allocation4 + $0x170] sm:$0xf] %v15242_v19  ;;  %5700 = vmatprep.mubr.bf16.mxu0 %v16571_v23  ;;  %5469 = vmatmul.mubr.bf16.gmra.mxu1 %v16573_v24  ;;  %v565_v8 = vadd.f32 %v17777_v30, %v564_v3  ;;  %v15150_v13 = vpack.c.bf16 %v711_v2, %v711_v2 }
 0x12b   :  { %1934 = vst [vmem:[#allocation4 + $0x174] sm:$0xf] %v15291_v20  ;;  %2523 = vst [vmem:[#allocation4 + $0x158] sm:$0xf] %v15193_v18  ;;  %5701 = vmatmul.mubr.bf16.gmra.mxu0 %v16574_v28  ;;  %v1099_v34 = vld [vmem:[#allocation2 + $0x59] sm:$0xff]  ;;  %v16687_v1 = vld [vmem:[%s19348_s3 + $0x190] sm:$0xff]   ;;  %5894 = vmatprep.subr.bf16.mxu1 %v19356_v0  ;;  %v566_v14 = vpop.f32.mrf.mxu0 }
 0x12c   :  { %3113 = vst [vmem:[#allocation4 + $0x160] sm:$0xf] %v15291_v20  ;;  %1052 = vst [vmem:[#allocation4 + $0x1d4] sm:$0xf] %v15147_v22  ;;  %v1394_v35 = vld [vmem:[#allocation2 + $0x5a] sm:$0xff]  ;;  %v15194_v38 = vpack.c.bf16 %v1099_v34, %v1099_v34  ;;  %v16648_v4 = vld [vmem:[%s19348_s3 + $0x170] sm:$0xff]   ;;  %6119 = vmatpush1.bf16.msra.mxu0 %v16687_v1 }
 0x12d   :  { %2231 = vst [vmem:[#allocation4 + $0x1c0] sm:$0xf] %v15147_v22  ;;  %3410 = vst [vmem:[#allocation4 + $0x1ac] sm:$0xf] %v15147_v22  ;;  %v1689_v36 = vld [vmem:[#allocation2 + $0x5f] sm:$0xff]  ;;  %v15243_v39 = vpack.c.bf16 %v1394_v35, %v1394_v35  ;;  %v16694_v16 = vld [vmem:[%s19348_s3 + $0x188] sm:$0xff]   ;;  %6120 = vmatprep.subr.bf16.mxu0 %v19356_v0  ;;  %v569_v23 = vpop.f32.mrf.mxu0  ;;  %5895 = vmatpush2.bf16.msra.mxu1 %v16648_v4 }
 0x12e   :  { %2818 = vst [vmem:[#allocation4 + $0x15c] sm:$0xf] %v15437_v25  ;;  %v15292_v40 = vpack.c.bf16 %v1689_v36, %v1689_v36  ;;  %v2573_v41 = vld [vmem:[#allocation2 + $0x5e] sm:$0xff]  ;;  %v16576_v48 = vld [vmem:[#allocation4 + $0x124] ss:$36 sps:$4 sm:$0xff]   ;;  %759 = vst [vmem:[#allocation2 + $0x78] sm:$0xff] %v710_v47  ;;  %v570_v34 = vadd.f32 %v17777_v30, %v569_v23  ;;  %5896 = vmatprep.subr.bf16.mxu1 %v19356_v0 }
 0x12f   :  { %v15438_v46 = vpack.c.bf16 %v2573_v41, %v2573_v41  ;;  %1345 = vst [vmem:[#allocation4 + $0x190] sm:$0xf] %v15194_v38  ;;  %1640 = vst [vmem:[#allocation4 + $0x194] sm:$0xf] %v15243_v39  ;;  %5476 = vmatprep.mubr.bf16.mxu1 %v16576_v48  ;;  %v16578_v58 = vld [vmem:[#allocation4 + $0x12c] ss:$36 sps:$4 sm:$0xff]   ;;  %v571_v35 = vpop.f32.mrf.mxu0 }
 0x130   :  { %1935 = vst [vmem:[#allocation4 + $0x198] sm:$0xf] %v15292_v40  ;;  %2524 = vst [vmem:[#allocation4 + $0x17c] sm:$0xf] %v15194_v38  ;;  %v1100_v49 = vld [vmem:[#allocation2 + $0x61] sm:$0xff]  ;;  %5708 = vmatprep.mubr.bf16.mxu0 %v16578_v58  ;;  %v1101_v5 = vld [vmem:[#allocation2 + $0x69] sm:$0xff]  ;;  %6121 = vmatpush1.bf16.msra.mxu0 %v16694_v16 }
 0x131   :  { %3114 = vst [vmem:[#allocation4 + $0x184] sm:$0xf] %v15292_v40  ;;  %v1395_v50 = vld [vmem:[#allocation2 + $0x62] sm:$0xff]  ;;  %1053 = vst [vmem:[#allocation4 + $0x1f8] sm:$0xf] %v15148_v42  ;;  %v15195_v53 = vpack.c.bf16 %v1100_v49, %v1100_v49  ;;  %v1396_v6 = vld [vmem:[#allocation2 + $0x6a] sm:$0xff]  ;;  %v15196_v9 = vpack.c.bf16 %v1101_v5, %v1101_v5  ;;  %v572_v38 = vpop.f32.mrf.mxu0  ;;  %5897 = vmatpush2.bf16.msra.mxu1 %v16655_v15  ;;  %6122 = vmatprep.subr.bf16.mxu0 %v19356_v0 }
 0x132   :  { %v1690_v51 = vld [vmem:[#allocation2 + $0x67] sm:$0xff]  ;;  %2232 = vst [vmem:[#allocation4 + $0x1e4] sm:$0xf] %v15148_v42  ;;  %3411 = vst [vmem:[#allocation4 + $0x1d0] sm:$0xf] %v15148_v42  ;;  %v15244_v54 = vpack.c.bf16 %v1395_v50, %v1395_v50  ;;  %v1691_v7 = vld [vmem:[#allocation2 + $0x6f] sm:$0xff]  ;;  %v15245_v10 = vpack.c.bf16 %v1396_v6, %v1396_v6  ;;  %5898 = vmatprep.subr.bf16.mxu1 %v19356_v0 }
 0x133   :  { %2819 = vst [vmem:[#allocation4 + $0x180] sm:$0xf] %v15438_v46  ;;  %v15293_v55 = vpack.c.bf16 %v1690_v51, %v1690_v51  ;;  %v2574_v56 = vld [vmem:[#allocation2 + $0x66] sm:$0xff]  ;;  %v16580_v59 = vld [vmem:[#allocation4 + $0x120] ss:$36 sps:$4 sm:$0xff]   ;;  %v15294_v11 = vpack.c.bf16 %v1691_v7, %v1691_v7  ;;  %760 = vst [vmem:[#allocation2 + $0x80] sm:$0xff] %v711_v2  ;;  %v574_v50 = vpop.f32.mrf.mxu0 }
 0x134   :  { %v15439_v60 = vpack.c.bf16 %v2574_v56, %v2574_v56  ;;  %v16581_v63 = vld [vmem:[#allocation4 + $0x128] ss:$36 sps:$4 sm:$0xff]   ;;  %1346 = vst [vmem:[#allocation4 + $0x1b4] sm:$0xf] %v15195_v53  ;;  %1641 = vst [vmem:[#allocation4 + $0x1b8] sm:$0xf] %v15244_v54  ;;  %5477 = vmatmul.mubr.bf16.gmra.mxu1 %v16580_v59  ;;  %6123 = vmatpush1.bf16.msra.mxu0 %v16696_v37 }
 0x135   :  { %1936 = vst [vmem:[#allocation4 + $0x1bc] sm:$0xf] %v15293_v55  ;;  %2525 = vst [vmem:[#allocation4 + $0x1a0] sm:$0xf] %v15195_v53  ;;  %5709 = vmatmul.mubr.bf16.gmra.mxu0 %v16581_v63  ;;  %v2575_v12 = vld [vmem:[#allocation2 + $0x6e] sm:$0xff]  ;;  %v712_v18 = vmax.f32 %v565_v8, 0.0  ;;  %6124 = vmatprep.subr.bf16.mxu0 %v19356_v0  ;;  %v577_v59 = vpop.f32.mrf.mxu0 }
 0x136   :  { %3115 = vst [vmem:[#allocation4 + $0x1a8] sm:$0xf] %v15293_v55  ;;  %1054 = vst [vmem:[#allocation4 + $0x21c] sm:$0xf] %v15149_v57  ;;  %v15440_v17 = vpack.c.bf16 %v2575_v12, %v2575_v12  ;;  %v16583_v19 = vld [vmem:[#allocation4 + $0x16c] ss:$36 sps:$4 sm:$0xff]  }
 0x137   :  { %2233 = vst [vmem:[#allocation4 + $0x208] sm:$0xf] %v15149_v57  ;;  %3412 = vst [vmem:[#allocation4 + $0x1f4] sm:$0xf] %v15149_v57  ;;  %v1102_v20 = vld [vmem:[#allocation2 + $0x71] sm:$0xff]  ;;  %v15151_v28 = vpack.c.bf16 %v712_v18, %v712_v18  ;;  %5484 = vmatprep.mubr.bf16.mxu1 %v16583_v19  ;;  %v713_v30 = vmax.f32 %v570_v34, 0.0  ;;  %v579_v6 = vpop.f32.mrf.mxu0 }
 0x138   :  { %2820 = vst [vmem:[#allocation4 + $0x1a4] sm:$0xf] %v15439_v60  ;;  %1347 = vst [vmem:[#allocation4 + $0x1d8] sm:$0xf] %v15196_v9  ;;  %v1397_v21 = vld [vmem:[#allocation2 + $0x72] sm:$0xff]  ;;  %v15197_v24 = vpack.c.bf16 %v1102_v20, %v1102_v20  ;;  %v16669_v39 = vld [vmem:[%s19348_s3 + $0x160] sm:$0xff]  }
 0x139   :  { %1642 = vst [vmem:[#allocation4 + $0x1dc] sm:$0xf] %v15245_v10  ;;  %1937 = vst [vmem:[#allocation4 + $0x1e0] sm:$0xf] %v15294_v11  ;;  %v1692_v22 = vld [vmem:[#allocation2 + $0x77] sm:$0xff]  ;;  %v15246_v25 = vpack.c.bf16 %v1397_v21, %v1397_v21  ;;  %v15152_v49 = vpack.c.bf16 %v713_v30, %v713_v30  ;;  %5899 = vmatpush2.bf16.msra.mxu1 %v16669_v39  ;;  %v580_v10 = vpop.f32.mrf.mxu0  ;;  %v16712_v23 = vld [vmem:[%s19348_s3 + $0x1e8] sm:$0xff]  }
 0x13a   :  { %2526 = vst [vmem:[#allocation4 + $0x1c4] sm:$0xf] %v15196_v9  ;;  %3116 = vst [vmem:[#allocation4 + $0x1cc] sm:$0xf] %v15294_v11  ;;  %v15295_v26 = vpack.c.bf16 %v1692_v22, %v1692_v22  ;;  %v2576_v27 = vld [vmem:[#allocation2 + $0x76] sm:$0xff]  ;;  %v1693_v42 = vld [vmem:[#allocation2 + $0x7f] sm:$0xff]  ;;  %5900 = vmatprep.subr.bf16.mxu1 %v19356_v0 }
 0x13b   :  { %1055 = vst [vmem:[#allocation4 + $0x240] sm:$0xf] %v15150_v13  ;;  %2234 = vst [vmem:[#allocation4 + $0x22c] sm:$0xf] %v15150_v13  ;;  %v16585_v29 = vld [vmem:[#allocation4 + $0x174] ss:$36 sps:$4 sm:$0xff]   ;;  %v15441_v33 = vpack.c.bf16 %v2576_v27, %v2576_v27  ;;  %v15296_v47 = vpack.c.bf16 %v1693_v42, %v1693_v42  ;;  %v582_v21 = vpop.f32.mrf.mxu0 }
 0x13c   :  { %3413 = vst [vmem:[#allocation4 + $0x218] sm:$0xf] %v15150_v13  ;;  %2821 = vst [vmem:[#allocation4 + $0x1c8] sm:$0xf] %v15440_v17  ;;  %v16587_v31 = vld [vmem:[#allocation4 + $0x168] ss:$36 sps:$4 sm:$0xff]   ;;  %5716 = vmatprep.mubr.bf16.mxu0 %v16585_v29 }
 0x13d   :  { %761 = vst [vmem:[#allocation2 + $0x88] sm:$0xff] %v712_v18  ;;  %33 = vst [vmem:[#allocation2 + $0x188] sm:$0xff] %v17384_v32  ;;  %v16588_v36 = vld [vmem:[#allocation4 + $0x170] ss:$36 sps:$4 sm:$0xff]   ;;  %5485 = vmatmul.mubr.bf16.gmra.mxu1 %v16587_v31  ;;  %v16679_v51 = vld [vmem:[%s19348_s3 + $0x158] sm:$0xff]   ;;  %v585_v31 = vpop.f32.mrf.mxu0 }
 0x13e   :  { %34 = vst [vmem:[#allocation2 + $0x190] sm:$0xff] %v17384_v32  ;;  %35 = vst [vmem:[#allocation3 + $0x188] sm:$0xff] %v17384_v32  ;;  %5717 = vmatmul.mubr.bf16.gmra.mxu0 %v16588_v36  ;;  %v1103_v40 = vld [vmem:[#allocation2 + $0x79] sm:$0xff]  ;;  %v16704_v8 = vld [vmem:[%s19348_s3 + $0x1f0] sm:$0xff]   ;;  %5901 = vmatpush2.bf16.msra.mxu1 %v16679_v51 }
 0x13f   :  { %36 = vst [vmem:[#allocation3 + $0x190] sm:$0xff] %v17384_v32  ;;  %1348 = vst [vmem:[#allocation4 + $0x1fc] sm:$0xf] %v15197_v24  ;;  %v1398_v41 = vld [vmem:[#allocation2 + $0x7a] sm:$0xff]  ;;  %v15198_v45 = vpack.c.bf16 %v1103_v40, %v1103_v40  ;;  %v16589_v55 = vld [vmem:[#allocation4 + $0x1b4] ss:$36 sps:$4 sm:$0xff]   ;;  %5902 = vmatprep.subr.bf16.mxu1 %v19356_v0  ;;  %v587_v42 = vpop.f32.mrf.mxu0 }
 0x140   :  { %1643 = vst [vmem:[#allocation4 + $0x200] sm:$0xf] %v15246_v25  ;;  %1938 = vst [vmem:[#allocation4 + $0x204] sm:$0xf] %v15295_v26  ;;  %v17881_v43 = vld [vmem:[%s19349_s2] ss:$0 sm:$0xff]  ;;  %v15247_v46 = vpack.c.bf16 %v1398_v41, %v1398_v41  ;;  %5492 = vmatprep.mubr.bf16.mxu1 %v16589_v55 }
 0x141   :  { %2527 = vst [vmem:[#allocation4 + $0x1e8] sm:$0xf] %v15197_v24  ;;  %3117 = vst [vmem:[#allocation4 + $0x1f0] sm:$0xf] %v15295_v26  ;;  %v573_v44 = vadd.f32 %v17881_v43, %v572_v38  ;;  %v2577_v48 = vld [vmem:[#allocation2 + $0x7e] sm:$0xff]  ;;  %v578_v5 = vadd.f32 %v17881_v43, %v577_v59  ;;  %v16695_v11 = vld [vmem:[%s19348_s3 + $0x150] sm:$0xff]   ;;  %v581_v15 = vadd.f32 %v17881_v43, %v580_v10 }
 0x142   :  { %1056 = vst [vmem:[#allocation4 + $0x264] sm:$0xf] %v15151_v28  ;;  %2235 = vst [vmem:[#allocation4 + $0x250] sm:$0xf] %v15151_v28  ;;  %v16703_v52 = vld [vmem:[%s19348_s3 + $0x1f8] sm:$0xff]   ;;  %v15442_v53 = vpack.c.bf16 %v2577_v48, %v2577_v48  ;;  %v16709_v22 = vld [vmem:[%s19348_s3 + $0x148] sm:$0xff]   ;;  %5903 = vmatpush2.bf16.msra.mxu1 %v16695_v11  ;;  %v586_v41 = vadd.f32 %v17881_v43, %v585_v31 }
 0x143   :  { %3414 = vst [vmem:[#allocation4 + $0x23c] sm:$0xf] %v15151_v28  ;;  %2822 = vst [vmem:[#allocation4 + $0x1ec] sm:$0xf] %v15441_v33  ;;  %v714_v54 = vmax.f32 %v573_v44, 0.0  ;;  %6125 = vmatpush2.bf16.msra.mxu0 %v16703_v52  ;;  %v715_v9 = vmax.f32 %v578_v5, 0.0  ;;  %5904 = vmatprep.subr.bf16.mxu1 %v19356_v0 }
 0x144   :  { %762 = vst [vmem:[#allocation2 + $0x90] sm:$0xff] %v713_v30  ;;  %1349 = vst [vmem:[#allocation4 + $0x220] sm:$0xf] %v15198_v45  ;;  %v1104_v56 = vld [vmem:[#allocation2 + $0x81] sm:$0xff]  ;;  %v16591_v2 = vld [vmem:[#allocation4 + $0x1bc] ss:$36 sps:$4 sm:$0xff]   ;;  %6126 = vmatprep.subr.bf16.mxu0 %v19356_v0 }
 0x145   :  { %1644 = vst [vmem:[#allocation4 + $0x224] sm:$0xf] %v15247_v46  ;;  %1939 = vst [vmem:[#allocation4 + $0x228] sm:$0xf] %v15296_v47  ;;  %v1399_v57 = vld [vmem:[#allocation2 + $0x82] sm:$0xff]  ;;  %v15199_v60 = vpack.c.bf16 %v1104_v56, %v1104_v56  ;;  %v15153_v1 = vpack.c.bf16 %v714_v54, %v714_v54  ;;  %5724 = vmatprep.mubr.bf16.mxu0 %v16591_v2  ;;  %v15154_v20 = vpack.c.bf16 %v715_v9, %v715_v9  ;;  %v588_v46 = vpop.f32.mrf.mxu0 }
 0x146   :  { %2528 = vst [vmem:[#allocation4 + $0x20c] sm:$0xf] %v15198_v45  ;;  %3118 = vst [vmem:[#allocation4 + $0x214] sm:$0xf] %v15296_v47  ;;  %v1694_v58 = vld [vmem:[#allocation2 + $0x87] sm:$0xff]  ;;  %v15248_v61 = vpack.c.bf16 %v1399_v57, %v1399_v57  ;;  %v716_v25 = vmax.f32 %v581_v15, 0.0  ;;  %5905 = vmatpush2.bf16.msra.mxu1 %v16709_v22  ;;  %v589_v50 = vadd.f32 %v17881_v43, %v588_v46 }
 0x147   :  { %1057 = vst [vmem:[#allocation4 + $0x288] sm:$0xf] %v15152_v49  ;;  %2236 = vst [vmem:[#allocation4 + $0x274] sm:$0xf] %v15152_v49  ;;  %v15297_v62 = vpack.c.bf16 %v1694_v58, %v1694_v58  ;;  %v2578_v63 = vld [vmem:[#allocation2 + $0x86] sm:$0xff]  ;;  %6127 = vmatpush2.bf16.msra.mxu0 %v16704_v8  ;;  %v717_v45 = vmax.f32 %v586_v41, 0.0  ;;  %5906 = vmatprep.subr.bf16.mxu1 %v19356_v0  ;;  %v590_v56 = vpop.f32.mrf.mxu0 }
 0x148   :  { %3415 = vst [vmem:[#allocation4 + $0x260] sm:$0xf] %v15152_v49  ;;  %2823 = vst [vmem:[#allocation4 + $0x210] sm:$0xf] %v15442_v53  ;;  %v16593_v3 = vld [vmem:[#allocation4 + $0x1b0] ss:$36 sps:$4 sm:$0xff]   ;;  %v15443_v4 = vpack.c.bf16 %v2578_v63, %v2578_v63  ;;  %6128 = vmatprep.subr.bf16.mxu0 %v19356_v0  ;;  %v15155_v30 = vpack.c.bf16 %v716_v25, %v716_v25 }
 0x149   :  { %763 = vst [vmem:[#allocation2 + $0x98] sm:$0xff] %v714_v54  ;;  %v16594_v7 = vld [vmem:[#allocation4 + $0x1b8] ss:$36 sps:$4 sm:$0xff]   ;;  %1350 = vst [vmem:[#allocation4 + $0x244] sm:$0xf] %v15199_v60  ;;  %5493 = vmatmul.mubr.bf16.gmra.mxu1 %v16593_v3  ;;  %v16713_v33 = vld [vmem:[%s19348_s3 + $0x1e0] sm:$0xff]   ;;  %v15156_v55 = vpack.c.bf16 %v717_v45, %v717_v45  ;;  %v593_v2 = vpop.f32.mrf.mxu0 }
 0x14a   :  { %1645 = vst [vmem:[#allocation4 + $0x248] sm:$0xf] %v15248_v61  ;;  %1940 = vst [vmem:[#allocation4 + $0x24c] sm:$0xf] %v15297_v62  ;;  %5725 = vmatmul.mubr.bf16.gmra.mxu0 %v16594_v7  ;;  %v16600_v39 = vld [vmem:[#allocation4 + $0x1f8] ss:$36 sps:$4 sm:$0xff]  }
 0x14b   :  { %2529 = vst [vmem:[#allocation4 + $0x230] sm:$0xf] %v15199_v60  ;;  %3119 = vst [vmem:[#allocation4 + $0x238] sm:$0xf] %v15297_v62  ;;  %v1105_v12 = vld [vmem:[#allocation2 + $0x89] sm:$0xff]  ;;  %6129 = vmatpush2.bf16.msra.mxu0 %v16712_v23  ;;  %v16722_v57 = vld [vmem:[%s19348_s3 + $0x1d8] sm:$0xff]  }
 0x14c   :  { %1058 = vst [vmem:[#allocation4 + $0x2ac] sm:$0xf] %v15153_v1  ;;  %2237 = vst [vmem:[#allocation4 + $0x298] sm:$0xf] %v15153_v1  ;;  %v1400_v13 = vld [vmem:[#allocation2 + $0x8a] sm:$0xff]  ;;  %v15200_v16 = vpack.c.bf16 %v1105_v12, %v1105_v12  ;;  %6130 = vmatprep.subr.bf16.mxu0 %v19356_v0  ;;  %v16723_v58 = vld [vmem:[%s19348_s3 + $0x140] sm:$0xff]   ;;  %v594_v12 = vadd.f32 %v17881_v43, %v593_v2 }
 0x14d   :  { %3416 = vst [vmem:[#allocation4 + $0x284] sm:$0xf] %v15153_v1  ;;  %2824 = vst [vmem:[#allocation4 + $0x234] sm:$0xf] %v15443_v4  ;;  %v1695_v14 = vld [vmem:[#allocation2 + $0x8f] sm:$0xff]  ;;  %v15249_v17 = vpack.c.bf16 %v1400_v13, %v1400_v13  ;;  %v718_v60 = vmax.f32 %v589_v50, 0.0  ;;  %5907 = vmatpush2.bf16.msra.mxu1 %v16723_v58  ;;  %v595_v13 = vpop.f32.mrf.mxu0 }
 0x14e   :  { %v15298_v18 = vpack.c.bf16 %v1695_v14, %v1695_v14  ;;  %v2579_v19 = vld [vmem:[#allocation2 + $0x8e] sm:$0xff]  ;;  %764 = vst [vmem:[#allocation2 + $0xa0] sm:$0xff] %v715_v9  ;;  %1351 = vst [vmem:[#allocation4 + $0x268] sm:$0xf] %v15200_v16  ;;  %16179 = vmatprep.subr.bf16.mxu1 %v17384_v32  ;;  %v719_v15 = vmax.f32 %v594_v12, 0.0 }
 0x14f   :  { %v15444_v24 = vpack.c.bf16 %v2579_v19, %v2579_v19  ;;  %v16596_v26 = vld [vmem:[#allocation4 + $0x1fc] ss:$36 sps:$4 sm:$0xff]   ;;  %1646 = vst [vmem:[#allocation4 + $0x26c] sm:$0xf] %v15249_v17  ;;  %2530 = vst [vmem:[#allocation4 + $0x254] sm:$0xf] %v15200_v16  ;;  %6131 = vmatpush2.bf16.msra.mxu0 %v16713_v33  ;;  %v15157_v8 = vpack.c.bf16 %v718_v60, %v718_v60  ;;  %v596_v16 = vpop.f32.mrf.mxu0 }
 0x150   :  { %1941 = vst [vmem:[#allocation4 + $0x270] sm:$0xf] %v15298_v18  ;;  %3120 = vst [vmem:[#allocation4 + $0x25c] sm:$0xf] %v15298_v18  ;;  %v1106_v27 = vld [vmem:[#allocation2 + $0x91] sm:$0xff]  ;;  %5500 = vmatprep.mubr.bf16.mxu1 %v16596_v26  ;;  %6132 = vmatprep.subr.bf16.mxu0 %v19356_v0  ;;  %v16729_v32 = vld [vmem:[%s19348_s3 + $0x1c8] sm:$0xff]  }
 0x151   :  { %v1401_v28 = vld [vmem:[#allocation2 + $0x92] sm:$0xff]  ;;  %1059 = vst [vmem:[#allocation4 + $0x2d0] sm:$0xf] %v15154_v20  ;;  %2238 = vst [vmem:[#allocation4 + $0x2bc] sm:$0xf] %v15154_v20  ;;  %v15201_v34 = vpack.c.bf16 %v1106_v27, %v1106_v27  ;;  %5501 = vmatmul.mubr.bf16.gmra.mxu1 %v16600_v39  ;;  %v598_v26 = vpop.f32.mrf.mxu0 }
 0x152   :  { %v1696_v29 = vld [vmem:[#allocation2 + $0x97] sm:$0xff]  ;;  %3417 = vst [vmem:[#allocation4 + $0x2a8] sm:$0xf] %v15154_v20  ;;  %2825 = vst [vmem:[#allocation4 + $0x258] sm:$0xf] %v15444_v24  ;;  %v15250_v35 = vpack.c.bf16 %v1401_v28, %v1401_v28  ;;  %v597_v20 = vadd.f32 %v17881_v43, %v596_v16 }
 0x153   :  { %v15299_v36 = vpack.c.bf16 %v1696_v29, %v1696_v29  ;;  %v2580_v37 = vld [vmem:[#allocation2 + $0x96] sm:$0xff]  ;;  %765 = vst [vmem:[#allocation2 + $0xa8] sm:$0xff] %v716_v25  ;;  %1352 = vst [vmem:[#allocation4 + $0x28c] sm:$0xf] %v15201_v34  ;;  %6133 = vmatpush2.bf16.msra.mxu0 %v16722_v57  ;;  %v15158_v25 = vpack.c.bf16 %v719_v15, %v719_v15 }
 0x154   :  { %v16598_v38 = vld [vmem:[#allocation4 + $0x204] ss:$36 sps:$4 sm:$0xff]   ;;  %v15445_v40 = vpack.c.bf16 %v2580_v37, %v2580_v37  ;;  %1647 = vst [vmem:[#allocation4 + $0x290] sm:$0xf] %v15250_v35  ;;  %2531 = vst [vmem:[#allocation4 + $0x278] sm:$0xf] %v15201_v34  ;;  %6134 = vmatprep.subr.bf16.mxu0 %v19356_v0  ;;  %v601_v35 = vpop.f32.mrf.mxu0 }
 0x155   :  { %v16601_v44 = vld [vmem:[#allocation4 + $0x200] ss:$36 sps:$4 sm:$0xff]   ;;  %1942 = vst [vmem:[#allocation4 + $0x294] sm:$0xf] %v15299_v36  ;;  %3121 = vst [vmem:[#allocation4 + $0x280] sm:$0xf] %v15299_v36  ;;  %5732 = vmatprep.mubr.bf16.mxu0 %v16598_v38 }
 0x156   :  { %1060 = vst [vmem:[#allocation4 + $0x2f4] sm:$0xf] %v15155_v30  ;;  %2239 = vst [vmem:[#allocation4 + $0x2e0] sm:$0xf] %v15155_v30  ;;  %5733 = vmatmul.mubr.bf16.gmra.mxu0 %v16601_v44  ;;  %v1107_v47 = vld [vmem:[#allocation2 + $0x99] sm:$0xff]  ;;  %v16724_v3 = vld [vmem:[%s19348_s3 + $0x1d0] sm:$0xff]   ;;  %v602_v44 = vadd.f32 %v17881_v43, %v601_v35 }
 0x157   :  { %3418 = vst [vmem:[#allocation4 + $0x2cc] sm:$0xf] %v15155_v30  ;;  %2826 = vst [vmem:[#allocation4 + $0x27c] sm:$0xf] %v15445_v40  ;;  %v1402_v48 = vld [vmem:[#allocation2 + $0x9a] sm:$0xff]  ;;  %v15202_v51 = vpack.c.bf16 %v1107_v47, %v1107_v47  ;;  %6135 = vmatpush2.bf16.msra.mxu0 %v16724_v3  ;;  %v720_v28 = vmax.f32 %v597_v20, 0.0 }
 0x158   :  { %v1697_v49 = vld [vmem:[#allocation2 + $0x9f] sm:$0xff]  ;;  %v15251_v52 = vpack.c.bf16 %v1402_v48, %v1402_v48  ;;  %766 = vst [vmem:[#allocation2 + $0xb0] sm:$0xff] %v717_v45  ;;  %v16602_v61 = vld [vmem:[#allocation4 + $0x244] ss:$36 sps:$4 sm:$0xff]   ;;  %1061 = vst [vmem:[#allocation4 + $0x318] sm:$0xf] %v15156_v55  ;;  %6136 = vmatprep.subr.bf16.mxu0 %v19356_v0  ;;  %v603_v45 = vpop.f32.mrf.mxu0 }
 0x159   :  { %v15300_v53 = vpack.c.bf16 %v1697_v49, %v1697_v49  ;;  %v2581_v54 = vld [vmem:[#allocation2 + $0x9e] sm:$0xff]  ;;  %1353 = vst [vmem:[#allocation4 + $0x2b0] sm:$0xf] %v15202_v51  ;;  %2532 = vst [vmem:[#allocation4 + $0x29c] sm:$0xf] %v15202_v51  ;;  %5508 = vmatprep.mubr.bf16.mxu1 %v16602_v61  ;;  %v15159_v39 = vpack.c.bf16 %v720_v28, %v720_v28  ;;  %v721_v48 = vmax.f32 %v602_v44, 0.0 }
 0x15a   :  { %v15446_v59 = vpack.c.bf16 %v2581_v54, %v2581_v54  ;;  %1648 = vst [vmem:[#allocation4 + $0x2b4] sm:$0xf] %v15251_v52  ;;  %v1108_v62 = vld [vmem:[#allocation2 + $0xa1] sm:$0xff]  ;;  %2240 = vst [vmem:[#allocation4 + $0x304] sm:$0xf] %v15156_v55  ;;  %v604_v49 = vpop.f32.mrf.mxu0 }
 0x15b   :  { %1943 = vst [vmem:[#allocation4 + $0x2b8] sm:$0xf] %v15300_v53  ;;  %3122 = vst [vmem:[#allocation4 + $0x2a4] sm:$0xf] %v15300_v53  ;;  %v1403_v63 = vld [vmem:[#allocation2 + $0xa2] sm:$0xff]  ;;  %v15203_v4 = vpack.c.bf16 %v1108_v62, %v1108_v62  ;;  %6137 = vmatpush2.bf16.msra.mxu0 %v16729_v32  ;;  %v605_v53 = vadd.f32 %v17881_v43, %v604_v49  ;;  %v15160_v58 = vpack.c.bf16 %v721_v48, %v721_v48 }
 0x15c   :  { %v1698_v1 = vld [vmem:[#allocation2 + $0xa7] sm:$0xff]  ;;  %3419 = vst [vmem:[#allocation4 + $0x2f0] sm:$0xf] %v15156_v55  ;;  %2827 = vst [vmem:[#allocation4 + $0x2a0] sm:$0xf] %v15446_v59  ;;  %v15252_v5 = vpack.c.bf16 %v1403_v63, %v1403_v63  ;;  %6138 = vmatprep.subr.bf16.mxu0 %v19356_v0  ;;  %v606_v59 = vpop.f32.mrf.mxu0 }
 0x15d   :  { %v15301_v6 = vpack.c.bf16 %v1698_v1, %v1698_v1  ;;  %v2582_v7 = vld [vmem:[#allocation2 + $0xa6] sm:$0xff]  ;;  %767 = vst [vmem:[#allocation2 + $0xb8] sm:$0xff] %v718_v60  ;;  %v16604_v9 = vld [vmem:[#allocation4 + $0x24c] ss:$36 sps:$4 sm:$0xff]   ;;  %v16607_v10 = vld [vmem:[#allocation4 + $0x240] ss:$36 sps:$4 sm:$0xff]  }
 0x15e   :  { %v15447_v11 = vpack.c.bf16 %v2582_v7, %v2582_v7  ;;  %v16608_v14 = vld [vmem:[#allocation4 + $0x248] ss:$36 sps:$4 sm:$0xff]   ;;  %1354 = vst [vmem:[#allocation4 + $0x2d4] sm:$0xf] %v15203_v4  ;;  %1649 = vst [vmem:[#allocation4 + $0x2d8] sm:$0xf] %v15252_v5  ;;  %5740 = vmatprep.mubr.bf16.mxu0 %v16604_v9  ;;  %5509 = vmatmul.mubr.bf16.gmra.mxu1 %v16607_v10  ;;  %v609_v3 = vpop.f32.mrf.mxu0 }
 0x15f   :  { %1944 = vst [vmem:[#allocation4 + $0x2dc] sm:$0xf] %v15301_v6  ;;  %2533 = vst [vmem:[#allocation4 + $0x2c0] sm:$0xf] %v15203_v4  ;;  %5741 = vmatmul.mubr.bf16.gmra.mxu0 %v16608_v14  ;;  %v1109_v17 = vld [vmem:[#allocation2 + $0xa9] sm:$0xff]  ;;  %v16733_v47 = vld [vmem:[%s19348_s3 + $0x1c0] sm:$0xff]   ;;  %v610_v12 = vadd.f32 %v17881_v43, %v609_v3 }
 0x160   :  { %3123 = vst [vmem:[#allocation4 + $0x2c8] sm:$0xf] %v15301_v6  ;;  %1062 = vst [vmem:[#allocation4 + $0x33c] sm:$0xf] %v15157_v8  ;;  %v1404_v18 = vld [vmem:[#allocation2 + $0xaa] sm:$0xff]  ;;  %v15204_v21 = vpack.c.bf16 %v1109_v17, %v1109_v17  ;;  %6139 = vmatpush2.bf16.msra.mxu0 %v16733_v47  ;;  %v722_v61 = vmax.f32 %v605_v53, 0.0  ;;  %v611_v13 = vpop.f32.mrf.mxu0 }
 0x161   :  { %2241 = vst [vmem:[#allocation4 + $0x328] sm:$0xf] %v15157_v8  ;;  %3420 = vst [vmem:[#allocation4 + $0x314] sm:$0xf] %v15157_v8  ;;  %v1699_v19 = vld [vmem:[#allocation2 + $0xaf] sm:$0xff]  ;;  %v15253_v22 = vpack.c.bf16 %v1404_v18, %v1404_v18  ;;  %11289 = vmatprep.subr.bf16.mxu0 %v19356_v0 }
 0x162   :  { %2828 = vst [vmem:[#allocation4 + $0x2c4] sm:$0xf] %v15447_v11  ;;  %v15302_v23 = vpack.c.bf16 %v1699_v19, %v1699_v19  ;;  %v2583_v24 = vld [vmem:[#allocation2 + $0xae] sm:$0xff]  ;;  %768 = vst [vmem:[#allocation2 + $0xc0] sm:$0xff] %v719_v15  ;;  %v16609_v29 = vld [vmem:[#allocation4 + $0x28c] ss:$36 sps:$4 sm:$0xff]   ;;  %v15161_v8 = vpack.c.bf16 %v722_v61, %v722_v61  ;;  %v612_v16 = vpop.f32.mrf.mxu0 }
 0x163   :  { %v15448_v27 = vpack.c.bf16 %v2583_v24, %v2583_v24  ;;  %1355 = vst [vmem:[#allocation4 + $0x2f8] sm:$0xf] %v15204_v21  ;;  %1650 = vst [vmem:[#allocation4 + $0x2fc] sm:$0xf] %v15253_v22  ;;  %5516 = vmatprep.mubr.bf16.mxu1 %v16609_v29  ;;  %v16611_v40 = vld [vmem:[#allocation4 + $0x294] ss:$36 sps:$4 sm:$0xff]   ;;  %v613_v19 = vadd.f32 %v17881_v43, %v612_v16 }
 0x164   :  { %1945 = vst [vmem:[#allocation4 + $0x300] sm:$0xf] %v15302_v23  ;;  %2534 = vst [vmem:[#allocation4 + $0x2e4] sm:$0xf] %v15204_v21  ;;  %v1110_v31 = vld [vmem:[#allocation2 + $0xb1] sm:$0xff]  ;;  %5748 = vmatprep.mubr.bf16.mxu0 %v16611_v40  ;;  %v723_v15 = vmax.f32 %v610_v12, 0.0 }
 0x165   :  { %3124 = vst [vmem:[#allocation4 + $0x2ec] sm:$0xf] %v15302_v23  ;;  %v1405_v33 = vld [vmem:[#allocation2 + $0xb2] sm:$0xff]  ;;  %1063 = vst [vmem:[#allocation4 + $0x360] sm:$0xf] %v15158_v25  ;;  %v15205_v36 = vpack.c.bf16 %v1110_v31, %v1110_v31 }
 0x166   :  { %v1700_v34 = vld [vmem:[#allocation2 + $0xb7] sm:$0xff]  ;;  %2242 = vst [vmem:[#allocation4 + $0x34c] sm:$0xf] %v15158_v25  ;;  %3421 = vst [vmem:[#allocation4 + $0x338] sm:$0xf] %v15158_v25  ;;  %v15254_v37 = vpack.c.bf16 %v1405_v33, %v1405_v33  ;;  %v15162_v24 = vpack.c.bf16 %v723_v15, %v723_v15  ;;  %v614_v25 = vpop.f32.mrf.mxu0 }
 0x167   :  { %2829 = vst [vmem:[#allocation4 + $0x2e8] sm:$0xf] %v15448_v27  ;;  %v15303_v30 = vpack.c.bf16 %v1700_v34, %v1700_v34  ;;  %v2584_v38 = vld [vmem:[#allocation2 + $0xb6] sm:$0xff]  ;;  %769 = vst [vmem:[#allocation2 + $0xc8] sm:$0xff] %v720_v28  ;;  %v16614_v46 = vld [vmem:[#allocation4 + $0x290] ss:$36 sps:$4 sm:$0xff]  }
 0x168   :  { %v16613_v41 = vld [vmem:[#allocation4 + $0x288] ss:$36 sps:$4 sm:$0xff]   ;;  %v15449_v42 = vpack.c.bf16 %v2584_v38, %v2584_v38  ;;  %1356 = vst [vmem:[#allocation4 + $0x31c] sm:$0xf] %v15205_v36  ;;  %1651 = vst [vmem:[#allocation4 + $0x320] sm:$0xf] %v15254_v37  ;;  %5749 = vmatmul.mubr.bf16.gmra.mxu0 %v16614_v46  ;;  %v617_v34 = vpop.f32.mrf.mxu0 }
 0x169   :  { %1946 = vst [vmem:[#allocation4 + $0x324] sm:$0xf] %v15303_v30  ;;  %2535 = vst [vmem:[#allocation4 + $0x308] sm:$0xf] %v15205_v36  ;;  %5517 = vmatmul.mubr.bf16.gmra.mxu1 %v16613_v41  ;;  %v1111_v50 = vld [vmem:[#allocation2 + $0xb9] sm:$0xff]  ;;  %v724_v27 = vmax.f32 %v613_v19, 0.0 }
 0x16a   :  { %3125 = vst [vmem:[#allocation4 + $0x310] sm:$0xf] %v15303_v30  ;;  %1064 = vst [vmem:[#allocation4 + $0x384] sm:$0xf] %v15159_v39  ;;  %v1406_v51 = vld [vmem:[#allocation2 + $0xba] sm:$0xff]  ;;  %v15206_v54 = vpack.c.bf16 %v1111_v50, %v1111_v50  ;;  %v619_v44 = vpop.f32.mrf.mxu0 }
 0x16b   :  { %2243 = vst [vmem:[#allocation4 + $0x370] sm:$0xf] %v15159_v39  ;;  %3422 = vst [vmem:[#allocation4 + $0x35c] sm:$0xf] %v15159_v39  ;;  %v1701_v52 = vld [vmem:[#allocation2 + $0xbf] sm:$0xff]  ;;  %v15255_v55 = vpack.c.bf16 %v1406_v51, %v1406_v51  ;;  %v15163_v38 = vpack.c.bf16 %v724_v27, %v724_v27 }
 0x16c   :  { %2830 = vst [vmem:[#allocation4 + $0x30c] sm:$0xf] %v15449_v42  ;;  %v15304_v56 = vpack.c.bf16 %v1701_v52, %v1701_v52  ;;  %v2585_v57 = vld [vmem:[#allocation2 + $0xbe] sm:$0xff]  ;;  %770 = vst [vmem:[#allocation2 + $0xd0] sm:$0xff] %v721_v48  ;;  %v16618_v9 = vld [vmem:[#allocation4 + $0x2dc] ss:$36 sps:$4 sm:$0xff]   ;;  %v618_v42 = vadd.f32 %v17881_v43, %v617_v34  ;;  %v620_v47 = vpop.f32.mrf.mxu0 }
 0x16d   :  { %v15450_v60 = vpack.c.bf16 %v2585_v57, %v2585_v57  ;;  %v16616_v62 = vld [vmem:[#allocation4 + $0x2d4] ss:$36 sps:$4 sm:$0xff]   ;;  %1357 = vst [vmem:[#allocation4 + $0x340] sm:$0xf] %v15206_v54  ;;  %1652 = vst [vmem:[#allocation4 + $0x344] sm:$0xf] %v15255_v55  ;;  %5756 = vmatprep.mubr.bf16.mxu0 %v16618_v9  ;;  %v621_v51 = vadd.f32 %v17881_v43, %v620_v47 }
 0x16e   :  { %1947 = vst [vmem:[#allocation4 + $0x348] sm:$0xf] %v15304_v56  ;;  %2536 = vst [vmem:[#allocation4 + $0x32c] sm:$0xf] %v15206_v54  ;;  %v1112_v63 = vld [vmem:[#allocation2 + $0xc1] sm:$0xff]  ;;  %5524 = vmatprep.mubr.bf16.mxu1 %v16616_v62  ;;  %v725_v46 = vmax.f32 %v618_v42, 0.0  ;;  %v622_v57 = vpop.f32.mrf.mxu0 }
 0x16f   :  { %3126 = vst [vmem:[#allocation4 + $0x334] sm:$0xf] %v15304_v56  ;;  %v1407_v1 = vld [vmem:[#allocation2 + $0xc2] sm:$0xff]  ;;  %1065 = vst [vmem:[#allocation4 + $0x3a8] sm:$0xf] %v15160_v58  ;;  %v15207_v4 = vpack.c.bf16 %v1112_v63, %v1112_v63  ;;  %v726_v59 = vmax.f32 %v621_v51, 0.0 }
 0x170   :  { %v1702_v2 = vld [vmem:[#allocation2 + $0xc7] sm:$0xff]  ;;  %2244 = vst [vmem:[#allocation4 + $0x394] sm:$0xf] %v15160_v58  ;;  %3423 = vst [vmem:[#allocation4 + $0x380] sm:$0xf] %v15160_v58  ;;  %v15256_v5 = vpack.c.bf16 %v1407_v1, %v1407_v1  ;;  %v15164_v56 = vpack.c.bf16 %v725_v46, %v725_v46  ;;  %v625_v1 = vpop.f32.mrf.mxu0 }
 0x171   :  { %2831 = vst [vmem:[#allocation4 + $0x330] sm:$0xf] %v15450_v60  ;;  %v15305_v6 = vpack.c.bf16 %v1702_v2, %v1702_v2  ;;  %v2586_v7 = vld [vmem:[#allocation2 + $0xc6] sm:$0xff]  ;;  %771 = vst [vmem:[#allocation2 + $0xd8] sm:$0xff] %v722_v61 }
 0x172   :  { %v16620_v10 = vld [vmem:[#allocation4 + $0x2d0] ss:$36 sps:$4 sm:$0xff]   ;;  %v15451_v11 = vpack.c.bf16 %v2586_v7, %v2586_v7  ;;  %v16621_v14 = vld [vmem:[#allocation4 + $0x2d8] ss:$36 sps:$4 sm:$0xff]   ;;  %1358 = vst [vmem:[#allocation4 + $0x364] sm:$0xf] %v15207_v4 }
 0x173   :  { %1653 = vst [vmem:[#allocation4 + $0x368] sm:$0xf] %v15256_v5  ;;  %1948 = vst [vmem:[#allocation4 + $0x36c] sm:$0xf] %v15305_v6  ;;  %5525 = vmatmul.mubr.bf16.gmra.mxu1 %v16620_v10  ;;  %5757 = vmatmul.mubr.bf16.gmra.mxu0 %v16621_v14  ;;  %v1113_v32 = vld [vmem:[#allocation2 + $0xc9] sm:$0xff]  ;;  %v626_v10 = vadd.f32 %v17881_v43, %v625_v1 }
 0x174   :  { %2537 = vst [vmem:[#allocation4 + $0x350] sm:$0xf] %v15207_v4  ;;  %3127 = vst [vmem:[#allocation4 + $0x358] sm:$0xf] %v15305_v6  ;;  %v1408_v17 = vld [vmem:[#allocation2 + $0xca] sm:$0xff]  ;;  %v15208_v20 = vpack.c.bf16 %v1113_v32, %v1113_v32  ;;  %v15165_v6 = vpack.c.bf16 %v726_v59, %v726_v59 }
 0x175   :  { %1066 = vst [vmem:[#allocation4 + $0x3cc] sm:$0xf] %v15161_v8  ;;  %2245 = vst [vmem:[#allocation4 + $0x3b8] sm:$0xf] %v15161_v8  ;;  %v1703_v18 = vld [vmem:[#allocation2 + $0xcf] sm:$0xff]  ;;  %v15257_v21 = vpack.c.bf16 %v1408_v17, %v1408_v17  ;;  %v727_v13 = vmax.f32 %v626_v10, 0.0 }
 0x176   :  { %3424 = vst [vmem:[#allocation4 + $0x3a4] sm:$0xf] %v15161_v8  ;;  %2832 = vst [vmem:[#allocation4 + $0x354] sm:$0xf] %v15451_v11  ;;  %v15306_v22 = vpack.c.bf16 %v1703_v18, %v1703_v18  ;;  %v2587_v23 = vld [vmem:[#allocation2 + $0xce] sm:$0xff]  ;;  %v627_v11 = vpop.f32.mrf.mxu0 }
 0x177   :  { %772 = vst [vmem:[#allocation2 + $0xe0] sm:$0xff] %v723_v15  ;;  %v15452_v26 = vpack.c.bf16 %v2587_v23, %v2587_v23  ;;  %v16622_v28 = vld [vmem:[#allocation4 + $0x31c] ss:$36 sps:$4 sm:$0xff]   ;;  %1359 = vst [vmem:[#allocation4 + $0x388] sm:$0xf] %v15208_v20 }
 0x178   :  { %1654 = vst [vmem:[#allocation4 + $0x38c] sm:$0xf] %v15257_v21  ;;  %1949 = vst [vmem:[#allocation4 + $0x390] sm:$0xf] %v15306_v22  ;;  %v1114_v29 = vld [vmem:[#allocation2 + $0xd1] sm:$0xff]  ;;  %5532 = vmatprep.mubr.bf16.mxu1 %v16622_v28  ;;  %v628_v14 = vpop.f32.mrf.mxu0 }
 0x179   :  { %2538 = vst [vmem:[#allocation4 + $0x374] sm:$0xf] %v15208_v20  ;;  %3128 = vst [vmem:[#allocation4 + $0x37c] sm:$0xf] %v15306_v22  ;;  %v1409_v31 = vld [vmem:[#allocation2 + $0xd2] sm:$0xff]  ;;  %v15209_v35 = vpack.c.bf16 %v1114_v29, %v1114_v29  ;;  %v629_v17 = vadd.f32 %v17881_v43, %v628_v14  ;;  %v15166_v22 = vpack.c.bf16 %v727_v13, %v727_v13 }
 0x17a   :  { %v1704_v33 = vld [vmem:[#allocation2 + $0xd7] sm:$0xff]  ;;  %1067 = vst [vmem:[#allocation4 + $0x3f0] sm:$0xf] %v15162_v24  ;;  %2246 = vst [vmem:[#allocation4 + $0x3dc] sm:$0xf] %v15162_v24  ;;  %v15258_v36 = vpack.c.bf16 %v1409_v31, %v1409_v31  ;;  %v630_v23 = vpop.f32.mrf.mxu0 }
 0x17b   :  { %3425 = vst [vmem:[#allocation4 + $0x3c8] sm:$0xf] %v15162_v24  ;;  %2833 = vst [vmem:[#allocation4 + $0x378] sm:$0xf] %v15452_v26  ;;  %v15307_v37 = vpack.c.bf16 %v1704_v33, %v1704_v33  ;;  %v2588_v30 = vld [vmem:[#allocation2 + $0xd6] sm:$0xff]  ;;  %v728_v25 = vmax.f32 %v629_v17, 0.0 }
 0x17c   :  { %773 = vst [vmem:[#allocation2 + $0xe8] sm:$0xff] %v724_v27  ;;  %v16624_v39 = vld [vmem:[#allocation4 + $0x324] ss:$36 sps:$4 sm:$0xff]   ;;  %v16626_v40 = vld [vmem:[#allocation4 + $0x318] ss:$36 sps:$4 sm:$0xff]   ;;  %v15453_v41 = vpack.c.bf16 %v2588_v30, %v2588_v30  ;;  %774 = vst [vmem:[#allocation2 + $0xf0] sm:$0xff] %v725_v46  ;;  %v633_v31 = vpop.f32.mrf.mxu0 }
 0x17d   :  { %v16627_v45 = vld [vmem:[#allocation4 + $0x320] ss:$36 sps:$4 sm:$0xff]   ;;  %1360 = vst [vmem:[#allocation4 + $0x3ac] sm:$0xf] %v15209_v35  ;;  %1655 = vst [vmem:[#allocation4 + $0x3b0] sm:$0xf] %v15258_v36  ;;  %5764 = vmatprep.mubr.bf16.mxu0 %v16624_v39  ;;  %5533 = vmatmul.mubr.bf16.gmra.mxu1 %v16626_v40  ;;  %v634_v40 = vadd.f32 %v17881_v43, %v633_v31 }
 0x17e   :  { %1950 = vst [vmem:[#allocation4 + $0x3b4] sm:$0xf] %v15307_v37  ;;  %2539 = vst [vmem:[#allocation4 + $0x398] sm:$0xf] %v15209_v35  ;;  %5765 = vmatmul.mubr.bf16.gmra.mxu0 %v16627_v45  ;;  %v1115_v48 = vld [vmem:[#allocation2 + $0xd9] sm:$0xff] }
 0x17f   :  { %3129 = vst [vmem:[#allocation4 + $0x3a0] sm:$0xf] %v15307_v37  ;;  %1068 = vst [vmem:[#allocation4 + $0x414] sm:$0xf] %v15163_v38  ;;  %v1410_v49 = vld [vmem:[#allocation2 + $0xda] sm:$0xff]  ;;  %v15210_v52 = vpack.c.bf16 %v1115_v48, %v1115_v48  ;;  %v15167_v37 = vpack.c.bf16 %v728_v25, %v728_v25  ;;  %v729_v44 = vmax.f32 %v634_v40, 0.0 }
 0x180   :  { %2247 = vst [vmem:[#allocation4 + $0x400] sm:$0xf] %v15163_v38  ;;  %3426 = vst [vmem:[#allocation4 + $0x3ec] sm:$0xf] %v15163_v38  ;;  %v1705_v50 = vld [vmem:[#allocation2 + $0xdf] sm:$0xff]  ;;  %v15259_v53 = vpack.c.bf16 %v1410_v49, %v1410_v49 }
 0x181   :  { %2834 = vst [vmem:[#allocation4 + $0x39c] sm:$0xf] %v15453_v41  ;;  %v15308_v54 = vpack.c.bf16 %v1705_v50, %v1705_v50  ;;  %v2589_v55 = vld [vmem:[#allocation2 + $0xde] sm:$0xff]  ;;  %v16629_v60 = vld [vmem:[#allocation4 + $0x364] ss:$36 sps:$4 sm:$0xff]   ;;  %775 = vst [vmem:[#allocation2 + $0xf8] sm:$0xff] %v726_v59  ;;  %v635_v41 = vpop.f32.mrf.mxu0 }
 0x182   :  { %v15454_v58 = vpack.c.bf16 %v2589_v55, %v2589_v55  ;;  %1361 = vst [vmem:[#allocation4 + $0x3d0] sm:$0xf] %v15210_v52  ;;  %1656 = vst [vmem:[#allocation4 + $0x3d4] sm:$0xf] %v15259_v53  ;;  %5540 = vmatprep.mubr.bf16.mxu1 %v16629_v60  ;;  %v16631_v7 = vld [vmem:[#allocation4 + $0x36c] ss:$36 sps:$4 sm:$0xff]  }
 0x183   :  { %1951 = vst [vmem:[#allocation4 + $0x3d8] sm:$0xf] %v15308_v54  ;;  %2540 = vst [vmem:[#allocation4 + $0x3bc] sm:$0xf] %v15210_v52  ;;  %v1116_v61 = vld [vmem:[#allocation2 + $0xe1] sm:$0xff]  ;;  %5772 = vmatprep.mubr.bf16.mxu0 %v16631_v7  ;;  %v1117_v15 = vld [vmem:[#allocation2 + $0xe9] sm:$0xff]  ;;  %v636_v45 = vpop.f32.mrf.mxu0 }
 0x184   :  { %3130 = vst [vmem:[#allocation4 + $0x3c4] sm:$0xf] %v15308_v54  ;;  %v1411_v62 = vld [vmem:[#allocation2 + $0xe2] sm:$0xff]  ;;  %1069 = vst [vmem:[#allocation4 + $0x438] sm:$0xf] %v15164_v56  ;;  %v15211_v2 = vpack.c.bf16 %v1116_v61, %v1116_v61  ;;  %v1412_v16 = vld [vmem:[#allocation2 + $0xea] sm:$0xff]  ;;  %v15212_v18 = vpack.c.bf16 %v1117_v15, %v1117_v15  ;;  %v15168_v54 = vpack.c.bf16 %v729_v44, %v729_v44 }
 0x185   :  { %v1706_v63 = vld [vmem:[#allocation2 + $0xe7] sm:$0xff]  ;;  %2248 = vst [vmem:[#allocation4 + $0x424] sm:$0xf] %v15164_v56  ;;  %3427 = vst [vmem:[#allocation4 + $0x410] sm:$0xf] %v15164_v56  ;;  %v15260_v3 = vpack.c.bf16 %v1411_v62, %v1411_v62  ;;  %v1707_v32 = vld [vmem:[#allocation2 + $0xef] sm:$0xff]  ;;  %v15261_v19 = vpack.c.bf16 %v1412_v16, %v1412_v16  ;;  %v638_v55 = vpop.f32.mrf.mxu0 }
 0x186   :  { %2835 = vst [vmem:[#allocation4 + $0x3c0] sm:$0xf] %v15454_v58  ;;  %v15309_v4 = vpack.c.bf16 %v1706_v63, %v1706_v63  ;;  %v2590_v5 = vld [vmem:[#allocation2 + $0xe6] sm:$0xff]  ;;  %v16633_v8 = vld [vmem:[#allocation4 + $0x360] ss:$36 sps:$4 sm:$0xff]   ;;  %v15310_v20 = vpack.c.bf16 %v1707_v32, %v1707_v32  ;;  %776 = vst [vmem:[#allocation2 + $0x100] sm:$0xff] %v727_v13 }
 0x187   :  { %v15455_v9 = vpack.c.bf16 %v2590_v5, %v2590_v5  ;;  %v16634_v12 = vld [vmem:[#allocation4 + $0x368] ss:$36 sps:$4 sm:$0xff]   ;;  %1362 = vst [vmem:[#allocation4 + $0x3f4] sm:$0xf] %v15211_v2  ;;  %1657 = vst [vmem:[#allocation4 + $0x3f8] sm:$0xf] %v15260_v3  ;;  %5541 = vmatmul.mubr.bf16.gmra.mxu1 %v16633_v8  ;;  %v641_v62 = vpop.f32.mrf.mxu0 }
 0x188   :  { %1952 = vst [vmem:[#allocation4 + $0x3fc] sm:$0xf] %v15309_v4  ;;  %2541 = vst [vmem:[#allocation4 + $0x3e0] sm:$0xf] %v15211_v2  ;;  %5773 = vmatmul.mubr.bf16.gmra.mxu0 %v16634_v12  ;;  %v2591_v21 = vld [vmem:[#allocation2 + $0xee] sm:$0xff]  ;;  %v1708_v29 = vld [vmem:[#allocation2 + $0xf7] sm:$0xff] }
 0x189   :  { %3131 = vst [vmem:[#allocation4 + $0x3e8] sm:$0xf] %v15309_v4  ;;  %1070 = vst [vmem:[#allocation4 + $0x45c] sm:$0xf] %v15165_v6  ;;  %v15456_v24 = vpack.c.bf16 %v2591_v21, %v2591_v21  ;;  %v16636_v26 = vld [vmem:[#allocation4 + $0x3ac] ss:$36 sps:$4 sm:$0xff]   ;;  %v15311_v35 = vpack.c.bf16 %v1708_v29, %v1708_v29 }
 0x18a   :  { %2249 = vst [vmem:[#allocation4 + $0x448] sm:$0xf] %v15165_v6  ;;  %3428 = vst [vmem:[#allocation4 + $0x434] sm:$0xf] %v15165_v6  ;;  %v1118_v27 = vld [vmem:[#allocation2 + $0xf1] sm:$0xff]  ;;  %5548 = vmatprep.mubr.bf16.mxu1 %v16636_v26 }
 0x18b   :  { %2836 = vst [vmem:[#allocation4 + $0x3e4] sm:$0xf] %v15455_v9  ;;  %1363 = vst [vmem:[#allocation4 + $0x418] sm:$0xf] %v15212_v18  ;;  %v1413_v28 = vld [vmem:[#allocation2 + $0xf2] sm:$0xff]  ;;  %v15213_v33 = vpack.c.bf16 %v1118_v27, %v1118_v27  ;;  %v643_v9 = vpop.f32.mrf.mxu0 }
 0x18c   :  { %1658 = vst [vmem:[#allocation4 + $0x41c] sm:$0xf] %v15261_v19  ;;  %1953 = vst [vmem:[#allocation4 + $0x420] sm:$0xf] %v15310_v20  ;;  %v15262_v34 = vpack.c.bf16 %v1413_v28, %v1413_v28  ;;  %v2592_v36 = vld [vmem:[#allocation2 + $0xf6] sm:$0xff] }
 0x18d   :  { %2542 = vst [vmem:[#allocation4 + $0x404] sm:$0xf] %v15212_v18  ;;  %3132 = vst [vmem:[#allocation4 + $0x40c] sm:$0xf] %v15310_v20  ;;  %v16638_v30 = vld [vmem:[#allocation4 + $0x3b4] ss:$36 sps:$4 sm:$0xff]   ;;  %v15457_v39 = vpack.c.bf16 %v2592_v36, %v2592_v36  ;;  %v644_v12 = vpop.f32.mrf.mxu0 }
 0x18e   :  { %1071 = vst [vmem:[#allocation4 + $0x480] sm:$0xf] %v15166_v22  ;;  %2250 = vst [vmem:[#allocation4 + $0x46c] sm:$0xf] %v15166_v22  ;;  %v16640_v38 = vld [vmem:[#allocation4 + $0x3a8] ss:$36 sps:$4 sm:$0xff]   ;;  %5780 = vmatprep.mubr.bf16.mxu0 %v16638_v30 }
 0x18f   :  { %3429 = vst [vmem:[#allocation4 + $0x458] sm:$0xf] %v15166_v22  ;;  %2837 = vst [vmem:[#allocation4 + $0x408] sm:$0xf] %v15456_v24  ;;  %v16641_v42 = vld [vmem:[#allocation4 + $0x3b0] ss:$36 sps:$4 sm:$0xff]   ;;  %5549 = vmatmul.mubr.bf16.gmra.mxu1 %v16640_v38  ;;  %v646_v21 = vpop.f32.mrf.mxu0 }
 0x190   :  { %777 = vst [vmem:[#allocation2 + $0x108] sm:$0xff] %v728_v25  ;;  %1364 = vst [vmem:[#allocation4 + $0x43c] sm:$0xf] %v15213_v33  ;;  %5781 = vmatmul.mubr.bf16.gmra.mxu0 %v16641_v42  ;;  %v1119_v46 = vld [vmem:[#allocation2 + $0xf9] sm:$0xff] }
 0x191   :  { %1659 = vst [vmem:[#allocation4 + $0x440] sm:$0xf] %v15262_v34  ;;  %1954 = vst [vmem:[#allocation4 + $0x444] sm:$0xf] %v15311_v35  ;;  %v1414_v47 = vld [vmem:[#allocation2 + $0xfa] sm:$0xff]  ;;  %v15214_v50 = vpack.c.bf16 %v1119_v46, %v1119_v46  ;;  %v649_v28 = vpop.f32.mrf.mxu0 }
 0x192   :  { %2543 = vst [vmem:[#allocation4 + $0x428] sm:$0xf] %v15213_v33  ;;  %3133 = vst [vmem:[#allocation4 + $0x430] sm:$0xf] %v15311_v35  ;;  %v1709_v48 = vld [vmem:[#allocation2 + $0xff] sm:$0xff]  ;;  %v15263_v51 = vpack.c.bf16 %v1414_v47, %v1414_v47 }
 0x193   :  { %1072 = vst [vmem:[#allocation4 + $0x4a4] sm:$0xf] %v15167_v37  ;;  %2251 = vst [vmem:[#allocation4 + $0x490] sm:$0xf] %v15167_v37  ;;  %v17954_v43 = vld [vmem:[%s19349_s2] ss:$0 sm:$0xff]  ;;  %v15312_v52 = vpack.c.bf16 %v1709_v48, %v1709_v48 }
 0x194   :  { %3430 = vst [vmem:[#allocation4 + $0x47c] sm:$0xf] %v15167_v37  ;;  %2838 = vst [vmem:[#allocation4 + $0x42c] sm:$0xf] %v15457_v39  ;;  %v637_v49 = vadd.f32 %v17954_v43, %v636_v45  ;;  %v2593_v53 = vld [vmem:[#allocation2 + $0xfe] sm:$0xff]  ;;  %v642_v8 = vadd.f32 %v17954_v43, %v641_v62  ;;  %v645_v16 = vadd.f32 %v17954_v43, %v644_v12  ;;  %v651_v39 = vpop.f32.mrf.mxu0 }
 0x195   :  { %778 = vst [vmem:[#allocation2 + $0x110] sm:$0xff] %v729_v44  ;;  %v15458_v56 = vpack.c.bf16 %v2593_v53, %v2593_v53  ;;  %v16642_v58 = vld [vmem:[#allocation4 + $0x3f4] ss:$36 sps:$4 sm:$0xff]   ;;  %1365 = vst [vmem:[#allocation4 + $0x460] sm:$0xf] %v15214_v50  ;;  %v650_v38 = vadd.f32 %v17954_v43, %v649_v28 }
 0x196   :  { %v730_v57 = vmax.f32 %v637_v49, 0.0  ;;  %1660 = vst [vmem:[#allocation4 + $0x464] sm:$0xf] %v15263_v51  ;;  %1955 = vst [vmem:[#allocation4 + $0x468] sm:$0xf] %v15312_v52  ;;  %5556 = vmatprep.mubr.bf16.mxu1 %v16642_v58  ;;  %v731_v11 = vmax.f32 %v642_v8, 0.0  ;;  %v652_v42 = vpop.f32.mrf.mxu0 }
 0x197   :  { %2544 = vst [vmem:[#allocation4 + $0x44c] sm:$0xf] %v15214_v50  ;;  %3134 = vst [vmem:[#allocation4 + $0x454] sm:$0xf] %v15312_v52  ;;  %v1120_v59 = vld [vmem:[#allocation2 + $0x101] sm:$0xff]  ;;  %v732_v23 = vmax.f32 %v645_v16, 0.0  ;;  %v653_v47 = vadd.f32 %v17954_v43, %v652_v42 }
 0x198   :  { %v1415_v60 = vld [vmem:[#allocation2 + $0x102] sm:$0xff]  ;;  %1073 = vst [vmem:[#allocation4 + $0x4c8] sm:$0xf] %v15168_v54  ;;  %2252 = vst [vmem:[#allocation4 + $0x4b4] sm:$0xf] %v15168_v54  ;;  %v15215_v63 = vpack.c.bf16 %v1120_v59, %v1120_v59  ;;  %v15169_v4 = vpack.c.bf16 %v730_v57, %v730_v57  ;;  %v15170_v20 = vpack.c.bf16 %v731_v11, %v731_v11  ;;  %v733_v41 = vmax.f32 %v650_v38, 0.0  ;;  %v654_v53 = vpop.f32.mrf.mxu0 }
 0x199   :  { %v1710_v61 = vld [vmem:[#allocation2 + $0x107] sm:$0xff]  ;;  %3431 = vst [vmem:[#allocation4 + $0x4a0] sm:$0xf] %v15168_v54  ;;  %2839 = vst [vmem:[#allocation4 + $0x450] sm:$0xf] %v15458_v56  ;;  %v15264_v1 = vpack.c.bf16 %v1415_v60, %v1415_v60  ;;  %v15171_v35 = vpack.c.bf16 %v732_v23, %v732_v23  ;;  %v734_v55 = vmax.f32 %v653_v47, 0.0 }
 0x19a   :  { %v15313_v2 = vpack.c.bf16 %v1710_v61, %v1710_v61  ;;  %v2594_v3 = vld [vmem:[#allocation2 + $0x106] sm:$0xff]  ;;  %779 = vst [vmem:[#allocation2 + $0x118] sm:$0xff] %v730_v57  ;;  %1366 = vst [vmem:[#allocation4 + $0x484] sm:$0xf] %v15215_v63  ;;  %v15172_v52 = vpack.c.bf16 %v733_v41, %v733_v41  ;;  %v657_v60 = vpop.f32.mrf.mxu0 }
 0x19b   :  { %v16644_v5 = vld [vmem:[#allocation4 + $0x3fc] ss:$36 sps:$4 sm:$0xff]   ;;  %v16646_v6 = vld [vmem:[#allocation4 + $0x3f0] ss:$36 sps:$4 sm:$0xff]   ;;  %v15459_v7 = vpack.c.bf16 %v2594_v3, %v2594_v3  ;;  %1661 = vst [vmem:[#allocation4 + $0x488] sm:$0xf] %v15264_v1 }
 0x19c   :  { %v16647_v10 = vld [vmem:[#allocation4 + $0x3f8] ss:$36 sps:$4 sm:$0xff]   ;;  %1956 = vst [vmem:[#allocation4 + $0x48c] sm:$0xf] %v15313_v2  ;;  %2545 = vst [vmem:[#allocation4 + $0x470] sm:$0xf] %v15215_v63  ;;  %5788 = vmatprep.mubr.bf16.mxu0 %v16644_v5  ;;  %5557 = vmatmul.mubr.bf16.gmra.mxu1 %v16646_v6  ;;  %v658_v6 = vadd.f32 %v17954_v43, %v657_v60 }
 0x19d   :  { %3135 = vst [vmem:[#allocation4 + $0x478] sm:$0xf] %v15313_v2  ;;  %1074 = vst [vmem:[#allocation4 + $0x4ec] sm:$0xf] %v15169_v4  ;;  %5789 = vmatmul.mubr.bf16.gmra.mxu0 %v16647_v10  ;;  %v1121_v13 = vld [vmem:[#allocation2 + $0x109] sm:$0xff]  ;;  %v15173_v2 = vpack.c.bf16 %v734_v55, %v734_v55 }
 0x19e   :  { %2253 = vst [vmem:[#allocation4 + $0x4d8] sm:$0xf] %v15169_v4  ;;  %3432 = vst [vmem:[#allocation4 + $0x4c4] sm:$0xf] %v15169_v4  ;;  %v1416_v14 = vld [vmem:[#allocation2 + $0x10a] sm:$0xff]  ;;  %v15216_v32 = vpack.c.bf16 %v1121_v13, %v1121_v13  ;;  %v735_v9 = vmax.f32 %v658_v6, 0.0 }
 0x19f   :  { %2840 = vst [vmem:[#allocation4 + $0x474] sm:$0xf] %v15459_v7  ;;  %v1711_v15 = vld [vmem:[#allocation2 + $0x10f] sm:$0xff]  ;;  %v15265_v17 = vpack.c.bf16 %v1416_v14, %v1416_v14  ;;  %780 = vst [vmem:[#allocation2 + $0x120] sm:$0xff] %v731_v11  ;;  %v659_v7 = vpop.f32.mrf.mxu0 }
 0x1a0   :  { %v15314_v18 = vpack.c.bf16 %v1711_v15, %v1711_v15  ;;  %v2595_v19 = vld [vmem:[#allocation2 + $0x10e] sm:$0xff]  ;;  %1367 = vst [vmem:[#allocation4 + $0x4a8] sm:$0xf] %v15216_v32  ;;  %2546 = vst [vmem:[#allocation4 + $0x494] sm:$0xf] %v15216_v32 }
 0x1a1   :  { %v15460_v22 = vpack.c.bf16 %v2595_v19, %v2595_v19  ;;  %v16649_v24 = vld [vmem:[#allocation4 + $0x43c] ss:$36 sps:$4 sm:$0xff]   ;;  %1662 = vst [vmem:[#allocation4 + $0x4ac] sm:$0xf] %v15265_v17  ;;  %v1712_v27 = vld [vmem:[#allocation2 + $0x117] sm:$0xff]  ;;  %781 = vst [vmem:[#allocation2 + $0x128] sm:$0xff] %v732_v23  ;;  %v660_v10 = vpop.f32.mrf.mxu0 }
 0x1a2   :  { %1957 = vst [vmem:[#allocation4 + $0x4b0] sm:$0xf] %v15314_v18  ;;  %3136 = vst [vmem:[#allocation4 + $0x49c] sm:$0xf] %v15314_v18  ;;  %v1122_v25 = vld [vmem:[#allocation2 + $0x111] sm:$0xff]  ;;  %v15315_v33 = vpack.c.bf16 %v1712_v27, %v1712_v27  ;;  %5564 = vmatprep.mubr.bf16.mxu1 %v16649_v24  ;;  %v661_v14 = vadd.f32 %v17954_v43, %v660_v10  ;;  %v15174_v18 = vpack.c.bf16 %v735_v9, %v735_v9 }
 0x1a3   :  { %v1417_v26 = vld [vmem:[#allocation2 + $0x112] sm:$0xff]  ;;  %1075 = vst [vmem:[#allocation4 + $0x510] sm:$0xf] %v15170_v20  ;;  %2254 = vst [vmem:[#allocation4 + $0x4fc] sm:$0xf] %v15170_v20  ;;  %v15217_v29 = vpack.c.bf16 %v1122_v25, %v1122_v25  ;;  %v662_v19 = vpop.f32.mrf.mxu0 }
 0x1a4   :  { %3433 = vst [vmem:[#allocation4 + $0x4e8] sm:$0xf] %v15170_v20  ;;  %2841 = vst [vmem:[#allocation4 + $0x498] sm:$0xf] %v15460_v22  ;;  %v15266_v31 = vpack.c.bf16 %v1417_v26, %v1417_v26  ;;  %v2596_v34 = vld [vmem:[#allocation2 + $0x116] sm:$0xff]  ;;  %v736_v21 = vmax.f32 %v661_v14, 0.0 }
 0x1a5   :  { %v16651_v36 = vld [vmem:[#allocation4 + $0x444] ss:$36 sps:$4 sm:$0xff]   ;;  %v16653_v37 = vld [vmem:[#allocation4 + $0x438] ss:$36 sps:$4 sm:$0xff]   ;;  %v15461_v30 = vpack.c.bf16 %v2596_v34, %v2596_v34  ;;  %1368 = vst [vmem:[#allocation4 + $0x4cc] sm:$0xf] %v15217_v29  ;;  %v665_v26 = vpop.f32.mrf.mxu0 }
 0x1a6   :  { %v16654_v40 = vld [vmem:[#allocation4 + $0x440] ss:$36 sps:$4 sm:$0xff]   ;;  %1663 = vst [vmem:[#allocation4 + $0x4d0] sm:$0xf] %v15266_v31  ;;  %1958 = vst [vmem:[#allocation4 + $0x4d4] sm:$0xf] %v15315_v33  ;;  %5796 = vmatprep.mubr.bf16.mxu0 %v16651_v36  ;;  %5565 = vmatmul.mubr.bf16.gmra.mxu1 %v16653_v37  ;;  %v666_v37 = vadd.f32 %v17954_v43, %v665_v26 }
 0x1a7   :  { %2547 = vst [vmem:[#allocation4 + $0x4b8] sm:$0xf] %v15217_v29  ;;  %3137 = vst [vmem:[#allocation4 + $0x4c0] sm:$0xf] %v15315_v33  ;;  %5797 = vmatmul.mubr.bf16.gmra.mxu0 %v16654_v40  ;;  %v1123_v44 = vld [vmem:[#allocation2 + $0x119] sm:$0xff]  ;;  %v15175_v33 = vpack.c.bf16 %v736_v21, %v736_v21 }
 0x1a8   :  { %1076 = vst [vmem:[#allocation4 + $0x534] sm:$0xf] %v15171_v35  ;;  %2255 = vst [vmem:[#allocation4 + $0x520] sm:$0xf] %v15171_v35  ;;  %v1418_v45 = vld [vmem:[#allocation2 + $0x11a] sm:$0xff]  ;;  %v15218_v48 = vpack.c.bf16 %v1123_v44, %v1123_v44  ;;  %v1419_v58 = vld [vmem:[#allocation2 + $0x122] sm:$0xff] }
 0x1a9   :  { %3434 = vst [vmem:[#allocation4 + $0x50c] sm:$0xf] %v15171_v35  ;;  %2842 = vst [vmem:[#allocation4 + $0x4bc] sm:$0xf] %v15461_v30  ;;  %v1713_v46 = vld [vmem:[#allocation2 + $0x11f] sm:$0xff]  ;;  %v15267_v49 = vpack.c.bf16 %v1418_v45, %v1418_v45  ;;  %v1714_v59 = vld [vmem:[#allocation2 + $0x127] sm:$0xff]  ;;  %v15268_v62 = vpack.c.bf16 %v1419_v58, %v1419_v58  ;;  %v667_v30 = vpop.f32.mrf.mxu0 }
 0x1aa   :  { %v15316_v50 = vpack.c.bf16 %v1713_v46, %v1713_v46  ;;  %v2597_v51 = vld [vmem:[#allocation2 + $0x11e] sm:$0xff]  ;;  %782 = vst [vmem:[#allocation2 + $0x130] sm:$0xff] %v733_v41  ;;  %v16656_v56 = vld [vmem:[#allocation4 + $0x484] ss:$36 sps:$4 sm:$0xff]   ;;  %1369 = vst [vmem:[#allocation4 + $0x4f0] sm:$0xf] %v15218_v48  ;;  %v15317_v63 = vpack.c.bf16 %v1714_v59, %v1714_v59 }
 0x1ab   :  { %v15462_v54 = vpack.c.bf16 %v2597_v51, %v2597_v51  ;;  %1664 = vst [vmem:[#allocation4 + $0x4f4] sm:$0xf] %v15267_v49  ;;  %2548 = vst [vmem:[#allocation4 + $0x4dc] sm:$0xf] %v15218_v48  ;;  %v1124_v57 = vld [vmem:[#allocation2 + $0x121] sm:$0xff]  ;;  %5572 = vmatprep.mubr.bf16.mxu1 %v16656_v56  ;;  %v737_v39 = vmax.f32 %v666_v37, 0.0  ;;  %v668_v40 = vpop.f32.mrf.mxu0 }
 0x1ac   :  { %1959 = vst [vmem:[#allocation4 + $0x4f8] sm:$0xf] %v15316_v50  ;;  %3138 = vst [vmem:[#allocation4 + $0x4e4] sm:$0xf] %v15316_v50  ;;  %v15219_v61 = vpack.c.bf16 %v1124_v57, %v1124_v57  ;;  %v2598_v1 = vld [vmem:[#allocation2 + $0x126] sm:$0xff]  ;;  %v669_v45 = vadd.f32 %v17954_v43, %v668_v40 }
 0x1ad   :  { %1077 = vst [vmem:[#allocation4 + $0x558] sm:$0xf] %v15172_v52  ;;  %2256 = vst [vmem:[#allocation4 + $0x544] sm:$0xf] %v15172_v52  ;;  %v16658_v3 = vld [vmem:[#allocation4 + $0x48c] ss:$36 sps:$4 sm:$0xff]   ;;  %v15463_v5 = vpack.c.bf16 %v2598_v1, %v2598_v1  ;;  %v15176_v50 = vpack.c.bf16 %v737_v39, %v737_v39  ;;  %v670_v51 = vpop.f32.mrf.mxu0 }
 0x1ae   :  { %3435 = vst [vmem:[#allocation4 + $0x530] sm:$0xf] %v15172_v52  ;;  %2843 = vst [vmem:[#allocation4 + $0x4e0] sm:$0xf] %v15462_v54  ;;  %v16660_v4 = vld [vmem:[#allocation4 + $0x480] ss:$36 sps:$4 sm:$0xff]   ;;  %5804 = vmatprep.mubr.bf16.mxu0 %v16658_v3 }
 0x1af   :  { %783 = vst [vmem:[#allocation2 + $0x138] sm:$0xff] %v734_v55  ;;  %v16661_v8 = vld [vmem:[#allocation4 + $0x488] ss:$36 sps:$4 sm:$0xff]   ;;  %1370 = vst [vmem:[#allocation4 + $0x514] sm:$0xf] %v15219_v61  ;;  %5573 = vmatmul.mubr.bf16.gmra.mxu1 %v16660_v4  ;;  %v738_v53 = vmax.f32 %v669_v45, 0.0  ;;  %v673_v58 = vpop.f32.mrf.mxu0 }
 0x1b0   :  { %1665 = vst [vmem:[#allocation4 + $0x518] sm:$0xf] %v15268_v62  ;;  %1960 = vst [vmem:[#allocation4 + $0x51c] sm:$0xf] %v15317_v63  ;;  %5805 = vmatmul.mubr.bf16.gmra.mxu0 %v16661_v8  ;;  %v16666_v35 = vld [vmem:[#allocation4 + $0x4c8] ss:$36 sps:$4 sm:$0xff]   ;;  %v674_v4 = vadd.f32 %v17954_v43, %v673_v58 }
 0x1b1   :  { %2549 = vst [vmem:[#allocation4 + $0x500] sm:$0xf] %v15219_v61  ;;  %3139 = vst [vmem:[#allocation4 + $0x508] sm:$0xf] %v15317_v63  ;;  %v1125_v11 = vld [vmem:[#allocation2 + $0x129] sm:$0xff]  ;;  %v15177_v63 = vpack.c.bf16 %v738_v53, %v738_v53 }
 0x1b2   :  { %1078 = vst [vmem:[#allocation4 + $0x57c] sm:$0xf] %v15173_v2  ;;  %2257 = vst [vmem:[#allocation4 + $0x568] sm:$0xf] %v15173_v2  ;;  %v1420_v12 = vld [vmem:[#allocation2 + $0x12a] sm:$0xff]  ;;  %v15220_v15 = vpack.c.bf16 %v1125_v11, %v1125_v11  ;;  %v739_v7 = vmax.f32 %v674_v4, 0.0 }
 0x1b3   :  { %3436 = vst [vmem:[#allocation4 + $0x554] sm:$0xf] %v15173_v2  ;;  %2844 = vst [vmem:[#allocation4 + $0x504] sm:$0xf] %v15463_v5  ;;  %v1715_v13 = vld [vmem:[#allocation2 + $0x12f] sm:$0xff]  ;;  %v15269_v16 = vpack.c.bf16 %v1420_v12, %v1420_v12  ;;  %v675_v5 = vpop.f32.mrf.mxu0 }
 0x1b4   :  { %v15318_v32 = vpack.c.bf16 %v1715_v13, %v1715_v13  ;;  %v2599_v17 = vld [vmem:[#allocation2 + $0x12e] sm:$0xff]  ;;  %784 = vst [vmem:[#allocation2 + $0x140] sm:$0xff] %v735_v9  ;;  %v16662_v22 = vld [vmem:[#allocation4 + $0x4cc] ss:$36 sps:$4 sm:$0xff]   ;;  %1371 = vst [vmem:[#allocation4 + $0x538] sm:$0xf] %v15220_v15 }
 0x1b5   :  { %v15464_v20 = vpack.c.bf16 %v2599_v17, %v2599_v17  ;;  %1666 = vst [vmem:[#allocation4 + $0x53c] sm:$0xf] %v15269_v16  ;;  %2550 = vst [vmem:[#allocation4 + $0x524] sm:$0xf] %v15220_v15  ;;  %5580 = vmatprep.mubr.bf16.mxu1 %v16662_v22  ;;  %v16664_v34 = vld [vmem:[#allocation4 + $0x4d4] ss:$36 sps:$4 sm:$0xff]   ;;  %v676_v8 = vpop.f32.mrf.mxu0 }
 0x1b6   :  { %1961 = vst [vmem:[#allocation4 + $0x540] sm:$0xf] %v15318_v32  ;;  %3140 = vst [vmem:[#allocation4 + $0x52c] sm:$0xf] %v15318_v32  ;;  %v1126_v23 = vld [vmem:[#allocation2 + $0x131] sm:$0xff]  ;;  %5812 = vmatprep.mubr.bf16.mxu0 %v16664_v34  ;;  %v677_v12 = vadd.f32 %v17954_v43, %v676_v8  ;;  %v15178_v32 = vpack.c.bf16 %v739_v7, %v739_v7 }
 0x1b7   :  { %v1421_v24 = vld [vmem:[#allocation2 + $0x132] sm:$0xff]  ;;  %1079 = vst [vmem:[#allocation4 + $0x5a0] sm:$0xf] %v15174_v18  ;;  %2258 = vst [vmem:[#allocation4 + $0x58c] sm:$0xf] %v15174_v18  ;;  %v15221_v27 = vpack.c.bf16 %v1126_v23, %v1126_v23  ;;  %5581 = vmatmul.mubr.bf16.gmra.mxu1 %v16666_v35  ;;  %v678_v17 = vpop.f32.mrf.mxu0 }
 0x1b8   :  { %v1716_v25 = vld [vmem:[#allocation2 + $0x137] sm:$0xff]  ;;  %3437 = vst [vmem:[#allocation4 + $0x578] sm:$0xf] %v15174_v18  ;;  %2845 = vst [vmem:[#allocation4 + $0x528] sm:$0xf] %v15464_v20  ;;  %v15270_v28 = vpack.c.bf16 %v1421_v24, %v1421_v24  ;;  %v740_v19 = vmax.f32 %v677_v12, 0.0 }
 0x1b9   :  { %v15319_v29 = vpack.c.bf16 %v1716_v25, %v1716_v25  ;;  %v2600_v31 = vld [vmem:[#allocation2 + $0x136] sm:$0xff]  ;;  %785 = vst [vmem:[#allocation2 + $0x148] sm:$0xff] %v736_v21  ;;  %v16667_v38 = vld [vmem:[#allocation4 + $0x4d0] ss:$36 sps:$4 sm:$0xff]   ;;  %1372 = vst [vmem:[#allocation4 + $0x55c] sm:$0xf] %v15221_v27  ;;  %v681_v24 = vpop.f32.mrf.mxu0 }
 0x1ba   :  { %v15465_v36 = vpack.c.bf16 %v2600_v31, %v2600_v31  ;;  %1667 = vst [vmem:[#allocation4 + $0x560] sm:$0xf] %v15270_v28  ;;  %2551 = vst [vmem:[#allocation4 + $0x548] sm:$0xf] %v15221_v27  ;;  %5813 = vmatmul.mubr.bf16.gmra.mxu0 %v16667_v38  ;;  %v16675_v2 = vld [vmem:[#allocation4 + $0x510] ss:$36 sps:$4 sm:$0xff]   ;;  %v682_v35 = vadd.f32 %v17954_v43, %v681_v24 }
 0x1bb   :  { %1962 = vst [vmem:[#allocation4 + $0x564] sm:$0xf] %v15319_v29  ;;  %3141 = vst [vmem:[#allocation4 + $0x550] sm:$0xf] %v15319_v29  ;;  %v1127_v41 = vld [vmem:[#allocation2 + $0x139] sm:$0xff]  ;;  %v15179_v29 = vpack.c.bf16 %v740_v19, %v740_v19 }
 0x1bc   :  { %1080 = vst [vmem:[#allocation4 + $0x5c4] sm:$0xf] %v15175_v33  ;;  %2259 = vst [vmem:[#allocation4 + $0x5b0] sm:$0xf] %v15175_v33  ;;  %v1422_v42 = vld [vmem:[#allocation2 + $0x13a] sm:$0xff]  ;;  %v15222_v46 = vpack.c.bf16 %v1127_v41, %v1127_v41  ;;  %v741_v30 = vmax.f32 %v682_v35, 0.0 }
 0x1bd   :  { %3438 = vst [vmem:[#allocation4 + $0x59c] sm:$0xf] %v15175_v33  ;;  %2846 = vst [vmem:[#allocation4 + $0x54c] sm:$0xf] %v15465_v36  ;;  %v1717_v44 = vld [vmem:[#allocation2 + $0x13f] sm:$0xff]  ;;  %v15271_v47 = vpack.c.bf16 %v1422_v42, %v1422_v42  ;;  %v683_v36 = vpop.f32.mrf.mxu0 }
 0x1be   :  { %v15320_v48 = vpack.c.bf16 %v1717_v44, %v1717_v44  ;;  %v2601_v49 = vld [vmem:[#allocation2 + $0x13e] sm:$0xff]  ;;  %786 = vst [vmem:[#allocation2 + $0x150] sm:$0xff] %v737_v39  ;;  %1373 = vst [vmem:[#allocation4 + $0x580] sm:$0xf] %v15222_v46  ;;  %v16673_v1 = vld [vmem:[#allocation4 + $0x51c] ss:$36 sps:$4 sm:$0xff]  }
 0x1bf   :  { %v15466_v52 = vpack.c.bf16 %v2601_v49, %v2601_v49  ;;  %v16671_v54 = vld [vmem:[#allocation4 + $0x514] ss:$36 sps:$4 sm:$0xff]   ;;  %1668 = vst [vmem:[#allocation4 + $0x584] sm:$0xf] %v15271_v47  ;;  %2552 = vst [vmem:[#allocation4 + $0x56c] sm:$0xf] %v15222_v46  ;;  %5820 = vmatprep.mubr.bf16.mxu0 %v16673_v1  ;;  %v684_v38 = vpop.f32.mrf.mxu0 }
 0x1c0   :  { %1963 = vst [vmem:[#allocation4 + $0x588] sm:$0xf] %v15320_v48  ;;  %3142 = vst [vmem:[#allocation4 + $0x574] sm:$0xf] %v15320_v48  ;;  %v1128_v55 = vld [vmem:[#allocation2 + $0x141] sm:$0xff]  ;;  %5588 = vmatprep.mubr.bf16.mxu1 %v16671_v54  ;;  %v685_v42 = vadd.f32 %v17954_v43, %v684_v38  ;;  %v15180_v48 = vpack.c.bf16 %v741_v30, %v741_v30 }
 0x1c1   :  { %v1423_v56 = vld [vmem:[#allocation2 + $0x142] sm:$0xff]  ;;  %1081 = vst [vmem:[#allocation4 + $0x5e8] sm:$0xf] %v15176_v50  ;;  %2260 = vst [vmem:[#allocation4 + $0x5d4] sm:$0xf] %v15176_v50  ;;  %v15223_v59 = vpack.c.bf16 %v1128_v55, %v1128_v55  ;;  %5589 = vmatmul.mubr.bf16.gmra.mxu1 %v16675_v2  ;;  %v686_v49 = vpop.f32.mrf.mxu0 }
 0x1c2   :  { %v1718_v57 = vld [vmem:[#allocation2 + $0x147] sm:$0xff]  ;;  %3439 = vst [vmem:[#allocation4 + $0x5c0] sm:$0xf] %v15176_v50  ;;  %2847 = vst [vmem:[#allocation4 + $0x570] sm:$0xf] %v15466_v52  ;;  %v15272_v60 = vpack.c.bf16 %v1423_v56, %v1423_v56  ;;  %v742_v51 = vmax.f32 %v685_v42, 0.0 }
 0x1c3   :  { %v15321_v61 = vpack.c.bf16 %v1718_v57, %v1718_v57  ;;  %v2602_v62 = vld [vmem:[#allocation2 + $0x146] sm:$0xff]  ;;  %787 = vst [vmem:[#allocation2 + $0x158] sm:$0xff] %v738_v53  ;;  %1374 = vst [vmem:[#allocation4 + $0x5a4] sm:$0xf] %v15223_v59  ;;  %v689_v56 = vpop.f32.mrf.mxu0 }
 0x1c4   :  { %v15467_v3 = vpack.c.bf16 %v2602_v62, %v2602_v62  ;;  %v16676_v6 = vld [vmem:[#allocation4 + $0x518] ss:$36 sps:$4 sm:$0xff]   ;;  %1669 = vst [vmem:[#allocation4 + $0x5a8] sm:$0xf] %v15272_v60  ;;  %2553 = vst [vmem:[#allocation4 + $0x590] sm:$0xf] %v15223_v59  ;;  %v690_v2 = vadd.f32 %v17954_v43, %v689_v56 }
 0x1c5   :  { %1964 = vst [vmem:[#allocation4 + $0x5ac] sm:$0xf] %v15321_v61  ;;  %3143 = vst [vmem:[#allocation4 + $0x598] sm:$0xf] %v15321_v61  ;;  %5821 = vmatmul.mubr.bf16.gmra.mxu0 %v16676_v6  ;;  %v1129_v9 = vld [vmem:[#allocation2 + $0x149] sm:$0xff]  ;;  %v15181_v61 = vpack.c.bf16 %v742_v51, %v742_v51 }
 0x1c6   :  { %1082 = vst [vmem:[#allocation4 + $0x60c] sm:$0xf] %v15177_v63  ;;  %2261 = vst [vmem:[#allocation4 + $0x5f8] sm:$0xf] %v15177_v63  ;;  %v1424_v10 = vld [vmem:[#allocation2 + $0x14a] sm:$0xff]  ;;  %v15224_v13 = vpack.c.bf16 %v1129_v9, %v1129_v9  ;;  %v743_v5 = vmax.f32 %v690_v2, 0.0 }
 0x1c7   :  { %3440 = vst [vmem:[#allocation4 + $0x5e4] sm:$0xf] %v15177_v63  ;;  %2848 = vst [vmem:[#allocation4 + $0x594] sm:$0xf] %v15467_v3  ;;  %v1719_v11 = vld [vmem:[#allocation2 + $0x14f] sm:$0xff]  ;;  %v15273_v14 = vpack.c.bf16 %v1424_v10, %v1424_v10  ;;  %v691_v3 = vpop.f32.mrf.mxu0 }
 0x1c8   :  { %v15322_v15 = vpack.c.bf16 %v1719_v11, %v1719_v11  ;;  %v2603_v16 = vld [vmem:[#allocation2 + $0x14e] sm:$0xff]  ;;  %788 = vst [vmem:[#allocation2 + $0x160] sm:$0xff] %v739_v7  ;;  %1375 = vst [vmem:[#allocation4 + $0x5c8] sm:$0xf] %v15224_v13 }
 0x1c9   :  { %v15468_v18 = vpack.c.bf16 %v2603_v16, %v2603_v16  ;;  %v16680_v20 = vld [vmem:[#allocation4 + $0x55c] ss:$36 sps:$4 sm:$0xff]   ;;  %1670 = vst [vmem:[#allocation4 + $0x5cc] sm:$0xf] %v15273_v14  ;;  %2554 = vst [vmem:[#allocation4 + $0x5b4] sm:$0xf] %v15224_v13  ;;  %v692_v6 = vpop.f32.mrf.mxu0  ;;  %v15182_v13 = vpack.c.bf16 %v743_v5, %v743_v5 }
 0x1ca   :  { %1965 = vst [vmem:[#allocation4 + $0x5d0] sm:$0xf] %v15322_v15  ;;  %3144 = vst [vmem:[#allocation4 + $0x5bc] sm:$0xf] %v15322_v15  ;;  %v1130_v21 = vld [vmem:[#allocation2 + $0x151] sm:$0xff]  ;;  %5596 = vmatprep.mubr.bf16.mxu1 %v16680_v20 }
 0x1cb   :  { %v1425_v22 = vld [vmem:[#allocation2 + $0x152] sm:$0xff]  ;;  %1083 = vst [vmem:[#allocation4 + $0x630] sm:$0xf] %v15178_v32  ;;  %2262 = vst [vmem:[#allocation4 + $0x61c] sm:$0xf] %v15178_v32  ;;  %v15225_v25 = vpack.c.bf16 %v1130_v21, %v1130_v21  ;;  %v693_v14 = vpop.f32.mrf.mxu0 }
 0x1cc   :  { %v1720_v23 = vld [vmem:[#allocation2 + $0x157] sm:$0xff]  ;;  %3441 = vst [vmem:[#allocation4 + $0x608] sm:$0xf] %v15178_v32  ;;  %2849 = vst [vmem:[#allocation4 + $0x5b8] sm:$0xf] %v15468_v18  ;;  %v15274_v26 = vpack.c.bf16 %v1425_v22, %v1425_v22 }
 0x1cd   :  { %v15323_v27 = vpack.c.bf16 %v1720_v23, %v1720_v23  ;;  %v2604_v28 = vld [vmem:[#allocation2 + $0x156] sm:$0xff]  ;;  %789 = vst [vmem:[#allocation2 + $0x168] sm:$0xff] %v740_v19  ;;  %v16684_v33 = vld [vmem:[#allocation4 + $0x558] ss:$36 sps:$4 sm:$0xff]   ;;  %1376 = vst [vmem:[#allocation4 + $0x5ec] sm:$0xf] %v15225_v25 }
 0x1ce   :  { %v16682_v31 = vld [vmem:[#allocation4 + $0x564] ss:$36 sps:$4 sm:$0xff]   ;;  %v15469_v34 = vpack.c.bf16 %v2604_v28, %v2604_v28  ;;  %1671 = vst [vmem:[#allocation4 + $0x5f0] sm:$0xf] %v15274_v26  ;;  %2555 = vst [vmem:[#allocation4 + $0x5d8] sm:$0xf] %v15225_v25  ;;  %5597 = vmatmul.mubr.bf16.gmra.mxu1 %v16684_v33 }
 0x1cf   :  { %v16685_v37 = vld [vmem:[#allocation4 + $0x560] ss:$36 sps:$4 sm:$0xff]   ;;  %1966 = vst [vmem:[#allocation4 + $0x5f4] sm:$0xf] %v15323_v27  ;;  %3145 = vst [vmem:[#allocation4 + $0x5e0] sm:$0xf] %v15323_v27  ;;  %5828 = vmatprep.mubr.bf16.mxu0 %v16682_v31 }
 0x1d0   :  { %1084 = vst [vmem:[#allocation4 + $0x654] sm:$0xf] %v15179_v29  ;;  %2263 = vst [vmem:[#allocation4 + $0x640] sm:$0xf] %v15179_v29  ;;  %5829 = vmatmul.mubr.bf16.gmra.mxu0 %v16685_v37  ;;  %v1131_v39 = vld [vmem:[#allocation2 + $0x159] sm:$0xff] }
 0x1d1   :  { %3442 = vst [vmem:[#allocation4 + $0x62c] sm:$0xf] %v15179_v29  ;;  %2850 = vst [vmem:[#allocation4 + $0x5dc] sm:$0xf] %v15469_v34  ;;  %v1426_v40 = vld [vmem:[#allocation2 + $0x15a] sm:$0xff]  ;;  %v15226_v44 = vpack.c.bf16 %v1131_v39, %v1131_v39 }
 0x1d2   :  { %v1721_v41 = vld [vmem:[#allocation2 + $0x15f] sm:$0xff]  ;;  %v15275_v45 = vpack.c.bf16 %v1426_v40, %v1426_v40  ;;  %790 = vst [vmem:[#allocation2 + $0x170] sm:$0xff] %v741_v30  ;;  %v16688_v52 = vld [vmem:[#allocation4 + $0x5a4] ss:$36 sps:$4 sm:$0xff]   ;;  %1085 = vst [vmem:[#allocation4 + $0x678] sm:$0xf] %v15180_v48 }
 0x1d3   :  { %v15324_v46 = vpack.c.bf16 %v1721_v41, %v1721_v41  ;;  %v2605_v47 = vld [vmem:[#allocation2 + $0x15e] sm:$0xff]  ;;  %1377 = vst [vmem:[#allocation4 + $0x610] sm:$0xf] %v15226_v44  ;;  %2556 = vst [vmem:[#allocation4 + $0x5fc] sm:$0xf] %v15226_v44  ;;  %5604 = vmatprep.mubr.bf16.mxu1 %v16688_v52 }
 0x1d4   :  { %v15470_v50 = vpack.c.bf16 %v2605_v47, %v2605_v47  ;;  %1672 = vst [vmem:[#allocation4 + $0x614] sm:$0xf] %v15275_v45  ;;  %v1132_v53 = vld [vmem:[#allocation2 + $0x161] sm:$0xff]  ;;  %2264 = vst [vmem:[#allocation4 + $0x664] sm:$0xf] %v15180_v48 }
 0x1d5   :  { %1967 = vst [vmem:[#allocation4 + $0x618] sm:$0xf] %v15324_v46  ;;  %3146 = vst [vmem:[#allocation4 + $0x604] sm:$0xf] %v15324_v46  ;;  %v1427_v54 = vld [vmem:[#allocation2 + $0x162] sm:$0xff]  ;;  %v15227_v57 = vpack.c.bf16 %v1132_v53, %v1132_v53 }
 0x1d6   :  { %v1722_v55 = vld [vmem:[#allocation2 + $0x167] sm:$0xff]  ;;  %3443 = vst [vmem:[#allocation4 + $0x650] sm:$0xf] %v15180_v48  ;;  %2851 = vst [vmem:[#allocation4 + $0x600] sm:$0xf] %v15470_v50  ;;  %v15276_v58 = vpack.c.bf16 %v1427_v54, %v1427_v54 }
 0x1d7   :  { %v15325_v59 = vpack.c.bf16 %v1722_v55, %v1722_v55  ;;  %v2606_v60 = vld [vmem:[#allocation2 + $0x166] sm:$0xff]  ;;  %791 = vst [vmem:[#allocation2 + $0x178] sm:$0xff] %v742_v51  ;;  %v16690_v62 = vld [vmem:[#allocation4 + $0x5ac] ss:$36 sps:$4 sm:$0xff]   ;;  %v16692_v63 = vld [vmem:[#allocation4 + $0x5a0] ss:$36 sps:$4 sm:$0xff]  }
 0x1d8   :  { %v15471_v1 = vpack.c.bf16 %v2606_v60, %v2606_v60  ;;  %v16693_v4 = vld [vmem:[#allocation4 + $0x5a8] ss:$36 sps:$4 sm:$0xff]   ;;  %1378 = vst [vmem:[#allocation4 + $0x634] sm:$0xf] %v15227_v57  ;;  %1673 = vst [vmem:[#allocation4 + $0x638] sm:$0xf] %v15276_v58  ;;  %5836 = vmatprep.mubr.bf16.mxu0 %v16690_v62  ;;  %5605 = vmatmul.mubr.bf16.gmra.mxu1 %v16692_v63  ;;  %v5678_v63 = vpop.f32.mrf.mxu0 }
 0x1d9   :  { %1968 = vst [vmem:[#allocation4 + $0x63c] sm:$0xf] %v15325_v59  ;;  %2557 = vst [vmem:[#allocation4 + $0x620] sm:$0xf] %v15227_v57  ;;  %5837 = vmatmul.mubr.bf16.gmra.mxu0 %v16693_v4  ;;  %v1133_v7 = vld [vmem:[#allocation2 + $0x169] sm:$0xff] }
 0x1da   :  { %3147 = vst [vmem:[#allocation4 + $0x628] sm:$0xf] %v15325_v59  ;;  %1086 = vst [vmem:[#allocation4 + $0x69c] sm:$0xf] %v15181_v61  ;;  %v1428_v8 = vld [vmem:[#allocation2 + $0x16a] sm:$0xff]  ;;  %v15228_v43 = vpack.c.bf16 %v1133_v7, %v1133_v7  ;;  %v5446_v59 = vpop.f32.mrf.mxu1  ;;  %v5680_v4 = vpop.f32.mrf.mxu0 }
 0x1db   :  { %2265 = vst [vmem:[#allocation4 + $0x688] sm:$0xf] %v15181_v61  ;;  %3444 = vst [vmem:[#allocation4 + $0x674] sm:$0xf] %v15181_v61  ;;  %v1723_v9 = vld [vmem:[#allocation2 + $0x16f] sm:$0xff]  ;;  %v15277_v10 = vpack.c.bf16 %v1428_v8, %v1428_v8 }
 0x1dc   :  { %2852 = vst [vmem:[#allocation4 + $0x624] sm:$0xf] %v15471_v1  ;;  %v15326_v11 = vpack.c.bf16 %v1723_v9, %v1723_v9  ;;  %v2607_v12 = vld [vmem:[#allocation2 + $0x16e] sm:$0xff]  ;;  %792 = vst [vmem:[#allocation2 + $0x180] sm:$0xff] %v743_v5  ;;  %v16697_v16 = vld [vmem:[#allocation4 + $0x5ec] ss:$36 sps:$4 sm:$0xff]   ;;  %v5448_v2 = vpop.f32.mrf.mxu1  ;;  %v5681_v7 = vpop.f32.mrf.mxu0 }
 0x1dd   :  { %v15472_v15 = vpack.c.bf16 %v2607_v12, %v2607_v12  ;;  %1379 = vst [vmem:[#allocation4 + $0x658] sm:$0xf] %v15228_v43  ;;  %1674 = vst [vmem:[#allocation4 + $0x65c] sm:$0xf] %v15277_v10  ;;  %5612 = vmatprep.mubr.bf16.mxu1 %v16697_v16  ;;  %v16699_v23 = vld [vmem:[#allocation4 + $0x5f4] ss:$36 sps:$4 sm:$0xff]  }
 0x1de   :  { %1969 = vst [vmem:[#allocation4 + $0x660] sm:$0xf] %v15326_v11  ;;  %2558 = vst [vmem:[#allocation4 + $0x644] sm:$0xf] %v15228_v43  ;;  %v1134_v32 = vld [vmem:[#allocation2 + $0x171] sm:$0xff]  ;;  %5844 = vmatprep.mubr.bf16.mxu0 %v16699_v23  ;;  %v5449_v5 = vpop.f32.mrf.mxu1 }
 0x1df   :  { %3148 = vst [vmem:[#allocation4 + $0x64c] sm:$0xf] %v15326_v11  ;;  %v1429_v17 = vld [vmem:[#allocation2 + $0x172] sm:$0xff]  ;;  %1087 = vst [vmem:[#allocation4 + $0x6c0] sm:$0xf] %v15182_v13  ;;  %v15229_v19 = vpack.c.bf16 %v1134_v32, %v1134_v32  ;;  %v5683_v11 = vpop.f32.mrf.mxu0 }
 0x1e0   :  { %v1724_v18 = vld [vmem:[#allocation2 + $0x177] sm:$0xff]  ;;  %2266 = vst [vmem:[#allocation4 + $0x6ac] sm:$0xf] %v15182_v13  ;;  %3445 = vst [vmem:[#allocation4 + $0x698] sm:$0xf] %v15182_v13  ;;  %v15278_v20 = vpack.c.bf16 %v1429_v17, %v1429_v17  ;;  %v5451_v9 = vpop.f32.mrf.mxu1 }
 0x1e1   :  { %2853 = vst [vmem:[#allocation4 + $0x648] sm:$0xf] %v15472_v15  ;;  %v15327_v21 = vpack.c.bf16 %v1724_v18, %v1724_v18  ;;  %v2608_v22 = vld [vmem:[#allocation2 + $0x176] sm:$0xff]  ;;  %v16702_v26 = vld [vmem:[#allocation4 + $0x5f0] ss:$36 sps:$4 sm:$0xff]   ;;  %v5686_v32 = vpop.f32.mrf.mxu0 }
 0x1e2   :  { %v16701_v24 = vld [vmem:[#allocation4 + $0x5e8] ss:$36 sps:$4 sm:$0xff]   ;;  %v15473_v25 = vpack.c.bf16 %v2608_v22, %v2608_v22  ;;  %1380 = vst [vmem:[#allocation4 + $0x67c] sm:$0xf] %v15229_v19  ;;  %1675 = vst [vmem:[#allocation4 + $0x680] sm:$0xf] %v15278_v20  ;;  %5845 = vmatmul.mubr.bf16.gmra.mxu0 %v16702_v26  ;;  %v5454_v14 = vpop.f32.mrf.mxu1 }
 0x1e3   :  { %1970 = vst [vmem:[#allocation4 + $0x684] sm:$0xf] %v15327_v21  ;;  %2559 = vst [vmem:[#allocation4 + $0x668] sm:$0xf] %v15229_v19  ;;  %5613 = vmatmul.mubr.bf16.gmra.mxu1 %v16701_v24  ;;  %v1135_v27 = vld [vmem:[#allocation2 + $0x179] sm:$0xff]  ;;  %v1136_v28 = vld [vmem:[#allocation2 + $0x181] sm:$0xff]  ;;  %v5688_v20 = vpop.f32.mrf.mxu0 }
 0x1e4   :  { %3149 = vst [vmem:[#allocation4 + $0x670] sm:$0xf] %v15327_v21  ;;  %2854 = vst [vmem:[#allocation4 + $0x66c] sm:$0xf] %v15473_v25  ;;  %v1430_v29 = vld [vmem:[#allocation2 + $0x17a] sm:$0xff]  ;;  %v15230_v31 = vpack.c.bf16 %v1135_v27, %v1135_v27  ;;  %v15231_v33 = vpack.c.bf16 %v1136_v28, %v1136_v28  ;;  %v1431_v34 = vld [vmem:[#allocation2 + $0x182] sm:$0xff]  ;;  %v5456_v18 = vpop.f32.mrf.mxu1 }
 0x1e5   :  { %v15279_v35 = vpack.c.bf16 %v1430_v29, %v1430_v29  ;;  %v1725_v36 = vld [vmem:[#allocation2 + $0x17f] sm:$0xff]  ;;  %v1726_v37 = vld [vmem:[#allocation2 + $0x187] sm:$0xff]  ;;  %v15280_v30 = vpack.c.bf16 %v1431_v34, %v1431_v34  ;;  %v16738_v15 = vld [vmem:[#allocation4 + $0x64] ss:$36 sps:$4 sm:$0xff]   ;;  %v5689_v25 = vpop.f32.mrf.mxu0 }
 0x1e6   :  { %v15328_v38 = vpack.c.bf16 %v1725_v36, %v1725_v36  ;;  %v15329_v39 = vpack.c.bf16 %v1726_v37, %v1726_v37  ;;  %v2609_v40 = vld [vmem:[#allocation2 + $0x17e] sm:$0xff]  ;;  %v2610_v41 = vld [vmem:[#allocation2 + $0x186] sm:$0xff]  ;;  %1381 = vst [vmem:[#allocation4 + $0x6a0] sm:$0xf] %v15230_v31  ;;  %1382 = vst [vmem:[#allocation4 + $0x6c4] sm:$0xf] %v15231_v33  ;;  %v5457_v22 = vpop.f32.mrf.mxu1 }
 0x1e7   :  { %1676 = vst [vmem:[#allocation4 + $0x6a4] sm:$0xf] %v15279_v35  ;;  %2560 = vst [vmem:[#allocation4 + $0x68c] sm:$0xf] %v15230_v31  ;;  %v15474_v42 = vpack.c.bf16 %v2609_v40, %v2609_v40  ;;  %v15475_v44 = vpack.c.bf16 %v2610_v41, %v2610_v41  ;;  %v16705_v45 = vld [vmem:[#allocation4 + $0x634] ss:$36 sps:$4 sm:$0xff]   ;;  %v5691_v31 = vpop.f32.mrf.mxu0 }
 0x1e8   :  { %2561 = vst [vmem:[#allocation4 + $0x6b0] sm:$0xf] %v15231_v33  ;;  %v16707_v46 = vld [vmem:[#allocation4 + $0x63c] ss:$36 sps:$4 sm:$0xff]   ;;  %1677 = vst [vmem:[#allocation4 + $0x6c8] sm:$0xf] %v15280_v30  ;;  %5620 = vmatprep.mubr.bf16.mxu1 %v16705_v45  ;;  %v5459_v27 = vpop.f32.mrf.mxu1 }
 0x1e9   :  { %1971 = vst [vmem:[#allocation4 + $0x6a8] sm:$0xf] %v15328_v38  ;;  %1972 = vst [vmem:[#allocation4 + $0x6cc] sm:$0xf] %v15329_v39  ;;  %v16710_v47 = vld [vmem:[#allocation4 + $0x630] ss:$36 sps:$4 sm:$0xff]   ;;  %5852 = vmatprep.mubr.bf16.mxu0 %v16707_v46  ;;  %v5694_v37 = vpop.f32.mrf.mxu0 }
 0x1ea   :  { %3150 = vst [vmem:[#allocation4 + $0x694] sm:$0xf] %v15328_v38  ;;  %3151 = vst [vmem:[#allocation4 + $0x6b8] sm:$0xf] %v15329_v39  ;;  %v16711_v48 = vld [vmem:[#allocation4 + $0x638] ss:$36 sps:$4 sm:$0xff]   ;;  %v5462_v34 = vpop.f32.mrf.mxu1 }
 0x1eb   :  { %2855 = vst [vmem:[#allocation4 + $0x690] sm:$0xf] %v15474_v42  ;;  %2856 = vst [vmem:[#allocation4 + $0x6b4] sm:$0xf] %v15475_v44  ;;  %5621 = vmatmul.mubr.bf16.gmra.mxu1 %v16710_v47  ;;  %5853 = vmatmul.mubr.bf16.gmra.mxu0 %v16711_v48  ;;  %v16718_v50 = vld [vmem:[#allocation4 + $0x678] ss:$36 sps:$4 sm:$0xff]   ;;  %v5696_v40 = vpop.f32.mrf.mxu0 }
 0x1ec   :  { %v17973_v57 = vld [vmem:[%s19350_s4] ss:$0 sm:$0xff]  ;;  %v16727_v61 = vld [vmem:[#allocation4 + $0x14] ss:$36 sps:$4 sm:$0xff]   ;;  %v16732_v1 = vld [vmem:[#allocation4 + $0x1c] ss:$36 sps:$4 sm:$0xff]   ;;  %v5464_v30 = vpop.f32.mrf.mxu1 }
 0x1ed   :  { %v16714_v49 = vld [vmem:[#allocation4 + $0x67c] ss:$36 sps:$4 sm:$0xff]   ;;  %v5447_v62 = vadd.f32 %v17973_v57, %v5446_v59  ;;  %v5450_v6 = vadd.f32 %v17973_v57, %v5449_v5  ;;  %v16735_v43 = vld [vmem:[%s19348_s3 + $0x238] sm:$0xff]   ;;  %v16734_v12 = vld [vmem:[#allocation4 + $0x10] ss:$36 sps:$4 sm:$0xff]   ;;  %v5455_v16 = vadd.f32 %v17973_v57, %v5454_v14  ;;  %v5458_v24 = vadd.f32 %v17973_v57, %v5457_v22  ;;  %v5697_v45 = vpop.f32.mrf.mxu0 }
 0x1ee   :  { %v16719_v52 = vld [vmem:[#allocation4 + $0x680] ss:$36 sps:$4 sm:$0xff]   ;;  %5628 = vmatprep.mubr.bf16.mxu1 %v16714_v49  ;;  %v16730_v8 = vld [vmem:[#allocation4 + $0x18] ss:$36 sps:$4 sm:$0xff]   ;;  %v16744_v35 = vld [vmem:[#allocation4 + $0xac] ss:$36 sps:$4 sm:$0xff]   ;;  %v5463_v36 = vadd.f32 %v17973_v57, %v5462_v34  ;;  %v5465_v41 = vpop.f32.mrf.mxu1 }
 0x1ef   :  { %v3688_v53 = vld [vmem:[#allocation4 + $0x6c0] sm:$0xff]  ;;  %v17976_v3 = vadd.f32 %v5678_v63, %v5447_v62  ;;  %v17982_v10 = vadd.f32 %v5681_v7, %v5450_v6  ;;  %v17988_v19 = vadd.f32 %v5686_v32, %v5455_v16  ;;  %v17990_v21 = vld [vmem:[#allocation2 + $0x188] sm:$0xff]  ;;  %v17998_v29 = vadd.f32 %v5689_v25, %v5458_v24  ;;  %v16796_v38 = vld [vmem:[%s19348_s3 + $0x220] sm:$0xff]   ;;  %v5699_v49 = vpop.f32.mrf.mxu0 }
 0x1f0   :  { %v16716_v51 = vld [vmem:[#allocation4 + $0x684] ss:$36 sps:$4 sm:$0xff]   ;;  %v14242_v55 = vcombine.high %v3688_v53, %v3688_v53  ;;  %v14241_v58 = vcombine.low %v3688_v53, %v3688_v53  ;;  %v16736_v13 = vld [vmem:[#allocation4 + $0x5c] ss:$36 sps:$4 sm:$0xff]   ;;  %v18004_v39 = vadd.f32 %v5694_v37, %v5463_v36  ;;  %v5466_v44 = vadd.f32 %v17973_v57, %v5465_v41  ;;  %v5467_v46 = vpop.f32.mrf.mxu1  ;;  %v16750_v53 = vld [vmem:[#allocation4 + $0xf4] ss:$36 sps:$4 sm:$0xff]  }
 0x1f1   :  { %v3689_v54 = vld [vmem:[#allocation4 + $0x6c8] sm:$0xff]  ;;  %5860 = vmatprep.mubr.bf16.mxu0 %v16716_v51  ;;  %v16758_v17 = vld [vmem:[%s19348_s3 + $0x230] sm:$0xff]   ;;  %v16740_v23 = vld [vmem:[#allocation4 + $0x58] ss:$36 sps:$4 sm:$0xff]   ;;  %v18034_v32 = vpack.c.bf16 %v17990_v21, %v17990_v21 }
 0x1f2   :  { %v14244_v56 = vcombine.high %v3689_v54, %v3689_v54  ;;  %v14243_v60 = vcombine.low %v3689_v54, %v3689_v54  ;;  %v16741_v26 = vld [vmem:[#allocation4 + $0x60] ss:$36 sps:$4 sm:$0xff]   ;;  %v16777_v28 = vld [vmem:[%s19348_s3 + $0x228] sm:$0xff]   ;;  %v16815_v47 = vld [vmem:[%s19348_s3 + $0x218] sm:$0xff]   ;;  %v18011_v48 = vadd.f32 %v5697_v45, %v5466_v44 }
 0x1f3   :  { %5629 = vmatmul.mubr.bf16.gmra.mxu1 %v16718_v50  ;;  %5861 = vmatmul.mubr.bf16.gmra.mxu0 %v16719_v52  ;;  %v16742_v33 = vld [vmem:[#allocation4 + $0xa4] ss:$36 sps:$4 sm:$0xff]   ;;  %v16748_v51 = vld [vmem:[#allocation4 + $0xec] ss:$36 sps:$4 sm:$0xff]   ;;  %v5470_v52 = vpop.f32.mrf.mxu1  ;;  %v16754_v7 = vld [vmem:[#allocation4 + $0x134] ss:$36 sps:$4 sm:$0xff]  }
 0x1f4   :  { %5636 = vmatprep.mubr.bf16.mxu1 %v14242_v55  ;;  %5868 = vmatprep.mubr.bf16.mxu0 %v14244_v56  ;;  %v16746_v42 = vld [vmem:[#allocation4 + $0xa0] ss:$36 sps:$4 sm:$0xff]   ;;  %v16747_v50 = vld [vmem:[#allocation4 + $0xa8] ss:$36 sps:$4 sm:$0xff]   ;;  %v5471_v54 = vadd.f32 %v17973_v57, %v5470_v52  ;;  %v5702_v55 = vpop.f32.mrf.mxu0  ;;  %v16753_v6 = vld [vmem:[#allocation4 + $0xf0] ss:$36 sps:$4 sm:$0xff]  }
 0x1f5   :  { %v5472_v56 = vpop.f32.mrf.mxu1  ;;  %v16752_v2 = vld [vmem:[#allocation4 + $0xe8] ss:$36 sps:$4 sm:$0xff]   ;;  %v16759_v22 = vld [vmem:[#allocation4 + $0x130] ss:$36 sps:$4 sm:$0xff]   ;;  %3446 = vst [vmem:[#allocation4 + $0x6bc] sm:$0xf] %v18034_v32 }
 0x1f6   :  { %v18018_v59 = vadd.f32 %v5702_v55, %v5471_v54  ;;  %3447 = vst [vmem:[#allocation4 + $0x6e0] sm:$0xf] %v18034_v32  ;;  %v16760_v25 = vld [vmem:[#allocation4 + $0x138] ss:$36 sps:$4 sm:$0xff]   ;;  %v16766_v45 = vld [vmem:[#allocation4 + $0x180] ss:$36 sps:$4 sm:$0xff]  }
 0x1f7   :  { %v16765_v41 = vld [vmem:[#allocation4 + $0x178] ss:$36 sps:$4 sm:$0xff]   ;;  %v16767_v46 = vld [vmem:[#allocation4 + $0x1c4] ss:$36 sps:$4 sm:$0xff]   ;;  %v16769_v49 = vld [vmem:[#allocation4 + $0x1cc] ss:$36 sps:$4 sm:$0xff]  }
 0x1f8   :  { %2267 = vst [vmem:[#allocation4 + $0x6d0] sm:$0xf] %v18034_v32 }
 0x1fb   :  { %5637 = vmatmul.mubr.bf16.gmra.mxu1 %v14241_v58  ;;  %5869 = vmatmul.mubr.bf16.gmra.mxu0 %v14243_v60  ;;  %v16834_v58 = vld [vmem:[%s19348_s3 + $0x210] sm:$0xff]   ;;  %v5704_v60 = vpop.f32.mrf.mxu0 }
 0x1fc   :  { %5908 = vmatprep.mubr.bf16.mxu1 %v16727_v61  ;;  %6140 = vmatprep.mubr.bf16.mxu0 %v16732_v1  ;;  %v5473_v61 = vpop.f32.mrf.mxu1 }
 0x1fd   :  { %v5474_v62 = vadd.f32 %v17973_v57, %v5473_v61  ;;  %v5705_v63 = vpop.f32.mrf.mxu0  ;;  %v16771_v61 = vld [vmem:[#allocation4 + $0x1c0] ss:$36 sps:$4 sm:$0xff]  }
 0x1fe   :  { %v5475_v1 = vpop.f32.mrf.mxu1 }
 0x1ff   :  { %v18022_v4 = vadd.f32 %v5705_v63, %v5474_v62  ;;  %v5707_v5 = vpop.f32.mrf.mxu0  ;;  %v16772_v1 = vld [vmem:[#allocation4 + $0x1c8] ss:$36 sps:$4 sm:$0xff]  }
 0x200   :  { %v5478_v9 = vpop.f32.mrf.mxu1  ;;  %v16872_v5 = vld [vmem:[%s19348_s3 + $0x200] sm:$0xff]  }
 0x201   :  { %v5479_v11 = vadd.f32 %v17973_v57, %v5478_v9 }
 0x203   :  { %5909 = vmatmul.mubr.bf16.vlgmr.msra.gmra.mxu1 %v16734_v12  ;;  %6141 = vmatmul.mubr.bf16.vlgmr.msra.gmra.mxu0 %v16730_v8  ;;  %v16853_v8 = vld [vmem:[%s19348_s3 + $0x208] sm:$0xff]   ;;  %v5710_v12 = vpop.f32.mrf.mxu0 }
 0x204   :  { %16180 = vmatpush3.bf16.msra.mxu1 %v16735_v43  ;;  %5916 = vmatprep.mubr.bf16.mxu1 %v16736_v13  ;;  %v16756_v43 = vld [vmem:[#allocation4 + $0x13c] ss:$36 sps:$4 sm:$0xff]   ;;  %v5480_v13 = vpop.f32.mrf.mxu1  ;;  %v18029_v14 = vadd.f32 %v5710_v12, %v5479_v11 }
 0x205   :  { %6148 = vmatprep.mubr.bf16.mxu0 %v16738_v15  ;;  %16181 = vmatprep.subr.bf16.mxu1 %v17990_v21  ;;  %v5712_v15 = vpop.f32.mrf.mxu0 }
 0x206   :  { %v5481_v16 = vpop.f32.mrf.mxu1 }
 0x207   :  { %v5713_v18 = vpop.f32.mrf.mxu0 }
 0x208   :  { %16182 = vmatpush3.bf16.msra.mxu1 %v16758_v17  ;;  %v5482_v17 = vadd.f32 %v17973_v57, %v5481_v16  ;;  %v5483_v20 = vpop.f32.mrf.mxu1 }
 0x209   :  { %16183 = vmatprep.subr.bf16.mxu1 %v17990_v21  ;;  %v5715_v24 = vpop.f32.mrf.mxu0 }
 0x20a   :  { %v5486_v27 = vpop.f32.mrf.mxu1  ;;  %v16779_v24 = vld [vmem:[#allocation4 + $0x210] ss:$36 sps:$4 sm:$0xff]  }
 0x20b   :  { %5917 = vmatmul.mubr.bf16.gmra.mxu1 %v16740_v23  ;;  %6149 = vmatmul.mubr.bf16.gmra.mxu0 %v16741_v26  ;;  %v18039_v23 = vadd.f32 %v5713_v18, %v5482_v17  ;;  %v16761_v26 = vld [vmem:[#allocation4 + $0x17c] ss:$36 sps:$4 sm:$0xff]   ;;  %v5718_v31 = vpop.f32.mrf.mxu0  ;;  %v16778_v18 = vld [vmem:[#allocation4 + $0x208] ss:$36 sps:$4 sm:$0xff]  }
 0x20c   :  { %5924 = vmatprep.mubr.bf16.mxu1 %v16742_v33  ;;  %6156 = vmatprep.mubr.bf16.mxu0 %v16744_v35  ;;  %v5488_v33 = vpop.f32.mrf.mxu1 }
 0x20d   :  { %16184 = vmatpush3.bf16.msra.mxu1 %v16777_v28  ;;  %v16763_v28 = vld [vmem:[#allocation4 + $0x184] ss:$36 sps:$4 sm:$0xff]   ;;  %v5720_v35 = vpop.f32.mrf.mxu0 }
 0x20e   :  { %16185 = vmatprep.subr.bf16.mxu1 %v17990_v21  ;;  %v5489_v36 = vpop.f32.mrf.mxu1 }
 0x20f   :  { %v5490_v37 = vadd.f32 %v17973_v57, %v5489_v36  ;;  %v5721_v30 = vpop.f32.mrf.mxu0 }
 0x210   :  { %v5491_v40 = vpop.f32.mrf.mxu1 }
 0x211   :  { %16186 = vmatpush3.bf16.msra.mxu1 %v16796_v38  ;;  %v18045_v38 = vld [vmem:[#allocation4 + $0x698] ss:$36 sps:$4 sm:$0xff]   ;;  %v5723_v44 = vpop.f32.mrf.mxu0 }
 0x212   :  { %16187 = vmatprep.subr.bf16.mxu1 %v17990_v21  ;;  %19358 = vst [vmem:[#allocation6_spill] sm:$0xff] %v18045_v38  ;;  %9323 = vst [vmem:[#allocation4 + $0x6bc] sm:$0xf] %v18034_v32 }
 0x213   :  { %5925 = vmatmul.mubr.bf16.gmra.mxu1 %v16746_v42  ;;  %6157 = vmatmul.mubr.bf16.gmra.mxu0 %v16747_v50  ;;  %v18048_v42 = vadd.f32 %v5721_v30, %v5490_v37 }
 0x214   :  { %5932 = vmatprep.mubr.bf16.mxu1 %v16748_v51  ;;  %6164 = vmatprep.mubr.bf16.mxu0 %v16750_v53  ;;  %v5726_v51 = vpop.f32.mrf.mxu0 }
 0x215   :  { %16188 = vmatpush3.bf16.msra.mxu1 %v16815_v47  ;;  %v5494_v47 = vpop.f32.mrf.mxu1 }
 0x216   :  { %16189 = vmatprep.subr.bf16.mxu1 %v17990_v21  ;;  %v5495_v50 = vadd.f32 %v17973_v57, %v5494_v47  ;;  %v5728_v54 = vpop.f32.mrf.mxu0  ;;  %v16786_v47 = vld [vmem:[#allocation4 + $0x29c] ss:$36 sps:$4 sm:$0xff]  }
 0x217   :  { %v5496_v52 = vpop.f32.mrf.mxu1 }
 0x218   :  { %v18051_v53 = vadd.f32 %v5726_v51, %v5495_v50  ;;  %v16788_v51 = vld [vmem:[#allocation4 + $0x2a4] ss:$36 sps:$4 sm:$0xff]  }
 0x219   :  { %16190 = vmatpush3.bf16.msra.mxu1 %v16834_v58  ;;  %v5497_v55 = vpop.f32.mrf.mxu1  ;;  %v5729_v58 = vpop.f32.mrf.mxu0 }
 0x21a   :  { %16191 = vmatprep.subr.bf16.mxu1 %v17990_v21  ;;  %v5498_v56 = vadd.f32 %v17973_v57, %v5497_v55 }
 0x21b   :  { %5933 = vmatmul.mubr.bf16.gmra.mxu1 %v16752_v2  ;;  %6165 = vmatmul.mubr.bf16.gmra.mxu0 %v16753_v6  ;;  %v5499_v60 = vpop.f32.mrf.mxu1  ;;  %v5731_v63 = vpop.f32.mrf.mxu0  ;;  %v16773_v2 = vld [vmem:[#allocation4 + $0x20c] ss:$36 sps:$4 sm:$0xff]  }
 0x21c   :  { %5940 = vmatprep.mubr.bf16.mxu1 %v16754_v7  ;;  %6172 = vmatprep.mubr.bf16.mxu0 %v16756_v43  ;;  %v18054_v62 = vadd.f32 %v5729_v58, %v5498_v56  ;;  %v16775_v7 = vld [vmem:[#allocation4 + $0x214] ss:$36 sps:$4 sm:$0xff]   ;;  %v2611_v63 = vld [vmem:[#allocation2 + $0x18e] sm:$0xff] }
 0x21d   :  { %16192 = vmatpush3.bf16.msra.mxu1 %v16853_v8  ;;  %v5502_v6 = vpop.f32.mrf.mxu1  ;;  %v5734_v9 = vpop.f32.mrf.mxu0 }
 0x21e   :  { %16193 = vmatprep.subr.bf16.mxu1 %v17990_v21  ;;  %v5487_v21 = vadd.f32 %v17973_v57, %v5486_v27  ;;  %v5503_v8 = vadd.f32 %v17973_v57, %v5502_v6  ;;  %v16782_v27 = vld [vmem:[#allocation4 + $0x25c] ss:$36 sps:$4 sm:$0xff]  }
 0x21f   :  { %v5504_v43 = vpop.f32.mrf.mxu1  ;;  %v5736_v12 = vpop.f32.mrf.mxu0 }
 0x220   :  { %v18042_v34 = vadd.f32 %v5718_v31, %v5487_v21  ;;  %v18060_v11 = vadd.f32 %v5734_v9, %v5503_v8  ;;  %v16790_v43 = vld [vmem:[#allocation4 + $0x298] ss:$36 sps:$4 sm:$0xff]   ;;  %v16791_v12 = vld [vmem:[#allocation4 + $0x2a0] ss:$36 sps:$4 sm:$0xff]  }
 0x221   :  { %16194 = vmatpush3.bf16.msra.mxu1 %v16872_v5  ;;  %v5505_v13 = vpop.f32.mrf.mxu1  ;;  %v5737_v16 = vpop.f32.mrf.mxu0  ;;  %v15476_v5 = vpack.c.bf16 %v2611_v63, %v2611_v63 }
 0x222   :  { %11521 = vmatprep.subr.bf16.mxu1 %v19356_v0  ;;  %v5506_v15 = vadd.f32 %v17973_v57, %v5505_v13 }
 0x223   :  { %5941 = vmatmul.mubr.bf16.gmra.mxu1 %v16759_v22  ;;  %6173 = vmatmul.mubr.bf16.gmra.mxu0 %v16760_v25  ;;  %v5507_v17 = vpop.f32.mrf.mxu1  ;;  %v5739_v22 = vpop.f32.mrf.mxu0  ;;  %v16780_v25 = vld [vmem:[#allocation4 + $0x254] ss:$36 sps:$4 sm:$0xff]   ;;  %2857 = vst [vmem:[#allocation4 + $0x6d8] sm:$0xf] %v15476_v5 }
 0x224   :  { %5948 = vmatprep.mubr.bf16.mxu1 %v16761_v26  ;;  %6180 = vmatprep.mubr.bf16.mxu0 %v16763_v28  ;;  %v18064_v20 = vadd.f32 %v5737_v16, %v5506_v15  ;;  %v16792_v17 = vld [vmem:[#allocation4 + $0x2e4] ss:$36 sps:$4 sm:$0xff]   ;;  %v8783_v22 = vld [vmem:[#allocation3 + $0x18f] sm:$0xff] }
 0x225   :  { %v5510_v26 = vpop.f32.mrf.mxu1  ;;  %v5742_v21 = vpop.f32.mrf.mxu0 }
 0x226   :  { %v5511_v28 = vadd.f32 %v17973_v57, %v5510_v26 }
 0x227   :  { %v5512_v31 = vpop.f32.mrf.mxu1  ;;  %v5744_v35 = vpop.f32.mrf.mxu0 }
 0x228   :  { %v18067_v33 = vadd.f32 %v5742_v21, %v5511_v28  ;;  %v15966_v35 = vpack.c.bf16 %v8783_v22, %v8783_v22 }
 0x229   :  { %v5513_v36 = vpop.f32.mrf.mxu1  ;;  %v5745_v30 = vpop.f32.mrf.mxu0 }
 0x22a   :  { %v5514_v37 = vadd.f32 %v17973_v57, %v5513_v36 }
 0x22b   :  { %5949 = vmatmul.mubr.bf16.gmra.mxu1 %v16765_v41  ;;  %6181 = vmatmul.mubr.bf16.gmra.mxu0 %v16766_v45  ;;  %v5515_v40 = vpop.f32.mrf.mxu1  ;;  %v16784_v41 = vld [vmem:[#allocation4 + $0x250] ss:$36 sps:$4 sm:$0xff]   ;;  %v5747_v45 = vpop.f32.mrf.mxu0 }
 0x22c   :  { %5956 = vmatprep.mubr.bf16.mxu1 %v16767_v46  ;;  %6188 = vmatprep.mubr.bf16.mxu0 %v16769_v49  ;;  %v18070_v44 = vadd.f32 %v5745_v30, %v5514_v37  ;;  %v16785_v46 = vld [vmem:[#allocation4 + $0x258] ss:$36 sps:$4 sm:$0xff]  }
 0x22d   :  { %v2316_v49 = vld [vmem:[#allocation2 + $0x189] sm:$0xff]  ;;  %v5518_v50 = vpop.f32.mrf.mxu1  ;;  %v5750_v55 = vpop.f32.mrf.mxu0 }
 0x22e   :  { %v15427_v52 = vpack.c.bf16 %v2316_v49, %v2316_v49  ;;  %v5519_v54 = vadd.f32 %v17973_v57, %v5518_v50 }
 0x22f   :  { %v5520_v56 = vpop.f32.mrf.mxu1  ;;  %v5752_v60 = vpop.f32.mrf.mxu0 }
 0x230   :  { %2562 = vst [vmem:[#allocation4 + $0x6d4] sm:$0xf] %v15427_v52  ;;  %v18074_v58 = vadd.f32 %v5750_v55, %v5519_v54  ;;  %v16799_v52 = vld [vmem:[#allocation4 + $0x32c] ss:$36 sps:$4 sm:$0xff]   ;;  %v16801_v55 = vld [vmem:[#allocation4 + $0x334] ss:$36 sps:$4 sm:$0xff]  }
 0x231   :  { %v5753_v8 = vpop.f32.mrf.mxu0 }
 0x233   :  { %5957 = vmatmul.mubr.bf16.gmra.mxu1 %v16771_v61  ;;  %6189 = vmatmul.mubr.bf16.gmra.mxu0 %v16772_v1  ;;  %v8193_v61 = vld [vmem:[#allocation3 + $0x189] sm:$0xff]  ;;  %v2906_v1 = vld [vmem:[#allocation2 + $0x18f] sm:$0xff]  ;;  %v5755_v16 = vpop.f32.mrf.mxu0 }
 0x234   :  { %5964 = vmatprep.mubr.bf16.mxu1 %v16773_v2  ;;  %6196 = vmatprep.mubr.bf16.mxu0 %v16775_v7  ;;  %v5521_v2 = vpop.f32.mrf.mxu1  ;;  %v15525_v6 = vpack.c.bf16 %v2906_v1, %v2906_v1  ;;  %v15868_v13 = vpack.c.bf16 %v8193_v61, %v8193_v61 }
 0x235   :  { %v5522_v7 = vadd.f32 %v17973_v57, %v5521_v2 }
 0x236   :  { %v5523_v9 = vpop.f32.mrf.mxu1  ;;  %3152 = vst [vmem:[#allocation4 + $0x6dc] sm:$0xf] %v15525_v6 }
 0x237   :  { %v18077_v15 = vadd.f32 %v5753_v8, %v5522_v7  ;;  %v18080_v28 = vld [vmem:[#allocation4 + $0x6d0] sm:$0xff]  ;;  %v16803_v8 = vld [vmem:[#allocation4 + $0x328] ss:$36 sps:$4 sm:$0xff]  }
 0x238   :  { %8144 = vst [vmem:[#allocation4 + $0x6d0] sm:$0xf] %v18034_v32  ;;  %8439 = vst [vmem:[#allocation4 + $0x6d4] sm:$0xf] %v15868_v13  ;;  %v16805_v13 = vld [vmem:[#allocation4 + $0x374] ss:$36 sps:$4 sm:$0xff]  }
 0x23b   :  { %5965 = vmatmul.mubr.bf16.gmra.mxu1 %v16778_v18  ;;  %6197 = vmatmul.mubr.bf16.gmra.mxu0 %v16779_v24  ;;  %v8488_v18 = vld [vmem:[#allocation3 + $0x18e] sm:$0xff]  ;;  %v5526_v24 = vpop.f32.mrf.mxu1 }
 0x23c   :  { %5972 = vmatprep.mubr.bf16.mxu1 %v16780_v25  ;;  %6204 = vmatprep.mubr.bf16.mxu0 %v16782_v27  ;;  %v16794_v25 = vld [vmem:[#allocation4 + $0x2ec] ss:$36 sps:$4 sm:$0xff]   ;;  %v5527_v26 = vadd.f32 %v17973_v57, %v5526_v24  ;;  %v5758_v27 = vpop.f32.mrf.mxu0  ;;  %v15917_v31 = vpack.c.bf16 %v8488_v18, %v8488_v18 }
 0x23d   :  { %v5528_v21 = vpop.f32.mrf.mxu1  ;;  %v18086_v45 = vld [vmem:[#allocation4 + $0x6d8] sm:$0xff] }
 0x23e   :  { %v18083_v36 = vadd.f32 %v5758_v27, %v5527_v26  ;;  %v5760_v37 = vpop.f32.mrf.mxu0  ;;  %8734 = vst [vmem:[#allocation4 + $0x6d8] sm:$0xf] %v15917_v31  ;;  %9029 = vst [vmem:[#allocation4 + $0x6dc] sm:$0xf] %v15966_v35 }
 0x23f   :  { %v5529_v30 = vpop.f32.mrf.mxu1  ;;  %v16809_v37 = vld [vmem:[#allocation4 + $0x370] ss:$36 sps:$4 sm:$0xff]  }
 0x240   :  { %v5530_v40 = vadd.f32 %v17973_v57, %v5529_v30 }
 0x243   :  { %5973 = vmatmul.mubr.bf16.gmra.mxu1 %v16784_v41  ;;  %6205 = vmatmul.mubr.bf16.gmra.mxu0 %v16785_v46  ;;  %v5761_v41 = vpop.f32.mrf.mxu0  ;;  %v5531_v46 = vpop.f32.mrf.mxu1 }
 0x244   :  { %5980 = vmatprep.mubr.bf16.mxu1 %v16786_v47  ;;  %6212 = vmatprep.mubr.bf16.mxu0 %v16788_v51  ;;  %v16797_v47 = vld [vmem:[#allocation4 + $0x2e0] ss:$36 sps:$4 sm:$0xff]   ;;  %v18088_v49 = vadd.f32 %v5761_v41, %v5530_v40  ;;  %v16798_v51 = vld [vmem:[#allocation4 + $0x2e8] ss:$36 sps:$4 sm:$0xff]   ;;  %v16810_v41 = vld [vmem:[#allocation4 + $0x378] ss:$36 sps:$4 sm:$0xff]  }
 0x245   :  { %v5763_v50 = vpop.f32.mrf.mxu0  ;;  %v5534_v54 = vpop.f32.mrf.mxu1  ;;  %v16811_v46 = vld [vmem:[#allocation4 + $0x3bc] ss:$36 sps:$4 sm:$0xff]  }
 0x246   :  { %v5535_v56 = vadd.f32 %v17973_v57, %v5534_v54  ;;  %v16813_v50 = vld [vmem:[#allocation4 + $0x3c4] ss:$36 sps:$4 sm:$0xff]  }
 0x247   :  { %v5766_v60 = vpop.f32.mrf.mxu0  ;;  %v5536_v61 = vpop.f32.mrf.mxu1 }
 0x248   :  { %v18091_v63 = vadd.f32 %v5766_v60, %v5535_v56  ;;  %v16816_v61 = vld [vmem:[#allocation4 + $0x3b8] ss:$36 sps:$4 sm:$0xff]  }
 0x249   :  { %v5768_v1 = vpop.f32.mrf.mxu0  ;;  %v5537_v2 = vpop.f32.mrf.mxu1 }
 0x24a   :  { %v5538_v5 = vadd.f32 %v17973_v57, %v5537_v2  ;;  %v16887_v1 = vld [vmem:[%s19351_s5 + $0x38] sm:$0xff]  }
 0x24b   :  { %5981 = vmatmul.mubr.bf16.gmra.mxu1 %v16790_v43  ;;  %6213 = vmatmul.mubr.bf16.gmra.mxu0 %v16791_v12  ;;  %v5769_v6 = vpop.f32.mrf.mxu0  ;;  %v5539_v7 = vpop.f32.mrf.mxu1  ;;  %v16804_v12 = vld [vmem:[#allocation4 + $0x330] ss:$36 sps:$4 sm:$0xff]  }
 0x24c   :  { %5988 = vmatprep.mubr.bf16.mxu1 %v16792_v17  ;;  %6220 = vmatprep.mubr.bf16.mxu0 %v16794_v25  ;;  %v18094_v9 = vadd.f32 %v5769_v6, %v5538_v5  ;;  %v16807_v17 = vld [vmem:[#allocation4 + $0x37c] ss:$36 sps:$4 sm:$0xff]   ;;  %v16818_v7 = vld [vmem:[#allocation4 + $0x404] ss:$36 sps:$4 sm:$0xff]  }
 0x24d   :  { %v5771_v43 = vpop.f32.mrf.mxu0  ;;  %v5542_v16 = vpop.f32.mrf.mxu1  ;;  %v16817_v6 = vld [vmem:[#allocation4 + $0x3c0] ss:$36 sps:$4 sm:$0xff]   ;;  %11290 = vmatpush1.bf16.msra.mxu0 %v16887_v1 }
 0x24e   :  { %v5543_v18 = vadd.f32 %v17973_v57, %v5542_v16  ;;  %v16820_v43 = vld [vmem:[#allocation4 + $0x40c] ss:$36 sps:$4 sm:$0xff]   ;;  %11291 = vmatprep.subr.bf16.mxu0 %v19356_v0 }
 0x24f   :  { %v5774_v22 = vpop.f32.mrf.mxu0  ;;  %v5544_v24 = vpop.f32.mrf.mxu1 }
 0x250   :  { %v18097_v25 = vadd.f32 %v5774_v22, %v5543_v18 }
 0x251   :  { %v5776_v26 = vpop.f32.mrf.mxu0  ;;  %v5545_v27 = vpop.f32.mrf.mxu1 }
 0x252   :  { %v5546_v21 = vadd.f32 %v17973_v57, %v5545_v27 }
 0x253   :  { %5989 = vmatmul.mubr.bf16.gmra.mxu1 %v16797_v47  ;;  %6221 = vmatmul.mubr.bf16.gmra.mxu0 %v16798_v51  ;;  %v5777_v31 = vpop.f32.mrf.mxu0  ;;  %v5547_v35 = vpop.f32.mrf.mxu1 }
 0x254   :  { %5996 = vmatprep.mubr.bf16.mxu1 %v16799_v52  ;;  %6228 = vmatprep.mubr.bf16.mxu0 %v16801_v55  ;;  %v18100_v30 = vadd.f32 %v5777_v31, %v5546_v21  ;;  %v16822_v21 = vld [vmem:[#allocation4 + $0x400] ss:$36 sps:$4 sm:$0xff]  }
 0x255   :  { %v5779_v40 = vpop.f32.mrf.mxu0  ;;  %v5550_v47 = vpop.f32.mrf.mxu1 }
 0x256   :  { %v5551_v51 = vadd.f32 %v17973_v57, %v5550_v47  ;;  %v16824_v40 = vld [vmem:[#allocation4 + $0x44c] ss:$36 sps:$4 sm:$0xff]  }
 0x257   :  { %v5782_v52 = vpop.f32.mrf.mxu0  ;;  %v5552_v54 = vpop.f32.mrf.mxu1 }
 0x258   :  { %v18103_v55 = vadd.f32 %v5782_v52, %v5551_v51  ;;  %v16889_v51 = vld [vmem:[%s19351_s5 + $0x30] sm:$0xff]  }
 0x259   :  { %v5784_v56 = vpop.f32.mrf.mxu0  ;;  %v5553_v60 = vpop.f32.mrf.mxu1  ;;  %11292 = vmatpush1.bf16.msra.mxu0 %v16889_v51  ;;  %v16836_v51 = vld [vmem:[#allocation4 + $0x498] ss:$36 sps:$4 sm:$0xff]  }
 0x25a   :  { %v5554_v2 = vadd.f32 %v17973_v57, %v5553_v60  ;;  %11293 = vmatprep.subr.bf16.mxu0 %v19356_v0 }
 0x25b   :  { %5997 = vmatmul.mubr.bf16.gmra.mxu1 %v16803_v8  ;;  %6229 = vmatmul.mubr.bf16.gmra.mxu0 %v16804_v12  ;;  %v5785_v5 = vpop.f32.mrf.mxu0  ;;  %v5555_v8 = vpop.f32.mrf.mxu1 }
 0x25c   :  { %6004 = vmatprep.mubr.bf16.mxu1 %v16805_v13  ;;  %6236 = vmatprep.mubr.bf16.mxu0 %v16807_v17  ;;  %v18109_v12 = vadd.f32 %v5785_v5, %v5554_v2  ;;  %v16828_v5 = vld [vmem:[#allocation4 + $0x448] ss:$36 sps:$4 sm:$0xff]   ;;  %v16829_v8 = vld [vmem:[#allocation4 + $0x450] ss:$36 sps:$4 sm:$0xff]  }
 0x25d   :  { %v5787_v13 = vpop.f32.mrf.mxu0  ;;  %v5558_v16 = vpop.f32.mrf.mxu1 }
 0x25e   :  { %v5559_v17 = vadd.f32 %v17973_v57, %v5558_v16  ;;  %v16832_v16 = vld [vmem:[#allocation4 + $0x49c] ss:$36 sps:$4 sm:$0xff]  }
 0x25f   :  { %v5790_v18 = vpop.f32.mrf.mxu0  ;;  %v5560_v22 = vpop.f32.mrf.mxu1 }
 0x260   :  { %v18113_v24 = vadd.f32 %v5790_v18, %v5559_v17 }
 0x261   :  { %v5792_v26 = vpop.f32.mrf.mxu0  ;;  %v5561_v27 = vpop.f32.mrf.mxu1 }
 0x262   :  { %v5562_v31 = vadd.f32 %v17973_v57, %v5561_v27 }
 0x263   :  { %6005 = vmatmul.mubr.bf16.gmra.mxu1 %v16809_v37  ;;  %6237 = vmatmul.mubr.bf16.gmra.mxu0 %v16810_v41  ;;  %v5793_v35 = vpop.f32.mrf.mxu0  ;;  %v16823_v37 = vld [vmem:[#allocation4 + $0x408] ss:$36 sps:$4 sm:$0xff]   ;;  %v5563_v41 = vpop.f32.mrf.mxu1 }
 0x264   :  { %6012 = vmatprep.mubr.bf16.mxu1 %v16811_v46  ;;  %6244 = vmatprep.mubr.bf16.mxu0 %v16813_v50  ;;  %v16826_v46 = vld [vmem:[#allocation4 + $0x454] ss:$36 sps:$4 sm:$0xff]   ;;  %v18116_v47 = vadd.f32 %v5793_v35, %v5562_v31 }
 0x265   :  { %v5795_v50 = vpop.f32.mrf.mxu0  ;;  %v16835_v41 = vld [vmem:[#allocation4 + $0x490] ss:$36 sps:$4 sm:$0xff]  }
 0x266   :  { %v5566_v52 = vpop.f32.mrf.mxu1 }
 0x267   :  { %v5567_v54 = vadd.f32 %v17973_v57, %v5566_v52  ;;  %v5798_v56 = vpop.f32.mrf.mxu0  ;;  %v16837_v52 = vld [vmem:[#allocation4 + $0x4dc] ss:$36 sps:$4 sm:$0xff]  }
 0x268   :  { %v5568_v60 = vpop.f32.mrf.mxu1 }
 0x269   :  { %v5800_v1 = vpop.f32.mrf.mxu0 }
 0x26a   :  { %v5569_v2 = vpop.f32.mrf.mxu1 }
 0x26b   :  { %6013 = vmatmul.mubr.bf16.gmra.mxu1 %v16816_v61  ;;  %6245 = vmatmul.mubr.bf16.gmra.mxu0 %v16817_v6  ;;  %v18122_v61 = vadd.f32 %v5798_v56, %v5567_v54  ;;  %v5570_v6 = vadd.f32 %v17973_v57, %v5569_v2  ;;  %v16839_v56 = vld [vmem:[#allocation4 + $0x4e4] ss:$36 sps:$4 sm:$0xff]  }
 0x26c   :  { %6020 = vmatprep.mubr.bf16.mxu1 %v16818_v7  ;;  %6252 = vmatprep.mubr.bf16.mxu0 %v16820_v43  ;;  %v5801_v7 = vpop.f32.mrf.mxu0  ;;  %v16830_v43 = vld [vmem:[#allocation4 + $0x494] ss:$36 sps:$4 sm:$0xff]   ;;  %v5571_v13 = vpop.f32.mrf.mxu1 }
 0x26d   :  { %v18126_v17 = vadd.f32 %v5801_v7, %v5570_v6 }
 0x26e   :  { %v5803_v18 = vpop.f32.mrf.mxu0 }
 0x26f   :  { %v5574_v22 = vpop.f32.mrf.mxu1 }
 0x270   :  { %v5575_v26 = vadd.f32 %v17973_v57, %v5574_v22  ;;  %v5806_v27 = vpop.f32.mrf.mxu0 }
 0x272   :  { %v18129_v31 = vadd.f32 %v5806_v27, %v5575_v26  ;;  %v5808_v35 = vpop.f32.mrf.mxu0  ;;  %v16842_v26 = vld [vmem:[#allocation4 + $0x4e0] ss:$36 sps:$4 sm:$0xff]  }
 0x273   :  { %6021 = vmatmul.mubr.bf16.gmra.mxu1 %v16822_v21  ;;  %6253 = vmatmul.mubr.bf16.gmra.mxu0 %v16823_v37  ;;  %v5576_v21 = vpop.f32.mrf.mxu1  ;;  %v16892_v37 = vld [vmem:[%s19351_s5 + $0x28] sm:$0xff]   ;;  %v16843_v27 = vld [vmem:[#allocation4 + $0x524] ss:$36 sps:$4 sm:$0xff]   ;;  %v16845_v35 = vld [vmem:[#allocation4 + $0x52c] ss:$36 sps:$4 sm:$0xff]  }
 0x274   :  { %6028 = vmatprep.mubr.bf16.mxu1 %v16824_v40  ;;  %6260 = vmatprep.mubr.bf16.mxu0 %v16826_v46  ;;  %v18137_v46 = vld [vmem:[%s19350_s4] ss:$0 sm:$0xff]  ;;  %v5809_v50 = vpop.f32.mrf.mxu0 }
 0x275   :  { %v5577_v40 = vpop.f32.mrf.mxu1  ;;  %11294 = vmatpush1.bf16.msra.mxu0 %v16892_v37 }
 0x276   :  { %v5578_v57 = vadd.f32 %v18137_v46, %v5577_v40  ;;  %11295 = vmatprep.subr.bf16.mxu0 %v19356_v0  ;;  %v5811_v1 = vpop.f32.mrf.mxu0 }
 0x277   :  { %v5579_v54 = vpop.f32.mrf.mxu1 }
 0x278   :  { %v18141_v60 = vadd.f32 %v5809_v50, %v5578_v57 }
 0x279   :  { %v5582_v2 = vpop.f32.mrf.mxu1 }
 0x27a   :  { %v5814_v6 = vpop.f32.mrf.mxu0 }
 0x27b   :  { %6029 = vmatmul.mubr.bf16.gmra.mxu1 %v16828_v5  ;;  %6261 = vmatmul.mubr.bf16.gmra.mxu0 %v16829_v8  ;;  %v5583_v5 = vadd.f32 %v18137_v46, %v5582_v2  ;;  %v5584_v7 = vpop.f32.mrf.mxu1  ;;  %v16847_v2 = vld [vmem:[#allocation4 + $0x520] ss:$36 sps:$4 sm:$0xff]  }
 0x27c   :  { %6036 = vmatprep.mubr.bf16.mxu1 %v16830_v43  ;;  %6268 = vmatprep.mubr.bf16.mxu0 %v16832_v16  ;;  %v5816_v43 = vpop.f32.mrf.mxu0  ;;  %v16841_v16 = vld [vmem:[#allocation4 + $0x4d8] ss:$36 sps:$4 sm:$0xff]   ;;  %v16848_v7 = vld [vmem:[#allocation4 + $0x528] ss:$36 sps:$4 sm:$0xff]  }
 0x27d   :  { %v18144_v8 = vadd.f32 %v5814_v6, %v5583_v5  ;;  %v5585_v13 = vpop.f32.mrf.mxu1  ;;  %v16849_v43 = vld [vmem:[#allocation4 + $0x56c] ss:$36 sps:$4 sm:$0xff]  }
 0x27e   :  { %v5586_v18 = vadd.f32 %v18137_v46, %v5585_v13  ;;  %v5817_v22 = vpop.f32.mrf.mxu0 }
 0x27f   :  { %v5587_v21 = vpop.f32.mrf.mxu1 }
 0x280   :  { %v18147_v37 = vadd.f32 %v5817_v22, %v5586_v18  ;;  %v5819_v40 = vpop.f32.mrf.mxu0 }
 0x283   :  { %6037 = vmatmul.mubr.bf16.gmra.mxu1 %v16835_v41  ;;  %6269 = vmatmul.mubr.bf16.gmra.mxu0 %v16836_v51  ;;  %v5590_v41 = vpop.f32.mrf.mxu1 }
 0x284   :  { %6044 = vmatprep.mubr.bf16.mxu1 %v16837_v52  ;;  %6276 = vmatprep.mubr.bf16.mxu0 %v16839_v56  ;;  %v5591_v57 = vadd.f32 %v18137_v46, %v5590_v41  ;;  %v16895_v56 = vld [vmem:[%s19351_s5 + $0x20] sm:$0xff]  }
 0x285   :  { %v5822_v50 = vpop.f32.mrf.mxu0  ;;  %v5592_v51 = vpop.f32.mrf.mxu1  ;;  %11296 = vmatpush1.bf16.msra.mxu0 %v16895_v56  ;;  %v16854_v56 = vld [vmem:[#allocation4 + $0x568] ss:$36 sps:$4 sm:$0xff]  }
 0x286   :  { %v18150_v52 = vadd.f32 %v5822_v50, %v5591_v57  ;;  %11297 = vmatprep.subr.bf16.mxu0 %v19356_v0 }
 0x287   :  { %v5824_v54 = vpop.f32.mrf.mxu0  ;;  %v5593_v1 = vpop.f32.mrf.mxu1 }
 0x288   :  { %v5594_v5 = vadd.f32 %v18137_v46, %v5593_v1 }
 0x289   :  { %v5825_v6 = vpop.f32.mrf.mxu0  ;;  %v5595_v13 = vpop.f32.mrf.mxu1 }
 0x28a   :  { %v18157_v18 = vadd.f32 %v5825_v6, %v5594_v5  ;;  %v16856_v6 = vld [vmem:[#allocation4 + $0x5b4] ss:$36 sps:$4 sm:$0xff]   ;;  %v16858_v13 = vld [vmem:[#allocation4 + $0x5bc] ss:$36 sps:$4 sm:$0xff]  }
 0x28b   :  { %6045 = vmatmul.mubr.bf16.gmra.mxu1 %v16841_v16  ;;  %6277 = vmatmul.mubr.bf16.gmra.mxu0 %v16842_v26  ;;  %v16851_v16 = vld [vmem:[#allocation4 + $0x574] ss:$36 sps:$4 sm:$0xff]   ;;  %v5827_v22 = vpop.f32.mrf.mxu0 }
 0x28c   :  { %6052 = vmatprep.mubr.bf16.mxu1 %v16843_v27  ;;  %6284 = vmatprep.mubr.bf16.mxu0 %v16845_v35 }
 0x28e   :  { %v5598_v26 = vpop.f32.mrf.mxu1 }
 0x28f   :  { %v5599_v27 = vadd.f32 %v18137_v46, %v5598_v26 }
 0x290   :  { %v5830_v21 = vpop.f32.mrf.mxu0  ;;  %v5600_v35 = vpop.f32.mrf.mxu1 }
 0x291   :  { %v18160_v40 = vadd.f32 %v5830_v21, %v5599_v27 }
 0x292   :  { %v5832_v41 = vpop.f32.mrf.mxu0  ;;  %v5601_v57 = vpop.f32.mrf.mxu1 }
 0x293   :  { %6053 = vmatmul.mubr.bf16.gmra.mxu1 %v16847_v2  ;;  %6285 = vmatmul.mubr.bf16.gmra.mxu0 %v16848_v7  ;;  %v5602_v50 = vadd.f32 %v18137_v46, %v5601_v57  ;;  %v16855_v2 = vld [vmem:[#allocation4 + $0x570] ss:$36 sps:$4 sm:$0xff]   ;;  %v16897_v7 = vld [vmem:[%s19351_s5 + $0x18] sm:$0xff]  }
 0x294   :  { %6060 = vmatprep.mubr.bf16.mxu1 %v16849_v43  ;;  %6292 = vmatprep.mubr.bf16.mxu0 %v16851_v16  ;;  %v5833_v51 = vpop.f32.mrf.mxu0  ;;  %v5603_v54 = vpop.f32.mrf.mxu1 }
 0x295   :  { %v18163_v1 = vadd.f32 %v5833_v51, %v5602_v50  ;;  %11298 = vmatpush1.bf16.msra.mxu0 %v16897_v7  ;;  %v16860_v51 = vld [vmem:[#allocation4 + $0x5b0] ss:$36 sps:$4 sm:$0xff]  }
 0x296   :  { %v5835_v5 = vpop.f32.mrf.mxu0  ;;  %11299 = vmatprep.subr.bf16.mxu0 %v19356_v0 }
 0x297   :  { %v16861_v5 = vld [vmem:[#allocation4 + $0x5b8] ss:$36 sps:$4 sm:$0xff]  }
 0x298   :  { %v5606_v43 = vpop.f32.mrf.mxu1 }
 0x299   :  { %v5607_v16 = vadd.f32 %v18137_v46, %v5606_v43  ;;  %v5838_v22 = vpop.f32.mrf.mxu0  ;;  %v16864_v43 = vld [vmem:[#allocation4 + $0x604] ss:$36 sps:$4 sm:$0xff]  }
 0x29a   :  { %v5608_v26 = vpop.f32.mrf.mxu1 }
 0x29b   :  { %6061 = vmatmul.mubr.bf16.gmra.mxu1 %v16854_v56  ;;  %6293 = vmatmul.mubr.bf16.gmra.mxu0 %v16855_v2  ;;  %v18169_v27 = vadd.f32 %v5838_v22, %v5607_v16  ;;  %v5840_v21 = vpop.f32.mrf.mxu0  ;;  %v16862_v2 = vld [vmem:[#allocation4 + $0x5fc] ss:$36 sps:$4 sm:$0xff]  }
 0x29c   :  { %6068 = vmatprep.mubr.bf16.mxu1 %v16856_v6  ;;  %6300 = vmatprep.mubr.bf16.mxu0 %v16858_v13  ;;  %v5609_v35 = vpop.f32.mrf.mxu1  ;;  %v16900_v21 = vld [vmem:[%s19351_s5 + $0x10] sm:$0xff]  }
 0x29d   :  { %v5610_v41 = vadd.f32 %v18137_v46, %v5609_v35  ;;  %v5841_v57 = vpop.f32.mrf.mxu0  ;;  %11300 = vmatpush1.bf16.msra.mxu0 %v16900_v21 }
 0x29e   :  { %v5611_v50 = vpop.f32.mrf.mxu1  ;;  %11301 = vmatprep.subr.bf16.mxu0 %v19356_v0  ;;  %v16873_v0 = vld [vmem:[#allocation4 + $0x640] ss:$36 sps:$4 sm:$0xff]  }
 0x29f   :  { %v18173_v54 = vadd.f32 %v5841_v57, %v5610_v41  ;;  %v5843_v56 = vpop.f32.mrf.mxu0 }
 0x2a2   :  { %v5846_v13 = vpop.f32.mrf.mxu0 }
 0x2a3   :  { %v5614_v6 = vpop.f32.mrf.mxu1  ;;  %6069 = vmatmul.mubr.bf16.gmra.mxu1 %v16860_v51  ;;  %6301 = vmatmul.mubr.bf16.gmra.mxu0 %v16861_v5  ;;  %v16866_v51 = vld [vmem:[#allocation4 + $0x5f8] ss:$36 sps:$4 sm:$0xff]  }
 0x2a4   :  { %v5615_v7 = vadd.f32 %v18137_v46, %v5614_v6  ;;  %6076 = vmatprep.mubr.bf16.mxu1 %v16862_v2  ;;  %6308 = vmatprep.mubr.bf16.mxu0 %v16864_v43  ;;  %v5848_v26 = vpop.f32.mrf.mxu0  ;;  %v16867_v2 = vld [vmem:[#allocation4 + $0x600] ss:$36 sps:$4 sm:$0xff]  }
 0x2a5   :  { %v5616_v16 = vpop.f32.mrf.mxu1  ;;  %v16868_v6 = vld [vmem:[#allocation4 + $0x644] ss:$36 sps:$4 sm:$0xff]  }
 0x2a6   :  { %v18176_v22 = vadd.f32 %v5846_v13, %v5615_v7  ;;  %v5849_v57 = vpop.f32.mrf.mxu0  ;;  %v16870_v7 = vld [vmem:[#allocation4 + $0x64c] ss:$36 sps:$4 sm:$0xff]  }
 0x2a7   :  { %v5617_v35 = vpop.f32.mrf.mxu1 }
 0x2a8   :  { %19359 = vst [vmem:[#allocation7_spill] sm:$0xff] %v18176_v22  ;;  %v5618_v41 = vadd.f32 %v18137_v46, %v5617_v35  ;;  %v5851_v5 = vpop.f32.mrf.mxu0  ;;  %v16875_v22 = vld [vmem:[#allocation4 + $0x68c] ss:$36 sps:$4 sm:$0xff]  }
 0x2a9   :  { %v5619_v50 = vpop.f32.mrf.mxu1 }
 0x2aa   :  { %v18183_v56 = vadd.f32 %v5849_v57, %v5618_v41 }
 0x2ab   :  { %v5622_v43 = vpop.f32.mrf.mxu1  ;;  %6077 = vmatmul.mubr.bf16.gmra.mxu1 %v16866_v51  ;;  %v5854_v16 = vpop.f32.mrf.mxu0  ;;  %6309 = vmatmul.mubr.bf16.gmra.mxu0 %v16867_v2  ;;  %v16902_v2 = vld [vmem:[%s19351_s5 + $0x8] sm:$0xff]  }
 0x2ac   :  { %19360 = vst [vmem:[#allocation8_spill] sm:$0xff] %v18183_v56  ;;  %v5623_v13 = vadd.f32 %v18137_v46, %v5622_v43  ;;  %6084 = vmatprep.mubr.bf16.mxu1 %v16868_v6  ;;  %6316 = vmatprep.mubr.bf16.mxu0 %v16870_v7  ;;  %v16874_v56 = vld [vmem:[#allocation4 + $0x648] ss:$36 sps:$4 sm:$0xff]   ;;  %v16877_v43 = vld [vmem:[#allocation4 + $0x694] ss:$36 sps:$4 sm:$0xff]  }
 0x2ad   :  { %v5624_v26 = vpop.f32.mrf.mxu1  ;;  %v5856_v35 = vpop.f32.mrf.mxu0  ;;  %11302 = vmatpush1.bf16.msra.mxu0 %v16902_v2 }
 0x2ae   :  { %v18186_v21 = vadd.f32 %v5854_v16, %v5623_v13 }
 0x2af   :  { %v5625_v50 = vpop.f32.mrf.mxu1  ;;  %v5857_v57 = vpop.f32.mrf.mxu0 }
 0x2b0   :  { %v5626_v41 = vadd.f32 %v18137_v46, %v5625_v50  ;;  %v19362_v50 = vmov 0  }
 0x2b1   :  { %v5627_v5 = vpop.f32.mrf.mxu1  ;;  %v5859_v51 = vpop.f32.mrf.mxu0  ;;  %11303 = vmatprep.subr.bf16.mxu0 %v19362_v50 }
 0x2b2   :  { %v18189_v38 = vadd.f32 %v5857_v57, %v5626_v41 }
 0x2b3   :  { %v5630_v6 = vpop.f32.mrf.mxu1  ;;  %6085 = vmatmul.mubr.bf16.gmra.mxu1 %v16873_v0  ;;  %v5862_v13 = vpop.f32.mrf.mxu0  ;;  %6317 = vmatmul.mubr.bf16.gmra.mxu0 %v16874_v56  ;;  %v14246_v0 = vcombine.high %v18080_v28, %v18080_v28 }
 0x2b4   :  { %v5631_v7 = vadd.f32 %v18137_v46, %v5630_v6  ;;  %6092 = vmatprep.mubr.bf16.mxu1 %v16875_v22  ;;  %6324 = vmatprep.mubr.bf16.mxu0 %v16877_v43  ;;  %v16879_v6 = vld [vmem:[#allocation4 + $0x688] ss:$36 sps:$4 sm:$0xff]   ;;  %v14248_v22 = vcombine.high %v18086_v45, %v18086_v45  ;;  %v16880_v43 = vld [vmem:[#allocation4 + $0x690] ss:$36 sps:$4 sm:$0xff]  }
 0x2b5   :  { %v5632_v16 = vpop.f32.mrf.mxu1  ;;  %v5864_v35 = vpop.f32.mrf.mxu0 }
 0x2b6   :  { %v18195_v26 = vadd.f32 %v5862_v13, %v5631_v7 }
 0x2b7   :  { %v5633_v41 = vpop.f32.mrf.mxu1  ;;  %v5865_v5 = vpop.f32.mrf.mxu0 }
 0x2b8   :  { %19361 = vst [vmem:[#allocation9_spill] sm:$0xff] %v18195_v26  ;;  %v5634_v57 = vadd.f32 %v18137_v46, %v5633_v41  ;;  %v16905_v26 = vld [vmem:[%s19351_s5] sm:$0xff]  }
 0x2b9   :  { %v5635_v51 = vpop.f32.mrf.mxu1  ;;  %v5867_v2 = vpop.f32.mrf.mxu0  ;;  %11304 = vmatpush1.bf16.msra.mxu0 %v16905_v26 }
 0x2ba   :  { %v18203_v56 = vadd.f32 %v5865_v5, %v5634_v57  ;;  %v14245_v5 = vcombine.low %v18080_v28, %v18080_v28  ;;  %11305 = vmatprep.subr.bf16.mxu0 %v19362_v50 }
 0x2bb   :  { %v5638_v7 = vpop.f32.mrf.mxu1  ;;  %6093 = vmatmul.mubr.bf16.gmra.mxu1 %v16879_v6  ;;  %v5870_v16 = vpop.f32.mrf.mxu0  ;;  %6325 = vmatmul.mubr.bf16.gmra.mxu0 %v16880_v43 }
 0x2bc   :  { %v5639_v13 = vadd.f32 %v18137_v46, %v5638_v7  ;;  %6100 = vmatprep.mubr.bf16.mxu1 %v14246_v0  ;;  %6332 = vmatprep.mubr.bf16.mxu0 %v14248_v22  ;;  %v14247_v46 = vcombine.low %v18086_v45, %v18086_v45 }
 0x2bd   :  { %v5640_v35 = vpop.f32.mrf.mxu1  ;;  %v5872_v51 = vpop.f32.mrf.mxu0 }
 0x2be   :  { %v18206_v41 = vadd.f32 %v5870_v16, %v5639_v13  ;;  %v18217_v13 = vld [vmem:[#allocation2 + $0x188] sm:$0xff] }
 0x2bf   :  { %v5641_v57 = vpop.f32.mrf.mxu1  ;;  %v5873_v2 = vpop.f32.mrf.mxu0 }
 0x2c1   :  { %v5642_v6 = vpop.f32.mrf.mxu1  ;;  %v5874_v0 = vpop.f32.mrf.mxu0 }
 0x2c3   :  { %v5910_v22 = vpop.f32.mrf.mxu1  ;;  %6101 = vmatmul.mubr.bf16.gmra.mxu1 %v14245_v5  ;;  %v6142_v7 = vpop.f32.mrf.mxu0  ;;  %6333 = vmatmul.mubr.bf16.gmra.mxu0 %v14247_v46  ;;  %v16883_v5 = vld [vmem:[#allocation4 + $0x20] ss:$36 sps:$4 sm:$0xff]   ;;  %v16907_v46 = vld [vmem:[%s19351_s5 + $0x78] sm:$0xff]  }
 0x2c4   :  { %v5911_v43 = vadd.f32 %v5910_v22, %v17976_v3  ;;  %16195 = vmatprep.mubr.msk.bf16.mxu1 %vm17385_vm1, %v18217_v13  ;;  %11306 = vmatpush2.bf16.msra.mxu0 %v16907_v46 }
 0x2c5   :  { %v5912_v28 = vpop.f32.mrf.mxu1  ;;  %v6144_v45 = vpop.f32.mrf.mxu0  ;;  %11307 = vmatprep.subr.bf16.mxu0 %v19362_v50 }
 0x2c6   :  { %v18221_v16 = vadd.f32 %v6142_v7, %v5911_v43 }
 0x2c7   :  { %v5913_v26 = vpop.f32.mrf.mxu1  ;;  %v6145_v51 = vpop.f32.mrf.mxu0 }
 0x2c8   :  { %v5914_v35 = vadd.f32 %v5913_v26, %v17982_v10 }
 0x2c9   :  { %v5915_v57 = vpop.f32.mrf.mxu1  ;;  %v6147_v3 = vpop.f32.mrf.mxu0 }
 0x2ca   :  { %v18224_v2 = vadd.f32 %v6145_v51, %v5914_v35  ;;  %v16884_v51 = vld [vmem:[#allocation4 + $0x68] ss:$36 sps:$4 sm:$0xff]  }
 0x2cb   :  { %v5918_v6 = vpop.f32.mrf.mxu1  ;;  %16196 = vmatmul.mubr.bf16.vlgmr.msra.gmra.mxu1 %v16883_v5  ;;  %v6150_v22 = vpop.f32.mrf.mxu0 }
 0x2cc   :  { %v5919_v0 = vadd.f32 %v5918_v6, %v17988_v19  ;;  %16199 = vmatprep.mubr.msk.bf16.mxu1 %vm17385_vm1, %v18217_v13 }
 0x2cd   :  { %v5920_v10 = vpop.f32.mrf.mxu1  ;;  %v6152_v7 = vpop.f32.mrf.mxu0 }
 0x2ce   :  { %v18233_v43 = vadd.f32 %v6150_v22, %v5919_v0 }
 0x2cf   :  { %v5921_v28 = vpop.f32.mrf.mxu1  ;;  %v6153_v26 = vpop.f32.mrf.mxu0 }
 0x2d0   :  { %v5922_v45 = vadd.f32 %v5921_v28, %v17998_v29  ;;  %v16910_v29 = vld [vmem:[%s19351_s5 + $0x70] sm:$0xff]  }
 0x2d1   :  { %v5923_v35 = vpop.f32.mrf.mxu1  ;;  %v6155_v19 = vpop.f32.mrf.mxu0  ;;  %11308 = vmatpush2.bf16.msra.mxu0 %v16910_v29 }
 0x2d2   :  { %v18236_v57 = vadd.f32 %v6153_v26, %v5922_v45  ;;  %v16885_v26 = vld [vmem:[#allocation4 + $0xb0] ss:$36 sps:$4 sm:$0xff]   ;;  %11309 = vmatprep.subr.bf16.mxu0 %v19362_v50 }
 0x2d3   :  { %v5926_v5 = vpop.f32.mrf.mxu1  ;;  %16200 = vmatmul.mubr.bf16.gmra.mxu1 %v16884_v51  ;;  %v6158_v46 = vpop.f32.mrf.mxu0 }
 0x2d4   :  { %v5927_v3 = vadd.f32 %v5926_v5, %v18004_v39  ;;  %16203 = vmatprep.mubr.msk.bf16.mxu1 %vm17385_vm1, %v18217_v13 }
 0x2d5   :  { %v5928_v6 = vpop.f32.mrf.mxu1  ;;  %v6160_v22 = vpop.f32.mrf.mxu0 }
 0x2d6   :  { %v18241_v0 = vadd.f32 %v6158_v46, %v5927_v3 }
 0x2d7   :  { %v5929_v10 = vpop.f32.mrf.mxu1  ;;  %v6161_v28 = vpop.f32.mrf.mxu0 }
 0x2d8   :  { %v5930_v7 = vadd.f32 %v5929_v10, %v18011_v48 }
 0x2d9   :  { %v5931_v45 = vpop.f32.mrf.mxu1  ;;  %v6163_v35 = vpop.f32.mrf.mxu0 }
 0x2da   :  { %v18248_v39 = vadd.f32 %v6161_v28, %v5930_v7  ;;  %v16886_v7 = vld [vmem:[#allocation4 + $0xf8] ss:$36 sps:$4 sm:$0xff]  }
 0x2db   :  { %v5934_v51 = vpop.f32.mrf.mxu1  ;;  %16204 = vmatmul.mubr.bf16.gmra.mxu1 %v16885_v26  ;;  %v6166_v5 = vpop.f32.mrf.mxu0 }
 0x2dc   :  { %v5935_v19 = vadd.f32 %v5934_v51, %v18018_v59  ;;  %16207 = vmatprep.mubr.msk.bf16.mxu1 %vm17385_vm1, %v18217_v13  ;;  %v16912_v59 = vld [vmem:[%s19351_s5 + $0x68] sm:$0xff]  }
 0x2dd   :  { %v5936_v3 = vpop.f32.mrf.mxu1  ;;  %v6168_v48 = vpop.f32.mrf.mxu0  ;;  %11310 = vmatpush2.bf16.msra.mxu0 %v16912_v59 }
 0x2de   :  { %v18253_v46 = vadd.f32 %v6166_v5, %v5935_v19  ;;  %11311 = vmatprep.subr.bf16.mxu0 %v19362_v50 }
 0x2df   :  { %v5937_v6 = vpop.f32.mrf.mxu1  ;;  %v6169_v29 = vpop.f32.mrf.mxu0 }
 0x2e0   :  { %v5938_v22 = vadd.f32 %v5937_v6, %v18022_v4 }
 0x2e1   :  { %v5939_v10 = vpop.f32.mrf.mxu1  ;;  %v6171_v45 = vpop.f32.mrf.mxu0 }
 0x2e2   :  { %v18256_v28 = vadd.f32 %v6169_v29, %v5938_v22  ;;  %v16888_v29 = vld [vmem:[#allocation4 + $0x140] ss:$36 sps:$4 sm:$0xff]  }
 0x2e3   :  { %v5942_v26 = vpop.f32.mrf.mxu1  ;;  %16208 = vmatmul.mubr.bf16.gmra.mxu1 %v16886_v7  ;;  %v6174_v51 = vpop.f32.mrf.mxu0 }
 0x2e4   :  { %v5943_v35 = vadd.f32 %v5942_v26, %v18029_v14  ;;  %16211 = vmatprep.mubr.msk.bf16.mxu1 %vm17385_vm1, %v18217_v13 }
 0x2e5   :  { %v5944_v4 = vpop.f32.mrf.mxu1  ;;  %v6176_v5 = vpop.f32.mrf.mxu0 }
 0x2e6   :  { %v18265_v19 = vadd.f32 %v6174_v51, %v5943_v35 }
 0x2e7   :  { %v5945_v3 = vpop.f32.mrf.mxu1  ;;  %v6177_v6 = vpop.f32.mrf.mxu0 }
 0x2e8   :  { %v5946_v48 = vadd.f32 %v5945_v3, %v18039_v23  ;;  %v16915_v23 = vld [vmem:[%s19351_s5 + $0xb8] sm:$0xff]  }
 0x2e9   :  { %v5947_v22 = vpop.f32.mrf.mxu1  ;;  %v6179_v14 = vpop.f32.mrf.mxu0  ;;  %11522 = vmatpush1.bf16.msra.mxu1 %v16915_v23  ;;  %v16919_v23 = vld [vmem:[%s19351_s5 + $0xa8] sm:$0xff]  }
 0x2ea   :  { %v18268_v10 = vadd.f32 %v6177_v6, %v5946_v48  ;;  %v16890_v6 = vld [vmem:[#allocation4 + $0x188] ss:$36 sps:$4 sm:$0xff]   ;;  %11523 = vmatprep.subr.bf16.mxu1 %v19362_v50  ;;  %v16917_v14 = vld [vmem:[%s19351_s5 + $0xb0] sm:$0xff]  }
 0x2eb   :  { %v5950_v7 = vpop.f32.mrf.mxu1  ;;  %16212 = vmatmul.mubr.bf16.gmra.mxu1 %v16888_v29  ;;  %v6182_v59 = vpop.f32.mrf.mxu0  ;;  %v16916_v29 = vld [vmem:[%s19351_s5 + $0x60] sm:$0xff]  }
 0x2ec   :  { %v5951_v45 = vadd.f32 %v5950_v7, %v18042_v34  ;;  %16215 = vmatprep.mubr.msk.bf16.mxu1 %vm17385_vm1, %v18217_v13  ;;  %11312 = vmatpush2.bf16.msra.mxu0 %v16916_v29  ;;  %v16920_v29 = vld [vmem:[%s19351_s5 + $0xa0] sm:$0xff]  }
 0x2ed   :  { %v5952_v26 = vpop.f32.mrf.mxu1  ;;  %v6184_v51 = vpop.f32.mrf.mxu0  ;;  %11524 = vmatpush1.bf16.msra.mxu1 %v16917_v14  ;;  %11313 = vmatprep.subr.bf16.mxu0 %v19362_v50 }
 0x2ee   :  { %v18273_v35 = vadd.f32 %v6182_v59, %v5951_v45  ;;  %11525 = vmatprep.subr.bf16.mxu1 %v19362_v50 }
 0x2ef   :  { %v5953_v4 = vpop.f32.mrf.mxu1  ;;  %v6185_v3 = vpop.f32.mrf.mxu0 }
 0x2f0   :  { %v5954_v5 = vadd.f32 %v5953_v4, %v18048_v42 }
 0x2f1   :  { %v5955_v48 = vpop.f32.mrf.mxu1  ;;  %v6187_v22 = vpop.f32.mrf.mxu0  ;;  %11526 = vmatpush1.bf16.msra.mxu1 %v16919_v23  ;;  %v16923_v23 = vld [vmem:[%s19351_s5 + $0x98] sm:$0xff]  }
 0x2f2   :  { %v18280_v34 = vadd.f32 %v6185_v3, %v5954_v5  ;;  %v16891_v48 = vld [vmem:[#allocation4 + $0x1d0] ss:$36 sps:$4 sm:$0xff]   ;;  %11527 = vmatprep.subr.bf16.mxu1 %v19362_v50 }
 0x2f3   :  { %v5958_v7 = vpop.f32.mrf.mxu1  ;;  %16216 = vmatmul.mubr.bf16.gmra.mxu1 %v16890_v6  ;;  %v6190_v45 = vpop.f32.mrf.mxu0 }
 0x2f4   :  { %v5959_v42 = vadd.f32 %v5958_v7, %v18051_v53  ;;  %16219 = vmatprep.mubr.msk.bf16.mxu1 %vm17385_vm1, %v18217_v13 }
 0x2f5   :  { %v5960_v59 = vpop.f32.mrf.mxu1  ;;  %v6192_v51 = vpop.f32.mrf.mxu0  ;;  %11528 = vmatpush1.bf16.msra.mxu1 %v16920_v29  ;;  %v16924_v29 = vld [vmem:[%s19351_s5 + $0x90] sm:$0xff]  }
 0x2f6   :  { %v18292_v26 = vadd.f32 %v6190_v45, %v5959_v42  ;;  %v16922_v51 = vld [vmem:[%s19351_s5 + $0x58] sm:$0xff]   ;;  %11529 = vmatprep.subr.bf16.mxu1 %v19362_v50 }
 0x2f7   :  { %v5961_v4 = vpop.f32.mrf.mxu1  ;;  %v6193_v5 = vpop.f32.mrf.mxu0  ;;  %11314 = vmatpush2.bf16.msra.mxu0 %v16922_v51  ;;  %v16926_v51 = vld [vmem:[%s19351_s5 + $0x88] sm:$0xff]  }
 0x2f8   :  { %v5962_v53 = vadd.f32 %v5961_v4, %v18054_v62  ;;  %11315 = vmatprep.subr.bf16.mxu0 %v19362_v50 }
 0x2f9   :  { %v5963_v3 = vpop.f32.mrf.mxu1  ;;  %v6195_v22 = vpop.f32.mrf.mxu0  ;;  %11530 = vmatpush1.bf16.msra.mxu1 %v16923_v23 }
 0x2fa   :  { %v18299_v6 = vadd.f32 %v6193_v5, %v5962_v53  ;;  %v16893_v3 = vld [vmem:[#allocation4 + $0x218] ss:$36 sps:$4 sm:$0xff]   ;;  %11531 = vmatprep.subr.bf16.mxu1 %v19362_v50 }
 0x2fb   :  { %v5966_v14 = vpop.f32.mrf.mxu1  ;;  %16220 = vmatmul.mubr.bf16.gmra.mxu1 %v16891_v48  ;;  %v6198_v42 = vpop.f32.mrf.mxu0 }
 0x2fc   :  { %v5967_v7 = vadd.f32 %v5966_v14, %v18060_v11  ;;  %16223 = vmatprep.mubr.msk.bf16.mxu1 %vm17385_vm1, %v18217_v13 }
 0x2fd   :  { %v5968_v62 = vpop.f32.mrf.mxu1  ;;  %v6200_v59 = vpop.f32.mrf.mxu0  ;;  %11532 = vmatpush1.bf16.msra.mxu1 %v16924_v29 }
 0x2fe   :  { %v18308_v45 = vadd.f32 %v6198_v42, %v5967_v7  ;;  %11533 = vmatprep.subr.bf16.mxu1 %v19362_v50 }
 0x2ff   :  { %v5969_v11 = vpop.f32.mrf.mxu1  ;;  %v6201_v53 = vpop.f32.mrf.mxu0 }
 0x300   :  { %v5970_v4 = vadd.f32 %v5969_v11, %v18064_v20 }
 0x301   :  { %v5971_v5 = vpop.f32.mrf.mxu1  ;;  %v6203_v22 = vpop.f32.mrf.mxu0  ;;  %11534 = vmatpush1.bf16.msra.mxu1 %v16926_v51 }
 0x302   :  { %v18319_v48 = vadd.f32 %v6201_v53, %v5970_v4  ;;  %v16894_v5 = vld [vmem:[#allocation4 + $0x260] ss:$36 sps:$4 sm:$0xff]   ;;  %11535 = vmatprep.subr.bf16.mxu1 %v19362_v50 }
 0x303   :  { %v5974_v14 = vpop.f32.mrf.mxu1  ;;  %16224 = vmatmul.mubr.bf16.gmra.mxu1 %v16893_v3  ;;  %v6206_v7 = vpop.f32.mrf.mxu0  ;;  %v16928_v3 = vld [vmem:[%s19351_s5 + $0x80] sm:$0xff]  }
 0x304   :  { %v5975_v20 = vadd.f32 %v5974_v14, %v18067_v33  ;;  %16227 = vmatprep.mubr.msk.bf16.mxu1 %vm17385_vm1, %v18217_v13  ;;  %v16927_v33 = vld [vmem:[%s19351_s5 + $0x50] sm:$0xff]  }
 0x305   :  { %v5976_v42 = vpop.f32.mrf.mxu1  ;;  %v6208_v59 = vpop.f32.mrf.mxu0  ;;  %11316 = vmatpush2.bf16.msra.mxu0 %v16927_v33  ;;  %11536 = vmatpush1.bf16.msra.mxu1 %v16928_v3  ;;  %v16930_v3 = vld [vmem:[%s19351_s5 + $0xf8] sm:$0xff]  }
 0x306   :  { %v18328_v62 = vadd.f32 %v6206_v7, %v5975_v20  ;;  %11317 = vmatprep.subr.bf16.mxu0 %v19362_v50  ;;  %11537 = vmatprep.subr.bf16.mxu1 %v19362_v50 }
 0x307   :  { %v5977_v23 = vpop.f32.mrf.mxu1  ;;  %v6209_v4 = vpop.f32.mrf.mxu0 }
 0x308   :  { %v5978_v11 = vadd.f32 %v5977_v23, %v18070_v44 }
 0x309   :  { %v5979_v53 = vpop.f32.mrf.mxu1  ;;  %v6211_v29 = vpop.f32.mrf.mxu0  ;;  %11538 = vmatpush2.bf16.msra.mxu1 %v16930_v3 }
 0x30a   :  { %v18341_v22 = vadd.f32 %v6209_v4, %v5978_v11  ;;  %v16896_v4 = vld [vmem:[#allocation4 + $0x2a8] ss:$36 sps:$4 sm:$0xff]   ;;  %11539 = vmatprep.subr.bf16.mxu1 %v19362_v50 }
 0x30b   :  { %v5982_v14 = vpop.f32.mrf.mxu1  ;;  %16228 = vmatmul.mubr.bf16.gmra.mxu1 %v16894_v5  ;;  %v6214_v20 = vpop.f32.mrf.mxu0  ;;  %v18354_v5 = vld [vmem:[#allocation4 + $0x6e0] ss:$0 sps:$4 sm:$0xff]  }
 0x30c   :  { %v5983_v44 = vadd.f32 %v5982_v14, %v18074_v58  ;;  %16231 = vmatprep.mubr.msk.bf16.mxu1 %vm17385_vm1, %v18217_v13  ;;  %9324 = vst [vmem:[#allocation4 + $0x6e0] sm:$0xf] %v18034_v32 }
 0x30d   :  { %v5984_v7 = vpop.f32.mrf.mxu1  ;;  %v6216_v59 = vpop.f32.mrf.mxu0 }
 0x30e   :  { %v18348_v42 = vadd.f32 %v6214_v20, %v5983_v44 }
 0x30f   :  { %v5985_v51 = vpop.f32.mrf.mxu1  ;;  %v6217_v33 = vpop.f32.mrf.mxu0 }
 0x310   :  { %v5986_v23 = vadd.f32 %v5985_v51, %v18077_v15 }
 0x311   :  { %v5987_v11 = vpop.f32.mrf.mxu1  ;;  %v6219_v58 = vpop.f32.mrf.mxu0 }
 0x312   :  { %v18352_v53 = vadd.f32 %v6217_v33, %v5986_v23  ;;  %v16898_v11 = vld [vmem:[#allocation4 + $0x2f0] ss:$36 sps:$4 sm:$0xff]  }
 0x313   :  { %v5990_v29 = vpop.f32.mrf.mxu1  ;;  %16232 = vmatmul.mubr.bf16.gmra.mxu1 %v16896_v4  ;;  %v6222_v44 = vpop.f32.mrf.mxu0 }
 0x314   :  { %v5991_v14 = vadd.f32 %v5990_v29, %v18083_v36  ;;  %16235 = vmatprep.mubr.msk.bf16.mxu1 %vm17385_vm1, %v18217_v13 }
 0x315   :  { %v5992_v15 = vpop.f32.mrf.mxu1  ;;  %v6224_v7 = vpop.f32.mrf.mxu0 }
 0x316   :  { %v18364_v20 = vadd.f32 %v6222_v44, %v5991_v14 }
 0x317   :  { %v5993_v59 = vpop.f32.mrf.mxu1  ;;  %v6225_v23 = vpop.f32.mrf.mxu0 }
 0x318   :  { %v5994_v51 = vadd.f32 %v5993_v59, %v18088_v49  ;;  %v16931_v49 = vld [vmem:[%s19351_s5 + $0xf0] sm:$0xff]  }
 0x319   :  { %v5995_v33 = vpop.f32.mrf.mxu1  ;;  %v6227_v36 = vpop.f32.mrf.mxu0  ;;  %11540 = vmatpush2.bf16.msra.mxu1 %v16931_v49 }
 0x31a   :  { %v18367_v32 = vadd.f32 %v6225_v23, %v5994_v51  ;;  %v16899_v23 = vld [vmem:[#allocation4 + $0x338] ss:$36 sps:$4 sm:$0xff]   ;;  %11541 = vmatprep.subr.bf16.mxu1 %v19362_v50 }
 0x31b   :  { %v5998_v4 = vpop.f32.mrf.mxu1  ;;  %16236 = vmatmul.mubr.bf16.gmra.mxu1 %v16898_v11  ;;  %v6230_v3 = vpop.f32.mrf.mxu0  ;;  %v16932_v36 = vld [vmem:[%s19351_s5 + $0x48] sm:$0xff]  }
 0x31c   :  { %v5999_v58 = vadd.f32 %v5998_v4, %v18091_v63  ;;  %16239 = vmatprep.mubr.msk.bf16.mxu1 %vm17385_vm1, %v18217_v13  ;;  %v16933_v4 = vld [vmem:[%s19351_s5 + $0xe8] sm:$0xff]   ;;  %11318 = vmatpush2.bf16.msra.mxu0 %v16932_v36 }
 0x31d   :  { %v6000_v29 = vpop.f32.mrf.mxu1  ;;  %v6232_v44 = vpop.f32.mrf.mxu0  ;;  %11542 = vmatpush2.bf16.msra.mxu1 %v16933_v4  ;;  %11319 = vmatprep.subr.bf16.mxu0 %v19362_v50 }
 0x31e   :  { %v18372_v14 = vadd.f32 %v6230_v3, %v5999_v58  ;;  %11543 = vmatprep.subr.bf16.mxu1 %v19362_v50 }
 0x31f   :  { %v6001_v15 = vpop.f32.mrf.mxu1  ;;  %v6233_v59 = vpop.f32.mrf.mxu0 }
 0x320   :  { %v6002_v7 = vadd.f32 %v6001_v15, %v18094_v9  ;;  %v16934_v15 = vld [vmem:[%s19351_s5 + $0xe0] sm:$0xff]  }
 0x321   :  { %v6003_v51 = vpop.f32.mrf.mxu1  ;;  %v6235_v33 = vpop.f32.mrf.mxu0  ;;  %11544 = vmatpush2.bf16.msra.mxu1 %v16934_v15 }
 0x322   :  { %v18379_v63 = vadd.f32 %v6233_v59, %v6002_v7  ;;  %v16901_v51 = vld [vmem:[#allocation4 + $0x380] ss:$36 sps:$4 sm:$0xff]   ;;  %11545 = vmatprep.subr.bf16.mxu1 %v19362_v50 }
 0x323   :  { %v6006_v11 = vpop.f32.mrf.mxu1  ;;  %16240 = vmatmul.mubr.bf16.gmra.mxu1 %v16899_v23  ;;  %v6238_v58 = vpop.f32.mrf.mxu0 }
 0x324   :  { %v6007_v9 = vadd.f32 %v6006_v11, %v18097_v25  ;;  %16243 = vmatprep.mubr.msk.bf16.mxu1 %vm17385_vm1, %v18217_v13 }
 0x325   :  { %v6008_v3 = vpop.f32.mrf.mxu1  ;;  %v6240_v44 = vpop.f32.mrf.mxu0 }
 0x326   :  { %v18390_v29 = vadd.f32 %v6238_v58, %v6007_v9 }
 0x327   :  { %v6009_v49 = vpop.f32.mrf.mxu1  ;;  %v6241_v7 = vpop.f32.mrf.mxu0 }
 0x328   :  { %v6010_v25 = vadd.f32 %v6009_v49, %v18100_v30  ;;  %v16935_v30 = vld [vmem:[%s19351_s5 + $0xd8] sm:$0xff]   ;;  %v16936_v49 = vld [vmem:[%s19351_s5 + $0x40] sm:$0xff]  }
 0x329   :  { %v6011_v59 = vpop.f32.mrf.mxu1  ;;  %v6243_v33 = vpop.f32.mrf.mxu0  ;;  %11546 = vmatpush2.bf16.msra.mxu1 %v16935_v30  ;;  %11320 = vmatpush2.bf16.msra.mxu0 %v16936_v49 }
 0x32a   :  { %v18398_v23 = vadd.f32 %v6241_v7, %v6010_v25  ;;  %11547 = vmatprep.subr.bf16.mxu1 %v19362_v50  ;;  %v16903_v59 = vld [vmem:[#allocation4 + $0x3c8] ss:$36 sps:$4 sm:$0xff]   ;;  %11753 = vmatprep.subr.bf16.mxu0 %v19362_v50 }
 0x32b   :  { %v6014_v11 = vpop.f32.mrf.mxu1  ;;  %16244 = vmatmul.mubr.bf16.gmra.mxu1 %v16901_v51  ;;  %v6246_v4 = vpop.f32.mrf.mxu0 }
 0x32c   :  { %v6015_v36 = vadd.f32 %v6014_v11, %v18103_v55  ;;  %16247 = vmatprep.mubr.msk.bf16.mxu1 %vm17385_vm1, %v18217_v13  ;;  %v16937_v55 = vld [vmem:[%s19351_s5 + $0xd0] sm:$0xff]  }
 0x32d   :  { %v6016_v9 = vpop.f32.mrf.mxu1  ;;  %v6248_v3 = vpop.f32.mrf.mxu0  ;;  %11548 = vmatpush2.bf16.msra.mxu1 %v16937_v55 }
 0x32e   :  { %v18407_v58 = vadd.f32 %v6246_v4, %v6015_v36  ;;  %11549 = vmatprep.subr.bf16.mxu1 %v19362_v50 }
 0x32f   :  { %v6017_v44 = vpop.f32.mrf.mxu1  ;;  %v6249_v25 = vpop.f32.mrf.mxu0 }
 0x330   :  { %v6018_v15 = vadd.f32 %v6017_v44, %v18109_v12  ;;  %v16938_v12 = vld [vmem:[%s19351_s5 + $0xc8] sm:$0xff]  }
 0x331   :  { %v6019_v7 = vpop.f32.mrf.mxu1  ;;  %v6251_v33 = vpop.f32.mrf.mxu0  ;;  %11550 = vmatpush2.bf16.msra.mxu1 %v16938_v12 }
 0x332   :  { %v18417_v51 = vadd.f32 %v6249_v25, %v6018_v15  ;;  %11551 = vmatprep.subr.bf16.mxu1 %v19362_v50  ;;  %v16904_v25 = vld [vmem:[#allocation4 + $0x410] ss:$36 sps:$4 sm:$0xff]  }
 0x333   :  { %v6022_v11 = vpop.f32.mrf.mxu1  ;;  %16248 = vmatmul.mubr.bf16.gmra.mxu1 %v16903_v59  ;;  %v6254_v4 = vpop.f32.mrf.mxu0 }
 0x334   :  { %v6023_v36 = vadd.f32 %v6022_v11, %v18113_v24  ;;  %16251 = vmatprep.mubr.msk.bf16.mxu1 %vm17385_vm1, %v18217_v13  ;;  %v16939_v24 = vld [vmem:[%s19351_s5 + $0xc0] sm:$0xff]  }
 0x335   :  { %v6024_v30 = vpop.f32.mrf.mxu1  ;;  %v6256_v3 = vpop.f32.mrf.mxu0  ;;  %11552 = vmatpush2.bf16.msra.mxu1 %v16939_v24  ;;  %v16906_v24 = vld [vmem:[#allocation4 + $0x458] ss:$36 sps:$4 sm:$0xff]  }
 0x336   :  { %v18427_v9 = vadd.f32 %v6254_v4, %v6023_v36  ;;  %11985 = vmatprep.subr.bf16.mxu1 %v19362_v50 }
 0x337   :  { %v6025_v44 = vpop.f32.mrf.mxu1  ;;  %v6257_v55 = vpop.f32.mrf.mxu0 }
 0x338   :  { %v6026_v49 = vadd.f32 %v6025_v44, %v18116_v47 }
 0x339   :  { %v6027_v15 = vpop.f32.mrf.mxu1  ;;  %v6259_v59 = vpop.f32.mrf.mxu0 }
 0x33a   :  { %v18434_v7 = vadd.f32 %v6257_v55, %v6026_v49 }
 0x33b   :  { %v6030_v33 = vpop.f32.mrf.mxu1  ;;  %16252 = vmatmul.mubr.bf16.gmra.mxu1 %v16904_v25  ;;  %v6262_v36 = vpop.f32.mrf.mxu0 }
 0x33c   :  { %v6031_v11 = vadd.f32 %v6030_v33, %v18122_v61  ;;  %16255 = vmatprep.mubr.msk.bf16.mxu1 %vm17385_vm1, %v18217_v13 }
 0x33d   :  { %v6032_v4 = vpop.f32.mrf.mxu1  ;;  %v6264_v47 = vpop.f32.mrf.mxu0 }
 0x33e   :  { %v18440_v12 = vadd.f32 %v6262_v36, %v6031_v11 }
 0x33f   :  { %v6033_v30 = vpop.f32.mrf.mxu1  ;;  %v6265_v44 = vpop.f32.mrf.mxu0 }
 0x340   :  { %v6034_v3 = vadd.f32 %v6033_v30, %v18126_v17 }
 0x341   :  { %v6035_v49 = vpop.f32.mrf.mxu1  ;;  %v6267_v15 = vpop.f32.mrf.mxu0 }
 0x342   :  { %v18443_v55 = vadd.f32 %v6265_v44, %v6034_v3  ;;  %v16908_v3 = vld [vmem:[#allocation4 + $0x4a0] ss:$36 sps:$4 sm:$0xff]  }
 0x343   :  { %v6038_v25 = vpop.f32.mrf.mxu1  ;;  %16256 = vmatmul.mubr.bf16.gmra.mxu1 %v16906_v24  ;;  %v6270_v59 = vpop.f32.mrf.mxu0 }
 0x344   :  { %v6039_v61 = vadd.f32 %v6038_v25, %v18129_v31  ;;  %16259 = vmatprep.mubr.msk.bf16.mxu1 %vm17385_vm1, %v18217_v13 }
 0x345   :  { %v6040_v33 = vpop.f32.mrf.mxu1  ;;  %v6272_v36 = vpop.f32.mrf.mxu0 }
 0x346   :  { %v18448_v11 = vadd.f32 %v6270_v59, %v6039_v61 }
 0x347   :  { %v6041_v4 = vpop.f32.mrf.mxu1  ;;  %v6273_v47 = vpop.f32.mrf.mxu0 }
 0x348   :  { %v6042_v17 = vadd.f32 %v6041_v4, %v18141_v60 }
 0x349   :  { %v6043_v30 = vpop.f32.mrf.mxu1  ;;  %v6275_v49 = vpop.f32.mrf.mxu0 }
 0x34a   :  { %v18451_v44 = vadd.f32 %v6273_v47, %v6042_v17  ;;  %v16909_v17 = vld [vmem:[#allocation4 + $0x4e8] ss:$36 sps:$4 sm:$0xff]  }
 0x34b   :  { %v6046_v24 = vpop.f32.mrf.mxu1  ;;  %16260 = vmatmul.mubr.bf16.gmra.mxu1 %v16908_v3  ;;  %v6278_v15 = vpop.f32.mrf.mxu0 }
 0x34c   :  { %v6047_v31 = vadd.f32 %v6046_v24, %v18144_v8  ;;  %16263 = vmatprep.mubr.msk.bf16.mxu1 %vm17385_vm1, %v18217_v13 }
 0x34d   :  { %v6048_v25 = vpop.f32.mrf.mxu1  ;;  %v6280_v59 = vpop.f32.mrf.mxu0 }
 0x34e   :  { %v18456_v61 = vadd.f32 %v6278_v15, %v6047_v31 }
 0x34f   :  { %v6049_v33 = vpop.f32.mrf.mxu1  ;;  %v6281_v36 = vpop.f32.mrf.mxu0 }
 0x350   :  { %v6050_v60 = vadd.f32 %v6049_v33, %v18147_v37 }
 0x351   :  { %v6051_v4 = vpop.f32.mrf.mxu1  ;;  %v6283_v30 = vpop.f32.mrf.mxu0 }
 0x352   :  { %v18459_v47 = vadd.f32 %v6281_v36, %v6050_v60  ;;  %v16911_v60 = vld [vmem:[#allocation4 + $0x530] ss:$36 sps:$4 sm:$0xff]  }
 0x353   :  { %v6054_v3 = vpop.f32.mrf.mxu1  ;;  %16264 = vmatmul.mubr.bf16.gmra.mxu1 %v16909_v17  ;;  %v6286_v49 = vpop.f32.mrf.mxu0 }
 0x354   :  { %v6055_v8 = vadd.f32 %v6054_v3, %v18150_v52  ;;  %16267 = vmatprep.mubr.msk.bf16.mxu1 %vm17385_vm1, %v18217_v13 }
 0x355   :  { %v6056_v24 = vpop.f32.mrf.mxu1  ;;  %v6288_v15 = vpop.f32.mrf.mxu0 }
 0x356   :  { %v18464_v31 = vadd.f32 %v6286_v49, %v6055_v8 }
 0x357   :  { %v6057_v25 = vpop.f32.mrf.mxu1  ;;  %v6289_v59 = vpop.f32.mrf.mxu0 }
 0x358   :  { %v6058_v37 = vadd.f32 %v6057_v25, %v18157_v18 }
 0x359   :  { %v6059_v33 = vpop.f32.mrf.mxu1  ;;  %v6291_v4 = vpop.f32.mrf.mxu0 }
 0x35a   :  { %v18467_v36 = vadd.f32 %v6289_v59, %v6058_v37  ;;  %v16913_v37 = vld [vmem:[#allocation4 + $0x578] ss:$36 sps:$4 sm:$0xff]  }
 0x35b   :  { %v6062_v17 = vpop.f32.mrf.mxu1  ;;  %16268 = vmatmul.mubr.bf16.gmra.mxu1 %v16911_v60  ;;  %v6294_v30 = vpop.f32.mrf.mxu0 }
 0x35c   :  { %v6063_v52 = vadd.f32 %v6062_v17, %v18160_v40  ;;  %16271 = vmatprep.mubr.msk.bf16.mxu1 %vm17385_vm1, %v18217_v13 }
 0x35d   :  { %v6064_v3 = vpop.f32.mrf.mxu1  ;;  %v6296_v49 = vpop.f32.mrf.mxu0 }
 0x35e   :  { %v18472_v8 = vadd.f32 %v6294_v30, %v6063_v52 }
 0x35f   :  { %v6065_v24 = vpop.f32.mrf.mxu1  ;;  %v6297_v15 = vpop.f32.mrf.mxu0 }
 0x360   :  { %v6066_v18 = vadd.f32 %v6065_v24, %v18163_v1 }
 0x361   :  { %v6067_v25 = vpop.f32.mrf.mxu1  ;;  %v6299_v33 = vpop.f32.mrf.mxu0 }
 0x362   :  { %v18475_v59 = vadd.f32 %v6297_v15, %v6066_v18  ;;  %v16914_v18 = vld [vmem:[#allocation4 + $0x5c0] ss:$36 sps:$4 sm:$0xff]  }
 0x363   :  { %v6070_v60 = vpop.f32.mrf.mxu1  ;;  %16272 = vmatmul.mubr.bf16.gmra.mxu1 %v16913_v37  ;;  %v6302_v4 = vpop.f32.mrf.mxu0 }
 0x364   :  { %v6071_v40 = vadd.f32 %v6070_v60, %v18169_v27  ;;  %16275 = vmatprep.mubr.msk.bf16.mxu1 %vm17385_vm1, %v18217_v13  ;;  %v19364_v27 = vld [vmem:[#allocation7_spill] sm:$0xff] }
 0x365   :  { %v6072_v17 = vpop.f32.mrf.mxu1  ;;  %v6304_v30 = vpop.f32.mrf.mxu0 }
 0x366   :  { %v18480_v52 = vadd.f32 %v6302_v4, %v6071_v40 }
 0x367   :  { %v6073_v3 = vpop.f32.mrf.mxu1  ;;  %v6305_v49 = vpop.f32.mrf.mxu0 }
 0x368   :  { %19363 = vst [vmem:[#allocation10_spill] sm:$0xff] %v18480_v52  ;;  %v6074_v1 = vadd.f32 %v6073_v3, %v18173_v54  ;;  %v19365_v54 = vld [vmem:[#allocation8_spill] sm:$0xff] }
 0x369   :  { %v6075_v24 = vpop.f32.mrf.mxu1  ;;  %v6307_v25 = vpop.f32.mrf.mxu0 }
 0x36a   :  { %v18483_v15 = vadd.f32 %v6305_v49, %v6074_v1  ;;  %v16918_v1 = vld [vmem:[#allocation4 + $0x608] ss:$36 sps:$4 sm:$0xff]  }
 0x36b   :  { %v6078_v37 = vpop.f32.mrf.mxu1  ;;  %16276 = vmatmul.mubr.bf16.gmra.mxu1 %v16914_v18  ;;  %v6310_v60 = vpop.f32.mrf.mxu0 }
 0x36c   :  { %v6079_v33 = vadd.f32 %v6078_v37, %v19364_v27  ;;  %16279 = vmatprep.mubr.msk.bf16.mxu1 %vm17385_vm1, %v18217_v13 }
 0x36d   :  { %v6080_v40 = vpop.f32.mrf.mxu1  ;;  %v6312_v17 = vpop.f32.mrf.mxu0 }
 0x36e   :  { %v18488_v4 = vadd.f32 %v6310_v60, %v6079_v33 }
 0x36f   :  { %v6081_v30 = vpop.f32.mrf.mxu1  ;;  %v6313_v24 = vpop.f32.mrf.mxu0 }
 0x370   :  { %v6082_v3 = vadd.f32 %v6081_v30, %v19365_v54 }
 0x371   :  { %v6083_v52 = vpop.f32.mrf.mxu1  ;;  %v6315_v25 = vpop.f32.mrf.mxu0 }
 0x372   :  { %v18491_v49 = vadd.f32 %v6313_v24, %v6082_v3  ;;  %v16921_v3 = vld [vmem:[#allocation4 + $0x650] ss:$36 sps:$4 sm:$0xff]  }
 0x373   :  { %v6086_v18 = vpop.f32.mrf.mxu1  ;;  %16280 = vmatmul.mubr.bf16.gmra.mxu1 %v16918_v1  ;;  %v6318_v27 = vpop.f32.mrf.mxu0 }
 0x374   :  { %19366 = vst [vmem:[#allocation7_spill] sm:$0xff] %v18491_v49  ;;  %v6087_v37 = vadd.f32 %v6086_v18, %v18186_v21  ;;  %16283 = vmatprep.mubr.msk.bf16.mxu1 %vm17385_vm1, %v18217_v13  ;;  %v19367_v21 = vld [vmem:[#allocation9_spill] sm:$0xff] }
 0x375   :  { %v6088_v33 = vpop.f32.mrf.mxu1  ;;  %v6320_v40 = vpop.f32.mrf.mxu0 }
 0x376   :  { %v18496_v60 = vadd.f32 %v6318_v27, %v6087_v37 }
 0x377   :  { %v6089_v17 = vpop.f32.mrf.mxu1  ;;  %v6321_v52 = vpop.f32.mrf.mxu0 }
 0x378   :  { %v6090_v30 = vadd.f32 %v6089_v17, %v18189_v38 }
 0x379   :  { %v6091_v54 = vpop.f32.mrf.mxu1  ;;  %v6323_v25 = vpop.f32.mrf.mxu0 }
 0x37a   :  { %v18499_v24 = vadd.f32 %v6321_v52, %v6090_v30 }
 0x37b   :  { %v6094_v1 = vpop.f32.mrf.mxu1  ;;  %16284 = vmatmul.mubr.bf16.gmra.mxu1 %v16921_v3  ;;  %v6326_v49 = vpop.f32.mrf.mxu0  ;;  %v19368_v3 = vld [vmem:[#allocation6_spill] sm:$0xff] }
 0x37c   :  { %v6095_v18 = vadd.f32 %v6094_v1, %v19367_v21  ;;  %16287 = vmatprep.mubr.msk.bf16.mxu1 %vm17385_vm1, %v18217_v13 }
 0x37d   :  { %v6096_v37 = vpop.f32.mrf.mxu1  ;;  %v6328_v33 = vpop.f32.mrf.mxu0 }
 0x37e   :  { %v18504_v27 = vadd.f32 %v6326_v49, %v6095_v18 }
 0x37f   :  { %v6097_v40 = vpop.f32.mrf.mxu1  ;;  %v6329_v17 = vpop.f32.mrf.mxu0 }
 0x380   :  { %v6098_v38 = vadd.f32 %v6097_v40, %v18203_v56 }
 0x381   :  { %v6099_v54 = vpop.f32.mrf.mxu1  ;;  %v6331_v52 = vpop.f32.mrf.mxu0 }
 0x382   :  { %v18507_v30 = vadd.f32 %v6329_v17, %v6098_v38 }
 0x383   :  { %v6102_v25 = vpop.f32.mrf.mxu1  ;;  %16288 = vmatmul.mubr.bf16.gmra.mxu1 %v19368_v3  ;;  %v6334_v21 = vpop.f32.mrf.mxu0 }
 0x384   :  { %v6103_v1 = vadd.f32 %v6102_v25, %v18206_v41  ;;  %16291 = vmatprep.mubr.msk.bf16.mxu1 %vm17385_vm1, %v18217_v13 }
 0x385   :  { %v6104_v49 = vpop.f32.mrf.mxu1  ;;  %v6336_v37 = vpop.f32.mrf.mxu0 }
 0x386   :  { %v18513_v18 = vadd.f32 %v6334_v21, %v6103_v1 }
 0x387   :  { %v6105_v33 = vpop.f32.mrf.mxu1  ;;  %v6337_v56 = vpop.f32.mrf.mxu0 }
 0x389   :  { %v6106_v40 = vpop.f32.mrf.mxu1  ;;  %v6338_v54 = vpop.f32.mrf.mxu0 }
 0x38b   :  { %v6374_v38 = vpop.f32.mrf.mxu1  ;;  %16292 = vmatmul.mubr.bf16.gmra.mxu1 %v18354_v5 }
 0x38c   :  { %v6375_v17 = vadd.f32 %v6374_v38, %v18221_v16 }
 0x38d   :  { %v16197_v52 = vpop.f32.mrf.mxu1 }
 0x38e   :  { %v6572_v3 = vmax.f32 %v6375_v17, 0.0 }
 0x38f   :  { %v6377_v41 = vpop.f32.mrf.mxu1 }
 0x390   :  { %6621 = vst [vmem:[#allocation3] sm:$0xff] %v6572_v3  ;;  %v15575_v25 = vpack.c.bf16 %v6572_v3, %v6572_v3  ;;  %v6378_v13 = vadd.f32 %v6377_v41, %v18224_v2 }
 0x391   :  { %v16198_v49 = vpop.f32.mrf.mxu1 }
 0x392   :  { %6916 = vst [vmem:[#allocation4] sm:$0xf] %v15575_v25  ;;  %v6573_v1 = vmax.f32 %v6378_v13, 0.0 }
 0x393   :  { %v6382_v21 = vpop.f32.mrf.mxu1 }
 0x394   :  { %6622 = vst [vmem:[#allocation3 + $0x8] sm:$0xff] %v6573_v1  ;;  %v15576_v37 = vpack.c.bf16 %v6573_v1, %v6573_v1  ;;  %v6383_v33 = vadd.f32 %v6382_v21, %v18233_v43 }
 0x395   :  { %v16201_v56 = vpop.f32.mrf.mxu1 }
 0x396   :  { %6917 = vst [vmem:[#allocation4 + $0x24] sm:$0xf] %v15576_v37  ;;  %8096 = vst [vmem:[#allocation4 + $0x10] sm:$0xf] %v15576_v37  ;;  %v6574_v5 = vmax.f32 %v6383_v33, 0.0 }
 0x397   :  { %v6385_v16 = vpop.f32.mrf.mxu1 }
 0x398   :  { %6623 = vst [vmem:[#allocation3 + $0x10] sm:$0xff] %v6574_v5  ;;  %v15577_v40 = vpack.c.bf16 %v6574_v5, %v6574_v5  ;;  %v6386_v54 = vadd.f32 %v6385_v16, %v18236_v57 }
 0x399   :  { %v16202_v38 = vpop.f32.mrf.mxu1 }
 0x39a   :  { %9276 = vst [vmem:[#allocation4 + $0x20] sm:$0xf] %v15577_v40  ;;  %6918 = vst [vmem:[#allocation4 + $0x48] sm:$0xf] %v15577_v40  ;;  %v6575_v2 = vmax.f32 %v6386_v54, 0.0 }
 0x39b   :  { %8097 = vst [vmem:[#allocation4 + $0x34] sm:$0xf] %v15577_v40  ;;  %v6965_v17 = vld [vmem:[#allocation3 + $0x1] sm:$0xff]  ;;  %v6390_v41 = vpop.f32.mrf.mxu1 }
 0x39c   :  { %v7260_v52 = vld [vmem:[#allocation3 + $0x2] sm:$0xff]  ;;  %v15624_v25 = vpack.c.bf16 %v6965_v17, %v6965_v17  ;;  %6624 = vst [vmem:[#allocation3 + $0x18] sm:$0xff] %v6575_v2  ;;  %v15578_v49 = vpack.c.bf16 %v6575_v2, %v6575_v2  ;;  %v6391_v1 = vadd.f32 %v6390_v41, %v18241_v0 }
 0x39d   :  { %v7555_v3 = vld [vmem:[#allocation3 + $0x7] sm:$0xff]  ;;  %v15673_v43 = vpack.c.bf16 %v7260_v52, %v7260_v52  ;;  %v16205_v21 = vpop.f32.mrf.mxu1 }
 0x39e   :  { %v15722_v13 = vpack.c.bf16 %v7555_v3, %v7555_v3  ;;  %7211 = vst [vmem:[#allocation4 + $0x4] sm:$0xf] %v15624_v25  ;;  %9277 = vst [vmem:[#allocation4 + $0x44] sm:$0xf] %v15578_v49  ;;  %v6576_v56 = vmax.f32 %v6391_v1, 0.0 }
 0x39f   :  { %7506 = vst [vmem:[#allocation4 + $0x8] sm:$0xf] %v15673_v43  ;;  %6919 = vst [vmem:[#allocation4 + $0x6c] sm:$0xf] %v15578_v49  ;;  %v6966_v57 = vld [vmem:[#allocation3 + $0x9] sm:$0xff]  ;;  %v6393_v5 = vpop.f32.mrf.mxu1 }
 0x3a0   :  { %7801 = vst [vmem:[#allocation4 + $0xc] sm:$0xf] %v15722_v13  ;;  %8098 = vst [vmem:[#allocation4 + $0x58] sm:$0xf] %v15578_v49  ;;  %v7261_v37 = vld [vmem:[#allocation3 + $0xa] sm:$0xff]  ;;  %v15625_v16 = vpack.c.bf16 %v6966_v57, %v6966_v57  ;;  %v6394_v2 = vadd.f32 %v6393_v5, %v18248_v39  ;;  %v15579_v0 = vpack.c.bf16 %v6576_v56, %v6576_v56 }
 0x3a1   :  { %v7556_v33 = vld [vmem:[#allocation3 + $0xf] sm:$0xff]  ;;  %v15674_v40 = vpack.c.bf16 %v7261_v37, %v7261_v37  ;;  %6625 = vst [vmem:[#allocation3 + $0x20] sm:$0xff] %v6576_v56  ;;  %v16206_v52 = vpop.f32.mrf.mxu1 }
 0x3a2   :  { %v15723_v54 = vpack.c.bf16 %v7556_v33, %v7556_v33  ;;  %v8440_v38 = vld [vmem:[#allocation3 + $0xe] sm:$0xff]  ;;  %7212 = vst [vmem:[#allocation4 + $0x28] sm:$0xf] %v15625_v16  ;;  %8391 = vst [vmem:[#allocation4 + $0x14] sm:$0xf] %v15625_v16  ;;  %v6577_v3 = vmax.f32 %v6394_v2, 0.0 }
 0x3a3   :  { %v15869_v17 = vpack.c.bf16 %v8440_v38, %v8440_v38  ;;  %7507 = vst [vmem:[#allocation4 + $0x2c] sm:$0xf] %v15674_v40  ;;  %v6967_v41 = vld [vmem:[#allocation3 + $0x11] sm:$0xff]  ;;  %9278 = vst [vmem:[#allocation4 + $0x68] sm:$0xf] %v15579_v0  ;;  %v6398_v13 = vpop.f32.mrf.mxu1 }
 0x3a4   :  { %7802 = vst [vmem:[#allocation4 + $0x30] sm:$0xf] %v15723_v54  ;;  %8981 = vst [vmem:[#allocation4 + $0x1c] sm:$0xf] %v15723_v54  ;;  %v7262_v25 = vld [vmem:[#allocation3 + $0x12] sm:$0xff]  ;;  %v15626_v49 = vpack.c.bf16 %v6967_v41, %v6967_v41  ;;  %v15580_v57 = vpack.c.bf16 %v6577_v3, %v6577_v3  ;;  %v6399_v33 = vadd.f32 %v6398_v13, %v18253_v46  ;;  %v16946_v46 = vld [vmem:[%s19351_s5 + $0x138] sm:$0xff]  }
 0x3a5   :  { %8686 = vst [vmem:[#allocation4 + $0x18] sm:$0xf] %v15869_v17  ;;  %v7557_v43 = vld [vmem:[#allocation3 + $0x17] sm:$0xff]  ;;  %6920 = vst [vmem:[#allocation4 + $0x90] sm:$0xf] %v15579_v0  ;;  %v15675_v39 = vpack.c.bf16 %v7262_v25, %v7262_v25  ;;  %v16209_v56 = vpop.f32.mrf.mxu1 }
 0x3a6   :  { %8099 = vst [vmem:[#allocation4 + $0x7c] sm:$0xf] %v15579_v0  ;;  %v15724_v1 = vpack.c.bf16 %v7557_v43, %v7557_v43  ;;  %v8441_v21 = vld [vmem:[#allocation3 + $0x16] sm:$0xff]  ;;  %6626 = vst [vmem:[#allocation3 + $0x28] sm:$0xff] %v6577_v3  ;;  %v6578_v5 = vmax.f32 %v6399_v33, 0.0 }
 0x3a7   :  { %v15870_v37 = vpack.c.bf16 %v8441_v21, %v8441_v21  ;;  %7213 = vst [vmem:[#allocation4 + $0x4c] sm:$0xf] %v15626_v49  ;;  %7508 = vst [vmem:[#allocation4 + $0x50] sm:$0xf] %v15675_v39  ;;  %v6401_v16 = vpop.f32.mrf.mxu1  ;;  %v16940_v43 = vld [vmem:[#allocation4] ss:$36 sps:$4 sm:$0xff]  }
 0x3a8   :  { %7803 = vst [vmem:[#allocation4 + $0x54] sm:$0xf] %v15724_v1  ;;  %8392 = vst [vmem:[#allocation4 + $0x38] sm:$0xf] %v15626_v49  ;;  %v6968_v40 = vld [vmem:[#allocation3 + $0x19] sm:$0xff]  ;;  %v6402_v2 = vadd.f32 %v6401_v16, %v18256_v28  ;;  %v15581_v41 = vpack.c.bf16 %v6578_v5, %v6578_v5 }
 0x3a9   :  { %8982 = vst [vmem:[#allocation4 + $0x40] sm:$0xf] %v15724_v1  ;;  %9279 = vst [vmem:[#allocation4 + $0x8c] sm:$0xf] %v15580_v57  ;;  %v7263_v54 = vld [vmem:[#allocation3 + $0x1a] sm:$0xff]  ;;  %v15627_v17 = vpack.c.bf16 %v6968_v40, %v6968_v40  ;;  %v16210_v25 = vpop.f32.mrf.mxu1 }
 0x3aa   :  { %6921 = vst [vmem:[#allocation4 + $0xb4] sm:$0xf] %v15580_v57  ;;  %8100 = vst [vmem:[#allocation4 + $0xa0] sm:$0xf] %v15580_v57  ;;  %v7558_v38 = vld [vmem:[#allocation3 + $0x1f] sm:$0xff]  ;;  %v15676_v0 = vpack.c.bf16 %v7263_v54, %v7263_v54  ;;  %v6579_v49 = vmax.f32 %v6402_v2, 0.0 }
 0x3ab   :  { %8687 = vst [vmem:[#allocation4 + $0x3c] sm:$0xf] %v15870_v37  ;;  %v15725_v52 = vpack.c.bf16 %v7558_v38, %v7558_v38  ;;  %v8442_v3 = vld [vmem:[#allocation3 + $0x1e] sm:$0xff]  ;;  %6627 = vst [vmem:[#allocation3 + $0x30] sm:$0xff] %v6578_v5  ;;  %v6406_v37 = vpop.f32.mrf.mxu1 }
 0x3ac   :  { %v15871_v13 = vpack.c.bf16 %v8442_v3, %v8442_v3  ;;  %v16942_v39 = vld [vmem:[#allocation4 + $0x4] ss:$36 sps:$4 sm:$0xff]   ;;  %7214 = vst [vmem:[#allocation4 + $0x70] sm:$0xf] %v15627_v17  ;;  %7509 = vst [vmem:[#allocation4 + $0x74] sm:$0xf] %v15676_v0  ;;  %v15582_v40 = vpack.c.bf16 %v6579_v49, %v6579_v49 }
 0x3ad   :  { %v16943_v1 = vld [vmem:[#allocation4 + $0x8] ss:$36 sps:$4 sm:$0xff]   ;;  %7804 = vst [vmem:[#allocation4 + $0x78] sm:$0xf] %v15725_v52  ;;  %8393 = vst [vmem:[#allocation4 + $0x5c] sm:$0xf] %v15627_v17  ;;  %11321 = vmatprep.mubr.bf16.mxu0 %v16942_v39  ;;  %v6407_v17 = vadd.f32 %v6406_v37, %v18265_v19  ;;  %v16213_v0 = vpop.f32.mrf.mxu1 }
 0x3ae   :  { %8983 = vst [vmem:[#allocation4 + $0x64] sm:$0xf] %v15725_v52  ;;  %v6969_v28 = vld [vmem:[#allocation3 + $0x21] sm:$0xff]  ;;  %9280 = vst [vmem:[#allocation4 + $0xb0] sm:$0xf] %v15581_v41  ;;  %v16953_v38 = vld [vmem:[%s19351_s5 + $0x130] sm:$0xff]   ;;  %11322 = vmatmul.mubr.bf16.vlgmr.msra.gmra.mxu0 %v16940_v43 }
 0x3af   :  { %v7264_v21 = vld [vmem:[#allocation3 + $0x22] sm:$0xff]  ;;  %6922 = vst [vmem:[#allocation4 + $0xd8] sm:$0xf] %v15581_v41  ;;  %8101 = vst [vmem:[#allocation4 + $0xc4] sm:$0xf] %v15581_v41  ;;  %v15628_v33 = vpack.c.bf16 %v6969_v28, %v6969_v28  ;;  %11754 = vmatpush1.bf16.msra.mxu0 %v16946_v46  ;;  %v6580_v52 = vmax.f32 %v6407_v17, 0.0  ;;  %v6409_v3 = vpop.f32.mrf.mxu1 }
 0x3b0   :  { %v7559_v57 = vld [vmem:[#allocation3 + $0x27] sm:$0xff]  ;;  %8688 = vst [vmem:[#allocation4 + $0x60] sm:$0xf] %v15871_v13  ;;  %v15677_v56 = vpack.c.bf16 %v7264_v21, %v7264_v21  ;;  %6628 = vst [vmem:[#allocation3 + $0x38] sm:$0xff] %v6579_v49  ;;  %11755 = vmatprep.subr.bf16.mxu0 %v19362_v50  ;;  %v6410_v43 = vadd.f32 %v6409_v3, %v18268_v10  ;;  %v16966_v46 = vld [vmem:[%s19351_s5 + $0x128] sm:$0xff]  }
 0x3b1   :  { %v15726_v5 = vpack.c.bf16 %v7559_v57, %v7559_v57  ;;  %v8443_v16 = vld [vmem:[#allocation3 + $0x26] sm:$0xff]  ;;  %7215 = vst [vmem:[#allocation4 + $0x94] sm:$0xf] %v15628_v33  ;;  %8394 = vst [vmem:[#allocation4 + $0x80] sm:$0xf] %v15628_v33  ;;  %v15583_v21 = vpack.c.bf16 %v6580_v52, %v6580_v52  ;;  %v16214_v57 = vpop.f32.mrf.mxu1 }
 0x3b2   :  { %v16945_v54 = vld [vmem:[#allocation4 + $0xc] ss:$36 sps:$4 sm:$0xff]   ;;  %v15872_v2 = vpack.c.bf16 %v8443_v16, %v8443_v16  ;;  %7510 = vst [vmem:[#allocation4 + $0x98] sm:$0xf] %v15677_v56  ;;  %9281 = vst [vmem:[#allocation4 + $0xd4] sm:$0xf] %v15582_v40 }
 0x3b3   :  { %7805 = vst [vmem:[#allocation4 + $0x9c] sm:$0xf] %v15726_v5  ;;  %8984 = vst [vmem:[#allocation4 + $0x88] sm:$0xf] %v15726_v5  ;;  %11553 = vmatprep.mubr.bf16.mxu1 %v16945_v54  ;;  %v6970_v41 = vld [vmem:[#allocation3 + $0x29] sm:$0xff]  ;;  %v6581_v37 = vmax.f32 %v6410_v43, 0.0  ;;  %11756 = vmatpush1.bf16.msra.mxu0 %v16953_v38 }
 0x3b4   :  { %6923 = vst [vmem:[#allocation4 + $0xfc] sm:$0xf] %v15582_v40  ;;  %8102 = vst [vmem:[#allocation4 + $0xe8] sm:$0xf] %v15582_v40  ;;  %11554 = vmatmul.mubr.bf16.vlgmr.msra.gmra.mxu1 %v16943_v1  ;;  %v7265_v19 = vld [vmem:[#allocation3 + $0x2a] sm:$0xff]  ;;  %v15629_v13 = vpack.c.bf16 %v6970_v41, %v6970_v41  ;;  %v6414_v40 = vpop.f32.mrf.mxu1  ;;  %11757 = vmatprep.subr.bf16.mxu0 %v19362_v50 }
 0x3b5   :  { %8689 = vst [vmem:[#allocation4 + $0x84] sm:$0xf] %v15872_v2  ;;  %v7560_v25 = vld [vmem:[#allocation3 + $0x2f] sm:$0xff]  ;;  %v15678_v49 = vpack.c.bf16 %v7265_v19, %v7265_v19  ;;  %6629 = vst [vmem:[#allocation3 + $0x40] sm:$0xff] %v6580_v52  ;;  %v16947_v33 = vld [vmem:[#allocation4 + $0x48] ss:$36 sps:$4 sm:$0xff]   ;;  %v15584_v38 = vpack.c.bf16 %v6581_v37, %v6581_v37  ;;  %v6415_v19 = vadd.f32 %v6414_v40, %v18273_v35 }
 0x3b6   :  { %v15727_v39 = vpack.c.bf16 %v7560_v25, %v7560_v25  ;;  %v8444_v28 = vld [vmem:[#allocation3 + $0x2e] sm:$0xff]  ;;  %v16949_v56 = vld [vmem:[#allocation4 + $0x4c] ss:$36 sps:$4 sm:$0xff]   ;;  %7216 = vst [vmem:[#allocation4 + $0xb8] sm:$0xf] %v15629_v13  ;;  %6630 = vst [vmem:[#allocation3 + $0x48] sm:$0xff] %v6581_v37  ;;  %v16217_v43 = vpop.f32.mrf.mxu1 }
 0x3b7   :  { %v15873_v1 = vpack.c.bf16 %v8444_v28, %v8444_v28  ;;  %7511 = vst [vmem:[#allocation4 + $0xbc] sm:$0xf] %v15678_v49  ;;  %8395 = vst [vmem:[#allocation4 + $0xa4] sm:$0xf] %v15629_v13  ;;  %v6971_v10 = vld [vmem:[#allocation3 + $0x31] sm:$0xff]  ;;  %11329 = vmatprep.mubr.bf16.mxu0 %v16949_v56  ;;  %v16973_v3 = vld [vmem:[%s19351_s5 + $0x120] sm:$0xff]   ;;  %11758 = vmatpush1.bf16.msra.mxu0 %v16966_v46 }
 0x3b8   :  { %7806 = vst [vmem:[#allocation4 + $0xc0] sm:$0xf] %v15727_v39  ;;  %8985 = vst [vmem:[#allocation4 + $0xac] sm:$0xf] %v15727_v39  ;;  %v7266_v5 = vld [vmem:[#allocation3 + $0x32] sm:$0xff]  ;;  %v15630_v54 = vpack.c.bf16 %v6971_v10, %v6971_v10  ;;  %11330 = vmatmul.mubr.bf16.gmra.mxu0 %v16947_v33  ;;  %v6582_v13 = vmax.f32 %v6415_v19, 0.0  ;;  %v6417_v49 = vpop.f32.mrf.mxu1  ;;  %11759 = vmatprep.subr.bf16.mxu0 %v19362_v50 }
 0x3b9   :  { %v7561_v16 = vld [vmem:[#allocation3 + $0x37] sm:$0xff]  ;;  %9282 = vst [vmem:[#allocation4 + $0xf8] sm:$0xf] %v15583_v21  ;;  %6924 = vst [vmem:[#allocation4 + $0x120] sm:$0xf] %v15583_v21  ;;  %v15679_v2 = vpack.c.bf16 %v7266_v5, %v7266_v5  ;;  %v16986_v46 = vld [vmem:[%s19351_s5 + $0x118] sm:$0xff]  }
 0x3ba   :  { %8103 = vst [vmem:[#allocation4 + $0x10c] sm:$0xf] %v15583_v21  ;;  %8690 = vst [vmem:[#allocation4 + $0xa8] sm:$0xf] %v15873_v1  ;;  %v15728_v17 = vpack.c.bf16 %v7561_v16, %v7561_v16  ;;  %v8445_v0 = vld [vmem:[#allocation3 + $0x36] sm:$0xff]  ;;  %v6418_v21 = vadd.f32 %v6417_v49, %v18280_v34  ;;  %v15585_v56 = vpack.c.bf16 %v6582_v13, %v6582_v13  ;;  %v16218_v10 = vpop.f32.mrf.mxu1 }
 0x3bb   :  { %v16950_v52 = vld [vmem:[#allocation4 + $0x50] ss:$36 sps:$4 sm:$0xff]   ;;  %v15874_v41 = vpack.c.bf16 %v8445_v0, %v8445_v0  ;;  %7217 = vst [vmem:[#allocation4 + $0xdc] sm:$0xf] %v15630_v54  ;;  %7512 = vst [vmem:[#allocation4 + $0xe0] sm:$0xf] %v15679_v2  ;;  %11760 = vmatpush1.bf16.msra.mxu0 %v16973_v3 }
 0x3bc   :  { %v16952_v25 = vld [vmem:[#allocation4 + $0x54] ss:$36 sps:$4 sm:$0xff]   ;;  %7807 = vst [vmem:[#allocation4 + $0xe4] sm:$0xf] %v15728_v17  ;;  %8396 = vst [vmem:[#allocation4 + $0xc8] sm:$0xf] %v15630_v54  ;;  %v6422_v0 = vpop.f32.mrf.mxu1  ;;  %11761 = vmatprep.subr.bf16.mxu0 %v19362_v50 }
 0x3bd   :  { %8986 = vst [vmem:[#allocation4 + $0xd0] sm:$0xf] %v15728_v17  ;;  %9283 = vst [vmem:[#allocation4 + $0x11c] sm:$0xf] %v15584_v38  ;;  %11561 = vmatprep.mubr.bf16.mxu1 %v16952_v25  ;;  %v6972_v39 = vld [vmem:[#allocation3 + $0x39] sm:$0xff]  ;;  %v6583_v16 = vmax.f32 %v6418_v21, 0.0  ;;  %v6423_v49 = vadd.f32 %v6422_v0, %v18292_v26 }
 0x3be   :  { %6925 = vst [vmem:[#allocation4 + $0x144] sm:$0xf] %v15584_v38  ;;  %8104 = vst [vmem:[#allocation4 + $0x130] sm:$0xf] %v15584_v38  ;;  %v7267_v35 = vld [vmem:[#allocation3 + $0x3a] sm:$0xff]  ;;  %11562 = vmatmul.mubr.bf16.gmra.mxu1 %v16950_v52  ;;  %v15631_v57 = vpack.c.bf16 %v6972_v39, %v6972_v39  ;;  %v7268_v2 = vld [vmem:[#allocation3 + $0x42] sm:$0xff] }
 0x3bf   :  { %8691 = vst [vmem:[#allocation4 + $0xcc] sm:$0xf] %v15874_v41  ;;  %v7562_v28 = vld [vmem:[#allocation3 + $0x3f] sm:$0xff]  ;;  %v15680_v1 = vpack.c.bf16 %v7267_v35, %v7267_v35  ;;  %6631 = vst [vmem:[#allocation3 + $0x50] sm:$0xff] %v6582_v13  ;;  %v16954_v40 = vld [vmem:[#allocation4 + $0x90] ss:$36 sps:$4 sm:$0xff]   ;;  %v15681_v52 = vpack.c.bf16 %v7268_v2, %v7268_v2  ;;  %v15586_v3 = vpack.c.bf16 %v6583_v16, %v6583_v16  ;;  %v16221_v35 = vpop.f32.mrf.mxu1  ;;  %11762 = vmatpush1.bf16.msra.mxu0 %v16986_v46 }
 0x3c0   :  { %v15729_v37 = vpack.c.bf16 %v7562_v28, %v7562_v28  ;;  %v8446_v33 = vld [vmem:[#allocation3 + $0x3e] sm:$0xff]  ;;  %v16956_v54 = vld [vmem:[#allocation4 + $0x94] ss:$36 sps:$4 sm:$0xff]   ;;  %7218 = vst [vmem:[#allocation4 + $0x100] sm:$0xf] %v15631_v57  ;;  %6632 = vst [vmem:[#allocation3 + $0x58] sm:$0xff] %v6583_v16  ;;  %11763 = vmatprep.subr.bf16.mxu0 %v19362_v50 }
 0x3c1   :  { %v15875_v5 = vpack.c.bf16 %v8446_v33, %v8446_v33  ;;  %7513 = vst [vmem:[#allocation4 + $0x104] sm:$0xf] %v15680_v1  ;;  %8397 = vst [vmem:[#allocation4 + $0xec] sm:$0xf] %v15631_v57  ;;  %v6973_v34 = vld [vmem:[#allocation3 + $0x41] sm:$0xff]  ;;  %11337 = vmatprep.mubr.bf16.mxu0 %v16956_v54  ;;  %v16999_v43 = vld [vmem:[%s19351_s5 + $0x110] sm:$0xff]   ;;  %v6425_v21 = vpop.f32.mrf.mxu1 }
 0x3c2   :  { %7808 = vst [vmem:[#allocation4 + $0x108] sm:$0xf] %v15729_v37  ;;  %8987 = vst [vmem:[#allocation4 + $0xf4] sm:$0xf] %v15729_v37  ;;  %v7563_v17 = vld [vmem:[#allocation3 + $0x47] sm:$0xff]  ;;  %v15632_v38 = vpack.c.bf16 %v6973_v34, %v6973_v34  ;;  %11338 = vmatmul.mubr.bf16.gmra.mxu0 %v16954_v40  ;;  %v6584_v28 = vmax.f32 %v6423_v49, 0.0  ;;  %v6426_v37 = vadd.f32 %v6425_v21, %v18299_v6 }
 0x3c3   :  { %9284 = vst [vmem:[#allocation4 + $0x140] sm:$0xf] %v15585_v56  ;;  %6926 = vst [vmem:[#allocation4 + $0x168] sm:$0xf] %v15585_v56  ;;  %v15730_v41 = vpack.c.bf16 %v7563_v17, %v7563_v17  ;;  %v8447_v19 = vld [vmem:[#allocation3 + $0x46] sm:$0xff]  ;;  %v16222_v40 = vpop.f32.mrf.mxu1  ;;  %v17006_v46 = vld [vmem:[%s19351_s5 + $0x108] sm:$0xff]   ;;  %11764 = vmatpush1.bf16.msra.mxu0 %v16999_v43 }
 0x3c4   :  { %8105 = vst [vmem:[#allocation4 + $0x154] sm:$0xf] %v15585_v56  ;;  %8692 = vst [vmem:[#allocation4 + $0xf0] sm:$0xf] %v15875_v5  ;;  %v16957_v25 = vld [vmem:[#allocation4 + $0x98] ss:$36 sps:$4 sm:$0xff]   ;;  %v15876_v13 = vpack.c.bf16 %v8447_v19, %v8447_v19  ;;  %v15587_v16 = vpack.c.bf16 %v6584_v28, %v6584_v28  ;;  %11765 = vmatprep.subr.bf16.mxu0 %v19362_v50 }
 0x3c5   :  { %v16959_v39 = vld [vmem:[#allocation4 + $0x9c] ss:$36 sps:$4 sm:$0xff]   ;;  %7219 = vst [vmem:[#allocation4 + $0x124] sm:$0xf] %v15632_v38  ;;  %7514 = vst [vmem:[#allocation4 + $0x128] sm:$0xf] %v15681_v52  ;;  %v6430_v52 = vpop.f32.mrf.mxu1 }
 0x3c6   :  { %7809 = vst [vmem:[#allocation4 + $0x12c] sm:$0xf] %v15730_v41  ;;  %8398 = vst [vmem:[#allocation4 + $0x110] sm:$0xf] %v15632_v38  ;;  %11569 = vmatprep.mubr.bf16.mxu1 %v16959_v39  ;;  %v6974_v57 = vld [vmem:[#allocation3 + $0x49] sm:$0xff]  ;;  %v6585_v34 = vmax.f32 %v6426_v37, 0.0  ;;  %v6431_v35 = vadd.f32 %v6430_v52, %v18308_v45 }
 0x3c7   :  { %8988 = vst [vmem:[#allocation4 + $0x118] sm:$0xf] %v15730_v41  ;;  %9285 = vst [vmem:[#allocation4 + $0x164] sm:$0xf] %v15586_v3  ;;  %v7269_v26 = vld [vmem:[#allocation3 + $0x4a] sm:$0xff]  ;;  %11570 = vmatmul.mubr.bf16.gmra.mxu1 %v16957_v25  ;;  %v15633_v33 = vpack.c.bf16 %v6974_v57, %v6974_v57  ;;  %v7270_v0 = vld [vmem:[#allocation3 + $0x52] sm:$0xff]  ;;  %v16225_v21 = vpop.f32.mrf.mxu1  ;;  %11766 = vmatpush1.bf16.msra.mxu0 %v17006_v46 }
 0x3c8   :  { %6927 = vst [vmem:[#allocation4 + $0x18c] sm:$0xf] %v15586_v3  ;;  %8106 = vst [vmem:[#allocation4 + $0x178] sm:$0xf] %v15586_v3  ;;  %v7564_v1 = vld [vmem:[#allocation3 + $0x4f] sm:$0xff]  ;;  %v15682_v56 = vpack.c.bf16 %v7269_v26, %v7269_v26  ;;  %v7565_v38 = vld [vmem:[#allocation3 + $0x57] sm:$0xff]  ;;  %v15683_v19 = vpack.c.bf16 %v7270_v0, %v7270_v0  ;;  %v15588_v43 = vpack.c.bf16 %v6585_v34, %v6585_v34  ;;  %11767 = vmatprep.subr.bf16.mxu0 %v19362_v50 }
 0x3c9   :  { %8693 = vst [vmem:[#allocation4 + $0x114] sm:$0xf] %v15876_v13  ;;  %v15731_v10 = vpack.c.bf16 %v7564_v1, %v7564_v1  ;;  %v8448_v5 = vld [vmem:[#allocation3 + $0x4e] sm:$0xff]  ;;  %6633 = vst [vmem:[#allocation3 + $0x60] sm:$0xff] %v6584_v28  ;;  %v15732_v3 = vpack.c.bf16 %v7565_v38, %v7565_v38  ;;  %v8449_v25 = vld [vmem:[#allocation3 + $0x56] sm:$0xff]  ;;  %v6586_v26 = vmax.f32 %v6431_v35, 0.0  ;;  %v6433_v45 = vpop.f32.mrf.mxu1 }
 0x3ca   :  { %v15877_v54 = vpack.c.bf16 %v8448_v5, %v8448_v5  ;;  %v16960_v2 = vld [vmem:[#allocation4 + $0xd8] ss:$36 sps:$4 sm:$0xff]   ;;  %7220 = vst [vmem:[#allocation4 + $0x148] sm:$0xf] %v15633_v33  ;;  %7515 = vst [vmem:[#allocation4 + $0x14c] sm:$0xf] %v15682_v56  ;;  %v15878_v39 = vpack.c.bf16 %v8449_v25, %v8449_v25 }
 0x3cb   :  { %v16962_v17 = vld [vmem:[#allocation4 + $0xdc] ss:$36 sps:$4 sm:$0xff]   ;;  %7810 = vst [vmem:[#allocation4 + $0x150] sm:$0xf] %v15731_v10  ;;  %8399 = vst [vmem:[#allocation4 + $0x134] sm:$0xf] %v15633_v33 }
 0x3cc   :  { %8989 = vst [vmem:[#allocation4 + $0x13c] sm:$0xf] %v15731_v10  ;;  %v6975_v6 = vld [vmem:[#allocation3 + $0x51] sm:$0xff]  ;;  %9286 = vst [vmem:[#allocation4 + $0x188] sm:$0xf] %v15587_v16  ;;  %11345 = vmatprep.mubr.bf16.mxu0 %v16962_v17  ;;  %v17019_v49 = vld [vmem:[%s19351_s5 + $0x100] sm:$0xff]   ;;  %v6434_v10 = vadd.f32 %v6433_v45, %v18319_v48 }
 0x3cd   :  { %6928 = vst [vmem:[#allocation4 + $0x1b0] sm:$0xf] %v15587_v16  ;;  %8107 = vst [vmem:[#allocation4 + $0x19c] sm:$0xf] %v15587_v16  ;;  %v15634_v41 = vpack.c.bf16 %v6975_v6, %v6975_v6  ;;  %v16963_v13 = vld [vmem:[#allocation4 + $0xe0] ss:$36 sps:$4 sm:$0xff]   ;;  %11346 = vmatmul.mubr.bf16.gmra.mxu0 %v16960_v2  ;;  %v16226_v2 = vpop.f32.mrf.mxu1 }
 0x3ce   :  { %8694 = vst [vmem:[#allocation4 + $0x138] sm:$0xf] %v15877_v54  ;;  %6634 = vst [vmem:[#allocation3 + $0x68] sm:$0xff] %v6585_v34  ;;  %v16965_v28 = vld [vmem:[#allocation4 + $0xe4] ss:$36 sps:$4 sm:$0xff]   ;;  %v15589_v34 = vpack.c.bf16 %v6586_v26, %v6586_v26  ;;  %v6587_v6 = vmax.f32 %v6434_v10, 0.0  ;;  %11768 = vmatpush1.bf16.msra.mxu0 %v17019_v49 }
 0x3cf   :  { %7221 = vst [vmem:[#allocation4 + $0x16c] sm:$0xf] %v15634_v41  ;;  %7516 = vst [vmem:[#allocation4 + $0x170] sm:$0xf] %v15683_v19  ;;  %v17059_v57 = vld [vmem:[%s19351_s5 + $0x1b8] sm:$0xff]   ;;  %11577 = vmatprep.mubr.bf16.mxu1 %v16965_v28  ;;  %v17061_v1 = vld [vmem:[%s19351_s5 + $0x1b0] sm:$0xff]   ;;  %v6438_v19 = vpop.f32.mrf.mxu1  ;;  %11769 = vmatprep.subr.bf16.mxu0 %v19362_v50 }
 0x3d0   :  { %7811 = vst [vmem:[#allocation4 + $0x174] sm:$0xf] %v15732_v3  ;;  %8400 = vst [vmem:[#allocation4 + $0x158] sm:$0xf] %v15634_v41  ;;  %v6976_v37 = vld [vmem:[#allocation3 + $0x59] sm:$0xff]  ;;  %11578 = vmatmul.mubr.bf16.gmra.mxu1 %v16963_v13  ;;  %v15590_v49 = vpack.c.bf16 %v6587_v6, %v6587_v6  ;;  %v6439_v21 = vadd.f32 %v6438_v19, %v18328_v62  ;;  %v17068_v45 = vld [vmem:[%s19351_s5 + $0x1a8] sm:$0xff]  }
 0x3d1   :  { %8990 = vst [vmem:[#allocation4 + $0x160] sm:$0xf] %v15732_v3  ;;  %9287 = vst [vmem:[#allocation4 + $0x1ac] sm:$0xf] %v15588_v43  ;;  %v7271_v33 = vld [vmem:[#allocation3 + $0x5a] sm:$0xff]  ;;  %v15635_v16 = vpack.c.bf16 %v6976_v37, %v6976_v37  ;;  %11986 = vmatpush1.bf16.msra.mxu1 %v17059_v57 }
 0x3d2   :  { %6929 = vst [vmem:[#allocation4 + $0x1d4] sm:$0xf] %v15588_v43  ;;  %8108 = vst [vmem:[#allocation4 + $0x1c0] sm:$0xf] %v15588_v43  ;;  %v7566_v56 = vld [vmem:[#allocation3 + $0x5f] sm:$0xff]  ;;  %v15684_v40 = vpack.c.bf16 %v7271_v33, %v7271_v33  ;;  %11987 = vmatprep.subr.bf16.mxu1 %v19362_v50  ;;  %v6588_v62 = vmax.f32 %v6439_v21, 0.0 }
 0x3d3   :  { %8695 = vst [vmem:[#allocation4 + $0x15c] sm:$0xf] %v15878_v39  ;;  %v17026_v5 = vld [vmem:[%s19351_s5 + $0x178] sm:$0xff]   ;;  %v15733_v46 = vpack.c.bf16 %v7566_v56, %v7566_v56  ;;  %6635 = vst [vmem:[#allocation3 + $0x70] sm:$0xff] %v6586_v26  ;;  %v16967_v0 = vld [vmem:[#allocation4 + $0x120] ss:$36 sps:$4 sm:$0xff]   ;;  %v16229_v26 = vpop.f32.mrf.mxu1 }
 0x3d4   :  { %v8450_v54 = vld [vmem:[#allocation3 + $0x5e] sm:$0xff]  ;;  %7222 = vst [vmem:[#allocation4 + $0x190] sm:$0xf] %v15635_v16  ;;  %7517 = vst [vmem:[#allocation4 + $0x194] sm:$0xf] %v15684_v40  ;;  %11770 = vmatpush2.bf16.msra.mxu0 %v17026_v5  ;;  %v15591_v2 = vpack.c.bf16 %v6588_v62, %v6588_v62  ;;  %v17060_v26 = vld [vmem:[%s19351_s5 + $0x160] sm:$0xff]  }
 0x3d5   :  { %v15879_v17 = vpack.c.bf16 %v8450_v54, %v8450_v54  ;;  %v16969_v38 = vld [vmem:[#allocation4 + $0x124] ss:$36 sps:$4 sm:$0xff]   ;;  %7812 = vst [vmem:[#allocation4 + $0x198] sm:$0xf] %v15733_v46  ;;  %8401 = vst [vmem:[#allocation4 + $0x17c] sm:$0xf] %v15635_v16  ;;  %11988 = vmatpush1.bf16.msra.mxu1 %v17061_v1  ;;  %v6441_v37 = vpop.f32.mrf.mxu1  ;;  %11771 = vmatprep.subr.bf16.mxu0 %v19362_v50 }
 0x3d6   :  { %8991 = vst [vmem:[#allocation4 + $0x184] sm:$0xf] %v15733_v46  ;;  %v6977_v48 = vld [vmem:[#allocation3 + $0x61] sm:$0xff]  ;;  %9288 = vst [vmem:[#allocation4 + $0x1d0] sm:$0xf] %v15589_v34  ;;  %11353 = vmatprep.mubr.bf16.mxu0 %v16969_v38  ;;  %v17039_v35 = vld [vmem:[%s19351_s5 + $0x170] sm:$0xff]   ;;  %11989 = vmatprep.subr.bf16.mxu1 %v19362_v50  ;;  %v6442_v5 = vadd.f32 %v6441_v37, %v18341_v22 }
 0x3d7   :  { %v7272_v52 = vld [vmem:[#allocation3 + $0x62] sm:$0xff]  ;;  %6930 = vst [vmem:[#allocation4 + $0x1f8] sm:$0xf] %v15589_v34  ;;  %8109 = vst [vmem:[#allocation4 + $0x1e4] sm:$0xf] %v15589_v34  ;;  %v15636_v3 = vpack.c.bf16 %v6977_v48, %v6977_v48  ;;  %11354 = vmatmul.mubr.bf16.gmra.mxu0 %v16967_v0  ;;  %v17046_v16 = vld [vmem:[%s19351_s5 + $0x168] sm:$0xff]  }
 0x3d8   :  { %v7567_v41 = vld [vmem:[#allocation3 + $0x67] sm:$0xff]  ;;  %8696 = vst [vmem:[#allocation4 + $0x180] sm:$0xf] %v15879_v17  ;;  %v15685_v25 = vpack.c.bf16 %v7272_v52, %v7272_v52  ;;  %6636 = vst [vmem:[#allocation3 + $0x78] sm:$0xff] %v6587_v6  ;;  %v16230_v17 = vpop.f32.mrf.mxu1  ;;  %v6589_v0 = vmax.f32 %v6442_v5, 0.0  ;;  %11772 = vmatpush2.bf16.msra.mxu0 %v17039_v35  ;;  %v17078_v37 = vld [vmem:[%s19351_s5 + $0x190] sm:$0xff]  }
 0x3d9   :  { %v15734_v43 = vpack.c.bf16 %v7567_v41, %v7567_v41  ;;  %v8451_v13 = vld [vmem:[#allocation3 + $0x66] sm:$0xff]  ;;  %7223 = vst [vmem:[#allocation4 + $0x1b4] sm:$0xf] %v15636_v3  ;;  %8402 = vst [vmem:[#allocation4 + $0x1a0] sm:$0xf] %v15636_v3  ;;  %11990 = vmatpush1.bf16.msra.mxu1 %v17068_v45  ;;  %11773 = vmatprep.subr.bf16.mxu0 %v19362_v50 }
 0x3da   :  { %v16970_v39 = vld [vmem:[#allocation4 + $0x128] ss:$36 sps:$4 sm:$0xff]   ;;  %v15880_v28 = vpack.c.bf16 %v8451_v13, %v8451_v13  ;;  %7518 = vst [vmem:[#allocation4 + $0x1b8] sm:$0xf] %v15685_v25  ;;  %9289 = vst [vmem:[#allocation4 + $0x1f4] sm:$0xf] %v15590_v49  ;;  %11991 = vmatprep.subr.bf16.mxu1 %v19362_v50  ;;  %v6446_v19 = vpop.f32.mrf.mxu1 }
 0x3db   :  { %v16972_v57 = vld [vmem:[#allocation4 + $0x12c] ss:$36 sps:$4 sm:$0xff]   ;;  %7813 = vst [vmem:[#allocation4 + $0x1bc] sm:$0xf] %v15734_v43  ;;  %8992 = vst [vmem:[#allocation4 + $0x1a8] sm:$0xf] %v15734_v43 }
 0x3dc   :  { %6931 = vst [vmem:[#allocation4 + $0x21c] sm:$0xf] %v15590_v49  ;;  %8110 = vst [vmem:[#allocation4 + $0x208] sm:$0xf] %v15590_v49  ;;  %11585 = vmatprep.mubr.bf16.mxu1 %v16972_v57  ;;  %v17069_v1 = vld [vmem:[%s19351_s5 + $0x1a0] sm:$0xff]   ;;  %v15592_v49 = vpack.c.bf16 %v6589_v0, %v6589_v0  ;;  %v16233_v57 = vpop.f32.mrf.mxu1  ;;  %11774 = vmatpush2.bf16.msra.mxu0 %v17046_v16  ;;  %v17070_v5 = vld [vmem:[%s19351_s5 + $0x158] sm:$0xff]  }
 0x3dd   :  { %8697 = vst [vmem:[#allocation4 + $0x1a4] sm:$0xf] %v15880_v28  ;;  %v6978_v33 = vld [vmem:[#allocation3 + $0x69] sm:$0xff]  ;;  %11586 = vmatmul.mubr.bf16.gmra.mxu1 %v16970_v39  ;;  %6637 = vst [vmem:[#allocation3 + $0x80] sm:$0xff] %v6588_v62  ;;  %v16974_v38 = vld [vmem:[#allocation4 + $0x168] ss:$36 sps:$4 sm:$0xff]   ;;  %v6447_v28 = vadd.f32 %v6446_v19, %v18348_v42  ;;  %11775 = vmatprep.subr.bf16.mxu0 %v19362_v50 }
 0x3de   :  { %v7273_v56 = vld [vmem:[#allocation3 + $0x6a] sm:$0xff]  ;;  %v15637_v40 = vpack.c.bf16 %v6978_v33, %v6978_v33  ;;  %9290 = vst [vmem:[#allocation4 + $0x218] sm:$0xf] %v15591_v2  ;;  %6932 = vst [vmem:[#allocation4 + $0x240] sm:$0xf] %v15591_v2  ;;  %11992 = vmatpush1.bf16.msra.mxu1 %v17069_v1  ;;  %v17077_v42 = vld [vmem:[%s19351_s5 + $0x198] sm:$0xff]   ;;  %v6449_v62 = vpop.f32.mrf.mxu1 }
 0x3df   :  { %v7568_v10 = vld [vmem:[#allocation3 + $0x6f] sm:$0xff]  ;;  %v15686_v46 = vpack.c.bf16 %v7273_v56, %v7273_v56  ;;  %v16976_v48 = vld [vmem:[#allocation4 + $0x16c] ss:$36 sps:$4 sm:$0xff]   ;;  %v7569_v41 = vld [vmem:[#allocation3 + $0x77] sm:$0xff]  ;;  %8111 = vst [vmem:[#allocation4 + $0x22c] sm:$0xf] %v15591_v2  ;;  %11993 = vmatprep.subr.bf16.mxu1 %v19362_v50 }
 0x3e0   :  { %v15735_v54 = vpack.c.bf16 %v7568_v10, %v7568_v10  ;;  %v8452_v34 = vld [vmem:[#allocation3 + $0x6e] sm:$0xff]  ;;  %7224 = vst [vmem:[#allocation4 + $0x1d8] sm:$0xf] %v15637_v40  ;;  %8403 = vst [vmem:[#allocation4 + $0x1c4] sm:$0xf] %v15637_v40  ;;  %v15736_v43 = vpack.c.bf16 %v7569_v41, %v7569_v41  ;;  %v8453_v13 = vld [vmem:[#allocation3 + $0x76] sm:$0xff]  ;;  %11361 = vmatprep.mubr.bf16.mxu0 %v16976_v48  ;;  %v6450_v10 = vadd.f32 %v6449_v62, %v18352_v53  ;;  %v16234_v2 = vpop.f32.mrf.mxu1 }
 0x3e1   :  { %v15881_v6 = vpack.c.bf16 %v8452_v34, %v8452_v34  ;;  %7519 = vst [vmem:[#allocation4 + $0x1dc] sm:$0xf] %v15686_v46  ;;  %v6979_v22 = vld [vmem:[#allocation3 + $0x71] sm:$0xff]  ;;  %6638 = vst [vmem:[#allocation3 + $0x88] sm:$0xff] %v6589_v0  ;;  %v16977_v39 = vld [vmem:[#allocation4 + $0x170] ss:$36 sps:$4 sm:$0xff]   ;;  %v15882_v35 = vpack.c.bf16 %v8453_v13, %v8453_v13  ;;  %11362 = vmatmul.mubr.bf16.gmra.mxu0 %v16974_v38 }
 0x3e2   :  { %7814 = vst [vmem:[#allocation4 + $0x1e0] sm:$0xf] %v15735_v54  ;;  %8993 = vst [vmem:[#allocation4 + $0x1cc] sm:$0xf] %v15735_v54  ;;  %v7274_v52 = vld [vmem:[#allocation3 + $0x72] sm:$0xff]  ;;  %v15638_v3 = vpack.c.bf16 %v6979_v22, %v6979_v22  ;;  %v6590_v45 = vmax.f32 %v6447_v28, 0.0  ;;  %11994 = vmatpush1.bf16.msra.mxu1 %v17077_v42  ;;  %11776 = vmatpush2.bf16.msra.mxu0 %v17060_v26 }
 0x3e3   :  { %8698 = vst [vmem:[#allocation4 + $0x1c8] sm:$0xf] %v15881_v6  ;;  %v15687_v25 = vpack.c.bf16 %v7274_v52, %v7274_v52  ;;  %v16979_v21 = vld [vmem:[#allocation4 + $0x174] ss:$36 sps:$4 sm:$0xff]   ;;  %7815 = vst [vmem:[#allocation4 + $0x204] sm:$0xf] %v15736_v43  ;;  %11995 = vmatprep.subr.bf16.mxu1 %v19362_v50  ;;  %v6454_v52 = vpop.f32.mrf.mxu1  ;;  %11777 = vmatprep.subr.bf16.mxu0 %v19362_v50 }
 0x3e4   :  { %7225 = vst [vmem:[#allocation4 + $0x1fc] sm:$0xf] %v15638_v3  ;;  %8404 = vst [vmem:[#allocation4 + $0x1e8] sm:$0xf] %v15638_v3  ;;  %11593 = vmatprep.mubr.bf16.mxu1 %v16979_v21  ;;  %v6980_v1 = vld [vmem:[#allocation3 + $0x79] sm:$0xff]  ;;  %v15593_v34 = vpack.c.bf16 %v6590_v45, %v6590_v45  ;;  %v6591_v6 = vmax.f32 %v6450_v10, 0.0 }
 0x3e5   :  { %7520 = vst [vmem:[#allocation4 + $0x200] sm:$0xf] %v15687_v25  ;;  %8994 = vst [vmem:[#allocation4 + $0x1f0] sm:$0xf] %v15736_v43  ;;  %v7275_v33 = vld [vmem:[#allocation3 + $0x7a] sm:$0xff]  ;;  %11594 = vmatmul.mubr.bf16.gmra.mxu1 %v16977_v39  ;;  %v15639_v16 = vpack.c.bf16 %v6980_v1, %v6980_v1  ;;  %v6455_v39 = vadd.f32 %v6454_v52, %v18364_v20  ;;  %v16237_v28 = vpop.f32.mrf.mxu1  ;;  %v17085_v21 = vld [vmem:[%s19351_s5 + $0x188] sm:$0xff]  }
 0x3e6   :  { %9291 = vst [vmem:[#allocation4 + $0x23c] sm:$0xf] %v15592_v49  ;;  %6933 = vst [vmem:[#allocation4 + $0x264] sm:$0xf] %v15592_v49  ;;  %v7570_v56 = vld [vmem:[#allocation3 + $0x7f] sm:$0xff]  ;;  %v15688_v40 = vpack.c.bf16 %v7275_v33, %v7275_v33  ;;  %v15594_v43 = vpack.c.bf16 %v6591_v6, %v6591_v6  ;;  %11996 = vmatpush1.bf16.msra.mxu1 %v17078_v37  ;;  %11778 = vmatpush2.bf16.msra.mxu0 %v17070_v5 }
 0x3e7   :  { %8112 = vst [vmem:[#allocation4 + $0x250] sm:$0xf] %v15592_v49  ;;  %8699 = vst [vmem:[#allocation4 + $0x1ec] sm:$0xf] %v15882_v35  ;;  %v15737_v46 = vpack.c.bf16 %v7570_v56, %v7570_v56  ;;  %v8454_v54 = vld [vmem:[#allocation3 + $0x7e] sm:$0xff]  ;;  %11997 = vmatprep.subr.bf16.mxu1 %v19362_v50  ;;  %v6592_v57 = vmax.f32 %v6455_v39, 0.0  ;;  %v6457_v26 = vpop.f32.mrf.mxu1  ;;  %11779 = vmatprep.subr.bf16.mxu0 %v19362_v50 }
 0x3e8   :  { %6639 = vst [vmem:[#allocation3 + $0x90] sm:$0xff] %v6590_v45  ;;  %v15883_v17 = vpack.c.bf16 %v8454_v54, %v8454_v54  ;;  %v16980_v0 = vld [vmem:[#allocation4 + $0x1b0] ss:$36 sps:$4 sm:$0xff]   ;;  %7226 = vst [vmem:[#allocation4 + $0x220] sm:$0xf] %v15639_v16  ;;  %v17086_v20 = vld [vmem:[%s19351_s5 + $0x150] sm:$0xff]   ;;  %v6458_v37 = vadd.f32 %v6457_v26, %v18367_v32 }
 0x3e9   :  { %v16982_v38 = vld [vmem:[#allocation4 + $0x1b4] ss:$36 sps:$4 sm:$0xff]   ;;  %7521 = vst [vmem:[#allocation4 + $0x224] sm:$0xf] %v15688_v40  ;;  %7816 = vst [vmem:[#allocation4 + $0x228] sm:$0xf] %v15737_v46  ;;  %v15595_v5 = vpack.c.bf16 %v6592_v57, %v6592_v57 }
 0x3ea   :  { %8405 = vst [vmem:[#allocation4 + $0x20c] sm:$0xf] %v15639_v16  ;;  %8995 = vst [vmem:[#allocation4 + $0x214] sm:$0xf] %v15737_v46  ;;  %v6981_v53 = vld [vmem:[#allocation3 + $0x81] sm:$0xff]  ;;  %11369 = vmatprep.mubr.bf16.mxu0 %v16982_v38  ;;  %v16238_v16 = vpop.f32.mrf.mxu1  ;;  %11998 = vmatpush1.bf16.msra.mxu1 %v17085_v21  ;;  %v17102_v46 = vld [vmem:[%s19351_s5 + $0x148] sm:$0xff]  }
 0x3eb   :  { %v7276_v48 = vld [vmem:[#allocation3 + $0x82] sm:$0xff]  ;;  %9292 = vst [vmem:[#allocation4 + $0x260] sm:$0xf] %v15593_v34  ;;  %6934 = vst [vmem:[#allocation4 + $0x288] sm:$0xf] %v15593_v34  ;;  %v15640_v41 = vpack.c.bf16 %v6981_v53, %v6981_v53  ;;  %11370 = vmatmul.mubr.bf16.gmra.mxu0 %v16980_v0  ;;  %11999 = vmatprep.subr.bf16.mxu1 %v19362_v50 }
 0x3ec   :  { %v7571_v22 = vld [vmem:[#allocation3 + $0x87] sm:$0xff]  ;;  %8113 = vst [vmem:[#allocation4 + $0x274] sm:$0xf] %v15593_v34  ;;  %8700 = vst [vmem:[#allocation4 + $0x210] sm:$0xf] %v15883_v17  ;;  %v15689_v19 = vpack.c.bf16 %v7276_v48, %v7276_v48  ;;  %v6593_v34 = vmax.f32 %v6458_v37, 0.0  ;;  %11780 = vmatpush2.bf16.msra.mxu0 %v17086_v20  ;;  %v6462_v38 = vpop.f32.mrf.mxu1 }
 0x3ed   :  { %v15738_v3 = vpack.c.bf16 %v7571_v22, %v7571_v22  ;;  %v8455_v25 = vld [vmem:[#allocation3 + $0x86] sm:$0xff]  ;;  %6640 = vst [vmem:[#allocation3 + $0x98] sm:$0xff] %v6591_v6  ;;  %v16983_v13 = vld [vmem:[#allocation4 + $0x1b8] ss:$36 sps:$4 sm:$0xff]   ;;  %7227 = vst [vmem:[#allocation4 + $0x244] sm:$0xf] %v15640_v41  ;;  %11781 = vmatprep.subr.bf16.mxu0 %v19362_v50 }
 0x3ee   :  { %v15884_v49 = vpack.c.bf16 %v8455_v25, %v8455_v25  ;;  %v16985_v35 = vld [vmem:[#allocation4 + $0x1bc] ss:$36 sps:$4 sm:$0xff]   ;;  %7522 = vst [vmem:[#allocation4 + $0x248] sm:$0xf] %v15689_v19  ;;  %8406 = vst [vmem:[#allocation4 + $0x230] sm:$0xf] %v15640_v41  ;;  %v15596_v19 = vpack.c.bf16 %v6593_v34, %v6593_v34 }
 0x3ef   :  { %7817 = vst [vmem:[#allocation4 + $0x24c] sm:$0xf] %v15738_v3  ;;  %8996 = vst [vmem:[#allocation4 + $0x238] sm:$0xf] %v15738_v3  ;;  %11601 = vmatprep.mubr.bf16.mxu1 %v16985_v35  ;;  %v6982_v42 = vld [vmem:[#allocation3 + $0x89] sm:$0xff]  ;;  %v17094_v53 = vld [vmem:[%s19351_s5 + $0x1f8] sm:$0xff]  }
 0x3f0   :  { %9293 = vst [vmem:[#allocation4 + $0x284] sm:$0xf] %v15594_v43  ;;  %6935 = vst [vmem:[#allocation4 + $0x2ac] sm:$0xf] %v15594_v43  ;;  %v7277_v45 = vld [vmem:[#allocation3 + $0x8a] sm:$0xff]  ;;  %11602 = vmatmul.mubr.bf16.gmra.mxu1 %v16983_v13  ;;  %v15641_v1 = vpack.c.bf16 %v6982_v42, %v6982_v42  ;;  %11782 = vmatpush2.bf16.msra.mxu0 %v17102_v46 }
 0x3f1   :  { %8114 = vst [vmem:[#allocation4 + $0x298] sm:$0xf] %v15594_v43  ;;  %8701 = vst [vmem:[#allocation4 + $0x234] sm:$0xf] %v15884_v49  ;;  %v7572_v62 = vld [vmem:[#allocation3 + $0x8f] sm:$0xff]  ;;  %v15690_v33 = vpack.c.bf16 %v7277_v45, %v7277_v45  ;;  %v6463_v43 = vadd.f32 %v6462_v38, %v18372_v14  ;;  %v16241_v49 = vpop.f32.mrf.mxu1  ;;  %11783 = vmatprep.subr.bf16.mxu0 %v19362_v50 }
 0x3f2   :  { %v15739_v56 = vpack.c.bf16 %v7572_v62, %v7572_v62  ;;  %v8456_v10 = vld [vmem:[#allocation3 + $0x8e] sm:$0xff]  ;;  %6641 = vst [vmem:[#allocation3 + $0xa0] sm:$0xff] %v6592_v57  ;;  %7228 = vst [vmem:[#allocation4 + $0x268] sm:$0xf] %v15641_v1  ;;  %v16990_v3 = vld [vmem:[#allocation4 + $0x200] ss:$36 sps:$4 sm:$0xff]  }
 0x3f3   :  { %v17087_v40 = vld [vmem:[%s19351_s5 + $0x180] sm:$0xff]   ;;  %v15885_v54 = vpack.c.bf16 %v8456_v10, %v8456_v10  ;;  %v16987_v2 = vld [vmem:[#allocation4 + $0x1f8] ss:$36 sps:$4 sm:$0xff]   ;;  %7523 = vst [vmem:[#allocation4 + $0x26c] sm:$0xf] %v15690_v33  ;;  %6642 = vst [vmem:[#allocation3 + $0xa8] sm:$0xff] %v6593_v34  ;;  %v6465_v35 = vpop.f32.mrf.mxu1 }
 0x3f4   :  { %v16989_v32 = vld [vmem:[#allocation4 + $0x1fc] ss:$36 sps:$4 sm:$0xff]   ;;  %7818 = vst [vmem:[#allocation4 + $0x270] sm:$0xf] %v15739_v56  ;;  %8407 = vst [vmem:[#allocation4 + $0x254] sm:$0xf] %v15641_v1  ;;  %12000 = vmatpush1.bf16.msra.mxu1 %v17087_v40  ;;  %v6466_v20 = vadd.f32 %v6465_v35, %v18379_v63 }
 0x3f5   :  { %8997 = vst [vmem:[#allocation4 + $0x25c] sm:$0xf] %v15739_v56  ;;  %v6983_v17 = vld [vmem:[#allocation3 + $0x91] sm:$0xff]  ;;  %9294 = vst [vmem:[#allocation4 + $0x2a8] sm:$0xf] %v15595_v5  ;;  %11377 = vmatprep.mubr.bf16.mxu0 %v16989_v32  ;;  %12001 = vmatprep.subr.bf16.mxu1 %v19362_v50  ;;  %v6594_v39 = vmax.f32 %v6463_v43, 0.0  ;;  %v16242_v37 = vpop.f32.mrf.mxu1 }
 0x3f6   :  { %v7278_v6 = vld [vmem:[#allocation3 + $0x92] sm:$0xff]  ;;  %6936 = vst [vmem:[#allocation4 + $0x2d0] sm:$0xf] %v15595_v5  ;;  %8115 = vst [vmem:[#allocation4 + $0x2bc] sm:$0xf] %v15595_v5  ;;  %v15642_v48 = vpack.c.bf16 %v6983_v17, %v6983_v17  ;;  %11378 = vmatmul.mubr.bf16.gmra.mxu0 %v16987_v2  ;;  %v17116_v33 = vld [vmem:[%s19351_s5 + $0x140] sm:$0xff]  }
 0x3f7   :  { %v7573_v0 = vld [vmem:[#allocation3 + $0x97] sm:$0xff]  ;;  %8702 = vst [vmem:[#allocation4 + $0x258] sm:$0xf] %v15885_v54  ;;  %v15691_v22 = vpack.c.bf16 %v7278_v6, %v7278_v6  ;;  %9295 = vst [vmem:[#allocation4 + $0x2cc] sm:$0xf] %v15596_v19  ;;  %v15597_v62 = vpack.c.bf16 %v6594_v39, %v6594_v39  ;;  %v6595_v10 = vmax.f32 %v6466_v20, 0.0  ;;  %v6470_v54 = vpop.f32.mrf.mxu1  ;;  %11784 = vmatpush2.bf16.msra.mxu0 %v17116_v33 }
 0x3f8   :  { %v15740_v52 = vpack.c.bf16 %v7573_v0, %v7573_v0  ;;  %v8457_v41 = vld [vmem:[#allocation3 + $0x96] sm:$0xff]  ;;  %7229 = vst [vmem:[#allocation4 + $0x28c] sm:$0xf] %v15642_v48  ;;  %8408 = vst [vmem:[#allocation4 + $0x278] sm:$0xf] %v15642_v48  ;;  %12002 = vmatpush2.bf16.msra.mxu1 %v17094_v53  ;;  %v6471_v48 = vadd.f32 %v6470_v54, %v18390_v29  ;;  %v17104_v20 = vld [vmem:[%s19351_s5 + $0x1e0] sm:$0xff]  }
 0x3f9   :  { %v15886_v25 = vpack.c.bf16 %v8457_v41, %v8457_v41  ;;  %v16992_v13 = vld [vmem:[#allocation4 + $0x204] ss:$36 sps:$4 sm:$0xff]   ;;  %7524 = vst [vmem:[#allocation4 + $0x290] sm:$0xf] %v15691_v22  ;;  %6937 = vst [vmem:[#allocation4 + $0x2f4] sm:$0xf] %v15596_v19  ;;  %12003 = vmatprep.subr.bf16.mxu1 %v19362_v50  ;;  %v15598_v0 = vpack.c.bf16 %v6595_v10, %v6595_v10 }
 0x3fa   :  { %7819 = vst [vmem:[#allocation4 + $0x294] sm:$0xf] %v15740_v52  ;;  %8998 = vst [vmem:[#allocation4 + $0x280] sm:$0xf] %v15740_v52  ;;  %11609 = vmatprep.mubr.bf16.mxu1 %v16992_v13  ;;  %v6984_v14 = vld [vmem:[#allocation3 + $0x99] sm:$0xff]  ;;  %v6985_v16 = vld [vmem:[#allocation3 + $0xa1] sm:$0xff]  ;;  %v16245_v52 = vpop.f32.mrf.mxu1 }
 0x3fb   :  { %8116 = vst [vmem:[#allocation4 + $0x2e0] sm:$0xf] %v15596_v19  ;;  %8703 = vst [vmem:[#allocation4 + $0x27c] sm:$0xf] %v15886_v25  ;;  %v7279_v28 = vld [vmem:[#allocation3 + $0x9a] sm:$0xff]  ;;  %11610 = vmatmul.mubr.bf16.gmra.mxu1 %v16990_v3  ;;  %v15643_v57 = vpack.c.bf16 %v6984_v14, %v6984_v14  ;;  %v7280_v40 = vld [vmem:[#allocation3 + $0xa2] sm:$0xff]  ;;  %v15644_v2 = vpack.c.bf16 %v6985_v16, %v6985_v16 }
 0x3fc   :  { %v7574_v21 = vld [vmem:[#allocation3 + $0x9f] sm:$0xff]  ;;  %v15692_v26 = vpack.c.bf16 %v7279_v28, %v7279_v28  ;;  %6643 = vst [vmem:[#allocation3 + $0xb0] sm:$0xff] %v6594_v39  ;;  %v7575_v46 = vld [vmem:[#allocation3 + $0xa7] sm:$0xff]  ;;  %9296 = vst [vmem:[#allocation4 + $0x2f0] sm:$0xf] %v15597_v62  ;;  %v15693_v32 = vpack.c.bf16 %v7280_v40, %v7280_v40  ;;  %v6596_v19 = vmax.f32 %v6471_v48, 0.0  ;;  %v6473_v29 = vpop.f32.mrf.mxu1 }
 0x3fd   :  { %v15741_v42 = vpack.c.bf16 %v7574_v21, %v7574_v21  ;;  %v8458_v45 = vld [vmem:[#allocation3 + $0x9e] sm:$0xff]  ;;  %7230 = vst [vmem:[#allocation4 + $0x2b0] sm:$0xf] %v15643_v57  ;;  %8409 = vst [vmem:[#allocation4 + $0x29c] sm:$0xf] %v15643_v57  ;;  %v17103_v34 = vld [vmem:[%s19351_s5 + $0x1e8] sm:$0xff]   ;;  %v15742_v17 = vpack.c.bf16 %v7575_v46, %v7575_v46  ;;  %v6474_v13 = vadd.f32 %v6473_v29, %v18398_v23 }
 0x3fe   :  { %v17095_v1 = vld [vmem:[%s19351_s5 + $0x1f0] sm:$0xff]   ;;  %v15887_v56 = vpack.c.bf16 %v8458_v45, %v8458_v45  ;;  %7525 = vst [vmem:[#allocation4 + $0x2b4] sm:$0xf] %v15692_v26  ;;  %6938 = vst [vmem:[#allocation4 + $0x318] sm:$0xf] %v15597_v62  ;;  %v8459_v6 = vld [vmem:[#allocation3 + $0xa6] sm:$0xff]  ;;  %v15599_v28 = vpack.c.bf16 %v6596_v19, %v6596_v19  ;;  %v16246_v21 = vpop.f32.mrf.mxu1 }
 0x3ff   :  { %v16993_v5 = vld [vmem:[#allocation4 + $0x240] ss:$36 sps:$4 sm:$0xff]   ;;  %7820 = vst [vmem:[#allocation4 + $0x2b8] sm:$0xf] %v15741_v42  ;;  %8999 = vst [vmem:[#allocation4 + $0x2a4] sm:$0xf] %v15741_v42  ;;  %v15888_v53 = vpack.c.bf16 %v8459_v6, %v8459_v6  ;;  %12004 = vmatpush2.bf16.msra.mxu1 %v17095_v1 }
 0x400   :  { %v16995_v63 = vld [vmem:[#allocation4 + $0x244] ss:$36 sps:$4 sm:$0xff]   ;;  %8117 = vst [vmem:[#allocation4 + $0x304] sm:$0xf] %v15597_v62  ;;  %8704 = vst [vmem:[#allocation4 + $0x2a0] sm:$0xf] %v15887_v56  ;;  %12005 = vmatprep.subr.bf16.mxu1 %v19362_v50  ;;  %v6478_v1 = vpop.f32.mrf.mxu1 }
 0x401   :  { %6644 = vst [vmem:[#allocation3 + $0xb8] sm:$0xff] %v6595_v10  ;;  %11385 = vmatprep.mubr.bf16.mxu0 %v16995_v63  ;;  %v16996_v38 = vld [vmem:[#allocation4 + $0x248] ss:$36 sps:$4 sm:$0xff]   ;;  %7231 = vst [vmem:[#allocation4 + $0x2d4] sm:$0xf] %v15644_v2  ;;  %v17378_v41 = vld [vmem:[#allocation2 + $0x188] sm:$0xff]  ;;  %v6479_v54 = vadd.f32 %v6478_v1, %v18407_v58 }
 0x402   :  { %v16998_v22 = vld [vmem:[#allocation4 + $0x24c] ss:$36 sps:$4 sm:$0xff]   ;;  %11386 = vmatmul.mubr.bf16.gmra.mxu0 %v16993_v5  ;;  %7526 = vst [vmem:[#allocation4 + $0x2d8] sm:$0xf] %v15693_v32  ;;  %7821 = vst [vmem:[#allocation4 + $0x2dc] sm:$0xf] %v15742_v17  ;;  %16295 = vmatprep.subr.bf16.mxu0 %v17378_v41 }
 0x403   :  { %8410 = vst [vmem:[#allocation4 + $0x2c0] sm:$0xf] %v15644_v2  ;;  %9000 = vst [vmem:[#allocation4 + $0x2c8] sm:$0xf] %v15742_v17  ;;  %11617 = vmatprep.mubr.bf16.mxu1 %v16998_v22  ;;  %v6986_v3 = vld [vmem:[#allocation3 + $0xa9] sm:$0xff]  ;;  %12006 = vmatpush2.bf16.msra.mxu1 %v17103_v34  ;;  %v6597_v26 = vmax.f32 %v6474_v13, 0.0  ;;  %v16249_v2 = vpop.f32.mrf.mxu1 }
 0x404   :  { %9297 = vst [vmem:[#allocation4 + $0x314] sm:$0xf] %v15598_v0  ;;  %6939 = vst [vmem:[#allocation4 + $0x33c] sm:$0xf] %v15598_v0  ;;  %v7281_v25 = vld [vmem:[#allocation3 + $0xaa] sm:$0xff]  ;;  %11618 = vmatmul.mubr.bf16.gmra.mxu1 %v16996_v38  ;;  %v15645_v49 = vpack.c.bf16 %v6986_v3, %v6986_v3  ;;  %12007 = vmatprep.subr.bf16.mxu1 %v19362_v50  ;;  %v17115_v33 = vld [vmem:[%s19351_s5 + $0x1d8] sm:$0xff]  }
 0x405   :  { %8118 = vst [vmem:[#allocation4 + $0x328] sm:$0xf] %v15598_v0  ;;  %8705 = vst [vmem:[#allocation4 + $0x2c4] sm:$0xf] %v15888_v53  ;;  %v7576_v43 = vld [vmem:[#allocation3 + $0xaf] sm:$0xff]  ;;  %v15694_v39 = vpack.c.bf16 %v7281_v25, %v7281_v25  ;;  %v15600_v16 = vpack.c.bf16 %v6597_v26, %v6597_v26  ;;  %v6598_v32 = vmax.f32 %v6479_v54, 0.0  ;;  %v6481_v17 = vpop.f32.mrf.mxu1 }
 0x406   :  { %v15743_v35 = vpack.c.bf16 %v7576_v43, %v7576_v43  ;;  %v8460_v14 = vld [vmem:[#allocation3 + $0xae] sm:$0xff]  ;;  %6645 = vst [vmem:[#allocation3 + $0xc0] sm:$0xff] %v6596_v19  ;;  %v17000_v42 = vld [vmem:[#allocation4 + $0x288] ss:$36 sps:$4 sm:$0xff]   ;;  %7232 = vst [vmem:[#allocation4 + $0x2f8] sm:$0xf] %v15645_v49  ;;  %v6482_v38 = vadd.f32 %v6481_v17, %v18417_v51 }
 0x407   :  { %v15889_v57 = vpack.c.bf16 %v8460_v14, %v8460_v14  ;;  %v17002_v45 = vld [vmem:[#allocation4 + $0x28c] ss:$36 sps:$4 sm:$0xff]   ;;  %7527 = vst [vmem:[#allocation4 + $0x2fc] sm:$0xf] %v15694_v39  ;;  %8411 = vst [vmem:[#allocation4 + $0x2e4] sm:$0xf] %v15645_v49  ;;  %12008 = vmatpush2.bf16.msra.mxu1 %v17104_v20  ;;  %v15601_v41 = vpack.c.bf16 %v6598_v32, %v6598_v32  ;;  %v16250_v19 = vpop.f32.mrf.mxu1 }
 0x408   :  { %7822 = vst [vmem:[#allocation4 + $0x300] sm:$0xf] %v15743_v35  ;;  %9001 = vst [vmem:[#allocation4 + $0x2ec] sm:$0xf] %v15743_v35  ;;  %v6987_v23 = vld [vmem:[#allocation3 + $0xb1] sm:$0xff]  ;;  %11393 = vmatprep.mubr.bf16.mxu0 %v17002_v45  ;;  %12009 = vmatprep.subr.bf16.mxu1 %v19362_v50  ;;  %v6599_v25 = vmax.f32 %v6482_v38, 0.0 }
 0x409   :  { %v7282_v62 = vld [vmem:[#allocation3 + $0xb2] sm:$0xff]  ;;  %9298 = vst [vmem:[#allocation4 + $0x338] sm:$0xf] %v15599_v28  ;;  %6940 = vst [vmem:[#allocation4 + $0x360] sm:$0xf] %v15599_v28  ;;  %v15646_v56 = vpack.c.bf16 %v6987_v23, %v6987_v23  ;;  %v6486_v35 = vpop.f32.mrf.mxu1 }
 0x40a   :  { %v7577_v37 = vld [vmem:[#allocation3 + $0xb7] sm:$0xff]  ;;  %8119 = vst [vmem:[#allocation4 + $0x34c] sm:$0xf] %v15599_v28  ;;  %8706 = vst [vmem:[#allocation4 + $0x2e8] sm:$0xf] %v15889_v57  ;;  %v15695_v10 = vpack.c.bf16 %v7282_v62, %v7282_v62  ;;  %11394 = vmatmul.mubr.bf16.gmra.mxu0 %v17000_v42  ;;  %v6487_v23 = vadd.f32 %v6486_v35, %v18427_v9  ;;  %v17125_v9 = vld [vmem:[%s19351_s5 + $0x1c0] sm:$0xff]  }
 0x40b   :  { %v15744_v5 = vpack.c.bf16 %v7577_v37, %v7577_v37  ;;  %v8461_v63 = vld [vmem:[#allocation3 + $0xb6] sm:$0xff]  ;;  %6646 = vst [vmem:[#allocation3 + $0xc8] sm:$0xff] %v6597_v26  ;;  %v17003_v40 = vld [vmem:[#allocation4 + $0x290] ss:$36 sps:$4 sm:$0xff]   ;;  %7233 = vst [vmem:[#allocation4 + $0x31c] sm:$0xf] %v15646_v56  ;;  %12010 = vmatpush2.bf16.msra.mxu1 %v17115_v33  ;;  %v15602_v26 = vpack.c.bf16 %v6599_v25, %v6599_v25  ;;  %v16253_v37 = vpop.f32.mrf.mxu1 }
 0x40c   :  { %v15890_v46 = vpack.c.bf16 %v8461_v63, %v8461_v63  ;;  %v17005_v34 = vld [vmem:[#allocation4 + $0x294] ss:$36 sps:$4 sm:$0xff]   ;;  %7528 = vst [vmem:[#allocation4 + $0x320] sm:$0xf] %v15695_v10  ;;  %8412 = vst [vmem:[#allocation4 + $0x308] sm:$0xf] %v15646_v56  ;;  %12011 = vmatprep.subr.bf16.mxu1 %v19362_v50 }
 0x40d   :  { %7823 = vst [vmem:[#allocation4 + $0x324] sm:$0xf] %v15744_v5  ;;  %9002 = vst [vmem:[#allocation4 + $0x310] sm:$0xf] %v15744_v5  ;;  %11625 = vmatprep.mubr.bf16.mxu1 %v17005_v34  ;;  %v6988_v6 = vld [vmem:[#allocation3 + $0xb9] sm:$0xff]  ;;  %v17121_v14 = vld [vmem:[%s19351_s5 + $0x1c8] sm:$0xff]   ;;  %v6489_v33 = vpop.f32.mrf.mxu1 }
 0x40e   :  { %9299 = vst [vmem:[#allocation4 + $0x35c] sm:$0xf] %v15600_v16  ;;  %6941 = vst [vmem:[#allocation4 + $0x384] sm:$0xf] %v15600_v16  ;;  %v7283_v58 = vld [vmem:[#allocation3 + $0xba] sm:$0xff]  ;;  %11626 = vmatmul.mubr.bf16.gmra.mxu1 %v17003_v40  ;;  %v15647_v53 = vpack.c.bf16 %v6988_v6, %v6988_v6  ;;  %v6600_v1 = vmax.f32 %v6487_v23, 0.0  ;;  %v6490_v63 = vadd.f32 %v6489_v33, %v18434_v7 }
 0x40f   :  { %8120 = vst [vmem:[#allocation4 + $0x370] sm:$0xf] %v15600_v16  ;;  %8707 = vst [vmem:[#allocation4 + $0x30c] sm:$0xf] %v15890_v46  ;;  %v7578_v0 = vld [vmem:[#allocation3 + $0xbf] sm:$0xff]  ;;  %v15696_v48 = vpack.c.bf16 %v7283_v58, %v7283_v58  ;;  %v16254_v2 = vpop.f32.mrf.mxu1 }
 0x410   :  { %v15745_v22 = vpack.c.bf16 %v7578_v0, %v7578_v0  ;;  %v8462_v52 = vld [vmem:[#allocation3 + $0xbe] sm:$0xff]  ;;  %6647 = vst [vmem:[#allocation3 + $0xd0] sm:$0xff] %v6598_v32  ;;  %v17007_v43 = vld [vmem:[#allocation4 + $0x2d0] ss:$36 sps:$4 sm:$0xff]   ;;  %7234 = vst [vmem:[#allocation4 + $0x340] sm:$0xf] %v15647_v53  ;;  %v15603_v34 = vpack.c.bf16 %v6600_v1, %v6600_v1 }
 0x411   :  { %v17117_v29 = vld [vmem:[%s19351_s5 + $0x1d0] sm:$0xff]   ;;  %v15891_v3 = vpack.c.bf16 %v8462_v52, %v8462_v52  ;;  %v17009_v13 = vld [vmem:[#allocation4 + $0x2d4] ss:$36 sps:$4 sm:$0xff]   ;;  %7529 = vst [vmem:[#allocation4 + $0x344] sm:$0xf] %v15696_v48  ;;  %6648 = vst [vmem:[#allocation3 + $0xd8] sm:$0xff] %v6599_v25 }
 0x412   :  { %7824 = vst [vmem:[#allocation4 + $0x348] sm:$0xf] %v15745_v22  ;;  %8413 = vst [vmem:[#allocation4 + $0x32c] sm:$0xf] %v15647_v53  ;;  %v6989_v51 = vld [vmem:[#allocation3 + $0xc1] sm:$0xff]  ;;  %11401 = vmatprep.mubr.bf16.mxu0 %v17009_v13  ;;  %12012 = vmatpush2.bf16.msra.mxu1 %v17117_v29  ;;  %v6601_v17 = vmax.f32 %v6490_v63, 0.0  ;;  %v6494_v53 = vpop.f32.mrf.mxu1 }
 0x413   :  { %9003 = vst [vmem:[#allocation4 + $0x334] sm:$0xf] %v15745_v22  ;;  %v7284_v49 = vld [vmem:[#allocation3 + $0xc2] sm:$0xff]  ;;  %9300 = vst [vmem:[#allocation4 + $0x380] sm:$0xf] %v15601_v41  ;;  %v15648_v28 = vpack.c.bf16 %v6989_v51, %v6989_v51  ;;  %11402 = vmatmul.mubr.bf16.gmra.mxu0 %v17007_v43  ;;  %12013 = vmatprep.subr.bf16.mxu1 %v19362_v50 }
 0x414   :  { %v7579_v39 = vld [vmem:[#allocation3 + $0xc7] sm:$0xff]  ;;  %6942 = vst [vmem:[#allocation4 + $0x3a8] sm:$0xf] %v15601_v41  ;;  %8121 = vst [vmem:[#allocation4 + $0x394] sm:$0xf] %v15601_v41  ;;  %v15697_v21 = vpack.c.bf16 %v7284_v49, %v7284_v49  ;;  %v15604_v19 = vpack.c.bf16 %v6601_v17, %v6601_v17  ;;  %v16257_v43 = vpop.f32.mrf.mxu1 }
 0x415   :  { %8708 = vst [vmem:[#allocation4 + $0x330] sm:$0xf] %v15891_v3  ;;  %v15746_v20 = vpack.c.bf16 %v7579_v39, %v7579_v39  ;;  %v8463_v57 = vld [vmem:[#allocation3 + $0xc6] sm:$0xff]  ;;  %v17010_v42 = vld [vmem:[#allocation4 + $0x2d8] ss:$36 sps:$4 sm:$0xff]   ;;  %6649 = vst [vmem:[#allocation3 + $0xe0] sm:$0xff] %v6600_v1  ;;  %v6495_v3 = vadd.f32 %v6494_v53, %v18440_v12 }
 0x416   :  { %v15892_v45 = vpack.c.bf16 %v8463_v57, %v8463_v57  ;;  %v17012_v62 = vld [vmem:[#allocation4 + $0x2dc] ss:$36 sps:$4 sm:$0xff]   ;;  %7235 = vst [vmem:[#allocation4 + $0x364] sm:$0xf] %v15648_v28  ;;  %7530 = vst [vmem:[#allocation4 + $0x368] sm:$0xf] %v15697_v21  ;;  %12014 = vmatpush2.bf16.msra.mxu1 %v17121_v14  ;;  %v6497_v51 = vpop.f32.mrf.mxu1 }
 0x417   :  { %7825 = vst [vmem:[#allocation4 + $0x36c] sm:$0xf] %v15746_v20  ;;  %8414 = vst [vmem:[#allocation4 + $0x350] sm:$0xf] %v15648_v28  ;;  %11633 = vmatprep.mubr.bf16.mxu1 %v17012_v62  ;;  %v6990_v56 = vld [vmem:[#allocation3 + $0xc9] sm:$0xff]  ;;  %12015 = vmatprep.subr.bf16.mxu1 %v19362_v50  ;;  %v6602_v13 = vmax.f32 %v6495_v3, 0.0  ;;  %v6498_v12 = vadd.f32 %v6497_v51, %v18443_v55 }
 0x418   :  { %9004 = vst [vmem:[#allocation4 + $0x358] sm:$0xf] %v15746_v20  ;;  %9301 = vst [vmem:[#allocation4 + $0x3a4] sm:$0xf] %v15602_v26  ;;  %v7285_v10 = vld [vmem:[#allocation3 + $0xca] sm:$0xff]  ;;  %11634 = vmatmul.mubr.bf16.gmra.mxu1 %v17010_v42  ;;  %v15649_v16 = vpack.c.bf16 %v6990_v56, %v6990_v56  ;;  %v7286_v0 = vld [vmem:[#allocation3 + $0xd2] sm:$0xff] }
 0x419   :  { %6943 = vst [vmem:[#allocation4 + $0x3cc] sm:$0xf] %v15602_v26  ;;  %8122 = vst [vmem:[#allocation4 + $0x3b8] sm:$0xf] %v15602_v26  ;;  %v7580_v5 = vld [vmem:[#allocation3 + $0xcf] sm:$0xff]  ;;  %v15698_v40 = vpack.c.bf16 %v7285_v10, %v7285_v10  ;;  %v7581_v38 = vld [vmem:[#allocation3 + $0xd7] sm:$0xff]  ;;  %v15699_v22 = vpack.c.bf16 %v7286_v0, %v7286_v0  ;;  %v15605_v57 = vpack.c.bf16 %v6602_v13, %v6602_v13  ;;  %v16258_v26 = vpop.f32.mrf.mxu1 }
 0x41a   :  { %8709 = vst [vmem:[#allocation4 + $0x354] sm:$0xf] %v15892_v45  ;;  %v15747_v46 = vpack.c.bf16 %v7580_v5, %v7580_v5  ;;  %v8464_v54 = vld [vmem:[#allocation3 + $0xce] sm:$0xff]  ;;  %7236 = vst [vmem:[#allocation4 + $0x388] sm:$0xf] %v15649_v16  ;;  %v15748_v52 = vpack.c.bf16 %v7581_v38, %v7581_v38  ;;  %v8465_v41 = vld [vmem:[#allocation3 + $0xd6] sm:$0xff]  ;;  %12016 = vmatpush2.bf16.msra.mxu1 %v17125_v9 }
 0x41b   :  { %v15893_v32 = vpack.c.bf16 %v8464_v54, %v8464_v54  ;;  %v17013_v6 = vld [vmem:[#allocation4 + $0x318] ss:$36 sps:$4 sm:$0xff]   ;;  %7531 = vst [vmem:[#allocation4 + $0x38c] sm:$0xf] %v15698_v40  ;;  %8415 = vst [vmem:[#allocation4 + $0x374] sm:$0xf] %v15649_v16  ;;  %v15894_v29 = vpack.c.bf16 %v8465_v41, %v8465_v41  ;;  %v6502_v55 = vpop.f32.mrf.mxu1 }
 0x41c   :  { %v17015_v58 = vld [vmem:[#allocation4 + $0x31c] ss:$36 sps:$4 sm:$0xff]   ;;  %7826 = vst [vmem:[#allocation4 + $0x390] sm:$0xf] %v15747_v46  ;;  %9005 = vst [vmem:[#allocation4 + $0x37c] sm:$0xf] %v15747_v46  ;;  %v6503_v46 = vadd.f32 %v6502_v55, %v18448_v11 }
 0x41d   :  { %v6991_v7 = vld [vmem:[#allocation3 + $0xd1] sm:$0xff]  ;;  %9302 = vst [vmem:[#allocation4 + $0x3c8] sm:$0xf] %v15603_v34  ;;  %6944 = vst [vmem:[#allocation4 + $0x3f0] sm:$0xf] %v15603_v34  ;;  %11409 = vmatprep.mubr.bf16.mxu0 %v17015_v58  ;;  %v6992_v49 = vld [vmem:[#allocation3 + $0xd9] sm:$0xff] }
 0x41e   :  { %8123 = vst [vmem:[#allocation4 + $0x3dc] sm:$0xf] %v15603_v34  ;;  %8710 = vst [vmem:[#allocation4 + $0x378] sm:$0xf] %v15893_v32  ;;  %v15650_v48 = vpack.c.bf16 %v6991_v7, %v6991_v7  ;;  %v17016_v50 = vld [vmem:[#allocation4 + $0x320] ss:$36 sps:$4 sm:$0xff]   ;;  %11410 = vmatmul.mubr.bf16.gmra.mxu0 %v17013_v6  ;;  %v15651_v14 = vpack.c.bf16 %v6992_v49, %v6992_v49  ;;  %v16261_v34 = vpop.f32.mrf.mxu1 }
 0x41f   :  { %6650 = vst [vmem:[#allocation3 + $0xe8] sm:$0xff] %v6601_v17  ;;  %v17018_v25 = vld [vmem:[#allocation4 + $0x324] ss:$36 sps:$4 sm:$0xff]   ;;  %7532 = vst [vmem:[#allocation4 + $0x3b0] sm:$0xf] %v15699_v22  ;;  %v6603_v45 = vmax.f32 %v6498_v12, 0.0 }
 0x420   :  { %7237 = vst [vmem:[#allocation4 + $0x3ac] sm:$0xf] %v15650_v48  ;;  %7827 = vst [vmem:[#allocation4 + $0x3b4] sm:$0xf] %v15748_v52  ;;  %11641 = vmatprep.mubr.bf16.mxu1 %v17018_v25  ;;  %v7287_v39 = vld [vmem:[#allocation3 + $0xda] sm:$0xff]  ;;  %v6604_v2 = vmax.f32 %v6503_v46, 0.0  ;;  %v6505_v32 = vpop.f32.mrf.mxu1 }
 0x421   :  { %8416 = vst [vmem:[#allocation4 + $0x398] sm:$0xf] %v15650_v48  ;;  %9006 = vst [vmem:[#allocation4 + $0x3a0] sm:$0xf] %v15748_v52  ;;  %v7582_v35 = vld [vmem:[#allocation3 + $0xdf] sm:$0xff]  ;;  %11642 = vmatmul.mubr.bf16.gmra.mxu1 %v17016_v50  ;;  %v15700_v28 = vpack.c.bf16 %v7287_v39, %v7287_v39  ;;  %v15606_v63 = vpack.c.bf16 %v6603_v45, %v6603_v45  ;;  %v6506_v11 = vadd.f32 %v6505_v32, %v18451_v44 }
 0x422   :  { %9303 = vst [vmem:[#allocation4 + $0x3ec] sm:$0xf] %v15604_v19  ;;  %6945 = vst [vmem:[#allocation4 + $0x414] sm:$0xf] %v15604_v19  ;;  %v15749_v21 = vpack.c.bf16 %v7582_v35, %v7582_v35  ;;  %v8466_v20 = vld [vmem:[#allocation3 + $0xde] sm:$0xff]  ;;  %v15607_v48 = vpack.c.bf16 %v6604_v2, %v6604_v2  ;;  %v16262_v22 = vpop.f32.mrf.mxu1 }
 0x423   :  { %8124 = vst [vmem:[#allocation4 + $0x400] sm:$0xf] %v15604_v19  ;;  %8711 = vst [vmem:[#allocation4 + $0x39c] sm:$0xf] %v15894_v29  ;;  %v15895_v42 = vpack.c.bf16 %v8466_v20, %v8466_v20  ;;  %v17020_v23 = vld [vmem:[#allocation4 + $0x360] ss:$36 sps:$4 sm:$0xff]  }
 0x424   :  { %6651 = vst [vmem:[#allocation3 + $0xf0] sm:$0xff] %v6602_v13  ;;  %v17022_v62 = vld [vmem:[#allocation4 + $0x364] ss:$36 sps:$4 sm:$0xff]   ;;  %7238 = vst [vmem:[#allocation4 + $0x3d0] sm:$0xf] %v15651_v14  ;;  %v6605_v41 = vmax.f32 %v6506_v11, 0.0  ;;  %v6510_v44 = vpop.f32.mrf.mxu1 }
 0x425   :  { %7533 = vst [vmem:[#allocation4 + $0x3d4] sm:$0xf] %v15700_v28  ;;  %7828 = vst [vmem:[#allocation4 + $0x3d8] sm:$0xf] %v15749_v21  ;;  %11417 = vmatprep.mubr.bf16.mxu0 %v17022_v62  ;;  %v17023_v16 = vld [vmem:[#allocation4 + $0x368] ss:$36 sps:$4 sm:$0xff]  }
 0x426   :  { %8417 = vst [vmem:[#allocation4 + $0x3bc] sm:$0xf] %v15651_v14  ;;  %9007 = vst [vmem:[#allocation4 + $0x3c4] sm:$0xf] %v15749_v21  ;;  %v6993_v37 = vld [vmem:[#allocation3 + $0xe1] sm:$0xff]  ;;  %11418 = vmatmul.mubr.bf16.gmra.mxu0 %v17020_v23  ;;  %v15608_v39 = vpack.c.bf16 %v6605_v41, %v6605_v41  ;;  %v6511_v14 = vadd.f32 %v6510_v44, %v18456_v61  ;;  %v16265_v21 = vpop.f32.mrf.mxu1 }
 0x427   :  { %v7288_v1 = vld [vmem:[#allocation3 + $0xe2] sm:$0xff]  ;;  %9304 = vst [vmem:[#allocation4 + $0x410] sm:$0xf] %v15605_v57  ;;  %6946 = vst [vmem:[#allocation4 + $0x438] sm:$0xf] %v15605_v57  ;;  %v15652_v9 = vpack.c.bf16 %v6993_v37, %v6993_v37 }
 0x428   :  { %v7583_v33 = vld [vmem:[#allocation3 + $0xe7] sm:$0xff]  ;;  %8125 = vst [vmem:[#allocation4 + $0x424] sm:$0xf] %v15605_v57  ;;  %8712 = vst [vmem:[#allocation4 + $0x3c0] sm:$0xf] %v15895_v42  ;;  %v15701_v56 = vpack.c.bf16 %v7288_v1, %v7288_v1  ;;  %v6606_v20 = vmax.f32 %v6511_v14, 0.0  ;;  %v6513_v57 = vpop.f32.mrf.mxu1 }
 0x429   :  { %v15750_v10 = vpack.c.bf16 %v7583_v33, %v7583_v33  ;;  %v8467_v5 = vld [vmem:[#allocation3 + $0xe6] sm:$0xff]  ;;  %6652 = vst [vmem:[#allocation3 + $0xf8] sm:$0xff] %v6603_v45  ;;  %7239 = vst [vmem:[#allocation4 + $0x3f4] sm:$0xf] %v15652_v9  ;;  %v6514_v61 = vadd.f32 %v6513_v57, %v18459_v47 }
 0x42a   :  { %v15896_v40 = vpack.c.bf16 %v8467_v5, %v8467_v5  ;;  %v17025_v54 = vld [vmem:[#allocation4 + $0x36c] ss:$36 sps:$4 sm:$0xff]   ;;  %7534 = vst [vmem:[#allocation4 + $0x3f8] sm:$0xf] %v15701_v56  ;;  %8418 = vst [vmem:[#allocation4 + $0x3e0] sm:$0xf] %v15652_v9  ;;  %v15609_v33 = vpack.c.bf16 %v6606_v20, %v6606_v20  ;;  %v16266_v55 = vpop.f32.mrf.mxu1 }
 0x42b   :  { %7829 = vst [vmem:[#allocation4 + $0x3fc] sm:$0xf] %v15750_v10  ;;  %9008 = vst [vmem:[#allocation4 + $0x3e8] sm:$0xf] %v15750_v10  ;;  %11649 = vmatprep.mubr.bf16.mxu1 %v17025_v54  ;;  %v6994_v17 = vld [vmem:[#allocation3 + $0xe9] sm:$0xff]  ;;  %v6607_v56 = vmax.f32 %v6514_v61, 0.0 }
 0x42c   :  { %9305 = vst [vmem:[#allocation4 + $0x434] sm:$0xf] %v15606_v63  ;;  %6947 = vst [vmem:[#allocation4 + $0x45c] sm:$0xf] %v15606_v63  ;;  %v7289_v6 = vld [vmem:[#allocation3 + $0xea] sm:$0xff]  ;;  %11650 = vmatmul.mubr.bf16.gmra.mxu1 %v17023_v16  ;;  %v15653_v7 = vpack.c.bf16 %v6994_v17, %v6994_v17  ;;  %v6518_v47 = vpop.f32.mrf.mxu1 }
 0x42d   :  { %8126 = vst [vmem:[#allocation4 + $0x448] sm:$0xf] %v15606_v63  ;;  %8713 = vst [vmem:[#allocation4 + $0x3e4] sm:$0xf] %v15896_v40  ;;  %v7584_v58 = vld [vmem:[#allocation3 + $0xef] sm:$0xff]  ;;  %v15702_v0 = vpack.c.bf16 %v7289_v6, %v7289_v6  ;;  %v15610_v32 = vpack.c.bf16 %v6607_v56, %v6607_v56 }
 0x42e   :  { %v15751_v38 = vpack.c.bf16 %v7584_v58, %v7584_v58  ;;  %v8468_v53 = vld [vmem:[#allocation3 + $0xee] sm:$0xff]  ;;  %6653 = vst [vmem:[#allocation3 + $0x100] sm:$0xff] %v6604_v2  ;;  %v17027_v19 = vld [vmem:[#allocation4 + $0x3a8] ss:$36 sps:$4 sm:$0xff]   ;;  %7240 = vst [vmem:[#allocation4 + $0x418] sm:$0xf] %v15653_v7  ;;  %v6519_v58 = vadd.f32 %v6518_v47, %v18464_v31 }
 0x42f   :  { %v15897_v52 = vpack.c.bf16 %v8468_v53, %v8468_v53  ;;  %v17029_v50 = vld [vmem:[#allocation4 + $0x3ac] ss:$36 sps:$4 sm:$0xff]   ;;  %7535 = vst [vmem:[#allocation4 + $0x41c] sm:$0xf] %v15702_v0  ;;  %8419 = vst [vmem:[#allocation4 + $0x404] sm:$0xf] %v15653_v7  ;;  %v16269_v7 = vpop.f32.mrf.mxu1 }
 0x430   :  { %7830 = vst [vmem:[#allocation4 + $0x420] sm:$0xf] %v15751_v38  ;;  %9009 = vst [vmem:[#allocation4 + $0x40c] sm:$0xf] %v15751_v38  ;;  %v6995_v29 = vld [vmem:[#allocation3 + $0xf1] sm:$0xff]  ;;  %11425 = vmatprep.mubr.bf16.mxu0 %v17029_v50  ;;  %v6608_v0 = vmax.f32 %v6519_v58, 0.0 }
 0x431   :  { %v7290_v3 = vld [vmem:[#allocation3 + $0xf2] sm:$0xff]  ;;  %9306 = vst [vmem:[#allocation4 + $0x458] sm:$0xf] %v15607_v48  ;;  %6948 = vst [vmem:[#allocation4 + $0x480] sm:$0xf] %v15607_v48  ;;  %v15654_v43 = vpack.c.bf16 %v6995_v29, %v6995_v29  ;;  %11426 = vmatmul.mubr.bf16.gmra.mxu0 %v17027_v19  ;;  %v6521_v38 = vpop.f32.mrf.mxu1 }
 0x432   :  { %v7585_v25 = vld [vmem:[#allocation3 + $0xf7] sm:$0xff]  ;;  %8127 = vst [vmem:[#allocation4 + $0x46c] sm:$0xf] %v15607_v48  ;;  %8714 = vst [vmem:[#allocation4 + $0x408] sm:$0xf] %v15897_v52  ;;  %v15703_v13 = vpack.c.bf16 %v7290_v3, %v7290_v3  ;;  %v6522_v31 = vadd.f32 %v6521_v38, %v18467_v36  ;;  %v15611_v29 = vpack.c.bf16 %v6608_v0, %v6608_v0 }
 0x433   :  { %v15752_v51 = vpack.c.bf16 %v7585_v25, %v7585_v25  ;;  %v8469_v49 = vld [vmem:[#allocation3 + $0xf6] sm:$0xff]  ;;  %6654 = vst [vmem:[#allocation3 + $0x108] sm:$0xff] %v6605_v41  ;;  %v17030_v35 = vld [vmem:[#allocation4 + $0x3b0] ss:$36 sps:$4 sm:$0xff]   ;;  %7241 = vst [vmem:[#allocation4 + $0x43c] sm:$0xf] %v15654_v43  ;;  %v16270_v3 = vpop.f32.mrf.mxu1 }
 0x434   :  { %v15898_v12 = vpack.c.bf16 %v8469_v49, %v8469_v49  ;;  %v17032_v28 = vld [vmem:[#allocation4 + $0x3b4] ss:$36 sps:$4 sm:$0xff]   ;;  %7536 = vst [vmem:[#allocation4 + $0x440] sm:$0xf] %v15703_v13  ;;  %8420 = vst [vmem:[#allocation4 + $0x428] sm:$0xf] %v15654_v43 }
 0x435   :  { %7831 = vst [vmem:[#allocation4 + $0x444] sm:$0xf] %v15752_v51  ;;  %9010 = vst [vmem:[#allocation4 + $0x430] sm:$0xf] %v15752_v51  ;;  %11657 = vmatprep.mubr.bf16.mxu1 %v17032_v28  ;;  %v6996_v26 = vld [vmem:[#allocation3 + $0xf9] sm:$0xff]  ;;  %v6609_v44 = vmax.f32 %v6522_v31, 0.0  ;;  %v6526_v36 = vpop.f32.mrf.mxu1 }
 0x436   :  { %9307 = vst [vmem:[#allocation4 + $0x47c] sm:$0xf] %v15608_v39  ;;  %6949 = vst [vmem:[#allocation4 + $0x4a4] sm:$0xf] %v15608_v39  ;;  %v7291_v42 = vld [vmem:[#allocation3 + $0xfa] sm:$0xff]  ;;  %11658 = vmatmul.mubr.bf16.gmra.mxu1 %v17030_v35  ;;  %v15655_v23 = vpack.c.bf16 %v6996_v26, %v6996_v26  ;;  %v6527_v26 = vadd.f32 %v6526_v36, %v18472_v8 }
 0x437   :  { %8128 = vst [vmem:[#allocation4 + $0x490] sm:$0xf] %v15608_v39  ;;  %8715 = vst [vmem:[#allocation4 + $0x42c] sm:$0xf] %v15898_v12  ;;  %v7586_v45 = vld [vmem:[#allocation3 + $0xff] sm:$0xff]  ;;  %v15704_v62 = vpack.c.bf16 %v7291_v42, %v7291_v42  ;;  %v15612_v21 = vpack.c.bf16 %v6609_v44, %v6609_v44 }
 0x438   :  { %v15753_v37 = vpack.c.bf16 %v7586_v45, %v7586_v45  ;;  %v8470_v1 = vld [vmem:[#allocation3 + $0xfe] sm:$0xff]  ;;  %6655 = vst [vmem:[#allocation3 + $0x110] sm:$0xff] %v6606_v20  ;;  %v17033_v10 = vld [vmem:[#allocation4 + $0x3f0] ss:$36 sps:$4 sm:$0xff]   ;;  %7242 = vst [vmem:[#allocation4 + $0x460] sm:$0xf] %v15655_v23  ;;  %v16273_v45 = vpop.f32.mrf.mxu1 }
 0x439   :  { %v15899_v9 = vpack.c.bf16 %v8470_v1, %v8470_v1  ;;  %v17035_v5 = vld [vmem:[#allocation4 + $0x3f4] ss:$36 sps:$4 sm:$0xff]   ;;  %7537 = vst [vmem:[#allocation4 + $0x464] sm:$0xf] %v15704_v62  ;;  %8421 = vst [vmem:[#allocation4 + $0x44c] sm:$0xf] %v15655_v23 }
 0x43a   :  { %7832 = vst [vmem:[#allocation4 + $0x468] sm:$0xf] %v15753_v37  ;;  %9011 = vst [vmem:[#allocation4 + $0x454] sm:$0xf] %v15753_v37  ;;  %v6997_v63 = vld [vmem:[#allocation3 + $0x101] sm:$0xff]  ;;  %11433 = vmatprep.mubr.bf16.mxu0 %v17035_v5  ;;  %v6610_v61 = vmax.f32 %v6527_v26, 0.0  ;;  %v6529_v23 = vpop.f32.mrf.mxu1 }
 0x43b   :  { %v7292_v16 = vld [vmem:[#allocation3 + $0x102] sm:$0xff]  ;;  %9308 = vst [vmem:[#allocation4 + $0x4a0] sm:$0xf] %v15609_v33  ;;  %6950 = vst [vmem:[#allocation4 + $0x4c8] sm:$0xf] %v15609_v33  ;;  %v15656_v46 = vpack.c.bf16 %v6997_v63, %v6997_v63  ;;  %11434 = vmatmul.mubr.bf16.gmra.mxu0 %v17033_v10  ;;  %v6530_v8 = vadd.f32 %v6529_v23, %v18475_v59 }
 0x43c   :  { %v7587_v40 = vld [vmem:[#allocation3 + $0x107] sm:$0xff]  ;;  %8129 = vst [vmem:[#allocation4 + $0x4b4] sm:$0xf] %v15609_v33  ;;  %8716 = vst [vmem:[#allocation4 + $0x450] sm:$0xf] %v15899_v9  ;;  %v15705_v54 = vpack.c.bf16 %v7292_v16, %v7292_v16  ;;  %v15613_v10 = vpack.c.bf16 %v6610_v61, %v6610_v61  ;;  %v16274_v5 = vpop.f32.mrf.mxu1 }
 0x43d   :  { %v15754_v34 = vpack.c.bf16 %v7587_v40, %v7587_v40  ;;  %v8471_v2 = vld [vmem:[#allocation3 + $0x106] sm:$0xff]  ;;  %6656 = vst [vmem:[#allocation3 + $0x118] sm:$0xff] %v6607_v56  ;;  %v17036_v17 = vld [vmem:[#allocation4 + $0x3f8] ss:$36 sps:$4 sm:$0xff]   ;;  %7243 = vst [vmem:[#allocation4 + $0x484] sm:$0xf] %v15656_v46 }
 0x43e   :  { %v15900_v6 = vpack.c.bf16 %v8471_v2, %v8471_v2  ;;  %v17038_v11 = vld [vmem:[#allocation4 + $0x3fc] ss:$36 sps:$4 sm:$0xff]   ;;  %7538 = vst [vmem:[#allocation4 + $0x488] sm:$0xf] %v15705_v54  ;;  %8422 = vst [vmem:[#allocation4 + $0x470] sm:$0xf] %v15656_v46  ;;  %v6534_v59 = vpop.f32.mrf.mxu1 }
 0x43f   :  { %7833 = vst [vmem:[#allocation4 + $0x48c] sm:$0xf] %v15754_v34  ;;  %9012 = vst [vmem:[#allocation4 + $0x478] sm:$0xf] %v15754_v34  ;;  %11665 = vmatprep.mubr.bf16.mxu1 %v17038_v11  ;;  %v6998_v53 = vld [vmem:[#allocation3 + $0x109] sm:$0xff]  ;;  %v6611_v16 = vmax.f32 %v6530_v8, 0.0 }
 0x440   :  { %9309 = vst [vmem:[#allocation4 + $0x4c4] sm:$0xf] %v15610_v32  ;;  %6951 = vst [vmem:[#allocation4 + $0x4ec] sm:$0xf] %v15610_v32  ;;  %v7293_v48 = vld [vmem:[#allocation3 + $0x10a] sm:$0xff]  ;;  %11666 = vmatmul.mubr.bf16.gmra.mxu1 %v17036_v17  ;;  %v15657_v52 = vpack.c.bf16 %v6998_v53, %v6998_v53 }
 0x441   :  { %8130 = vst [vmem:[#allocation4 + $0x4d8] sm:$0xf] %v15610_v32  ;;  %8717 = vst [vmem:[#allocation4 + $0x474] sm:$0xf] %v15900_v6  ;;  %v7588_v22 = vld [vmem:[#allocation3 + $0x10f] sm:$0xff]  ;;  %v15706_v41 = vpack.c.bf16 %v7293_v48, %v7293_v48  ;;  %v15614_v58 = vpack.c.bf16 %v6611_v16, %v6611_v16  ;;  %v16277_v48 = vpop.f32.mrf.mxu1 }
 0x442   :  { %v15755_v19 = vpack.c.bf16 %v7588_v22, %v7588_v22  ;;  %v8472_v50 = vld [vmem:[#allocation3 + $0x10e] sm:$0xff]  ;;  %6657 = vst [vmem:[#allocation3 + $0x120] sm:$0xff] %v6608_v0  ;;  %7244 = vst [vmem:[#allocation4 + $0x4a8] sm:$0xf] %v15657_v52  ;;  %v17043_v20 = vld [vmem:[#allocation4 + $0x440] ss:$36 sps:$4 sm:$0xff]  }
 0x443   :  { %v15901_v25 = vpack.c.bf16 %v8472_v50, %v8472_v50  ;;  %v17040_v43 = vld [vmem:[#allocation4 + $0x438] ss:$36 sps:$4 sm:$0xff]   ;;  %7539 = vst [vmem:[#allocation4 + $0x4ac] sm:$0xf] %v15706_v41  ;;  %8423 = vst [vmem:[#allocation4 + $0x494] sm:$0xf] %v15657_v52  ;;  %v6537_v31 = vpop.f32.mrf.mxu1 }
 0x444   :  { %v17042_v13 = vld [vmem:[#allocation4 + $0x43c] ss:$36 sps:$4 sm:$0xff]   ;;  %7834 = vst [vmem:[#allocation4 + $0x4b0] sm:$0xf] %v15755_v19  ;;  %9013 = vst [vmem:[#allocation4 + $0x49c] sm:$0xf] %v15755_v19  ;;  %v6538_v50 = vadd.f32 %v6537_v31, %v18483_v15 }
 0x445   :  { %v6999_v51 = vld [vmem:[#allocation3 + $0x111] sm:$0xff]  ;;  %9310 = vst [vmem:[#allocation4 + $0x4e8] sm:$0xf] %v15611_v29  ;;  %6952 = vst [vmem:[#allocation4 + $0x510] sm:$0xf] %v15611_v29  ;;  %11441 = vmatprep.mubr.bf16.mxu0 %v17042_v13  ;;  %v19369_v0 = vld [vmem:[#allocation10_spill] sm:$0xff]  ;;  %v16278_v13 = vpop.f32.mrf.mxu1 }
 0x446   :  { %v7294_v49 = vld [vmem:[#allocation3 + $0x112] sm:$0xff]  ;;  %8131 = vst [vmem:[#allocation4 + $0x4fc] sm:$0xf] %v15611_v29  ;;  %8718 = vst [vmem:[#allocation4 + $0x498] sm:$0xf] %v15901_v25  ;;  %v15658_v35 = vpack.c.bf16 %v6999_v51, %v6999_v51  ;;  %11442 = vmatmul.mubr.bf16.gmra.mxu0 %v17040_v43  ;;  %v6535_v38 = vadd.f32 %v6534_v59, %v19369_v0 }
 0x447   :  { %v7589_v39 = vld [vmem:[#allocation3 + $0x117] sm:$0xff]  ;;  %v15707_v12 = vpack.c.bf16 %v7294_v49, %v7294_v49  ;;  %6658 = vst [vmem:[#allocation3 + $0x128] sm:$0xff] %v6609_v44  ;;  %9311 = vst [vmem:[#allocation4 + $0x50c] sm:$0xf] %v15612_v21  ;;  %v6613_v49 = vmax.f32 %v6538_v50, 0.0  ;;  %v6542_v15 = vpop.f32.mrf.mxu1 }
 0x448   :  { %v15756_v14 = vpack.c.bf16 %v7589_v39, %v7589_v39  ;;  %v8473_v28 = vld [vmem:[#allocation3 + $0x116] sm:$0xff]  ;;  %7245 = vst [vmem:[#allocation4 + $0x4cc] sm:$0xf] %v15658_v35  ;;  %8424 = vst [vmem:[#allocation4 + $0x4b8] sm:$0xf] %v15658_v35  ;;  %v6612_v22 = vmax.f32 %v6535_v38, 0.0 }
 0x449   :  { %v15902_v57 = vpack.c.bf16 %v8473_v28, %v8473_v28  ;;  %v17045_v42 = vld [vmem:[#allocation4 + $0x444] ss:$36 sps:$4 sm:$0xff]   ;;  %7540 = vst [vmem:[#allocation4 + $0x4d0] sm:$0xf] %v15707_v12  ;;  %6953 = vst [vmem:[#allocation4 + $0x534] sm:$0xf] %v15612_v21  ;;  %v15616_v26 = vpack.c.bf16 %v6613_v49, %v6613_v49 }
 0x44a   :  { %7835 = vst [vmem:[#allocation4 + $0x4d4] sm:$0xf] %v15756_v14  ;;  %9014 = vst [vmem:[#allocation4 + $0x4c0] sm:$0xf] %v15756_v14  ;;  %11673 = vmatprep.mubr.bf16.mxu1 %v17045_v42  ;;  %v7000_v62 = vld [vmem:[#allocation3 + $0x119] sm:$0xff]  ;;  %v15615_v43 = vpack.c.bf16 %v6612_v22, %v6612_v22 }
 0x44b   :  { %8132 = vst [vmem:[#allocation4 + $0x520] sm:$0xf] %v15612_v21  ;;  %8719 = vst [vmem:[#allocation4 + $0x4bc] sm:$0xf] %v15902_v57  ;;  %v7295_v37 = vld [vmem:[#allocation3 + $0x11a] sm:$0xff]  ;;  %11674 = vmatmul.mubr.bf16.gmra.mxu1 %v17043_v20  ;;  %v15659_v33 = vpack.c.bf16 %v7000_v62, %v7000_v62  ;;  %v16281_v62 = vpop.f32.mrf.mxu1 }
 0x44c   :  { %v7590_v1 = vld [vmem:[#allocation3 + $0x11f] sm:$0xff]  ;;  %v15708_v55 = vpack.c.bf16 %v7295_v37, %v7295_v37  ;;  %6659 = vst [vmem:[#allocation3 + $0x130] sm:$0xff] %v6610_v61  ;;  %9312 = vst [vmem:[#allocation4 + $0x530] sm:$0xf] %v15613_v10  ;;  %v6543_v61 = vadd.f32 %v6542_v15, %v18488_v4  ;;  %v19370_v4 = vld [vmem:[#allocation7_spill] sm:$0xff] }
 0x44d   :  { %v15757_v9 = vpack.c.bf16 %v7590_v1, %v7590_v1  ;;  %v8474_v56 = vld [vmem:[#allocation3 + $0x11e] sm:$0xff]  ;;  %7246 = vst [vmem:[#allocation4 + $0x4f0] sm:$0xf] %v15659_v33  ;;  %8425 = vst [vmem:[#allocation4 + $0x4dc] sm:$0xf] %v15659_v33  ;;  %v6545_v1 = vpop.f32.mrf.mxu1 }
 0x44e   :  { %v15903_v63 = vpack.c.bf16 %v8474_v56, %v8474_v56  ;;  %v17047_v40 = vld [vmem:[#allocation4 + $0x480] ss:$36 sps:$4 sm:$0xff]   ;;  %7541 = vst [vmem:[#allocation4 + $0x4f4] sm:$0xf] %v15708_v55  ;;  %v7001_v46 = vld [vmem:[#allocation3 + $0x121] sm:$0xff]  ;;  %6660 = vst [vmem:[#allocation3 + $0x138] sm:$0xff] %v6611_v16 }
 0x44f   :  { %v17049_v47 = vld [vmem:[#allocation4 + $0x484] ss:$36 sps:$4 sm:$0xff]   ;;  %7836 = vst [vmem:[#allocation4 + $0x4f8] sm:$0xf] %v15757_v9  ;;  %9015 = vst [vmem:[#allocation4 + $0x4e4] sm:$0xf] %v15757_v9  ;;  %v15660_v2 = vpack.c.bf16 %v7001_v46, %v7001_v46  ;;  %v6546_v9 = vadd.f32 %v6545_v1, %v19370_v4 }
 0x450   :  { %v7296_v54 = vld [vmem:[#allocation3 + $0x122] sm:$0xff]  ;;  %6954 = vst [vmem:[#allocation4 + $0x558] sm:$0xf] %v15613_v10  ;;  %8133 = vst [vmem:[#allocation4 + $0x544] sm:$0xf] %v15613_v10  ;;  %11449 = vmatprep.mubr.bf16.mxu0 %v17049_v47  ;;  %v6614_v37 = vmax.f32 %v6543_v61, 0.0 }
 0x451   :  { %v7591_v34 = vld [vmem:[#allocation3 + $0x127] sm:$0xff]  ;;  %8720 = vst [vmem:[#allocation4 + $0x4e0] sm:$0xf] %v15903_v63  ;;  %v15709_v32 = vpack.c.bf16 %v7296_v54, %v7296_v54  ;;  %11450 = vmatmul.mubr.bf16.gmra.mxu0 %v17047_v40  ;;  %7247 = vst [vmem:[#allocation4 + $0x514] sm:$0xf] %v15660_v2  ;;  %v16282_v40 = vpop.f32.mrf.mxu1  ;;  %v6615_v46 = vmax.f32 %v6546_v9, 0.0 }
 0x452   :  { %v15758_v17 = vpack.c.bf16 %v7591_v34, %v7591_v34  ;;  %v8475_v6 = vld [vmem:[#allocation3 + $0x126] sm:$0xff]  ;;  %8426 = vst [vmem:[#allocation4 + $0x500] sm:$0xf] %v15660_v2  ;;  %9313 = vst [vmem:[#allocation4 + $0x554] sm:$0xf] %v15614_v58  ;;  %v15617_v16 = vpack.c.bf16 %v6614_v37, %v6614_v37 }
 0x453   :  { %v17050_v11 = vld [vmem:[#allocation4 + $0x488] ss:$36 sps:$4 sm:$0xff]   ;;  %v15904_v7 = vpack.c.bf16 %v8475_v6, %v8475_v6  ;;  %7542 = vst [vmem:[#allocation4 + $0x518] sm:$0xf] %v15709_v32  ;;  %6955 = vst [vmem:[#allocation4 + $0x57c] sm:$0xf] %v15614_v58  ;;  %v15618_v0 = vpack.c.bf16 %v6615_v46, %v6615_v46 }
 0x454   :  { %v17052_v53 = vld [vmem:[#allocation4 + $0x48c] ss:$36 sps:$4 sm:$0xff]   ;;  %7837 = vst [vmem:[#allocation4 + $0x51c] sm:$0xf] %v15758_v17  ;;  %9016 = vst [vmem:[#allocation4 + $0x508] sm:$0xf] %v15758_v17  ;;  %v6550_v17 = vpop.f32.mrf.mxu1 }
 0x455   :  { %8134 = vst [vmem:[#allocation4 + $0x568] sm:$0xf] %v15614_v58  ;;  %8721 = vst [vmem:[#allocation4 + $0x504] sm:$0xf] %v15904_v7  ;;  %11681 = vmatprep.mubr.bf16.mxu1 %v17052_v53  ;;  %v7002_v52 = vld [vmem:[#allocation3 + $0x129] sm:$0xff]  ;;  %v7003_v35 = vld [vmem:[#allocation3 + $0x131] sm:$0xff]  ;;  %v6551_v48 = vadd.f32 %v6550_v17, %v18496_v60 }
 0x456   :  { %v7297_v41 = vld [vmem:[#allocation3 + $0x12a] sm:$0xff]  ;;  %11682 = vmatmul.mubr.bf16.gmra.mxu1 %v17050_v11  ;;  %v15661_v29 = vpack.c.bf16 %v7002_v52, %v7002_v52  ;;  %6661 = vst [vmem:[#allocation3 + $0x140] sm:$0xff] %v6612_v22  ;;  %v17053_v39 = vld [vmem:[#allocation4 + $0x4c8] ss:$36 sps:$4 sm:$0xff]   ;;  %v7298_v12 = vld [vmem:[#allocation3 + $0x132] sm:$0xff]  ;;  %v15662_v28 = vpack.c.bf16 %v7003_v35, %v7003_v35  ;;  %v16285_v31 = vpop.f32.mrf.mxu1 }
 0x457   :  { %v7592_v19 = vld [vmem:[#allocation3 + $0x12f] sm:$0xff]  ;;  %v15710_v3 = vpack.c.bf16 %v7297_v41, %v7297_v41  ;;  %v17055_v36 = vld [vmem:[#allocation4 + $0x4cc] ss:$36 sps:$4 sm:$0xff]   ;;  %v7593_v14 = vld [vmem:[#allocation3 + $0x137] sm:$0xff]  ;;  %9314 = vst [vmem:[#allocation4 + $0x578] sm:$0xf] %v15615_v43  ;;  %v15711_v21 = vpack.c.bf16 %v7298_v12, %v7298_v12 }
 0x458   :  { %v15759_v25 = vpack.c.bf16 %v7592_v19, %v7592_v19  ;;  %v8476_v44 = vld [vmem:[#allocation3 + $0x12e] sm:$0xff]  ;;  %7248 = vst [vmem:[#allocation4 + $0x538] sm:$0xf] %v15661_v29  ;;  %8427 = vst [vmem:[#allocation4 + $0x524] sm:$0xf] %v15661_v29  ;;  %v15760_v20 = vpack.c.bf16 %v7593_v14, %v7593_v14  ;;  %v8477_v57 = vld [vmem:[#allocation3 + $0x136] sm:$0xff]  ;;  %11457 = vmatprep.mubr.bf16.mxu0 %v17055_v36  ;;  %v6553_v41 = vpop.f32.mrf.mxu1 }
 0x459   :  { %v15905_v51 = vpack.c.bf16 %v8476_v44, %v8476_v44  ;;  %7543 = vst [vmem:[#allocation4 + $0x53c] sm:$0xf] %v15710_v3  ;;  %6956 = vst [vmem:[#allocation4 + $0x5a0] sm:$0xf] %v15615_v43  ;;  %v17056_v42 = vld [vmem:[#allocation4 + $0x4d0] ss:$36 sps:$4 sm:$0xff]   ;;  %v15906_v45 = vpack.c.bf16 %v8477_v57, %v8477_v57  ;;  %11458 = vmatmul.mubr.bf16.gmra.mxu0 %v17053_v39  ;;  %v6554_v60 = vadd.f32 %v6553_v41, %v18499_v24 }
 0x45a   :  { %7838 = vst [vmem:[#allocation4 + $0x540] sm:$0xf] %v15759_v25  ;;  %9017 = vst [vmem:[#allocation4 + $0x52c] sm:$0xf] %v15759_v25  ;;  %v17058_v23 = vld [vmem:[#allocation4 + $0x4d4] ss:$36 sps:$4 sm:$0xff]  }
 0x45b   :  { %8135 = vst [vmem:[#allocation4 + $0x58c] sm:$0xf] %v15615_v43  ;;  %8722 = vst [vmem:[#allocation4 + $0x528] sm:$0xf] %v15905_v51  ;;  %11689 = vmatprep.mubr.bf16.mxu1 %v17058_v23  ;;  %v17062_v54 = vld [vmem:[#allocation4 + $0x510] ss:$36 sps:$4 sm:$0xff]   ;;  %v16286_v51 = vpop.f32.mrf.mxu1 }
 0x45c   :  { %6662 = vst [vmem:[#allocation3 + $0x148] sm:$0xff] %v6613_v49  ;;  %7249 = vst [vmem:[#allocation4 + $0x55c] sm:$0xf] %v15662_v28  ;;  %v6616_v52 = vmax.f32 %v6551_v48, 0.0  ;;  %v6617_v39 = vmax.f32 %v6554_v60, 0.0 }
 0x45d   :  { %7544 = vst [vmem:[#allocation4 + $0x560] sm:$0xf] %v15711_v21  ;;  %7839 = vst [vmem:[#allocation4 + $0x564] sm:$0xf] %v15760_v20  ;;  %v7004_v8 = vld [vmem:[#allocation3 + $0x139] sm:$0xff]  ;;  %v6558_v24 = vpop.f32.mrf.mxu1 }
 0x45e   :  { %8428 = vst [vmem:[#allocation4 + $0x548] sm:$0xf] %v15662_v28  ;;  %9018 = vst [vmem:[#allocation4 + $0x550] sm:$0xf] %v15760_v20  ;;  %v7299_v33 = vld [vmem:[#allocation3 + $0x13a] sm:$0xff]  ;;  %11690 = vmatmul.mubr.bf16.gmra.mxu1 %v17056_v42  ;;  %v15663_v56 = vpack.c.bf16 %v7004_v8, %v7004_v8  ;;  %v15619_v13 = vpack.c.bf16 %v6616_v52, %v6616_v52  ;;  %v6559_v61 = vadd.f32 %v6558_v24, %v18504_v27 }
 0x45f   :  { %9315 = vst [vmem:[#allocation4 + $0x59c] sm:$0xf] %v15616_v26  ;;  %6957 = vst [vmem:[#allocation4 + $0x5c4] sm:$0xf] %v15616_v26  ;;  %v7594_v55 = vld [vmem:[#allocation3 + $0x13f] sm:$0xff]  ;;  %v15712_v10 = vpack.c.bf16 %v7299_v33, %v7299_v33  ;;  %v16289_v62 = vpop.f32.mrf.mxu1 }
 0x460   :  { %8136 = vst [vmem:[#allocation4 + $0x5b0] sm:$0xf] %v15616_v26  ;;  %8723 = vst [vmem:[#allocation4 + $0x54c] sm:$0xf] %v15906_v45  ;;  %v15761_v5 = vpack.c.bf16 %v7594_v55, %v7594_v55  ;;  %v8478_v63 = vld [vmem:[#allocation3 + $0x13e] sm:$0xff]  ;;  %v15620_v26 = vpack.c.bf16 %v6617_v39, %v6617_v39 }
 0x461   :  { %6663 = vst [vmem:[#allocation3 + $0x150] sm:$0xff] %v6614_v37  ;;  %v15907_v47 = vpack.c.bf16 %v8478_v63, %v8478_v63  ;;  %v17064_v34 = vld [vmem:[#allocation4 + $0x514] ss:$36 sps:$4 sm:$0xff]   ;;  %7250 = vst [vmem:[#allocation4 + $0x580] sm:$0xf] %v15663_v56  ;;  %v6618_v37 = vmax.f32 %v6559_v61, 0.0  ;;  %v6561_v1 = vpop.f32.mrf.mxu1 }
 0x462   :  { %7545 = vst [vmem:[#allocation4 + $0x584] sm:$0xf] %v15712_v10  ;;  %7840 = vst [vmem:[#allocation4 + $0x588] sm:$0xf] %v15761_v5  ;;  %11465 = vmatprep.mubr.bf16.mxu0 %v17064_v34  ;;  %v17065_v38 = vld [vmem:[#allocation4 + $0x518] ss:$36 sps:$4 sm:$0xff]   ;;  %v6562_v27 = vadd.f32 %v6561_v1, %v18507_v30 }
 0x463   :  { %8429 = vst [vmem:[#allocation4 + $0x56c] sm:$0xf] %v15663_v56  ;;  %9019 = vst [vmem:[#allocation4 + $0x574] sm:$0xf] %v15761_v5  ;;  %v7005_v59 = vld [vmem:[#allocation3 + $0x141] sm:$0xff]  ;;  %11466 = vmatmul.mubr.bf16.gmra.mxu0 %v17062_v54  ;;  %v15621_v5 = vpack.c.bf16 %v6618_v37, %v6618_v37  ;;  %v16290_v63 = vpop.f32.mrf.mxu1 }
 0x464   :  { %v7300_v2 = vld [vmem:[#allocation3 + $0x142] sm:$0xff]  ;;  %9316 = vst [vmem:[#allocation4 + $0x5c0] sm:$0xf] %v15617_v16  ;;  %6958 = vst [vmem:[#allocation4 + $0x5e8] sm:$0xf] %v15617_v16  ;;  %v15664_v6 = vpack.c.bf16 %v7005_v59, %v7005_v59  ;;  %v6619_v40 = vmax.f32 %v6562_v27, 0.0 }
 0x465   :  { %v7595_v32 = vld [vmem:[#allocation3 + $0x147] sm:$0xff]  ;;  %8137 = vst [vmem:[#allocation4 + $0x5d4] sm:$0xf] %v15617_v16  ;;  %8724 = vst [vmem:[#allocation4 + $0x570] sm:$0xf] %v15907_v47  ;;  %v15713_v58 = vpack.c.bf16 %v7300_v2, %v7300_v2  ;;  %v6566_v30 = vpop.f32.mrf.mxu1 }
 0x466   :  { %v15762_v11 = vpack.c.bf16 %v7595_v32, %v7595_v32  ;;  %v8479_v7 = vld [vmem:[#allocation3 + $0x146] sm:$0xff]  ;;  %6664 = vst [vmem:[#allocation3 + $0x158] sm:$0xff] %v6615_v46  ;;  %v17067_v22 = vld [vmem:[#allocation4 + $0x51c] ss:$36 sps:$4 sm:$0xff]   ;;  %7251 = vst [vmem:[#allocation4 + $0x5a4] sm:$0xf] %v15664_v6 }
 0x467   :  { %v15908_v53 = vpack.c.bf16 %v8479_v7, %v8479_v7  ;;  %7546 = vst [vmem:[#allocation4 + $0x5a8] sm:$0xf] %v15713_v58  ;;  %8430 = vst [vmem:[#allocation4 + $0x590] sm:$0xf] %v15664_v6  ;;  %11697 = vmatprep.mubr.bf16.mxu1 %v17067_v22  ;;  %v17071_v36 = vld [vmem:[#allocation4 + $0x558] ss:$36 sps:$4 sm:$0xff]   ;;  %v15622_v58 = vpack.c.bf16 %v6619_v40, %v6619_v40 }
 0x468   :  { %7841 = vst [vmem:[#allocation4 + $0x5ac] sm:$0xf] %v15762_v11  ;;  %9020 = vst [vmem:[#allocation4 + $0x598] sm:$0xf] %v15762_v11  ;;  %v7006_v19 = vld [vmem:[#allocation3 + $0x149] sm:$0xff]  ;;  %11698 = vmatmul.mubr.bf16.gmra.mxu1 %v17065_v38 }
 0x469   :  { %9317 = vst [vmem:[#allocation4 + $0x5e4] sm:$0xf] %v15618_v0  ;;  %6959 = vst [vmem:[#allocation4 + $0x60c] sm:$0xf] %v15618_v0  ;;  %v7301_v50 = vld [vmem:[#allocation3 + $0x14a] sm:$0xff]  ;;  %v15665_v3 = vpack.c.bf16 %v7006_v19, %v7006_v19 }
 0x46a   :  { %8138 = vst [vmem:[#allocation4 + $0x5f8] sm:$0xf] %v15618_v0  ;;  %8725 = vst [vmem:[#allocation4 + $0x594] sm:$0xf] %v15908_v53  ;;  %v7596_v29 = vld [vmem:[#allocation3 + $0x14f] sm:$0xff]  ;;  %v15714_v25 = vpack.c.bf16 %v7301_v50, %v7301_v50  ;;  %v6567_v0 = vadd.f32 %v6566_v30, %v18513_v18  ;;  %v16293_v53 = vpop.f32.mrf.mxu1 }
 0x46b   :  { %v15763_v44 = vpack.c.bf16 %v7596_v29, %v7596_v29  ;;  %v8480_v43 = vld [vmem:[#allocation3 + $0x14e] sm:$0xff]  ;;  %6665 = vst [vmem:[#allocation3 + $0x160] sm:$0xff] %v6616_v52  ;;  %7252 = vst [vmem:[#allocation4 + $0x5c8] sm:$0xf] %v15665_v3  ;;  %v17074_v42 = vld [vmem:[#allocation4 + $0x560] ss:$36 sps:$4 sm:$0xff]  }
 0x46c   :  { %v15909_v49 = vpack.c.bf16 %v8480_v43, %v8480_v43  ;;  %v17073_v35 = vld [vmem:[#allocation4 + $0x55c] ss:$36 sps:$4 sm:$0xff]   ;;  %7547 = vst [vmem:[#allocation4 + $0x5cc] sm:$0xf] %v15714_v25  ;;  %8431 = vst [vmem:[#allocation4 + $0x5b4] sm:$0xf] %v15665_v3  ;;  %v6569_v22 = vpop.f32.mrf.mxu1 }
 0x46d   :  { %7842 = vst [vmem:[#allocation4 + $0x5d0] sm:$0xf] %v15763_v44  ;;  %9021 = vst [vmem:[#allocation4 + $0x5bc] sm:$0xf] %v15763_v44  ;;  %v7007_v12 = vld [vmem:[#allocation3 + $0x151] sm:$0xff]  ;;  %11473 = vmatprep.mubr.bf16.mxu0 %v17073_v35  ;;  %v6620_v48 = vmax.f32 %v6567_v0, 0.0 }
 0x46e   :  { %v7302_v14 = vld [vmem:[#allocation3 + $0x152] sm:$0xff]  ;;  %9318 = vst [vmem:[#allocation4 + $0x608] sm:$0xf] %v15619_v13  ;;  %6960 = vst [vmem:[#allocation4 + $0x630] sm:$0xf] %v15619_v13  ;;  %v15666_v28 = vpack.c.bf16 %v7007_v12, %v7007_v12  ;;  %11474 = vmatmul.mubr.bf16.gmra.mxu0 %v17071_v36  ;;  %v16294_v3 = vpop.f32.mrf.mxu1 }
 0x46f   :  { %v7597_v15 = vld [vmem:[#allocation3 + $0x157] sm:$0xff]  ;;  %8139 = vst [vmem:[#allocation4 + $0x61c] sm:$0xf] %v15619_v13  ;;  %8726 = vst [vmem:[#allocation4 + $0x5b8] sm:$0xf] %v15909_v49  ;;  %v15715_v21 = vpack.c.bf16 %v7302_v14, %v7302_v14  ;;  %v15623_v60 = vpack.c.bf16 %v6620_v48, %v6620_v48 }
 0x470   :  { %v15764_v20 = vpack.c.bf16 %v7597_v15, %v7597_v15  ;;  %v8481_v57 = vld [vmem:[#allocation3 + $0x156] sm:$0xff]  ;;  %6666 = vst [vmem:[#allocation3 + $0x168] sm:$0xff] %v6617_v39  ;;  %7253 = vst [vmem:[#allocation4 + $0x5ec] sm:$0xf] %v15666_v28  ;;  %v17088_v44 = vld [vmem:[#allocation4 + $0x5e8] ss:$36 sps:$4 sm:$0xff]  }
 0x471   :  { %v15910_v45 = vpack.c.bf16 %v8481_v57, %v8481_v57  ;;  %v17076_v23 = vld [vmem:[#allocation4 + $0x564] ss:$36 sps:$4 sm:$0xff]   ;;  %7548 = vst [vmem:[#allocation4 + $0x5f0] sm:$0xf] %v15715_v21  ;;  %8432 = vst [vmem:[#allocation4 + $0x5d8] sm:$0xf] %v15666_v28 }
 0x472   :  { %7843 = vst [vmem:[#allocation4 + $0x5f4] sm:$0xf] %v15764_v20  ;;  %9022 = vst [vmem:[#allocation4 + $0x5e0] sm:$0xf] %v15764_v20  ;;  %11705 = vmatprep.mubr.bf16.mxu1 %v17076_v23  ;;  %v7008_v8 = vld [vmem:[#allocation3 + $0x159] sm:$0xff] }
 0x473   :  { %9319 = vst [vmem:[#allocation4 + $0x62c] sm:$0xf] %v15620_v26  ;;  %6961 = vst [vmem:[#allocation4 + $0x654] sm:$0xf] %v15620_v26  ;;  %v7303_v33 = vld [vmem:[#allocation3 + $0x15a] sm:$0xff]  ;;  %11706 = vmatmul.mubr.bf16.gmra.mxu1 %v17074_v42  ;;  %v15667_v4 = vpack.c.bf16 %v7008_v8, %v7008_v8 }
 0x474   :  { %8140 = vst [vmem:[#allocation4 + $0x640] sm:$0xf] %v15620_v26  ;;  %8727 = vst [vmem:[#allocation4 + $0x5dc] sm:$0xf] %v15910_v45  ;;  %v7598_v55 = vld [vmem:[#allocation3 + $0x15f] sm:$0xff]  ;;  %v15716_v9 = vpack.c.bf16 %v7303_v33, %v7303_v33 }
 0x475   :  { %v15765_v56 = vpack.c.bf16 %v7598_v55, %v7598_v55  ;;  %v8482_v10 = vld [vmem:[#allocation3 + $0x15e] sm:$0xff]  ;;  %6667 = vst [vmem:[#allocation3 + $0x170] sm:$0xff] %v6618_v37  ;;  %7254 = vst [vmem:[#allocation4 + $0x610] sm:$0xf] %v15667_v4 }
 0x476   :  { %v15911_v16 = vpack.c.bf16 %v8482_v10, %v8482_v10  ;;  %v17079_v47 = vld [vmem:[#allocation4 + $0x5a0] ss:$36 sps:$4 sm:$0xff]   ;;  %7549 = vst [vmem:[#allocation4 + $0x614] sm:$0xf] %v15716_v9  ;;  %8433 = vst [vmem:[#allocation4 + $0x5fc] sm:$0xf] %v15667_v4 }
 0x477   :  { %v17081_v46 = vld [vmem:[#allocation4 + $0x5a4] ss:$36 sps:$4 sm:$0xff]   ;;  %7844 = vst [vmem:[#allocation4 + $0x618] sm:$0xf] %v15765_v56  ;;  %9023 = vst [vmem:[#allocation4 + $0x604] sm:$0xf] %v15765_v56 }
 0x478   :  { %v7009_v54 = vld [vmem:[#allocation3 + $0x161] sm:$0xff]  ;;  %9320 = vst [vmem:[#allocation4 + $0x650] sm:$0xf] %v15621_v5  ;;  %6962 = vst [vmem:[#allocation4 + $0x678] sm:$0xf] %v15621_v5  ;;  %11481 = vmatprep.mubr.bf16.mxu0 %v17081_v46 }
 0x479   :  { %v7304_v34 = vld [vmem:[#allocation3 + $0x162] sm:$0xff]  ;;  %8141 = vst [vmem:[#allocation4 + $0x664] sm:$0xf] %v15621_v5  ;;  %8728 = vst [vmem:[#allocation4 + $0x600] sm:$0xf] %v15911_v16  ;;  %v15668_v2 = vpack.c.bf16 %v7009_v54, %v7009_v54  ;;  %11482 = vmatmul.mubr.bf16.gmra.mxu0 %v17079_v47 }
 0x47a   :  { %v7599_v59 = vld [vmem:[#allocation3 + $0x167] sm:$0xff]  ;;  %v15717_v32 = vpack.c.bf16 %v7304_v34, %v7304_v34  ;;  %6668 = vst [vmem:[#allocation3 + $0x178] sm:$0xff] %v6619_v40  ;;  %9321 = vst [vmem:[#allocation4 + $0x674] sm:$0xf] %v15622_v58 }
 0x47b   :  { %v15766_v17 = vpack.c.bf16 %v7599_v59, %v7599_v59  ;;  %v8483_v6 = vld [vmem:[#allocation3 + $0x166] sm:$0xff]  ;;  %7255 = vst [vmem:[#allocation4 + $0x634] sm:$0xf] %v15668_v2  ;;  %8434 = vst [vmem:[#allocation4 + $0x620] sm:$0xf] %v15668_v2  ;;  %v11323_v2 = vpop.f32.mrf.mxu0 }
 0x47c   :  { %v17082_v11 = vld [vmem:[#allocation4 + $0x5a8] ss:$36 sps:$4 sm:$0xff]   ;;  %v15912_v7 = vpack.c.bf16 %v8483_v6, %v8483_v6  ;;  %7550 = vst [vmem:[#allocation4 + $0x638] sm:$0xf] %v15717_v32  ;;  %6963 = vst [vmem:[#allocation4 + $0x69c] sm:$0xf] %v15622_v58 }
 0x47d   :  { %v17084_v38 = vld [vmem:[#allocation4 + $0x5ac] ss:$36 sps:$4 sm:$0xff]   ;;  %7845 = vst [vmem:[#allocation4 + $0x63c] sm:$0xf] %v15766_v17  ;;  %9024 = vst [vmem:[#allocation4 + $0x628] sm:$0xf] %v15766_v17 }
 0x47e   :  { %8142 = vst [vmem:[#allocation4 + $0x688] sm:$0xf] %v15622_v58  ;;  %8729 = vst [vmem:[#allocation4 + $0x624] sm:$0xf] %v15912_v7  ;;  %11713 = vmatprep.mubr.bf16.mxu1 %v17084_v38  ;;  %v7010_v31 = vld [vmem:[#allocation3 + $0x169] sm:$0xff]  ;;  %v11555_v58 = vpop.f32.mrf.mxu1  ;;  %v11325_v7 = vpop.f32.mrf.mxu0 }
 0x47f   :  { %v7305_v52 = vld [vmem:[#allocation3 + $0x16a] sm:$0xff]  ;;  %11714 = vmatmul.mubr.bf16.gmra.mxu1 %v17082_v11  ;;  %v15669_v18 = vpack.c.bf16 %v7010_v31, %v7010_v31  ;;  %6669 = vst [vmem:[#allocation3 + $0x180] sm:$0xff] %v6620_v48  ;;  %9322 = vst [vmem:[#allocation4 + $0x698] sm:$0xf] %v15623_v60  ;;  %v18694_v59 = vld [vmem:[%s19352_s6] ss:$0 sm:$0xff] }
 0x480   :  { %v7600_v41 = vld [vmem:[#allocation3 + $0x16f] sm:$0xff]  ;;  %v15718_v19 = vpack.c.bf16 %v7305_v52, %v7305_v52  ;;  %v17090_v43 = vld [vmem:[#allocation4 + $0x5ec] ss:$36 sps:$4 sm:$0xff]   ;;  %6964 = vst [vmem:[#allocation4 + $0x6c0] sm:$0xf] %v15623_v60  ;;  %v11324_v6 = vadd.f32 %v18694_v59, %v11323_v2  ;;  %v11557_v38 = vpop.f32.mrf.mxu1  ;;  %v11326_v53 = vpop.f32.mrf.mxu0 }
 0x481   :  { %v15767_v50 = vpack.c.bf16 %v7600_v41, %v7600_v41  ;;  %v8484_v29 = vld [vmem:[#allocation3 + $0x16e] sm:$0xff]  ;;  %7256 = vst [vmem:[#allocation4 + $0x658] sm:$0xf] %v15669_v18  ;;  %8435 = vst [vmem:[#allocation4 + $0x644] sm:$0xf] %v15669_v18  ;;  %v7601_v49 = vld [vmem:[#allocation3 + $0x177] sm:$0xff]  ;;  %11489 = vmatprep.mubr.bf16.mxu0 %v17090_v43  ;;  %v11327_v48 = vadd.f32 %v18694_v59, %v11326_v53 }
 0x482   :  { %v15913_v25 = vpack.c.bf16 %v8484_v29, %v8484_v29  ;;  %7551 = vst [vmem:[#allocation4 + $0x65c] sm:$0xf] %v15718_v19  ;;  %v7011_v13 = vld [vmem:[#allocation3 + $0x171] sm:$0xff]  ;;  %8143 = vst [vmem:[#allocation4 + $0x6ac] sm:$0xf] %v15623_v60  ;;  %v15768_v35 = vpack.c.bf16 %v7601_v49, %v7601_v49  ;;  %11490 = vmatmul.mubr.bf16.gmra.mxu0 %v17088_v44  ;;  %v18697_v0 = vadd.f32 %v11555_v58, %v11324_v6  ;;  %v11558_v22 = vpop.f32.mrf.mxu1  ;;  %v11328_v31 = vpop.f32.mrf.mxu0  ;;  %v17126_v52 = vld [vmem:[%s19351_s5 + $0x238] sm:$0xff]  }
 0x483   :  { %7846 = vst [vmem:[#allocation4 + $0x660] sm:$0xf] %v15767_v50  ;;  %9025 = vst [vmem:[#allocation4 + $0x64c] sm:$0xf] %v15767_v50  ;;  %v7306_v51 = vld [vmem:[#allocation3 + $0x172] sm:$0xff]  ;;  %v15670_v39 = vpack.c.bf16 %v7011_v13, %v7011_v13  ;;  %v18703_v18 = vadd.f32 %v11558_v22, %v11327_v48 }
 0x484   :  { %8730 = vst [vmem:[#allocation4 + $0x648] sm:$0xf] %v15913_v25  ;;  %v15719_v36 = vpack.c.bf16 %v7306_v51, %v7306_v51  ;;  %v8485_v12 = vld [vmem:[#allocation3 + $0x176] sm:$0xff]  ;;  %v17091_v14 = vld [vmem:[#allocation4 + $0x5f0] ss:$36 sps:$4 sm:$0xff]   ;;  %v11560_v19 = vpop.f32.mrf.mxu1  ;;  %v11331_v50 = vpop.f32.mrf.mxu0 }
 0x485   :  { %v15914_v15 = vpack.c.bf16 %v8485_v12, %v8485_v12  ;;  %v17093_v24 = vld [vmem:[#allocation4 + $0x5f4] ss:$36 sps:$4 sm:$0xff]   ;;  %7257 = vst [vmem:[#allocation4 + $0x67c] sm:$0xf] %v15670_v39  ;;  %7847 = vst [vmem:[#allocation4 + $0x684] sm:$0xf] %v15768_v35  ;;  %v11332_v3 = vadd.f32 %v18694_v59, %v11331_v50 }
 0x486   :  { %7552 = vst [vmem:[#allocation4 + $0x680] sm:$0xf] %v15719_v36  ;;  %8436 = vst [vmem:[#allocation4 + $0x668] sm:$0xf] %v15670_v39  ;;  %11721 = vmatprep.mubr.bf16.mxu1 %v17093_v24  ;;  %v7012_v28 = vld [vmem:[#allocation3 + $0x179] sm:$0xff]  ;;  %v7013_v21 = vld [vmem:[#allocation3 + $0x181] sm:$0xff]  ;;  %v11333_v44 = vpop.f32.mrf.mxu0  ;;  %v11563_v13 = vpop.f32.mrf.mxu1 }
 0x487   :  { %9026 = vst [vmem:[#allocation4 + $0x670] sm:$0xf] %v15768_v35  ;;  %8731 = vst [vmem:[#allocation4 + $0x66c] sm:$0xf] %v15914_v15  ;;  %v7307_v20 = vld [vmem:[#allocation3 + $0x17a] sm:$0xff]  ;;  %11722 = vmatmul.mubr.bf16.gmra.mxu1 %v17091_v14  ;;  %v15671_v57 = vpack.c.bf16 %v7012_v28, %v7012_v28  ;;  %v15672_v26 = vpack.c.bf16 %v7013_v21, %v7013_v21  ;;  %v7308_v42 = vld [vmem:[#allocation3 + $0x182] sm:$0xff]  ;;  %v18712_v49 = vadd.f32 %v11563_v13, %v11332_v3 }
 0x488   :  { %v15720_v45 = vpack.c.bf16 %v7307_v20, %v7307_v20  ;;  %v7602_v61 = vld [vmem:[#allocation3 + $0x17f] sm:$0xff]  ;;  %v7603_v23 = vld [vmem:[#allocation3 + $0x187] sm:$0xff]  ;;  %v15721_v62 = vpack.c.bf16 %v7308_v42, %v7308_v42  ;;  %v17105_v5 = vld [vmem:[#allocation4 + $0x678] ss:$36 sps:$4 sm:$0xff]   ;;  %v11334_v39 = vpop.f32.mrf.mxu0  ;;  %v11565_v35 = vpop.f32.mrf.mxu1 }
 0x489   :  { %v15769_v37 = vpack.c.bf16 %v7602_v61, %v7602_v61  ;;  %v15770_v1 = vpack.c.bf16 %v7603_v23, %v7603_v23  ;;  %v8486_v8 = vld [vmem:[#allocation3 + $0x17e] sm:$0xff]  ;;  %v8487_v33 = vld [vmem:[#allocation3 + $0x186] sm:$0xff]  ;;  %7258 = vst [vmem:[#allocation4 + $0x6a0] sm:$0xf] %v15671_v57  ;;  %7259 = vst [vmem:[#allocation4 + $0x6c4] sm:$0xf] %v15672_v26  ;;  %v11335_v12 = vadd.f32 %v18694_v59, %v11334_v39 }
 0x48a   :  { %v15915_v55 = vpack.c.bf16 %v8486_v8, %v8486_v8  ;;  %v15916_v27 = vpack.c.bf16 %v8487_v33, %v8487_v33  ;;  %7553 = vst [vmem:[#allocation4 + $0x6a4] sm:$0xf] %v15720_v45  ;;  %8437 = vst [vmem:[#allocation4 + $0x68c] sm:$0xf] %v15671_v57  ;;  %v17096_v4 = vld [vmem:[#allocation4 + $0x630] ss:$36 sps:$4 sm:$0xff]   ;;  %v11336_v14 = vpop.f32.mrf.mxu0  ;;  %v11566_v24 = vpop.f32.mrf.mxu1 }
 0x48b   :  { %8438 = vst [vmem:[#allocation4 + $0x6b0] sm:$0xf] %v15672_v26  ;;  %v17098_v9 = vld [vmem:[#allocation4 + $0x634] ss:$36 sps:$4 sm:$0xff]   ;;  %7554 = vst [vmem:[#allocation4 + $0x6c8] sm:$0xf] %v15721_v62  ;;  %v18719_v21 = vadd.f32 %v11566_v24, %v11335_v12 }
 0x48c   :  { %7848 = vst [vmem:[#allocation4 + $0x6a8] sm:$0xf] %v15769_v37  ;;  %7849 = vst [vmem:[#allocation4 + $0x6cc] sm:$0xf] %v15770_v1  ;;  %v17099_v56 = vld [vmem:[#allocation4 + $0x638] ss:$36 sps:$4 sm:$0xff]   ;;  %11497 = vmatprep.mubr.bf16.mxu0 %v17098_v9  ;;  %v11339_v20 = vpop.f32.mrf.mxu0  ;;  %v11568_v42 = vpop.f32.mrf.mxu1 }
 0x48d   :  { %9027 = vst [vmem:[#allocation4 + $0x694] sm:$0xf] %v15769_v37  ;;  %9028 = vst [vmem:[#allocation4 + $0x6b8] sm:$0xf] %v15770_v1  ;;  %v17101_v10 = vld [vmem:[#allocation4 + $0x63c] ss:$36 sps:$4 sm:$0xff]   ;;  %11498 = vmatmul.mubr.bf16.gmra.mxu0 %v17096_v4  ;;  %v11340_v45 = vadd.f32 %v18694_v59, %v11339_v20 }
 0x48e   :  { %8732 = vst [vmem:[#allocation4 + $0x690] sm:$0xf] %v15915_v55  ;;  %8733 = vst [vmem:[#allocation4 + $0x6b4] sm:$0xf] %v15916_v27  ;;  %11729 = vmatprep.mubr.bf16.mxu1 %v17101_v10  ;;  %v17120_v32 = vld [vmem:[#allocation4 + $0x14] ss:$36 sps:$4 sm:$0xff]   ;;  %v11341_v23 = vpop.f32.mrf.mxu0  ;;  %v11571_v62 = vpop.f32.mrf.mxu1 }
 0x48f   :  { %11730 = vmatmul.mubr.bf16.gmra.mxu1 %v17099_v56  ;;  %v17124_v11 = vld [vmem:[#allocation4 + $0x1c] ss:$36 sps:$4 sm:$0xff]   ;;  %v17118_v41 = vld [vmem:[#allocation4 + $0x10] ss:$36 sps:$4 sm:$0xff]   ;;  %v17132_v25 = vld [vmem:[#allocation4 + $0x64] ss:$36 sps:$4 sm:$0xff]   ;;  %v18726_v37 = vadd.f32 %v11571_v62, %v11340_v45 }
 0x490   :  { %v17107_v63 = vld [vmem:[#allocation4 + $0x67c] ss:$36 sps:$4 sm:$0xff]   ;;  %v17135_v57 = vld [vmem:[#allocation4 + $0xa4] ss:$36 sps:$4 sm:$0xff]   ;;  %v17138_v26 = vld [vmem:[#allocation4 + $0xac] ss:$36 sps:$4 sm:$0xff]   ;;  %v11342_v1 = vpop.f32.mrf.mxu0  ;;  %v11573_v8 = vpop.f32.mrf.mxu1 }
 0x491   :  { %v17108_v16 = vld [vmem:[#allocation4 + $0x680] ss:$36 sps:$4 sm:$0xff]   ;;  %11505 = vmatprep.mubr.bf16.mxu0 %v17107_v63  ;;  %v17122_v60 = vld [vmem:[#allocation4 + $0x18] ss:$36 sps:$4 sm:$0xff]   ;;  %v17189_v61 = vld [vmem:[%s19351_s5 + $0x220] sm:$0xff]   ;;  %v11343_v33 = vadd.f32 %v18694_v59, %v11342_v1 }
 0x492   :  { %v9565_v47 = vld [vmem:[#allocation4 + $0x6c0] sm:$0xff]  ;;  %v18709_v51 = vld [vmem:[#allocation2 + $0x188] sm:$0xff]  ;;  %v11344_v55 = vpop.f32.mrf.mxu0  ;;  %v17208_v27 = vld [vmem:[%s19351_s5 + $0x218] sm:$0xff]   ;;  %v11574_v9 = vpop.f32.mrf.mxu1 }
 0x493   :  { %v17110_v40 = vld [vmem:[#allocation4 + $0x684] ss:$36 sps:$4 sm:$0xff]   ;;  %v14981_v54 = vcombine.high %v9565_v47, %v9565_v47  ;;  %v14980_v30 = vcombine.low %v9565_v47, %v9565_v47  ;;  %v17129_v29 = vld [vmem:[#allocation4 + $0x5c] ss:$36 sps:$4 sm:$0xff]   ;;  %v18733_v56 = vadd.f32 %v11574_v9, %v11343_v33  ;;  %v17144_v47 = vld [vmem:[#allocation4 + $0xf4] ss:$36 sps:$4 sm:$0xff]  }
 0x494   :  { %v9566_v46 = vld [vmem:[#allocation4 + $0x6c8] sm:$0xff]  ;;  %11737 = vmatprep.mubr.bf16.mxu1 %v17110_v40  ;;  %v17151_v43 = vld [vmem:[%s19351_s5 + $0x230] sm:$0xff]   ;;  %v17127_v36 = vld [vmem:[#allocation4 + $0x58] ss:$36 sps:$4 sm:$0xff]   ;;  %v11347_v10 = vpop.f32.mrf.mxu0 }
 0x495   :  { %v14983_v34 = vcombine.high %v9566_v46, %v9566_v46  ;;  %11506 = vmatmul.mubr.bf16.gmra.mxu0 %v17105_v5  ;;  %v14982_v17 = vcombine.low %v9566_v46, %v9566_v46  ;;  %v17170_v15 = vld [vmem:[%s19351_s5 + $0x228] sm:$0xff]   ;;  %v17130_v28 = vld [vmem:[#allocation4 + $0x60] ss:$36 sps:$4 sm:$0xff]   ;;  %v17141_v5 = vld [vmem:[#allocation4 + $0xec] ss:$36 sps:$4 sm:$0xff]   ;;  %v11348_v40 = vadd.f32 %v18694_v59, %v11347_v10 }
 0x496   :  { %11513 = vmatprep.mubr.bf16.mxu0 %v14981_v54  ;;  %v17133_v4 = vld [vmem:[#allocation4 + $0xa0] ss:$36 sps:$4 sm:$0xff]   ;;  %v17136_v63 = vld [vmem:[#allocation4 + $0xa8] ss:$36 sps:$4 sm:$0xff]   ;;  %v11349_v46 = vpop.f32.mrf.mxu0  ;;  %v17147_v53 = vld [vmem:[#allocation4 + $0x134] ss:$36 sps:$4 sm:$0xff]  }
 0x497   :  { %11738 = vmatmul.mubr.bf16.gmra.mxu1 %v17108_v16  ;;  %v11576_v16 = vpop.f32.mrf.mxu1  ;;  %v17227_v54 = vld [vmem:[%s19351_s5 + $0x210] sm:$0xff]   ;;  %v17139_v58 = vld [vmem:[#allocation4 + $0xe8] ss:$36 sps:$4 sm:$0xff]   ;;  %v17142_v48 = vld [vmem:[#allocation4 + $0xf0] ss:$36 sps:$4 sm:$0xff]  }
 0x498   :  { %11745 = vmatprep.mubr.bf16.mxu1 %v14983_v34  ;;  %v11350_v2 = vpop.f32.mrf.mxu0  ;;  %v17154_v35 = vld [vmem:[#allocation4 + $0x17c] ss:$36 sps:$4 sm:$0xff]   ;;  %v17157_v24 = vld [vmem:[#allocation4 + $0x184] ss:$36 sps:$4 sm:$0xff]   ;;  %v17163_v9 = vld [vmem:[#allocation4 + $0x1cc] ss:$36 sps:$4 sm:$0xff]  }
 0x499   :  { %v11579_v34 = vpop.f32.mrf.mxu1  ;;  %v17148_v12 = vld [vmem:[#allocation4 + $0x138] ss:$36 sps:$4 sm:$0xff]   ;;  %v17160_v33 = vld [vmem:[#allocation4 + $0x1c4] ss:$36 sps:$4 sm:$0xff]  }
 0x49a   :  { %v11352_v6 = vpop.f32.mrf.mxu0  ;;  %v17152_v23 = vld [vmem:[#allocation4 + $0x178] ss:$36 sps:$4 sm:$0xff]   ;;  %v17155_v55 = vld [vmem:[#allocation4 + $0x180] ss:$36 sps:$4 sm:$0xff]  }
 0x49b   :  { %v17161_v6 = vld [vmem:[#allocation4 + $0x1c8] ss:$36 sps:$4 sm:$0xff]  }
 0x49c   :  { %v11355_v38 = vpop.f32.mrf.mxu0 }
 0x49d   :  { %11514 = vmatmul.mubr.bf16.gmra.mxu0 %v14980_v30  ;;  %v18740_v30 = vadd.f32 %v11579_v34, %v11348_v40  ;;  %v11356_v31 = vadd.f32 %v18694_v59, %v11355_v38  ;;  %v17265_v38 = vld [vmem:[%s19351_s5 + $0x200] sm:$0xff]  }
 0x49e   :  { %11785 = vmatprep.mubr.bf16.mxu0 %v17120_v32  ;;  %v11581_v32 = vpop.f32.mrf.mxu1  ;;  %v11357_v19 = vpop.f32.mrf.mxu0 }
 0x49f   :  { %11746 = vmatmul.mubr.bf16.gmra.mxu1 %v14982_v17  ;;  %v11351_v17 = vadd.f32 %v18694_v59, %v11350_v2 }
 0x4a0   :  { %12017 = vmatprep.mubr.bf16.mxu1 %v17124_v11  ;;  %v11582_v11 = vpop.f32.mrf.mxu1 }
 0x4a1   :  { %v18744_v7 = vadd.f32 %v11582_v11, %v11351_v17  ;;  %v17166_v17 = vld [vmem:[#allocation4 + $0x20c] ss:$36 sps:$4 sm:$0xff]  }
 0x4a2   :  { %v11584_v22 = vpop.f32.mrf.mxu1 }
 0x4a4   :  { %v11587_v50 = vpop.f32.mrf.mxu1 }
 0x4a5   :  { %11786 = vmatmul.mubr.bf16.vlgmr.msra.gmra.mxu0 %v17118_v41  ;;  %v17150_v41 = vld [vmem:[#allocation4 + $0x13c] ss:$36 sps:$4 sm:$0xff]  }
 0x4a6   :  { %16296 = vmatpush3.bf16.msra.mxu0 %v17126_v52  ;;  %11793 = vmatprep.mubr.bf16.mxu0 %v17129_v29  ;;  %v17246_v52 = vld [vmem:[%s19351_s5 + $0x208] sm:$0xff]   ;;  %v18750_v29 = vadd.f32 %v11587_v50, %v11356_v31  ;;  %v11589_v3 = vpop.f32.mrf.mxu1 }
 0x4a7   :  { %12018 = vmatmul.mubr.bf16.vlgmr.msra.gmra.mxu1 %v17122_v60  ;;  %16297 = vmatprep.subr.bf16.mxu0 %v18709_v51  ;;  %v11358_v60 = vpop.f32.mrf.mxu0 }
 0x4a8   :  { %12025 = vmatprep.mubr.bf16.mxu1 %v17132_v25  ;;  %v11359_v25 = vadd.f32 %v18694_v59, %v11358_v60  ;;  %v11590_v13 = vpop.f32.mrf.mxu1  ;;  %v17164_v60 = vld [vmem:[#allocation4 + $0x208] ss:$36 sps:$4 sm:$0xff]  }
 0x4a9   :  { %v11360_v44 = vpop.f32.mrf.mxu0 }
 0x4aa   :  { %16298 = vmatpush3.bf16.msra.mxu0 %v17151_v43  ;;  %v17145_v43 = vld [vmem:[#allocation4 + $0x130] ss:$36 sps:$4 sm:$0xff]   ;;  %v18754_v39 = vadd.f32 %v11590_v13, %v11359_v25  ;;  %v11592_v14 = vpop.f32.mrf.mxu1 }
 0x4ab   :  { %16299 = vmatprep.subr.bf16.mxu0 %v18709_v51  ;;  %v17167_v13 = vld [vmem:[#allocation4 + $0x210] ss:$36 sps:$4 sm:$0xff]  }
 0x4ac   :  { %v11595_v20 = vpop.f32.mrf.mxu1 }
 0x4ad   :  { %11794 = vmatmul.mubr.bf16.gmra.mxu0 %v17127_v36  ;;  %v11363_v36 = vpop.f32.mrf.mxu0 }
 0x4ae   :  { %11801 = vmatprep.mubr.bf16.mxu0 %v17135_v57  ;;  %16300 = vmatpush3.bf16.msra.mxu0 %v17170_v15  ;;  %v11364_v15 = vadd.f32 %v18694_v59, %v11363_v36  ;;  %v11597_v42 = vpop.f32.mrf.mxu1 }
 0x4af   :  { %12026 = vmatmul.mubr.bf16.gmra.mxu1 %v17130_v28  ;;  %16301 = vmatprep.subr.bf16.mxu0 %v18709_v51  ;;  %v11365_v28 = vpop.f32.mrf.mxu0 }
 0x4b0   :  { %12033 = vmatprep.mubr.bf16.mxu1 %v17138_v26  ;;  %v18757_v57 = vadd.f32 %v11595_v20, %v11364_v15  ;;  %v11598_v62 = vpop.f32.mrf.mxu1 }
 0x4b1   :  { %v11366_v26 = vpop.f32.mrf.mxu0 }
 0x4b2   :  { %16302 = vmatpush3.bf16.msra.mxu0 %v17189_v61  ;;  %v11367_v45 = vadd.f32 %v18694_v59, %v11366_v26 }
 0x4b3   :  { %16303 = vmatprep.subr.bf16.mxu0 %v18709_v51  ;;  %v11368_v61 = vpop.f32.mrf.mxu0 }
 0x4b4   :  { %v18760_v1 = vadd.f32 %v11598_v62, %v11367_v45  ;;  %v17171_v45 = vld [vmem:[#allocation4 + $0x250] ss:$36 sps:$4 sm:$0xff]  }
 0x4b5   :  { %11802 = vmatmul.mubr.bf16.gmra.mxu0 %v17133_v4  ;;  %v11371_v8 = vpop.f32.mrf.mxu0 }
 0x4b6   :  { %11809 = vmatprep.mubr.bf16.mxu0 %v17141_v5  ;;  %16304 = vmatpush3.bf16.msra.mxu0 %v17208_v27  ;;  %v11600_v27 = vpop.f32.mrf.mxu1  ;;  %v11372_v4 = vadd.f32 %v18694_v59, %v11371_v8  ;;  %v17179_v8 = vld [vmem:[#allocation4 + $0x29c] ss:$36 sps:$4 sm:$0xff]  }
 0x4b7   :  { %12034 = vmatmul.mubr.bf16.gmra.mxu1 %v17136_v63  ;;  %16305 = vmatprep.subr.bf16.mxu0 %v18709_v51  ;;  %v11373_v10 = vpop.f32.mrf.mxu0 }
 0x4b8   :  { %12041 = vmatprep.mubr.bf16.mxu1 %v17144_v47  ;;  %v11603_v5 = vpop.f32.mrf.mxu1 }
 0x4b9   :  { %v18763_v63 = vadd.f32 %v11603_v5, %v11372_v4  ;;  %v11374_v16 = vpop.f32.mrf.mxu0  ;;  %v17182_v4 = vld [vmem:[#allocation4 + $0x2a4] ss:$36 sps:$4 sm:$0xff]  }
 0x4ba   :  { %16306 = vmatpush3.bf16.msra.mxu0 %v17227_v54  ;;  %v11605_v40 = vpop.f32.mrf.mxu1  ;;  %v11375_v47 = vadd.f32 %v18694_v59, %v11374_v16  ;;  %v17158_v54 = vld [vmem:[#allocation4 + $0x1c0] ss:$36 sps:$4 sm:$0xff]  }
 0x4bb   :  { %16307 = vmatprep.subr.bf16.mxu0 %v18709_v51  ;;  %v11376_v46 = vpop.f32.mrf.mxu0 }
 0x4bc   :  { %v11606_v34 = vpop.f32.mrf.mxu1 }
 0x4bd   :  { %11810 = vmatmul.mubr.bf16.gmra.mxu0 %v17139_v58  ;;  %v18766_v2 = vadd.f32 %v11606_v34, %v11375_v47  ;;  %v11379_v32 = vpop.f32.mrf.mxu0 }
 0x4be   :  { %11817 = vmatprep.mubr.bf16.mxu0 %v17147_v53  ;;  %16308 = vmatpush3.bf16.msra.mxu0 %v17246_v52  ;;  %v11608_v58 = vpop.f32.mrf.mxu1  ;;  %v11380_v11 = vadd.f32 %v18694_v59, %v11379_v32  ;;  %v17169_v53 = vld [vmem:[#allocation4 + $0x214] ss:$36 sps:$4 sm:$0xff]  }
 0x4bf   :  { %12042 = vmatmul.mubr.bf16.gmra.mxu1 %v17142_v48  ;;  %16309 = vmatprep.subr.bf16.mxu0 %v18709_v51  ;;  %v11381_v48 = vpop.f32.mrf.mxu0  ;;  %v17180_v58 = vld [vmem:[#allocation4 + $0x2a0] ss:$36 sps:$4 sm:$0xff]  }
 0x4c0   :  { %12049 = vmatprep.mubr.bf16.mxu1 %v17150_v41  ;;  %v11611_v22 = vpop.f32.mrf.mxu1 }
 0x4c1   :  { %v18772_v31 = vadd.f32 %v11611_v22, %v11380_v11  ;;  %v11382_v52 = vpop.f32.mrf.mxu0 }
 0x4c2   :  { %16310 = vmatpush3.bf16.msra.mxu0 %v17265_v38  ;;  %v11613_v41 = vpop.f32.mrf.mxu1  ;;  %v11383_v19 = vadd.f32 %v18694_v59, %v11382_v52 }
 0x4c3   :  { %v11384_v50 = vpop.f32.mrf.mxu0 }
 0x4c4   :  { %v11614_v3 = vpop.f32.mrf.mxu1 }
 0x4c5   :  { %11818 = vmatmul.mubr.bf16.gmra.mxu0 %v17145_v43  ;;  %v18775_v25 = vadd.f32 %v11614_v3, %v11383_v19  ;;  %v11387_v44 = vpop.f32.mrf.mxu0  ;;  %v17173_v43 = vld [vmem:[#allocation4 + $0x254] ss:$36 sps:$4 sm:$0xff]   ;;  %v17183_v3 = vld [vmem:[#allocation4 + $0x2e0] ss:$36 sps:$4 sm:$0xff]  }
 0x4c6   :  { %11825 = vmatprep.mubr.bf16.mxu0 %v17154_v35  ;;  %v11616_v36 = vpop.f32.mrf.mxu1  ;;  %v11388_v35 = vadd.f32 %v18694_v59, %v11387_v44 }
 0x4c7   :  { %12050 = vmatmul.mubr.bf16.gmra.mxu1 %v17148_v12  ;;  %v17176_v12 = vld [vmem:[#allocation4 + $0x25c] ss:$36 sps:$4 sm:$0xff]   ;;  %v11389_v14 = vpop.f32.mrf.mxu0  ;;  %v17192_v36 = vld [vmem:[#allocation4 + $0x32c] ss:$36 sps:$4 sm:$0xff]  }
 0x4c8   :  { %12057 = vmatprep.mubr.bf16.mxu1 %v17157_v24  ;;  %v11619_v15 = vpop.f32.mrf.mxu1 }
 0x4c9   :  { %v18778_v24 = vadd.f32 %v11619_v15, %v11388_v35  ;;  %v11390_v28 = vpop.f32.mrf.mxu0  ;;  %v17186_v35 = vld [vmem:[#allocation4 + $0x2e8] ss:$36 sps:$4 sm:$0xff]   ;;  %v17195_v15 = vld [vmem:[#allocation4 + $0x334] ss:$36 sps:$4 sm:$0xff]  }
 0x4ca   :  { %v11621_v20 = vpop.f32.mrf.mxu1  ;;  %v11391_v26 = vadd.f32 %v18694_v59, %v11390_v28 }
 0x4cb   :  { %v11392_v42 = vpop.f32.mrf.mxu0 }
 0x4cc   :  { %v11622_v61 = vpop.f32.mrf.mxu1 }
 0x4cd   :  { %11826 = vmatmul.mubr.bf16.gmra.mxu0 %v17152_v23  ;;  %v18781_v23 = vadd.f32 %v11622_v61, %v11391_v26  ;;  %v11395_v62 = vpop.f32.mrf.mxu0 }
 0x4ce   :  { %11833 = vmatprep.mubr.bf16.mxu0 %v17160_v33  ;;  %v17174_v33 = vld [vmem:[#allocation4 + $0x258] ss:$36 sps:$4 sm:$0xff]   ;;  %v11396_v27 = vadd.f32 %v18694_v59, %v11395_v62 }
 0x4cf   :  { %12058 = vmatmul.mubr.bf16.gmra.mxu1 %v17155_v55  ;;  %v11624_v55 = vpop.f32.mrf.mxu1 }
 0x4d0   :  { %12065 = vmatprep.mubr.bf16.mxu1 %v17163_v9  ;;  %v11397_v9 = vpop.f32.mrf.mxu0 }
 0x4d1   :  { %v11627_v10 = vpop.f32.mrf.mxu1  ;;  %v17193_v9 = vld [vmem:[#allocation4 + $0x330] ss:$36 sps:$4 sm:$0xff]  }
 0x4d2   :  { %v18784_v5 = vadd.f32 %v11627_v10, %v11396_v27  ;;  %v11398_v16 = vpop.f32.mrf.mxu0 }
 0x4d3   :  { %v11629_v40 = vpop.f32.mrf.mxu1  ;;  %v11399_v47 = vadd.f32 %v18694_v59, %v11398_v16 }
 0x4d4   :  { %v11400_v46 = vpop.f32.mrf.mxu0  ;;  %v17201_v40 = vld [vmem:[#allocation4 + $0x37c] ss:$36 sps:$4 sm:$0xff]  }
 0x4d5   :  { %11834 = vmatmul.mubr.bf16.gmra.mxu0 %v17158_v54  ;;  %v17177_v54 = vld [vmem:[#allocation4 + $0x298] ss:$36 sps:$4 sm:$0xff]   ;;  %v11630_v34 = vpop.f32.mrf.mxu1 }
 0x4d6   :  { %11841 = vmatprep.mubr.bf16.mxu0 %v17166_v17  ;;  %v18787_v32 = vadd.f32 %v11630_v34, %v11399_v47  ;;  %v11403_v17 = vpop.f32.mrf.mxu0 }
 0x4d7   :  { %12066 = vmatmul.mubr.bf16.gmra.mxu1 %v17161_v6  ;;  %v17185_v6 = vld [vmem:[#allocation4 + $0x2e4] ss:$36 sps:$4 sm:$0xff]   ;;  %v11632_v11 = vpop.f32.mrf.mxu1  ;;  %v11404_v38 = vadd.f32 %v18694_v59, %v11403_v17 }
 0x4d8   :  { %12073 = vmatprep.mubr.bf16.mxu1 %v17169_v53  ;;  %v17188_v53 = vld [vmem:[#allocation4 + $0x2ec] ss:$36 sps:$4 sm:$0xff]   ;;  %v11405_v48 = vpop.f32.mrf.mxu0 }
 0x4d9   :  { %v11635_v22 = vpop.f32.mrf.mxu1  ;;  %v17196_v11 = vld [vmem:[#allocation4 + $0x370] ss:$36 sps:$4 sm:$0xff]  }
 0x4da   :  { %v18790_v52 = vadd.f32 %v11635_v22, %v11404_v38  ;;  %v11406_v41 = vpop.f32.mrf.mxu0  ;;  %v17204_v22 = vld [vmem:[#allocation4 + $0x3bc] ss:$36 sps:$4 sm:$0xff]  }
 0x4db   :  { %v11637_v19 = vpop.f32.mrf.mxu1  ;;  %v11407_v50 = vadd.f32 %v18694_v59, %v11406_v41  ;;  %v17199_v41 = vld [vmem:[#allocation4 + $0x378] ss:$36 sps:$4 sm:$0xff]  }
 0x4dd   :  { %11842 = vmatmul.mubr.bf16.gmra.mxu0 %v17164_v60  ;;  %v11408_v60 = vpop.f32.mrf.mxu0  ;;  %v11638_v44 = vpop.f32.mrf.mxu1 }
 0x4de   :  { %11849 = vmatprep.mubr.bf16.mxu0 %v17173_v43  ;;  %v18793_v43 = vadd.f32 %v11638_v44, %v11407_v50  ;;  %v17207_v60 = vld [vmem:[#allocation4 + $0x3c4] ss:$36 sps:$4 sm:$0xff]  }
 0x4df   :  { %12074 = vmatmul.mubr.bf16.gmra.mxu1 %v17167_v13  ;;  %v11411_v13 = vpop.f32.mrf.mxu0 }
 0x4e0   :  { %12081 = vmatprep.mubr.bf16.mxu1 %v17176_v12  ;;  %v11640_v12 = vpop.f32.mrf.mxu1  ;;  %v11412_v14 = vadd.f32 %v18694_v59, %v11411_v13 }
 0x4e1   :  { %v11413_v28 = vpop.f32.mrf.mxu0 }
 0x4e2   :  { %v11643_v20 = vpop.f32.mrf.mxu1 }
 0x4e3   :  { %v18796_v26 = vadd.f32 %v11643_v20, %v11412_v14  ;;  %v11414_v42 = vpop.f32.mrf.mxu0 }
 0x4e4   :  { %v11415_v61 = vadd.f32 %v18694_v59, %v11414_v42 }
 0x4e5   :  { %11850 = vmatmul.mubr.bf16.gmra.mxu0 %v17171_v45  ;;  %v11645_v45 = vpop.f32.mrf.mxu1  ;;  %v11416_v62 = vpop.f32.mrf.mxu0 }
 0x4e6   :  { %11857 = vmatprep.mubr.bf16.mxu0 %v17179_v8  ;;  %v17190_v8 = vld [vmem:[#allocation4 + $0x328] ss:$36 sps:$4 sm:$0xff]  }
 0x4e7   :  { %12082 = vmatmul.mubr.bf16.gmra.mxu1 %v17174_v33  ;;  %v11646_v33 = vpop.f32.mrf.mxu1  ;;  %v11419_v27 = vpop.f32.mrf.mxu0  ;;  %v17211_v45 = vld [vmem:[#allocation4 + $0x404] ss:$36 sps:$4 sm:$0xff]  }
 0x4e8   :  { %12089 = vmatprep.mubr.bf16.mxu1 %v17182_v4  ;;  %v18799_v55 = vadd.f32 %v11646_v33, %v11415_v61  ;;  %v17198_v4 = vld [vmem:[#allocation4 + $0x374] ss:$36 sps:$4 sm:$0xff]   ;;  %v11420_v16 = vadd.f32 %v18694_v59, %v11419_v27  ;;  %v17205_v61 = vld [vmem:[#allocation4 + $0x3c0] ss:$36 sps:$4 sm:$0xff]   ;;  %v17214_v33 = vld [vmem:[#allocation4 + $0x40c] ss:$36 sps:$4 sm:$0xff]  }
 0x4e9   :  { %v11648_v10 = vpop.f32.mrf.mxu1  ;;  %v11421_v47 = vpop.f32.mrf.mxu0 }
 0x4eb   :  { %v11422_v34 = vpop.f32.mrf.mxu0 }
 0x4ec   :  { %v11651_v46 = vpop.f32.mrf.mxu1 }
 0x4ed   :  { %11858 = vmatmul.mubr.bf16.gmra.mxu0 %v17177_v54  ;;  %v18802_v54 = vadd.f32 %v11651_v46, %v11420_v16  ;;  %v17209_v46 = vld [vmem:[#allocation4 + $0x400] ss:$36 sps:$4 sm:$0xff]  }
 0x4ee   :  { %11865 = vmatprep.mubr.bf16.mxu0 %v17185_v6  ;;  %v11653_v17 = vpop.f32.mrf.mxu1  ;;  %v11423_v6 = vadd.f32 %v18694_v59, %v11422_v34 }
 0x4ef   :  { %12090 = vmatmul.mubr.bf16.gmra.mxu1 %v17180_v58  ;;  %v11424_v58 = vpop.f32.mrf.mxu0 }
 0x4f0   :  { %12097 = vmatprep.mubr.bf16.mxu1 %v17188_v53  ;;  %v11654_v38 = vpop.f32.mrf.mxu1  ;;  %v17217_v58 = vld [vmem:[#allocation4 + $0x44c] ss:$36 sps:$4 sm:$0xff]  }
 0x4f1   :  { %v18805_v53 = vadd.f32 %v11654_v38, %v11423_v6  ;;  %v11427_v48 = vpop.f32.mrf.mxu0 }
 0x4f2   :  { %v11656_v19 = vpop.f32.mrf.mxu1  ;;  %v11428_v50 = vadd.f32 %v18694_v59, %v11427_v48 }
 0x4f5   :  { %11866 = vmatmul.mubr.bf16.gmra.mxu0 %v17183_v3  ;;  %v11429_v3 = vpop.f32.mrf.mxu0 }
 0x4f6   :  { %11873 = vmatprep.mubr.bf16.mxu0 %v17192_v36  ;;  %v11659_v44 = vpop.f32.mrf.mxu1 }
 0x4f7   :  { %12098 = vmatmul.mubr.bf16.gmra.mxu1 %v17186_v35  ;;  %v18808_v13 = vadd.f32 %v11659_v44, %v11428_v50  ;;  %v11430_v36 = vpop.f32.mrf.mxu0 }
 0x4f8   :  { %12105 = vmatprep.mubr.bf16.mxu1 %v17195_v15  ;;  %v11661_v35 = vpop.f32.mrf.mxu1  ;;  %v11431_v12 = vadd.f32 %v18694_v59, %v11430_v36  ;;  %v17202_v15 = vld [vmem:[#allocation4 + $0x3b8] ss:$36 sps:$4 sm:$0xff]  }
 0x4f9   :  { %v11432_v14 = vpop.f32.mrf.mxu0  ;;  %v17215_v35 = vld [vmem:[#allocation4 + $0x448] ss:$36 sps:$4 sm:$0xff]  }
 0x4fa   :  { %v11662_v28 = vpop.f32.mrf.mxu1 }
 0x4fb   :  { %v18811_v20 = vadd.f32 %v11662_v28, %v11431_v12  ;;  %v11435_v42 = vpop.f32.mrf.mxu0  ;;  %v17223_v28 = vld [vmem:[#allocation4 + $0x494] ss:$36 sps:$4 sm:$0xff]  }
 0x4fc   :  { %v11664_v62 = vpop.f32.mrf.mxu1 }
 0x4fd   :  { %11874 = vmatmul.mubr.bf16.gmra.mxu0 %v17190_v8  ;;  %v11436_v8 = vadd.f32 %v18694_v59, %v11435_v42  ;;  %v11437_v27 = vpop.f32.mrf.mxu0  ;;  %v17218_v42 = vld [vmem:[#allocation4 + $0x450] ss:$36 sps:$4 sm:$0xff]   ;;  %v17226_v62 = vld [vmem:[#allocation4 + $0x49c] ss:$36 sps:$4 sm:$0xff]  }
 0x4fe   :  { %11881 = vmatprep.mubr.bf16.mxu0 %v17198_v4 }
 0x4ff   :  { %12106 = vmatmul.mubr.bf16.gmra.mxu1 %v17193_v9  ;;  %v11438_v10 = vpop.f32.mrf.mxu0 }
 0x500   :  { %12113 = vmatprep.mubr.bf16.mxu1 %v17201_v40  ;;  %v11667_v4 = vpop.f32.mrf.mxu1  ;;  %v11439_v40 = vadd.f32 %v18694_v59, %v11438_v10 }
 0x501   :  { %v18814_v9 = vadd.f32 %v11667_v4, %v11436_v8  ;;  %v11440_v47 = vpop.f32.mrf.mxu0 }
 0x502   :  { %v11669_v16 = vpop.f32.mrf.mxu1  ;;  %v17221_v47 = vld [vmem:[#allocation4 + $0x490] ss:$36 sps:$4 sm:$0xff]  }
 0x504   :  { %v11670_v34 = vpop.f32.mrf.mxu1 }
 0x505   :  { %11882 = vmatmul.mubr.bf16.gmra.mxu0 %v17196_v11  ;;  %v18817_v17 = vadd.f32 %v11670_v34, %v11439_v40  ;;  %v17212_v11 = vld [vmem:[#allocation4 + $0x408] ss:$36 sps:$4 sm:$0xff]  }
 0x506   :  { %11889 = vmatprep.mubr.bf16.mxu0 %v17204_v22  ;;  %v11443_v6 = vpop.f32.mrf.mxu0  ;;  %v11672_v38 = vpop.f32.mrf.mxu1  ;;  %v17220_v22 = vld [vmem:[#allocation4 + $0x454] ss:$36 sps:$4 sm:$0xff]  }
 0x507   :  { %12114 = vmatmul.mubr.bf16.gmra.mxu1 %v17199_v41  ;;  %v11444_v48 = vadd.f32 %v18694_v59, %v11443_v6 }
 0x508   :  { %12121 = vmatprep.mubr.bf16.mxu1 %v17207_v60  ;;  %v11445_v41 = vpop.f32.mrf.mxu0 }
 0x50a   :  { %v11446_v60 = vpop.f32.mrf.mxu0 }
 0x50b   :  { %v11675_v19 = vpop.f32.mrf.mxu1  ;;  %v11447_v44 = vadd.f32 %v18694_v59, %v11446_v60 }
 0x50c   :  { %v18820_v50 = vadd.f32 %v11675_v19, %v11444_v48  ;;  %v11448_v36 = vpop.f32.mrf.mxu0 }
 0x50d   :  { %11890 = vmatmul.mubr.bf16.gmra.mxu0 %v17202_v15  ;;  %v11677_v3 = vpop.f32.mrf.mxu1 }
 0x50e   :  { %11897 = vmatprep.mubr.bf16.mxu0 %v17211_v45 }
 0x50f   :  { %12122 = vmatmul.mubr.bf16.gmra.mxu1 %v17205_v61  ;;  %v11678_v12 = vpop.f32.mrf.mxu1 }
 0x510   :  { %12129 = vmatprep.mubr.bf16.mxu1 %v17214_v33  ;;  %v18823_v14 = vadd.f32 %v11678_v12, %v11447_v44  ;;  %v17228_v12 = vld [vmem:[#allocation4 + $0x4d8] ss:$36 sps:$4 sm:$0xff]  }
 0x511   :  { %v11451_v15 = vpop.f32.mrf.mxu0  ;;  %v11680_v45 = vpop.f32.mrf.mxu1 }
 0x512   :  { %v11452_v61 = vadd.f32 %v18694_v59, %v11451_v15  ;;  %v17236_v45 = vld [vmem:[#allocation4 + $0x524] ss:$36 sps:$4 sm:$0xff]  }
 0x513   :  { %v11453_v8 = vpop.f32.mrf.mxu0 }
 0x515   :  { %11898 = vmatmul.mubr.bf16.gmra.mxu0 %v17209_v46  ;;  %v11454_v4 = vpop.f32.mrf.mxu0 }
 0x516   :  { %11905 = vmatprep.mubr.bf16.mxu0 %v17217_v58  ;;  %v11683_v33 = vpop.f32.mrf.mxu1  ;;  %v11455_v16 = vadd.f32 %v18694_v59, %v11454_v4  ;;  %v17230_v58 = vld [vmem:[#allocation4 + $0x4dc] ss:$36 sps:$4 sm:$0xff]  }
 0x517   :  { %12130 = vmatmul.mubr.bf16.gmra.mxu1 %v17212_v11  ;;  %v18826_v27 = vadd.f32 %v11683_v33, %v11452_v61  ;;  %v11456_v40 = vpop.f32.mrf.mxu0  ;;  %v17224_v11 = vld [vmem:[#allocation4 + $0x498] ss:$36 sps:$4 sm:$0xff]   ;;  %v17231_v61 = vld [vmem:[#allocation4 + $0x4e0] ss:$36 sps:$4 sm:$0xff]   ;;  %v17239_v33 = vld [vmem:[#allocation4 + $0x52c] ss:$36 sps:$4 sm:$0xff]  }
 0x518   :  { %12137 = vmatprep.mubr.bf16.mxu1 %v17220_v22  ;;  %v11685_v10 = vpop.f32.mrf.mxu1  ;;  %v17233_v22 = vld [vmem:[#allocation4 + $0x4e4] ss:$36 sps:$4 sm:$0xff]  }
 0x519   :  { %v11459_v6 = vpop.f32.mrf.mxu0 }
 0x51a   :  { %v11686_v46 = vpop.f32.mrf.mxu1  ;;  %v11460_v48 = vadd.f32 %v18694_v59, %v11459_v6 }
 0x51b   :  { %v18829_v34 = vadd.f32 %v11686_v46, %v11455_v16  ;;  %v11461_v41 = vpop.f32.mrf.mxu0 }
 0x51c   :  { %v11688_v38 = vpop.f32.mrf.mxu1  ;;  %v17237_v41 = vld [vmem:[#allocation4 + $0x528] ss:$36 sps:$4 sm:$0xff]  }
 0x51d   :  { %11906 = vmatmul.mubr.bf16.gmra.mxu0 %v17215_v35  ;;  %v11462_v3 = vpop.f32.mrf.mxu0 }
 0x51e   :  { %11913 = vmatprep.mubr.bf16.mxu0 %v17223_v28  ;;  %v11691_v19 = vpop.f32.mrf.mxu1  ;;  %v11463_v36 = vadd.f32 %v18694_v59, %v11462_v3 }
 0x51f   :  { %12138 = vmatmul.mubr.bf16.gmra.mxu1 %v17218_v42  ;;  %v18832_v60 = vadd.f32 %v11691_v19, %v11460_v48  ;;  %v11464_v35 = vpop.f32.mrf.mxu0 }
 0x520   :  { %12145 = vmatprep.mubr.bf16.mxu1 %v17226_v62  ;;  %v11693_v44 = vpop.f32.mrf.mxu1 }
 0x521   :  { %v17245_v44 = vld [vmem:[#allocation4 + $0x574] ss:$36 sps:$4 sm:$0xff]  }
 0x522   :  { %v11694_v15 = vpop.f32.mrf.mxu1 }
 0x523   :  { %v18835_v28 = vadd.f32 %v11694_v15, %v11463_v36  ;;  %v11467_v42 = vpop.f32.mrf.mxu0 }
 0x524   :  { %v11696_v62 = vpop.f32.mrf.mxu1  ;;  %v11468_v8 = vadd.f32 %v18694_v59, %v11467_v42 }
 0x525   :  { %11914 = vmatmul.mubr.bf16.gmra.mxu0 %v17221_v47  ;;  %v11469_v4 = vpop.f32.mrf.mxu0  ;;  %v17240_v62 = vld [vmem:[#allocation4 + $0x568] ss:$36 sps:$4 sm:$0xff]  }
 0x526   :  { %11921 = vmatprep.mubr.bf16.mxu0 %v17230_v58  ;;  %v17234_v58 = vld [vmem:[#allocation4 + $0x520] ss:$36 sps:$4 sm:$0xff]  }
 0x527   :  { %12146 = vmatmul.mubr.bf16.gmra.mxu1 %v17224_v11  ;;  %v11470_v40 = vpop.f32.mrf.mxu0 }
 0x528   :  { %12153 = vmatprep.mubr.bf16.mxu1 %v17233_v22  ;;  %v11699_v10 = vpop.f32.mrf.mxu1  ;;  %v11471_v46 = vadd.f32 %v18694_v59, %v11470_v40  ;;  %v17242_v22 = vld [vmem:[#allocation4 + $0x56c] ss:$36 sps:$4 sm:$0xff]  }
 0x529   :  { %v18838_v16 = vadd.f32 %v11699_v10, %v11468_v8  ;;  %v11472_v6 = vpop.f32.mrf.mxu0  ;;  %v17249_v10 = vld [vmem:[#allocation4 + $0x5b4] ss:$36 sps:$4 sm:$0xff]  }
 0x52a   :  { %v11701_v47 = vpop.f32.mrf.mxu1  ;;  %v17243_v40 = vld [vmem:[#allocation4 + $0x570] ss:$36 sps:$4 sm:$0xff]   ;;  %v17252_v6 = vld [vmem:[#allocation4 + $0x5bc] ss:$36 sps:$4 sm:$0xff]  }
 0x52c   :  { %v11702_v11 = vpop.f32.mrf.mxu1 }
 0x52d   :  { %11922 = vmatmul.mubr.bf16.gmra.mxu0 %v17228_v12  ;;  %v18841_v38 = vadd.f32 %v11702_v11, %v11471_v46 }
 0x52e   :  { %11929 = vmatprep.mubr.bf16.mxu0 %v17236_v45  ;;  %v11475_v48 = vpop.f32.mrf.mxu0  ;;  %v11704_v19 = vpop.f32.mrf.mxu1 }
 0x52f   :  { %12154 = vmatmul.mubr.bf16.gmra.mxu1 %v17231_v61  ;;  %v11476_v3 = vadd.f32 %v18694_v59, %v11475_v48 }
 0x530   :  { %12161 = vmatprep.mubr.bf16.mxu1 %v17239_v33  ;;  %v11477_v36 = vpop.f32.mrf.mxu0 }
 0x532   :  { %v11478_v15 = vpop.f32.mrf.mxu0 }
 0x533   :  { %v11707_v35 = vpop.f32.mrf.mxu1  ;;  %v11479_v45 = vadd.f32 %v18694_v59, %v11478_v15 }
 0x534   :  { %v18844_v12 = vadd.f32 %v11707_v35, %v11476_v3  ;;  %v11480_v61 = vpop.f32.mrf.mxu0 }
 0x535   :  { %11930 = vmatmul.mubr.bf16.gmra.mxu0 %v17234_v58  ;;  %v11709_v42 = vpop.f32.mrf.mxu1 }
 0x536   :  { %11937 = vmatprep.mubr.bf16.mxu0 %v17242_v22  ;;  %v17255_v42 = vld [vmem:[#allocation4 + $0x5fc] ss:$36 sps:$4 sm:$0xff]  }
 0x537   :  { %12162 = vmatmul.mubr.bf16.gmra.mxu1 %v17237_v41  ;;  %v11710_v8 = vpop.f32.mrf.mxu1 }
 0x538   :  { %12169 = vmatprep.mubr.bf16.mxu1 %v17245_v44  ;;  %v18847_v33 = vadd.f32 %v11710_v8, %v11479_v45  ;;  %v17247_v44 = vld [vmem:[#allocation4 + $0x5b0] ss:$36 sps:$4 sm:$0xff]   ;;  %v17250_v45 = vld [vmem:[#allocation4 + $0x5b8] ss:$36 sps:$4 sm:$0xff]   ;;  %v17258_v8 = vld [vmem:[#allocation4 + $0x604] ss:$36 sps:$4 sm:$0xff]  }
 0x539   :  { %v11483_v4 = vpop.f32.mrf.mxu0  ;;  %v11712_v47 = vpop.f32.mrf.mxu1 }
 0x53a   :  { %v11484_v46 = vadd.f32 %v18694_v59, %v11483_v4 }
 0x53b   :  { %v11485_v58 = vpop.f32.mrf.mxu0 }
 0x53d   :  { %11938 = vmatmul.mubr.bf16.gmra.mxu0 %v17240_v62  ;;  %v11486_v22 = vpop.f32.mrf.mxu0 }
 0x53e   :  { %11945 = vmatprep.mubr.bf16.mxu0 %v17249_v10  ;;  %v11487_v19 = vadd.f32 %v18694_v59, %v11486_v22 }
 0x53f   :  { %v11715_v11 = vpop.f32.mrf.mxu1  ;;  %12170 = vmatmul.mubr.bf16.gmra.mxu1 %v17243_v40  ;;  %v11488_v3 = vpop.f32.mrf.mxu0 }
 0x540   :  { %v18850_v48 = vadd.f32 %v11715_v11, %v11484_v46  ;;  %12177 = vmatprep.mubr.bf16.mxu1 %v17252_v6  ;;  %v17253_v11 = vld [vmem:[#allocation4 + $0x5f8] ss:$36 sps:$4 sm:$0xff]   ;;  %v17256_v3 = vld [vmem:[#allocation4 + $0x600] ss:$36 sps:$4 sm:$0xff]  }
 0x541   :  { %v11717_v41 = vpop.f32.mrf.mxu1 }
 0x542   :  { %v11491_v15 = vpop.f32.mrf.mxu0 }
 0x543   :  { %v11718_v36 = vpop.f32.mrf.mxu1  ;;  %v11492_v62 = vadd.f32 %v18694_v59, %v11491_v15 }
 0x544   :  { %v18853_v35 = vadd.f32 %v11718_v36, %v11487_v19  ;;  %v11493_v4 = vpop.f32.mrf.mxu0  ;;  %v17261_v19 = vld [vmem:[#allocation4 + $0x644] ss:$36 sps:$4 sm:$0xff]  }
 0x545   :  { %v11720_v61 = vpop.f32.mrf.mxu1  ;;  %11946 = vmatmul.mubr.bf16.gmra.mxu0 %v17247_v44 }
 0x546   :  { %11953 = vmatprep.mubr.bf16.mxu0 %v17255_v42  ;;  %v11494_v47 = vpop.f32.mrf.mxu0  ;;  %v17264_v42 = vld [vmem:[#allocation4 + $0x64c] ss:$36 sps:$4 sm:$0xff]  }
 0x547   :  { %v11723_v10 = vpop.f32.mrf.mxu1  ;;  %12178 = vmatmul.mubr.bf16.gmra.mxu1 %v17250_v45  ;;  %v11495_v6 = vadd.f32 %v18694_v59, %v11494_v47 }
 0x548   :  { %v18856_v40 = vadd.f32 %v11723_v10, %v11492_v62  ;;  %12185 = vmatprep.mubr.bf16.mxu1 %v17258_v8  ;;  %v11496_v58 = vpop.f32.mrf.mxu0  ;;  %v17380_v10 = vld [vmem:[%s19352_s6] ss:$0 sm:$0xff] }
 0x549   :  { %v11725_v46 = vpop.f32.mrf.mxu1 }
 0x54a   :  { %19371 = vst [vmem:[#allocation8_spill] sm:$0xff] %v18856_v40  ;;  %v17259_v46 = vld [vmem:[#allocation4 + $0x640] ss:$36 sps:$4 sm:$0xff]  }
 0x54b   :  { %v11726_v22 = vpop.f32.mrf.mxu1 }
 0x54c   :  { %v18859_v41 = vadd.f32 %v11726_v22, %v11495_v6  ;;  %v17262_v22 = vld [vmem:[#allocation4 + $0x648] ss:$36 sps:$4 sm:$0xff]  }
 0x54d   :  { %v11728_v44 = vpop.f32.mrf.mxu1  ;;  %v11499_v36 = vpop.f32.mrf.mxu0  ;;  %11954 = vmatmul.mubr.bf16.gmra.mxu0 %v17253_v11 }
 0x54e   :  { %19372 = vst [vmem:[#allocation9_spill] sm:$0xff] %v18859_v41  ;;  %v11500_v15 = vadd.f32 %v18694_v59, %v11499_v36  ;;  %11961 = vmatprep.mubr.bf16.mxu0 %v17261_v19  ;;  %v17268_v59 = vld [vmem:[#allocation4 + $0x68c] ss:$36 sps:$4 sm:$0xff]   ;;  %v17271_v36 = vld [vmem:[#allocation4 + $0x694] ss:$36 sps:$4 sm:$0xff]  }
 0x54f   :  { %v11731_v45 = vpop.f32.mrf.mxu1  ;;  %12186 = vmatmul.mubr.bf16.gmra.mxu1 %v17256_v3  ;;  %v11501_v61 = vpop.f32.mrf.mxu0 }
 0x550   :  { %v18862_v62 = vadd.f32 %v11731_v45, %v11500_v15  ;;  %12193 = vmatprep.mubr.bf16.mxu1 %v17264_v42  ;;  %v9567_v45 = vld [vmem:[#allocation4 + $0x6d0] sm:$0xff] }
 0x551   :  { %v11733_v8 = vpop.f32.mrf.mxu1  ;;  %v11502_v4 = vpop.f32.mrf.mxu0 }
 0x552   :  { %19373 = vst [vmem:[#allocation6_spill] sm:$0xff] %v18862_v62  ;;  %v11503_v47 = vadd.f32 %v17380_v10, %v11502_v4 }
 0x553   :  { %v11734_v6 = vpop.f32.mrf.mxu1  ;;  %v11504_v58 = vpop.f32.mrf.mxu0 }
 0x554   :  { %v18867_v11 = vadd.f32 %v11734_v6, %v11503_v47  ;;  %v9568_v58 = vld [vmem:[#allocation4 + $0x6d8] sm:$0xff]  ;;  %v14985_v6 = vcombine.high %v9567_v45, %v9567_v45 }
 0x555   :  { %v11736_v19 = vpop.f32.mrf.mxu1  ;;  %v11507_v3 = vpop.f32.mrf.mxu0  ;;  %11962 = vmatmul.mubr.bf16.gmra.mxu0 %v17259_v46  ;;  %v14987_v46 = vcombine.high %v9568_v58, %v9568_v58 }
 0x556   :  { %19374 = vst [vmem:[#allocation10_spill] sm:$0xff] %v18867_v11  ;;  %v11508_v44 = vadd.f32 %v17380_v10, %v11507_v3  ;;  %11969 = vmatprep.mubr.bf16.mxu0 %v17268_v59  ;;  %v17266_v11 = vld [vmem:[#allocation4 + $0x688] ss:$36 sps:$4 sm:$0xff]   ;;  %v17269_v59 = vld [vmem:[#allocation4 + $0x690] ss:$36 sps:$4 sm:$0xff]  }
 0x557   :  { %v11739_v15 = vpop.f32.mrf.mxu1  ;;  %12194 = vmatmul.mubr.bf16.gmra.mxu1 %v17262_v22  ;;  %v11509_v42 = vpop.f32.mrf.mxu0 }
 0x558   :  { %v18869_v61 = vadd.f32 %v11739_v15, %v11508_v44  ;;  %12201 = vmatprep.mubr.bf16.mxu1 %v17271_v36 }
 0x559   :  { %v11741_v8 = vpop.f32.mrf.mxu1  ;;  %v11510_v4 = vpop.f32.mrf.mxu0 }
 0x55a   :  { %19375 = vst [vmem:[#allocation7_spill] sm:$0xff] %v18869_v61  ;;  %v11511_v47 = vadd.f32 %v17380_v10, %v11510_v4  ;;  %v14984_v4 = vcombine.low %v9567_v45, %v9567_v45 }
 0x55b   :  { %v11742_v62 = vpop.f32.mrf.mxu1  ;;  %v11512_v19 = vpop.f32.mrf.mxu0 }
 0x55c   :  { %v18871_v41 = vadd.f32 %v11742_v62, %v11511_v47  ;;  %v14986_v62 = vcombine.low %v9568_v58, %v9568_v58  ;;  %v17276_v58 = vld [vmem:[#allocation4 + $0x20] ss:$36 sps:$4 sm:$0xff]  }
 0x55d   :  { %v11744_v3 = vpop.f32.mrf.mxu1  ;;  %v11515_v40 = vpop.f32.mrf.mxu0  ;;  %11970 = vmatmul.mubr.bf16.gmra.mxu0 %v17266_v11 }
 0x55e   :  { %19376 = vst [vmem:[#allocation11_spill] sm:$0xff] %v18871_v41  ;;  %v11516_v22 = vadd.f32 %v17380_v10, %v11515_v40  ;;  %11977 = vmatprep.mubr.bf16.mxu0 %v14985_v6 }
 0x55f   :  { %v11747_v44 = vpop.f32.mrf.mxu1  ;;  %12202 = vmatmul.mubr.bf16.gmra.mxu1 %v17269_v59  ;;  %v11517_v36 = vpop.f32.mrf.mxu0 }
 0x560   :  { %v18873_v15 = vadd.f32 %v11747_v44, %v11516_v22  ;;  %12209 = vmatprep.mubr.bf16.mxu1 %v14987_v46 }
 0x561   :  { %v11749_v42 = vpop.f32.mrf.mxu1  ;;  %v11518_v8 = vpop.f32.mrf.mxu0 }
 0x563   :  { %v11750_v61 = vpop.f32.mrf.mxu1  ;;  %v11519_v19 = vpop.f32.mrf.mxu0 }
 0x565   :  { %v11751_v47 = vpop.f32.mrf.mxu1  ;;  %v11787_v41 = vpop.f32.mrf.mxu0  ;;  %11978 = vmatmul.mubr.bf16.gmra.mxu0 %v14984_v4 }
 0x566   :  { %v11788_v3 = vadd.f32 %v11787_v41, %v18697_v0  ;;  %16311 = vmatprep.mubr.msk.bf16.mxu0 %vm17385_vm1, %v18709_v51  ;;  %v18884_v51 = vld [vmem:[#allocation2 + $0x188] sm:$0xff] }
 0x567   :  { %v12019_v40 = vpop.f32.mrf.mxu1  ;;  %v11789_v10 = vpop.f32.mrf.mxu0  ;;  %12210 = vmatmul.mubr.bf16.gmra.mxu1 %v14986_v62 }
 0x568   :  { %v18878_v11 = vadd.f32 %v12019_v40, %v11788_v3  ;;  %v17277_v3 = vld [vmem:[#allocation4 + $0x68] ss:$36 sps:$4 sm:$0xff]  }
 0x569   :  { %v12021_v6 = vpop.f32.mrf.mxu1  ;;  %v11790_v46 = vpop.f32.mrf.mxu0 }
 0x56a   :  { %v11791_v45 = vadd.f32 %v11790_v46, %v18703_v18 }
 0x56b   :  { %v12022_v61 = vpop.f32.mrf.mxu1  ;;  %v11792_v59 = vpop.f32.mrf.mxu0 }
 0x56c   :  { %v18881_v22 = vadd.f32 %v12022_v61, %v11791_v45 }
 0x56d   :  { %v12024_v44 = vpop.f32.mrf.mxu1  ;;  %v11795_v36 = vpop.f32.mrf.mxu0  ;;  %16312 = vmatmul.mubr.bf16.vlgmr.msra.gmra.mxu0 %v17276_v58 }
 0x56e   :  { %v11796_v0 = vadd.f32 %v11795_v36, %v18712_v49  ;;  %16315 = vmatprep.mubr.msk.bf16.mxu0 %vm17385_vm1, %v18884_v51 }
 0x56f   :  { %v12027_v41 = vpop.f32.mrf.mxu1  ;;  %v11797_v42 = vpop.f32.mrf.mxu0 }
 0x570   :  { %v18888_v8 = vadd.f32 %v12027_v41, %v11796_v0  ;;  %v17278_v0 = vld [vmem:[#allocation4 + $0xb0] ss:$36 sps:$4 sm:$0xff]  }
 0x571   :  { %v12029_v18 = vpop.f32.mrf.mxu1  ;;  %v11798_v4 = vpop.f32.mrf.mxu0 }
 0x572   :  { %v11799_v19 = vadd.f32 %v11798_v4, %v18719_v21 }
 0x573   :  { %v12030_v62 = vpop.f32.mrf.mxu1  ;;  %v11800_v47 = vpop.f32.mrf.mxu0 }
 0x574   :  { %v18891_v40 = vadd.f32 %v12030_v62, %v11799_v19 }
 0x575   :  { %v12032_v10 = vpop.f32.mrf.mxu1  ;;  %v11803_v49 = vpop.f32.mrf.mxu0  ;;  %16316 = vmatmul.mubr.bf16.gmra.mxu0 %v17277_v3 }
 0x576   :  { %v11804_v6 = vadd.f32 %v11803_v49, %v18726_v37  ;;  %16319 = vmatprep.mubr.msk.bf16.mxu0 %vm17385_vm1, %v18884_v51 }
 0x577   :  { %v12035_v46 = vpop.f32.mrf.mxu1  ;;  %v11805_v45 = vpop.f32.mrf.mxu0 }
 0x578   :  { %v18896_v61 = vadd.f32 %v12035_v46, %v11804_v6  ;;  %v17279_v6 = vld [vmem:[#allocation4 + $0xf8] ss:$36 sps:$4 sm:$0xff]  }
 0x579   :  { %v12037_v59 = vpop.f32.mrf.mxu1  ;;  %v11806_v58 = vpop.f32.mrf.mxu0 }
 0x57a   :  { %v11807_v21 = vadd.f32 %v11806_v58, %v18733_v56 }
 0x57b   :  { %v12038_v44 = vpop.f32.mrf.mxu1  ;;  %v11808_v36 = vpop.f32.mrf.mxu0 }
 0x57c   :  { %v18899_v41 = vadd.f32 %v12038_v44, %v11807_v21 }
 0x57d   :  { %v12040_v42 = vpop.f32.mrf.mxu1  ;;  %v11811_v18 = vpop.f32.mrf.mxu0  ;;  %16320 = vmatmul.mubr.bf16.gmra.mxu0 %v17278_v0 }
 0x57e   :  { %v11812_v37 = vadd.f32 %v11811_v18, %v18740_v30  ;;  %16323 = vmatprep.mubr.msk.bf16.mxu0 %vm17385_vm1, %v18884_v51 }
 0x57f   :  { %v12043_v4 = vpop.f32.mrf.mxu1  ;;  %v11813_v19 = vpop.f32.mrf.mxu0 }
 0x580   :  { %v18904_v62 = vadd.f32 %v12043_v4, %v11812_v37  ;;  %v17280_v37 = vld [vmem:[#allocation4 + $0x140] ss:$36 sps:$4 sm:$0xff]  }
 0x581   :  { %v12045_v47 = vpop.f32.mrf.mxu1  ;;  %v11814_v3 = vpop.f32.mrf.mxu0 }
 0x582   :  { %v11815_v56 = vadd.f32 %v11814_v3, %v18744_v7 }
 0x583   :  { %v12046_v10 = vpop.f32.mrf.mxu1  ;;  %v11816_v49 = vpop.f32.mrf.mxu0 }
 0x584   :  { %v18907_v46 = vadd.f32 %v12046_v10, %v11815_v56 }
 0x585   :  { %v12048_v45 = vpop.f32.mrf.mxu1  ;;  %v11819_v59 = vpop.f32.mrf.mxu0  ;;  %16324 = vmatmul.mubr.bf16.gmra.mxu0 %v17279_v6 }
 0x586   :  { %v11820_v30 = vadd.f32 %v11819_v59, %v18750_v29  ;;  %16327 = vmatprep.mubr.msk.bf16.mxu0 %vm17385_vm1, %v18884_v51 }
 0x587   :  { %v12051_v58 = vpop.f32.mrf.mxu1  ;;  %v11821_v21 = vpop.f32.mrf.mxu0 }
 0x588   :  { %v18912_v44 = vadd.f32 %v12051_v58, %v11820_v30  ;;  %v17281_v30 = vld [vmem:[#allocation4 + $0x188] ss:$36 sps:$4 sm:$0xff]  }
 0x589   :  { %v12053_v36 = vpop.f32.mrf.mxu1  ;;  %v11822_v0 = vpop.f32.mrf.mxu0 }
 0x58a   :  { %v11823_v7 = vadd.f32 %v11822_v0, %v18754_v39 }
 0x58b   :  { %v12054_v42 = vpop.f32.mrf.mxu1  ;;  %v11824_v18 = vpop.f32.mrf.mxu0 }
 0x58c   :  { %v18915_v4 = vadd.f32 %v12054_v42, %v11823_v7 }
 0x58d   :  { %v12056_v19 = vpop.f32.mrf.mxu1  ;;  %v11827_v47 = vpop.f32.mrf.mxu0  ;;  %16328 = vmatmul.mubr.bf16.gmra.mxu0 %v17280_v37 }
 0x58e   :  { %v11828_v29 = vadd.f32 %v11827_v47, %v18757_v57  ;;  %16331 = vmatprep.mubr.msk.bf16.mxu0 %vm17385_vm1, %v18884_v51 }
 0x58f   :  { %v12059_v3 = vpop.f32.mrf.mxu1  ;;  %v11829_v56 = vpop.f32.mrf.mxu0 }
 0x590   :  { %v18920_v10 = vadd.f32 %v12059_v3, %v11828_v29  ;;  %v17282_v29 = vld [vmem:[#allocation4 + $0x1d0] ss:$36 sps:$4 sm:$0xff]  }
 0x591   :  { %v12061_v49 = vpop.f32.mrf.mxu1  ;;  %v11830_v6 = vpop.f32.mrf.mxu0 }
 0x592   :  { %v11831_v39 = vadd.f32 %v11830_v6, %v18760_v1 }
 0x593   :  { %v12062_v45 = vpop.f32.mrf.mxu1  ;;  %v11832_v59 = vpop.f32.mrf.mxu0 }
 0x594   :  { %v18923_v58 = vadd.f32 %v12062_v45, %v11831_v39 }
 0x595   :  { %v12064_v21 = vpop.f32.mrf.mxu1  ;;  %v11835_v36 = vpop.f32.mrf.mxu0  ;;  %16332 = vmatmul.mubr.bf16.gmra.mxu0 %v17281_v30 }
 0x596   :  { %v11836_v57 = vadd.f32 %v11835_v36, %v18763_v63  ;;  %16335 = vmatprep.mubr.msk.bf16.mxu0 %vm17385_vm1, %v18884_v51 }
 0x597   :  { %v12067_v0 = vpop.f32.mrf.mxu1  ;;  %v11837_v7 = vpop.f32.mrf.mxu0 }
 0x598   :  { %v18928_v42 = vadd.f32 %v12067_v0, %v11836_v57  ;;  %v17283_v57 = vld [vmem:[#allocation4 + $0x218] ss:$36 sps:$4 sm:$0xff]  }
 0x599   :  { %v12069_v18 = vpop.f32.mrf.mxu1  ;;  %v11838_v37 = vpop.f32.mrf.mxu0 }
 0x59a   :  { %v11839_v1 = vadd.f32 %v11838_v37, %v18766_v2 }
 0x59b   :  { %v12070_v19 = vpop.f32.mrf.mxu1  ;;  %v11840_v47 = vpop.f32.mrf.mxu0 }
 0x59c   :  { %v18931_v3 = vadd.f32 %v12070_v19, %v11839_v1 }
 0x59d   :  { %v12072_v56 = vpop.f32.mrf.mxu1  ;;  %v11843_v49 = vpop.f32.mrf.mxu0  ;;  %16336 = vmatmul.mubr.bf16.gmra.mxu0 %v17282_v29 }
 0x59e   :  { %v11844_v63 = vadd.f32 %v11843_v49, %v18772_v31  ;;  %16339 = vmatprep.mubr.msk.bf16.mxu0 %vm17385_vm1, %v18884_v51  ;;  %v17300_v56 = vld [vmem:[%s19353_s7 + $0x78] sm:$0xff]  }
 0x59f   :  { %v12075_v6 = vpop.f32.mrf.mxu1  ;;  %v11845_v39 = vpop.f32.mrf.mxu0  ;;  %16082 = vmatprep.subr.bf16.mxu1 %v17300_v56 }
 0x5a0   :  { %v18936_v45 = vadd.f32 %v12075_v6, %v11844_v63 }
 0x5a1   :  { %v12077_v59 = vpop.f32.mrf.mxu1  ;;  %v11846_v30 = vpop.f32.mrf.mxu0 }
 0x5a2   :  { %v11847_v2 = vadd.f32 %v11846_v30, %v18775_v25  ;;  %v17284_v25 = vld [vmem:[#allocation4 + $0x260] ss:$36 sps:$4 sm:$0xff]  }
 0x5a3   :  { %v12078_v21 = vpop.f32.mrf.mxu1  ;;  %v11848_v36 = vpop.f32.mrf.mxu0 }
 0x5a4   :  { %v18939_v0 = vadd.f32 %v12078_v21, %v11847_v2 }
 0x5a5   :  { %v12080_v7 = vpop.f32.mrf.mxu1  ;;  %v11851_v18 = vpop.f32.mrf.mxu0  ;;  %16340 = vmatmul.mubr.bf16.gmra.mxu0 %v17283_v57 }
 0x5a6   :  { %v11852_v31 = vadd.f32 %v11851_v18, %v18778_v24  ;;  %16343 = vmatprep.mubr.msk.bf16.mxu0 %vm17385_vm1, %v18884_v51  ;;  %v17301_v24 = vld [vmem:[%s19353_s7 + $0x38] sm:$0xff]  }
 0x5a7   :  { %v12083_v37 = vpop.f32.mrf.mxu1  ;;  %v11853_v1 = vpop.f32.mrf.mxu0  ;;  %16083 = vmatpush3.bf16.msra.mxu1 %v17301_v24 }
 0x5a8   :  { %v18944_v19 = vadd.f32 %v12083_v37, %v11852_v31  ;;  %v17285_v31 = vld [vmem:[#allocation4 + $0x2a8] ss:$36 sps:$4 sm:$0xff]  }
 0x5a9   :  { %v12085_v47 = vpop.f32.mrf.mxu1  ;;  %v11854_v29 = vpop.f32.mrf.mxu0 }
 0x5aa   :  { %v11855_v49 = vadd.f32 %v11854_v29, %v18781_v23 }
 0x5ab   :  { %v12086_v63 = vpop.f32.mrf.mxu1  ;;  %v11856_v6 = vpop.f32.mrf.mxu0 }
 0x5ac   :  { %v18953_v39 = vadd.f32 %v12086_v63, %v11855_v49 }
 0x5ad   :  { %v12088_v59 = vpop.f32.mrf.mxu1  ;;  %v11859_v30 = vpop.f32.mrf.mxu0  ;;  %16344 = vmatmul.mubr.bf16.gmra.mxu0 %v17284_v25 }
 0x5ae   :  { %v11860_v2 = vadd.f32 %v11859_v30, %v18784_v5  ;;  %16347 = vmatprep.mubr.msk.bf16.mxu0 %vm17385_vm1, %v18884_v51 }
 0x5af   :  { %v12091_v21 = vpop.f32.mrf.mxu1  ;;  %v11861_v23 = vpop.f32.mrf.mxu0 }
 0x5b0   :  { %v18958_v36 = vadd.f32 %v12091_v21, %v11860_v2 }
 0x5b1   :  { %v12093_v57 = vpop.f32.mrf.mxu1  ;;  %v11862_v7 = vpop.f32.mrf.mxu0 }
 0x5b2   :  { %v11863_v18 = vadd.f32 %v11862_v7, %v18787_v32  ;;  %v17286_v32 = vld [vmem:[#allocation4 + $0x2f0] ss:$36 sps:$4 sm:$0xff]  }
 0x5b3   :  { %v12094_v37 = vpop.f32.mrf.mxu1  ;;  %v11864_v1 = vpop.f32.mrf.mxu0 }
 0x5b4   :  { %v18961_v47 = vadd.f32 %v12094_v37, %v11863_v18 }
 0x5b5   :  { %v12096_v29 = vpop.f32.mrf.mxu1  ;;  %v11867_v25 = vpop.f32.mrf.mxu0  ;;  %16348 = vmatmul.mubr.bf16.gmra.mxu0 %v17285_v31 }
 0x5b6   :  { %v11868_v5 = vadd.f32 %v11867_v25, %v18790_v52  ;;  %16351 = vmatprep.mubr.msk.bf16.mxu0 %vm17385_vm1, %v18884_v51  ;;  %v17287_v29 = vld [vmem:[#allocation4 + $0x338] ss:$36 sps:$4 sm:$0xff]  }
 0x5b7   :  { %v12099_v56 = vpop.f32.mrf.mxu1  ;;  %v11869_v49 = vpop.f32.mrf.mxu0 }
 0x5b8   :  { %v18966_v24 = vadd.f32 %v12099_v56, %v11868_v5 }
 0x5b9   :  { %v12101_v63 = vpop.f32.mrf.mxu1  ;;  %v11870_v6 = vpop.f32.mrf.mxu0 }
 0x5ba   :  { %v11871_v59 = vadd.f32 %v11870_v6, %v18793_v43  ;;  %v17303_v6 = vld [vmem:[%s19353_s7 + $0x70] sm:$0xff]  }
 0x5bb   :  { %v12102_v30 = vpop.f32.mrf.mxu1  ;;  %v11872_v2 = vpop.f32.mrf.mxu0  ;;  %16084 = vmatprep.subr.bf16.mxu1 %v17303_v6 }
 0x5bc   :  { %v18969_v21 = vadd.f32 %v12102_v30, %v11871_v59 }
 0x5bd   :  { %v12104_v23 = vpop.f32.mrf.mxu1  ;;  %v11875_v57 = vpop.f32.mrf.mxu0  ;;  %16352 = vmatmul.mubr.bf16.gmra.mxu0 %v17286_v32 }
 0x5be   :  { %v11876_v52 = vadd.f32 %v11875_v57, %v18796_v26  ;;  %16355 = vmatprep.mubr.msk.bf16.mxu0 %vm17385_vm1, %v18884_v51  ;;  %v17288_v57 = vld [vmem:[#allocation4 + $0x380] ss:$36 sps:$4 sm:$0xff]  }
 0x5bf   :  { %v12107_v7 = vpop.f32.mrf.mxu1  ;;  %v11877_v18 = vpop.f32.mrf.mxu0 }
 0x5c0   :  { %v18974_v31 = vadd.f32 %v12107_v7, %v11876_v52 }
 0x5c1   :  { %v12109_v37 = vpop.f32.mrf.mxu1  ;;  %v11878_v1 = vpop.f32.mrf.mxu0 }
 0x5c2   :  { %v11879_v43 = vadd.f32 %v11878_v1, %v18799_v55  ;;  %v17304_v55 = vld [vmem:[%s19353_s7 + $0x30] sm:$0xff]  }
 0x5c3   :  { %v12110_v25 = vpop.f32.mrf.mxu1  ;;  %v11880_v5 = vpop.f32.mrf.mxu0  ;;  %16085 = vmatpush3.bf16.msra.mxu1 %v17304_v55 }
 0x5c4   :  { %v18977_v56 = vadd.f32 %v12110_v25, %v11879_v43 }
 0x5c5   :  { %v12112_v49 = vpop.f32.mrf.mxu1  ;;  %v11883_v63 = vpop.f32.mrf.mxu0  ;;  %16356 = vmatmul.mubr.bf16.gmra.mxu0 %v17287_v29 }
 0x5c6   :  { %v11884_v26 = vadd.f32 %v11883_v63, %v18802_v54  ;;  %16359 = vmatprep.mubr.msk.bf16.mxu0 %vm17385_vm1, %v18884_v51 }
 0x5c7   :  { %v12115_v32 = vpop.f32.mrf.mxu1  ;;  %v11885_v59 = vpop.f32.mrf.mxu0 }
 0x5c8   :  { %v18988_v30 = vadd.f32 %v12115_v32, %v11884_v26  ;;  %v17289_v26 = vld [vmem:[#allocation4 + $0x3c8] ss:$36 sps:$4 sm:$0xff]  }
 0x5c9   :  { %v12117_v2 = vpop.f32.mrf.mxu1  ;;  %v11886_v23 = vpop.f32.mrf.mxu0 }
 0x5ca   :  { %v11887_v54 = vadd.f32 %v11886_v23, %v18805_v53 }
 0x5cb   :  { %v12118_v52 = vpop.f32.mrf.mxu1  ;;  %v11888_v7 = vpop.f32.mrf.mxu0 }
 0x5cc   :  { %v18991_v18 = vadd.f32 %v12118_v52, %v11887_v54 }
 0x5cd   :  { %v12120_v37 = vpop.f32.mrf.mxu1  ;;  %v11891_v1 = vpop.f32.mrf.mxu0  ;;  %16360 = vmatmul.mubr.bf16.gmra.mxu0 %v17288_v57 }
 0x5ce   :  { %v11892_v29 = vadd.f32 %v11891_v1, %v18808_v13  ;;  %16363 = vmatprep.mubr.msk.bf16.mxu0 %vm17385_vm1, %v18884_v51 }
 0x5cf   :  { %v12123_v43 = vpop.f32.mrf.mxu1  ;;  %v11893_v25 = vpop.f32.mrf.mxu0 }
 0x5d0   :  { %v18996_v5 = vadd.f32 %v12123_v43, %v11892_v29  ;;  %v17290_v29 = vld [vmem:[#allocation4 + $0x410] ss:$36 sps:$4 sm:$0xff]  }
 0x5d1   :  { %v12125_v49 = vpop.f32.mrf.mxu1  ;;  %v11894_v63 = vpop.f32.mrf.mxu0 }
 0x5d2   :  { %v11895_v53 = vadd.f32 %v11894_v63, %v18811_v20  ;;  %v17305_v63 = vld [vmem:[%s19353_s7 + $0x68] sm:$0xff]  }
 0x5d3   :  { %v12126_v6 = vpop.f32.mrf.mxu1  ;;  %v11896_v55 = vpop.f32.mrf.mxu0  ;;  %16086 = vmatprep.subr.bf16.mxu1 %v17305_v63 }
 0x5d4   :  { %v18999_v32 = vadd.f32 %v12126_v6, %v11895_v53 }
 0x5d5   :  { %v12128_v59 = vpop.f32.mrf.mxu1  ;;  %v11899_v2 = vpop.f32.mrf.mxu0  ;;  %16364 = vmatmul.mubr.bf16.gmra.mxu0 %v17289_v26 }
 0x5d6   :  { %v11900_v13 = vadd.f32 %v11899_v2, %v18814_v9  ;;  %16367 = vmatprep.mubr.msk.bf16.mxu0 %vm17385_vm1, %v18884_v51 }
 0x5d7   :  { %v12131_v23 = vpop.f32.mrf.mxu1  ;;  %v11901_v57 = vpop.f32.mrf.mxu0 }
 0x5d8   :  { %v19004_v54 = vadd.f32 %v12131_v23, %v11900_v13  ;;  %v17291_v23 = vld [vmem:[#allocation4 + $0x458] ss:$36 sps:$4 sm:$0xff]  }
 0x5d9   :  { %v12133_v52 = vpop.f32.mrf.mxu1  ;;  %v11902_v7 = vpop.f32.mrf.mxu0 }
 0x5da   :  { %v11903_v20 = vadd.f32 %v11902_v7, %v18817_v17  ;;  %v17306_v17 = vld [vmem:[%s19353_s7 + $0x28] sm:$0xff]  }
 0x5db   :  { %v12134_v37 = vpop.f32.mrf.mxu1  ;;  %v11904_v1 = vpop.f32.mrf.mxu0  ;;  %16087 = vmatpush3.bf16.msra.mxu1 %v17306_v17  ;;  %v17292_v17 = vld [vmem:[#allocation4 + $0x4a0] ss:$36 sps:$4 sm:$0xff]  }
 0x5dc   :  { %v19007_v43 = vadd.f32 %v12134_v37, %v11903_v20 }
 0x5dd   :  { %v12136_v25 = vpop.f32.mrf.mxu1  ;;  %v11907_v49 = vpop.f32.mrf.mxu0  ;;  %16368 = vmatmul.mubr.bf16.gmra.mxu0 %v17290_v29 }
 0x5de   :  { %v11908_v9 = vadd.f32 %v11907_v49, %v18820_v50  ;;  %16371 = vmatprep.mubr.msk.bf16.mxu0 %vm17385_vm1, %v18884_v51 }
 0x5df   :  { %v12139_v26 = vpop.f32.mrf.mxu1  ;;  %v11909_v53 = vpop.f32.mrf.mxu0 }
 0x5e0   :  { %v19018_v6 = vadd.f32 %v12139_v26, %v11908_v9 }
 0x5e1   :  { %v12141_v55 = vpop.f32.mrf.mxu1  ;;  %v11910_v59 = vpop.f32.mrf.mxu0 }
 0x5e2   :  { %v11911_v50 = vadd.f32 %v11910_v59, %v18823_v14 }
 0x5e3   :  { %v12142_v2 = vpop.f32.mrf.mxu1  ;;  %v11912_v13 = vpop.f32.mrf.mxu0 }
 0x5e4   :  { %v19021_v57 = vadd.f32 %v12142_v2, %v11911_v50 }
 0x5e5   :  { %v12144_v52 = vpop.f32.mrf.mxu1  ;;  %v11915_v7 = vpop.f32.mrf.mxu0  ;;  %16372 = vmatmul.mubr.bf16.gmra.mxu0 %v17291_v23 }
 0x5e6   :  { %v11916_v20 = vadd.f32 %v11915_v7, %v18826_v27  ;;  %16375 = vmatprep.mubr.msk.bf16.mxu0 %vm17385_vm1, %v18884_v51 }
 0x5e7   :  { %v12147_v37 = vpop.f32.mrf.mxu1  ;;  %v11917_v1 = vpop.f32.mrf.mxu0 }
 0x5e8   :  { %v19026_v29 = vadd.f32 %v12147_v37, %v11916_v20  ;;  %v17293_v20 = vld [vmem:[#allocation4 + $0x4e8] ss:$36 sps:$4 sm:$0xff]  }
 0x5e9   :  { %v12149_v25 = vpop.f32.mrf.mxu1  ;;  %v11918_v49 = vpop.f32.mrf.mxu0 }
 0x5ea   :  { %v11919_v14 = vadd.f32 %v11918_v49, %v18829_v34  ;;  %v17307_v49 = vld [vmem:[%s19353_s7 + $0x60] sm:$0xff]  }
 0x5eb   :  { %v12150_v9 = vpop.f32.mrf.mxu1  ;;  %v11920_v63 = vpop.f32.mrf.mxu0  ;;  %16088 = vmatprep.subr.bf16.mxu1 %v17307_v49 }
 0x5ec   :  { %v19029_v26 = vadd.f32 %v12150_v9, %v11919_v14 }
 0x5ed   :  { %v12152_v53 = vpop.f32.mrf.mxu1  ;;  %v11923_v55 = vpop.f32.mrf.mxu0  ;;  %16376 = vmatmul.mubr.bf16.gmra.mxu0 %v17292_v17 }
 0x5ee   :  { %v11924_v27 = vadd.f32 %v11923_v55, %v18832_v60  ;;  %16379 = vmatprep.mubr.msk.bf16.mxu0 %vm17385_vm1, %v18884_v51 }
 0x5ef   :  { %v12155_v59 = vpop.f32.mrf.mxu1  ;;  %v11925_v50 = vpop.f32.mrf.mxu0 }
 0x5f0   :  { %v19034_v2 = vadd.f32 %v12155_v59, %v11924_v27  ;;  %v17294_v59 = vld [vmem:[#allocation4 + $0x530] ss:$36 sps:$4 sm:$0xff]  }
 0x5f1   :  { %v12157_v13 = vpop.f32.mrf.mxu1  ;;  %v11926_v23 = vpop.f32.mrf.mxu0 }
 0x5f2   :  { %v11927_v34 = vadd.f32 %v11926_v23, %v18835_v28  ;;  %v17308_v28 = vld [vmem:[%s19353_s7 + $0x20] sm:$0xff]  }
 0x5f3   :  { %v12158_v52 = vpop.f32.mrf.mxu1  ;;  %v11928_v7 = vpop.f32.mrf.mxu0  ;;  %16089 = vmatpush3.bf16.msra.mxu1 %v17308_v28  ;;  %v17295_v28 = vld [vmem:[#allocation4 + $0x578] ss:$36 sps:$4 sm:$0xff]  }
 0x5f4   :  { %v19037_v37 = vadd.f32 %v12158_v52, %v11927_v34 }
 0x5f5   :  { %v12160_v1 = vpop.f32.mrf.mxu1  ;;  %v11931_v25 = vpop.f32.mrf.mxu0  ;;  %16380 = vmatmul.mubr.bf16.gmra.mxu0 %v17293_v20 }
 0x5f6   :  { %v11932_v60 = vadd.f32 %v11931_v25, %v18838_v16  ;;  %16383 = vmatprep.mubr.msk.bf16.mxu0 %vm17385_vm1, %v18884_v51 }
 0x5f7   :  { %v12163_v14 = vpop.f32.mrf.mxu1  ;;  %v11933_v9 = vpop.f32.mrf.mxu0 }
 0x5f8   :  { %v19048_v63 = vadd.f32 %v12163_v14, %v11932_v60 }
 0x5f9   :  { %v12165_v17 = vpop.f32.mrf.mxu1  ;;  %v11934_v53 = vpop.f32.mrf.mxu0 }
 0x5fa   :  { %v11935_v16 = vadd.f32 %v11934_v53, %v18841_v38 }
 0x5fb   :  { %v12166_v55 = vpop.f32.mrf.mxu1  ;;  %v11936_v27 = vpop.f32.mrf.mxu0 }
 0x5fc   :  { %v19051_v50 = vadd.f32 %v12166_v55, %v11935_v16 }
 0x5fd   :  { %v12168_v13 = vpop.f32.mrf.mxu1  ;;  %v11939_v23 = vpop.f32.mrf.mxu0  ;;  %16384 = vmatmul.mubr.bf16.gmra.mxu0 %v17294_v59 }
 0x5fe   :  { %v11940_v34 = vadd.f32 %v11939_v23, %v18844_v12  ;;  %16387 = vmatprep.mubr.msk.bf16.mxu0 %vm17385_vm1, %v18884_v51 }
 0x5ff   :  { %v12171_v52 = vpop.f32.mrf.mxu1  ;;  %v11941_v7 = vpop.f32.mrf.mxu0 }
 0x600   :  { %v19056_v20 = vadd.f32 %v12171_v52, %v11940_v34  ;;  %v17296_v34 = vld [vmem:[#allocation4 + $0x5c0] ss:$36 sps:$4 sm:$0xff]  }
 0x601   :  { %v12173_v1 = vpop.f32.mrf.mxu1  ;;  %v11942_v25 = vpop.f32.mrf.mxu0 }
 0x602   :  { %v11943_v38 = vadd.f32 %v11942_v25, %v18847_v33 }
 0x603   :  { %v12174_v60 = vpop.f32.mrf.mxu1  ;;  %v11944_v49 = vpop.f32.mrf.mxu0 }
 0x604   :  { %v19059_v14 = vadd.f32 %v12174_v60, %v11943_v38  ;;  %v17309_v38 = vld [vmem:[%s19353_s7 + $0x58] sm:$0xff]  }
 0x605   :  { %v12176_v9 = vpop.f32.mrf.mxu1  ;;  %v11947_v17 = vpop.f32.mrf.mxu0  ;;  %16388 = vmatmul.mubr.bf16.gmra.mxu0 %v17295_v28  ;;  %16090 = vmatprep.subr.bf16.mxu1 %v17309_v38 }
 0x606   :  { %v11948_v12 = vadd.f32 %v11947_v17, %v18850_v48  ;;  %16391 = vmatprep.mubr.msk.bf16.mxu0 %vm17385_vm1, %v18884_v51  ;;  %v19377_v48 = vld [vmem:[#allocation8_spill] sm:$0xff]  ;;  %v19378_v17 = vld [vmem:[#allocation9_spill] sm:$0xff] }
 0x607   :  { %v12179_v53 = vpop.f32.mrf.mxu1  ;;  %v11949_v16 = vpop.f32.mrf.mxu0 }
 0x608   :  { %v19064_v55 = vadd.f32 %v12179_v53, %v11948_v12  ;;  %v17310_v53 = vld [vmem:[%s19353_s7 + $0x18] sm:$0xff]  }
 0x609   :  { %v12181_v27 = vpop.f32.mrf.mxu1  ;;  %v11950_v59 = vpop.f32.mrf.mxu0  ;;  %16091 = vmatpush3.bf16.msra.mxu1 %v17310_v53 }
 0x60a   :  { %v11951_v33 = vadd.f32 %v11950_v59, %v18853_v35  ;;  %v17297_v59 = vld [vmem:[#allocation4 + $0x608] ss:$36 sps:$4 sm:$0xff]  }
 0x60b   :  { %v12182_v13 = vpop.f32.mrf.mxu1  ;;  %v11952_v23 = vpop.f32.mrf.mxu0 }
 0x60c   :  { %v19067_v52 = vadd.f32 %v12182_v13, %v11951_v33 }
 0x60d   :  { %v12184_v7 = vpop.f32.mrf.mxu1  ;;  %v11955_v1 = vpop.f32.mrf.mxu0  ;;  %16392 = vmatmul.mubr.bf16.gmra.mxu0 %v17296_v34  ;;  %v19379_v34 = vld [vmem:[#allocation6_spill] sm:$0xff] }
 0x60e   :  { %v11956_v25 = vadd.f32 %v11955_v1, %v19377_v48  ;;  %16395 = vmatprep.mubr.msk.bf16.mxu0 %vm17385_vm1, %v18884_v51 }
 0x60f   :  { %v12187_v60 = vpop.f32.mrf.mxu1  ;;  %v11957_v49 = vpop.f32.mrf.mxu0 }
 0x610   :  { %v19075_v35 = vadd.f32 %v12187_v60, %v11956_v25  ;;  %v19380_v49 = vld [vmem:[#allocation10_spill] sm:$0xff] }
 0x611   :  { %v12189_v28 = vpop.f32.mrf.mxu1  ;;  %v11958_v9 = vpop.f32.mrf.mxu0 }
 0x612   :  { %v11959_v12 = vadd.f32 %v11958_v9, %v19378_v17 }
 0x613   :  { %v12190_v16 = vpop.f32.mrf.mxu1  ;;  %v11960_v27 = vpop.f32.mrf.mxu0 }
 0x614   :  { %v19081_v33 = vadd.f32 %v12190_v16, %v11959_v12  ;;  %v17298_v12 = vld [vmem:[#allocation4 + $0x650] ss:$36 sps:$4 sm:$0xff]  }
 0x615   :  { %v12192_v13 = vpop.f32.mrf.mxu1  ;;  %v11963_v23 = vpop.f32.mrf.mxu0  ;;  %16396 = vmatmul.mubr.bf16.gmra.mxu0 %v17297_v59  ;;  %v19381_v59 = vld [vmem:[#allocation7_spill] sm:$0xff] }
 0x616   :  { %v11964_v7 = vadd.f32 %v11963_v23, %v19379_v34  ;;  %16399 = vmatprep.mubr.msk.bf16.mxu0 %vm17385_vm1, %v18884_v51 }
 0x617   :  { %v12195_v1 = vpop.f32.mrf.mxu1  ;;  %v11965_v48 = vpop.f32.mrf.mxu0 }
 0x618   :  { %v19086_v25 = vadd.f32 %v12195_v1, %v11964_v7 }
 0x619   :  { %v12197_v38 = vpop.f32.mrf.mxu1  ;;  %v11966_v60 = vpop.f32.mrf.mxu0 }
 0x61a   :  { %v11967_v28 = vadd.f32 %v11966_v60, %v19380_v49  ;;  %v19382_v38 = vld [vmem:[#allocation11_spill] sm:$0xff] }
 0x61b   :  { %v12198_v9 = vpop.f32.mrf.mxu1  ;;  %v11968_v17 = vpop.f32.mrf.mxu0 }
 0x61c   :  { %v19089_v53 = vadd.f32 %v12198_v9, %v11967_v28  ;;  %v17299_v28 = vld [vmem:[#allocation4 + $0x698] ss:$36 sps:$4 sm:$0xff]  }
 0x61d   :  { %v12200_v16 = vpop.f32.mrf.mxu1  ;;  %v11971_v27 = vpop.f32.mrf.mxu0  ;;  %16400 = vmatmul.mubr.bf16.gmra.mxu0 %v17298_v12 }
 0x61e   :  { %v11972_v13 = vadd.f32 %v11971_v27, %v19381_v59  ;;  %16403 = vmatprep.mubr.msk.bf16.mxu0 %vm17385_vm1, %v18884_v51 }
 0x61f   :  { %v12203_v23 = vpop.f32.mrf.mxu1  ;;  %v11973_v34 = vpop.f32.mrf.mxu0 }
 0x620   :  { %v19094_v7 = vadd.f32 %v12203_v23, %v11972_v13 }
 0x621   :  { %v12205_v1 = vpop.f32.mrf.mxu1  ;;  %v11974_v48 = vpop.f32.mrf.mxu0 }
 0x622   :  { %v11975_v60 = vadd.f32 %v11974_v48, %v19382_v38  ;;  %v17302_v1 = vld [vmem:[#allocation4 + $0x6e0] ss:$0 sps:$4 sm:$0xff]  }
 0x623   :  { %v12206_v49 = vpop.f32.mrf.mxu1  ;;  %v11976_v17 = vpop.f32.mrf.mxu0  ;;  %v17311_v38 = vld [vmem:[%s19353_s7 + $0x50] sm:$0xff]  }
 0x624   :  { %v19097_v9 = vadd.f32 %v12206_v49, %v11975_v60  ;;  %v17312_v60 = vld [vmem:[%s19353_s7 + $0x10] sm:$0xff]   ;;  %16092 = vmatprep.subr.bf16.mxu1 %v17311_v38 }
 0x625   :  { %v12208_v16 = vpop.f32.mrf.mxu1  ;;  %v11979_v12 = vpop.f32.mrf.mxu0  ;;  %16404 = vmatmul.mubr.bf16.gmra.mxu0 %v17299_v28  ;;  %16093 = vmatpush3.bf16.msra.mxu1 %v17312_v60 }
 0x626   :  { %v11980_v27 = vadd.f32 %v11979_v12, %v18873_v15  ;;  %16407 = vmatprep.mubr.msk.bf16.mxu0 %vm17385_vm1, %v18884_v51 }
 0x627   :  { %v11981_v59 = vpop.f32.mrf.mxu0  ;;  %v12211_v13 = vpop.f32.mrf.mxu1 }
 0x628   :  { %v19102_v23 = vadd.f32 %v12211_v13, %v11980_v27 }
 0x629   :  { %v11982_v34 = vpop.f32.mrf.mxu0  ;;  %v12213_v48 = vpop.f32.mrf.mxu1 }
 0x62a   :  { %19383 = vst [vmem:[#allocation8_spill] sm:$0xff] %v19102_v23 }
 0x62b   :  { %v11983_v49 = vpop.f32.mrf.mxu0  ;;  %v12214_v15 = vpop.f32.mrf.mxu1 }
 0x62d   :  { %v12251_v17 = vpop.f32.mrf.mxu0  ;;  %16408 = vmatmul.mubr.bf16.gmra.mxu0 %v17302_v1  ;;  %v12215_v51 = vpop.f32.mrf.mxu1 }
 0x62e   :  { %v12252_v28 = vadd.f32 %v12251_v17, %v18878_v11 }
 0x62f   :  { %v16313_v16 = vpop.f32.mrf.mxu0 }
 0x630   :  { %v12449_v12 = vmax.f32 %v12252_v28, 0.0 }
 0x631   :  { %v12254_v27 = vpop.f32.mrf.mxu0 }
 0x632   :  { %12498 = vst [vmem:[#allocation2] sm:$0xff] %v12449_v12  ;;  %v12255_v59 = vadd.f32 %v12254_v27, %v18881_v22 }
 0x633   :  { %v16314_v13 = vpop.f32.mrf.mxu0 }
 0x634   :  { %v12450_v34 = vmax.f32 %v12255_v59, 0.0 }
 0x635   :  { %v12259_v48 = vpop.f32.mrf.mxu0 }
 0x636   :  { %12499 = vst [vmem:[#allocation2 + $0x8] sm:$0xff] %v12450_v34  ;;  %v12260_v49 = vadd.f32 %v12259_v48, %v18888_v8  ;;  %v17313_v8 = vld [vmem:[%s19353_s7 + $0x48] sm:$0xff]  }
 0x637   :  { %v16317_v15 = vpop.f32.mrf.mxu0  ;;  %16094 = vmatprep.subr.bf16.mxu1 %v17313_v8 }
 0x638   :  { %v12451_v38 = vmax.f32 %v12260_v49, 0.0 }
 0x639   :  { %v12262_v23 = vpop.f32.mrf.mxu0 }
 0x63a   :  { %12500 = vst [vmem:[#allocation2 + $0x10] sm:$0xff] %v12451_v38  ;;  %v12263_v1 = vadd.f32 %v12262_v23, %v18891_v40  ;;  %v17314_v40 = vld [vmem:[%s19353_s7 + $0x8] sm:$0xff]  }
 0x63b   :  { %v16318_v60 = vpop.f32.mrf.mxu0  ;;  %16095 = vmatpush3.bf16.msra.mxu1 %v17314_v40 }
 0x63c   :  { %v12452_v11 = vmax.f32 %v12263_v1, 0.0 }
 0x63d   :  { %v12267_v17 = vpop.f32.mrf.mxu0 }
 0x63e   :  { %12501 = vst [vmem:[#allocation2 + $0x18] sm:$0xff] %v12452_v11  ;;  %v12268_v51 = vadd.f32 %v12267_v17, %v18896_v61 }
 0x63f   :  { %v16321_v28 = vpop.f32.mrf.mxu0 }
 0x640   :  { %v12453_v22 = vmax.f32 %v12268_v51, 0.0 }
 0x641   :  { %v12270_v16 = vpop.f32.mrf.mxu0 }
 0x642   :  { %12502 = vst [vmem:[#allocation2 + $0x20] sm:$0xff] %v12453_v22  ;;  %v12271_v12 = vadd.f32 %v12270_v16, %v18899_v41 }
 0x643   :  { %v16322_v23 = vpop.f32.mrf.mxu0 }
 0x644   :  { %v12454_v27 = vmax.f32 %v12271_v12, 0.0 }
 0x645   :  { %v12275_v59 = vpop.f32.mrf.mxu0 }
 0x646   :  { %12503 = vst [vmem:[#allocation2 + $0x28] sm:$0xff] %v12454_v27  ;;  %v12276_v61 = vadd.f32 %v12275_v59, %v18904_v62 }
 0x647   :  { %v16325_v13 = vpop.f32.mrf.mxu0 }
 0x648   :  { %v12455_v34 = vmax.f32 %v12276_v61, 0.0 }
 0x649   :  { %v12278_v48 = vpop.f32.mrf.mxu0 }
 0x64a   :  { %12504 = vst [vmem:[#allocation2 + $0x30] sm:$0xff] %v12455_v34  ;;  %v12279_v41 = vadd.f32 %v12278_v48, %v18907_v46 }
 0x64b   :  { %v16326_v49 = vpop.f32.mrf.mxu0 }
 0x64c   :  { %v12456_v15 = vmax.f32 %v12279_v41, 0.0 }
 0x64d   :  { %v12283_v38 = vpop.f32.mrf.mxu0 }
 0x64e   :  { %12505 = vst [vmem:[#allocation2 + $0x38] sm:$0xff] %v12456_v15  ;;  %v12284_v1 = vadd.f32 %v12283_v38, %v18912_v44  ;;  %v17315_v44 = vld [vmem:[%s19353_s7 + $0x40] sm:$0xff]  }
 0x64f   :  { %v16329_v60 = vpop.f32.mrf.mxu0  ;;  %16096 = vmatprep.subr.bf16.mxu1 %v17315_v44 }
 0x650   :  { %v12457_v11 = vmax.f32 %v12284_v1, 0.0 }
 0x651   :  { %v12286_v17 = vpop.f32.mrf.mxu0  ;;  %v12565_v44 = vld [vmem:[#allocation2 + $0x31] sm:$0x1] }
 0x652   :  { %12506 = vst [vmem:[#allocation2 + $0x40] sm:$0xff] %v12457_v11  ;;  %v12287_v51 = vadd.f32 %v12286_v17, %v18915_v4  ;;  %v17316_v4 = vld [vmem:[%s19353_s7] sm:$0xff]   ;;  %12566 = vst [vmem:[#allocation5 + $0x1] sm:$0x1] %v12565_v44 }
 0x653   :  { %v16330_v28 = vpop.f32.mrf.mxu0  ;;  %16097 = vmatpush3.bf16.msra.mxu1 %v17316_v4 }
 0x654   :  { %v12458_v62 = vmax.f32 %v12287_v51, 0.0 }
 0x655   :  { %v12291_v22 = vpop.f32.mrf.mxu0 }
 0x656   :  { %12507 = vst [vmem:[#allocation2 + $0x48] sm:$0xff] %v12458_v62  ;;  %v12292_v16 = vadd.f32 %v12291_v22, %v18920_v10 }
 0x657   :  { %v16333_v12 = vpop.f32.mrf.mxu0 }
 0x658   :  { %v12459_v46 = vmax.f32 %v12292_v16, 0.0  ;;  %v12549_v12 = vld [vmem:[#allocation2 + $0x1] sm:$0x1] }
 0x659   :  { %v12294_v8 = vpop.f32.mrf.mxu0  ;;  %12550 = vst [vmem:[#allocation5 + $0x8] sm:$0x1] %v12549_v12 }
 0x65a   :  { %12508 = vst [vmem:[#allocation2 + $0x50] sm:$0xff] %v12459_v46  ;;  %v12295_v40 = vadd.f32 %v12294_v8, %v18923_v58 }
 0x65b   :  { %v16334_v23 = vpop.f32.mrf.mxu0 }
 0x65c   :  { %v12460_v27 = vmax.f32 %v12295_v40, 0.0  ;;  %v12547_v40 = vld [vmem:[#allocation2] sm:$0x1]  ;;  %v12553_v23 = vld [vmem:[#allocation2 + $0x7] sm:$0x1] }
 0x65d   :  { %v12299_v59 = vpop.f32.mrf.mxu0  ;;  %12548 = vst [vmem:[#allocation5] sm:$0x1] %v12547_v40  ;;  %12554 = vst [vmem:[#allocation5 + $0x18] sm:$0x1] %v12553_v23  ;;  %v12569_v23 = vld [vmem:[#allocation2 + $0x33] sm:$0x1] }
 0x65e   :  { %12509 = vst [vmem:[#allocation2 + $0x58] sm:$0xff] %v12460_v27  ;;  %v12300_v10 = vadd.f32 %v12299_v59, %v18928_v42  ;;  %12570 = vst [vmem:[#allocation5 + $0x11] sm:$0x1] %v12569_v23 }
 0x65f   :  { %v16337_v61 = vpop.f32.mrf.mxu0 }
 0x660   :  { %v12461_v13 = vmax.f32 %v12300_v10, 0.0 }
 0x661   :  { %v12302_v34 = vpop.f32.mrf.mxu0 }
 0x662   :  { %12510 = vst [vmem:[#allocation2 + $0x60] sm:$0xff] %v12461_v13  ;;  %v12303_v58 = vadd.f32 %v12302_v34, %v18931_v3 }
 0x663   :  { %v16338_v48 = vpop.f32.mrf.mxu0 }
 0x664   :  { %v12462_v41 = vmax.f32 %v12303_v58, 0.0 }
 0x665   :  { %v12307_v49 = vpop.f32.mrf.mxu0 }
 0x666   :  { %12511 = vst [vmem:[#allocation2 + $0x68] sm:$0xff] %v12462_v41  ;;  %v12308_v15 = vadd.f32 %v12307_v49, %v18936_v45  ;;  %v12567_v45 = vld [vmem:[#allocation2 + $0x32] sm:$0x1]  ;;  %v12551_v41 = vld [vmem:[#allocation2 + $0x2] sm:$0x1] }
 0x667   :  { %v16341_v38 = vpop.f32.mrf.mxu0  ;;  %12568 = vst [vmem:[#allocation5 + $0x9] sm:$0x1] %v12567_v45  ;;  %12552 = vst [vmem:[#allocation5 + $0x10] sm:$0x1] %v12551_v41 }
 0x668   :  { %v12463_v1 = vmax.f32 %v12308_v15, 0.0 }
 0x669   :  { %v12310_v60 = vpop.f32.mrf.mxu0  ;;  %v12585_v46 = vld [vmem:[#allocation2 + $0x63] sm:$0x1]  ;;  %v12583_v4 = vld [vmem:[#allocation2 + $0x62] sm:$0x1] }
 0x66a   :  { %12512 = vst [vmem:[#allocation2 + $0x70] sm:$0xff] %v12463_v1  ;;  %v12311_v11 = vadd.f32 %v12310_v60, %v18939_v0  ;;  %12586 = vst [vmem:[#allocation5 + $0xa] sm:$0x1] %v12585_v46  ;;  %v17317_v0 = vld [vmem:[%s19353_s7 + $0xf8] sm:$0xff]   ;;  %v12557_v60 = vld [vmem:[#allocation2 + $0x9] sm:$0x1] }
 0x66b   :  { %v16342_v17 = vpop.f32.mrf.mxu0  ;;  %16104 = vmatprep.subr.bf16.mxu1 %v17317_v0  ;;  %12584 = vst [vmem:[#allocation5 + $0x2] sm:$0x1] %v12583_v4  ;;  %12558 = vst [vmem:[#allocation5 + $0x28] sm:$0x1] %v12557_v60 }
 0x66c   :  { %v12464_v42 = vmax.f32 %v12311_v11, 0.0  ;;  %v12555_v11 = vld [vmem:[#allocation2 + $0x8] sm:$0x1]  ;;  %v12561_v17 = vld [vmem:[#allocation2 + $0xf] sm:$0x1] }
 0x66d   :  { %v12315_v51 = vpop.f32.mrf.mxu0  ;;  %v12589_v59 = vld [vmem:[#allocation2 + $0x69] sm:$0x1]  ;;  %12556 = vst [vmem:[#allocation5 + $0x20] sm:$0x1] %v12555_v11  ;;  %12562 = vst [vmem:[#allocation5 + $0x38] sm:$0x1] %v12561_v17 }
 0x66e   :  { %12513 = vst [vmem:[#allocation2 + $0x78] sm:$0xff] %v12464_v42  ;;  %v12316_v28 = vadd.f32 %v12315_v51, %v18944_v19  ;;  %12590 = vst [vmem:[#allocation5 + $0x1a] sm:$0x1] %v12589_v59  ;;  %v12559_v42 = vld [vmem:[#allocation2 + $0xe] sm:$0x1] }
 0x66f   :  { %v16345_v62 = vpop.f32.mrf.mxu0  ;;  %12560 = vst [vmem:[#allocation5 + $0x30] sm:$0x1] %v12559_v42 }
 0x670   :  { %v12465_v3 = vmax.f32 %v12316_v28, 0.0 }
 0x671   :  { %v12318_v22 = vpop.f32.mrf.mxu0 }
 0x672   :  { %12514 = vst [vmem:[#allocation2 + $0x80] sm:$0xff] %v12465_v3  ;;  %v12319_v16 = vadd.f32 %v12318_v22, %v18953_v39  ;;  %v12571_v39 = vld [vmem:[#allocation2 + $0x38] sm:$0x1] }
 0x673   :  { %v16346_v8 = vpop.f32.mrf.mxu0  ;;  %12572 = vst [vmem:[#allocation5 + $0x19] sm:$0x1] %v12571_v39 }
 0x674   :  { %v12466_v19 = vmax.f32 %v12319_v16, 0.0 }
 0x675   :  { %v12323_v27 = vpop.f32.mrf.mxu0 }
 0x676   :  { %12515 = vst [vmem:[#allocation2 + $0x88] sm:$0xff] %v12466_v19  ;;  %v12324_v10 = vadd.f32 %v12323_v27, %v18958_v36  ;;  %v12587_v27 = vld [vmem:[#allocation2 + $0x64] sm:$0x1] }
 0x677   :  { %v16349_v61 = vpop.f32.mrf.mxu0  ;;  %12588 = vst [vmem:[#allocation5 + $0x12] sm:$0x1] %v12587_v27 }
 0x678   :  { %v12467_v13 = vmax.f32 %v12324_v10, 0.0 }
 0x679   :  { %v12326_v34 = vpop.f32.mrf.mxu0 }
 0x67a   :  { %12516 = vst [vmem:[#allocation2 + $0x90] sm:$0xff] %v12467_v13  ;;  %v12327_v58 = vadd.f32 %v12326_v34, %v18961_v47  ;;  %v12575_v13 = vld [vmem:[#allocation2 + $0x3a] sm:$0x1] }
 0x67b   :  { %v16350_v48 = vpop.f32.mrf.mxu0  ;;  %12576 = vst [vmem:[#allocation5 + $0x29] sm:$0x1] %v12575_v13 }
 0x67c   :  { %v12468_v49 = vmax.f32 %v12327_v58, 0.0 }
 0x67d   :  { %v12331_v15 = vpop.f32.mrf.mxu0 }
 0x67e   :  { %12517 = vst [vmem:[#allocation2 + $0x98] sm:$0xff] %v12468_v49  ;;  %v12332_v38 = vadd.f32 %v12331_v15, %v18966_v24  ;;  %v12563_v24 = vld [vmem:[#allocation2 + $0x10] sm:$0x1]  ;;  %v12573_v15 = vld [vmem:[#allocation2 + $0x39] sm:$0x1] }
 0x67f   :  { %v16353_v1 = vpop.f32.mrf.mxu0  ;;  %12564 = vst [vmem:[#allocation5 + $0x40] sm:$0x1] %v12563_v24  ;;  %12574 = vst [vmem:[#allocation5 + $0x21] sm:$0x1] %v12573_v15 }
 0x680   :  { %v12469_v36 = vmax.f32 %v12332_v38, 0.0  ;;  %v12577_v38 = vld [vmem:[#allocation2 + $0x3f] sm:$0x1] }
 0x681   :  { %v12334_v51 = vpop.f32.mrf.mxu0  ;;  %v12603_v28 = vld [vmem:[#allocation2 + $0x94] sm:$0x1]  ;;  %v12601_v62 = vld [vmem:[#allocation2 + $0x93] sm:$0x1]  ;;  %v12605_v39 = vld [vmem:[#allocation2 + $0x95] sm:$0x1] }
 0x682   :  { %12518 = vst [vmem:[#allocation2 + $0xa0] sm:$0xff] %v12469_v36  ;;  %v12335_v47 = vadd.f32 %v12334_v51, %v18969_v21  ;;  %12604 = vst [vmem:[#allocation5 + $0xb] sm:$0x1] %v12603_v28  ;;  %v12579_v51 = vld [vmem:[#allocation2 + $0x40] sm:$0x1] }
 0x683   :  { %12602 = vst [vmem:[#allocation5 + $0x3] sm:$0x1] %v12601_v62  ;;  %v16354_v3 = vpop.f32.mrf.mxu0  ;;  %12606 = vst [vmem:[#allocation5 + $0x13] sm:$0x1] %v12605_v39  ;;  %v12581_v28 = vld [vmem:[#allocation2 + $0x41] sm:$0x1] }
 0x684   :  { %v12470_v22 = vmax.f32 %v12335_v47, 0.0  ;;  %12578 = vst [vmem:[#allocation5 + $0x31] sm:$0x1] %v12577_v38  ;;  %12580 = vst [vmem:[#allocation5 + $0x39] sm:$0x1] %v12579_v51 }
 0x685   :  { %v12339_v16 = vpop.f32.mrf.mxu0  ;;  %v12607_v12 = vld [vmem:[#allocation2 + $0x9a] sm:$0x1]  ;;  %v12611_v34 = vld [vmem:[#allocation2 + $0x9c] sm:$0x1]  ;;  %12582 = vst [vmem:[#allocation5 + $0x41] sm:$0x1] %v12581_v28 }
 0x686   :  { %12519 = vst [vmem:[#allocation2 + $0xa8] sm:$0xff] %v12470_v22  ;;  %v12340_v45 = vadd.f32 %v12339_v16, %v18974_v31  ;;  %12608 = vst [vmem:[#allocation5 + $0x1b] sm:$0x1] %v12607_v12  ;;  %v12591_v39 = vld [vmem:[#allocation2 + $0x6a] sm:$0x1] }
 0x687   :  { %v16357_v46 = vpop.f32.mrf.mxu0  ;;  %12612 = vst [vmem:[#allocation5 + $0x2b] sm:$0x1] %v12611_v34  ;;  %12592 = vst [vmem:[#allocation5 + $0x22] sm:$0x1] %v12591_v39  ;;  %v12597_v34 = vld [vmem:[#allocation2 + $0x71] sm:$0x1] }
 0x688   :  { %v12471_v8 = vmax.f32 %v12340_v45, 0.0  ;;  %12598 = vst [vmem:[#allocation5 + $0x3a] sm:$0x1] %v12597_v34 }
 0x689   :  { %v12342_v0 = vpop.f32.mrf.mxu0 }
 0x68a   :  { %12520 = vst [vmem:[#allocation2 + $0xb0] sm:$0xff] %v12471_v8  ;;  %v12343_v40 = vadd.f32 %v12342_v0, %v18977_v56  ;;  %v12593_v56 = vld [vmem:[#allocation2 + $0x6b] sm:$0x1] }
 0x68b   :  { %v16358_v44 = vpop.f32.mrf.mxu0  ;;  %12594 = vst [vmem:[#allocation5 + $0x2a] sm:$0x1] %v12593_v56 }
 0x68c   :  { %v12472_v21 = vmax.f32 %v12343_v40, 0.0 }
 0x68d   :  { %v12347_v19 = vpop.f32.mrf.mxu0 }
 0x68e   :  { %12521 = vst [vmem:[#allocation2 + $0xb8] sm:$0xff] %v12472_v21  ;;  %v12348_v4 = vadd.f32 %v12347_v19, %v18988_v30 }
 0x68f   :  { %v16361_v59 = vpop.f32.mrf.mxu0 }
 0x690   :  { %v12473_v31 = vmax.f32 %v12348_v4, 0.0 }
 0x691   :  { %v12350_v10 = vpop.f32.mrf.mxu0 }
 0x692   :  { %12522 = vst [vmem:[#allocation2 + $0xc0] sm:$0xff] %v12473_v31  ;;  %v12351_v61 = vadd.f32 %v12350_v10, %v18991_v18 }
 0x693   :  { %v16362_v58 = vpop.f32.mrf.mxu0 }
 0x694   :  { %v12474_v30 = vmax.f32 %v12351_v61, 0.0  ;;  %v12615_v58 = vld [vmem:[#allocation2 + $0xa2] sm:$0x1] }
 0x695   :  { %v12355_v48 = vpop.f32.mrf.mxu0  ;;  %12616 = vst [vmem:[#allocation5 + $0x3b] sm:$0x1] %v12615_v58 }
 0x696   :  { %12523 = vst [vmem:[#allocation2 + $0xc8] sm:$0xff] %v12474_v30  ;;  %v12356_v41 = vadd.f32 %v12355_v48, %v18996_v5 }
 0x697   :  { %v16365_v49 = vpop.f32.mrf.mxu0 }
 0x698   :  { %v12475_v1 = vmax.f32 %v12356_v41, 0.0  ;;  %v12595_v41 = vld [vmem:[#allocation2 + $0x70] sm:$0x1]  ;;  %v12599_v49 = vld [vmem:[#allocation2 + $0x72] sm:$0x1] }
 0x699   :  { %v12358_v60 = vpop.f32.mrf.mxu0  ;;  %v12621_v18 = vld [vmem:[#allocation2 + $0xc5] sm:$0x1]  ;;  %v12619_v11 = vld [vmem:[#allocation2 + $0xc4] sm:$0x1]  ;;  %v12623_v36 = vld [vmem:[#allocation2 + $0xc6] sm:$0x1] }
 0x69a   :  { %12524 = vst [vmem:[#allocation2 + $0xd0] sm:$0xff] %v12475_v1  ;;  %v12359_v17 = vadd.f32 %v12358_v60, %v18999_v32  ;;  %12622 = vst [vmem:[#allocation5 + $0xc] sm:$0x1] %v12621_v18 }
 0x69b   :  { %12620 = vst [vmem:[#allocation5 + $0x4] sm:$0x1] %v12619_v11  ;;  %12624 = vst [vmem:[#allocation5 + $0x14] sm:$0x1] %v12623_v36  ;;  %v16366_v42 = vpop.f32.mrf.mxu0 }
 0x69c   :  { %v12476_v5 = vmax.f32 %v12359_v17, 0.0  ;;  %12596 = vst [vmem:[#allocation5 + $0x32] sm:$0x1] %v12595_v41  ;;  %12600 = vst [vmem:[#allocation5 + $0x42] sm:$0x1] %v12599_v49 }
 0x69d   :  { %v12363_v62 = vpop.f32.mrf.mxu0  ;;  %v12625_v47 = vld [vmem:[#allocation2 + $0xcb] sm:$0x1]  ;;  %v12629_v3 = vld [vmem:[#allocation2 + $0xcd] sm:$0x1]  ;;  %v12627_v59 = vld [vmem:[#allocation2 + $0xcc] sm:$0x1] }
 0x69e   :  { %12525 = vst [vmem:[#allocation2 + $0xd8] sm:$0xff] %v12476_v5  ;;  %v12364_v24 = vadd.f32 %v12363_v62, %v19004_v54  ;;  %12626 = vst [vmem:[#allocation5 + $0x1c] sm:$0x1] %v12625_v47 }
 0x69f   :  { %12630 = vst [vmem:[#allocation5 + $0x2c] sm:$0x1] %v12629_v3  ;;  %v16369_v22 = vpop.f32.mrf.mxu0  ;;  %12628 = vst [vmem:[#allocation5 + $0x24] sm:$0x1] %v12627_v59 }
 0x6a0   :  { %v12477_v16 = vmax.f32 %v12364_v24, 0.0 }
 0x6a1   :  { %v12366_v32 = vpop.f32.mrf.mxu0  ;;  %v12633_v30 = vld [vmem:[#allocation2 + $0xd3] sm:$0x1] }
 0x6a2   :  { %12526 = vst [vmem:[#allocation2 + $0xe0] sm:$0xff] %v12477_v16  ;;  %v12367_v12 = vadd.f32 %v12366_v32, %v19007_v43  ;;  %v12609_v43 = vld [vmem:[#allocation2 + $0x9b] sm:$0x1]  ;;  %12634 = vst [vmem:[#allocation5 + $0x3c] sm:$0x1] %v12633_v30 }
 0x6a3   :  { %v16370_v45 = vpop.f32.mrf.mxu0  ;;  %12610 = vst [vmem:[#allocation5 + $0x23] sm:$0x1] %v12609_v43 }
 0x6a4   :  { %v12478_v46 = vmax.f32 %v12367_v12, 0.0 }
 0x6a5   :  { %v12371_v8 = vpop.f32.mrf.mxu0 }
 0x6a6   :  { %12527 = vst [vmem:[#allocation2 + $0xe8] sm:$0xff] %v12478_v46  ;;  %v12372_v0 = vadd.f32 %v12371_v8, %v19018_v6 }
 0x6a7   :  { %v16373_v40 = vpop.f32.mrf.mxu0 }
 0x6a8   :  { %v12479_v44 = vmax.f32 %v12372_v0, 0.0 }
 0x6a9   :  { %v12374_v21 = vpop.f32.mrf.mxu0 }
 0x6aa   :  { %12528 = vst [vmem:[#allocation2 + $0xf0] sm:$0xff] %v12479_v44  ;;  %v12375_v54 = vadd.f32 %v12374_v21, %v19021_v57  ;;  %v12613_v44 = vld [vmem:[#allocation2 + $0xa1] sm:$0x1]  ;;  %v12617_v21 = vld [vmem:[#allocation2 + $0xa3] sm:$0x1] }
 0x6ab   :  { %v16374_v19 = vpop.f32.mrf.mxu0  ;;  %12614 = vst [vmem:[#allocation5 + $0x33] sm:$0x1] %v12613_v44  ;;  %12618 = vst [vmem:[#allocation5 + $0x43] sm:$0x1] %v12617_v21 }
 0x6ac   :  { %v12480_v4 = vmax.f32 %v12375_v54, 0.0 }
 0x6ad   :  { %v12379_v23 = vpop.f32.mrf.mxu0 }
 0x6ae   :  { %12529 = vst [vmem:[#allocation2 + $0xf8] sm:$0xff] %v12480_v4  ;;  %v12380_v27 = vadd.f32 %v12379_v23, %v19026_v29 }
 0x6af   :  { %v16377_v31 = vpop.f32.mrf.mxu0 }
 0x6b0   :  { %v12481_v6 = vmax.f32 %v12380_v27, 0.0 }
 0x6b1   :  { %v12382_v10 = vpop.f32.mrf.mxu0  ;;  %v12639_v61 = vld [vmem:[#allocation2 + $0xf6] sm:$0x1]  ;;  %v12637_v13 = vld [vmem:[#allocation2 + $0xf5] sm:$0x1]  ;;  %v12641_v56 = vld [vmem:[#allocation2 + $0xf7] sm:$0x1] }
 0x6b2   :  { %12530 = vst [vmem:[#allocation2 + $0x100] sm:$0xff] %v12481_v6  ;;  %v12383_v57 = vadd.f32 %v12382_v10, %v19029_v26  ;;  %12640 = vst [vmem:[#allocation5 + $0xd] sm:$0x1] %v12639_v61 }
 0x6b3   :  { %12638 = vst [vmem:[#allocation5 + $0x5] sm:$0x1] %v12637_v13  ;;  %12642 = vst [vmem:[#allocation5 + $0x15] sm:$0x1] %v12641_v56  ;;  %v16378_v29 = vpop.f32.mrf.mxu0 }
 0x6b4   :  { %v12482_v48 = vmax.f32 %v12383_v57, 0.0 }
 0x6b5   :  { %v12387_v15 = vpop.f32.mrf.mxu0  ;;  %v12643_v38 = vld [vmem:[#allocation2 + $0xfc] sm:$0x1]  ;;  %v12647_v1 = vld [vmem:[#allocation2 + $0xfe] sm:$0x1]  ;;  %v12645_v60 = vld [vmem:[#allocation2 + $0xfd] sm:$0x1] }
 0x6b6   :  { %12531 = vst [vmem:[#allocation2 + $0x108] sm:$0xff] %v12482_v48  ;;  %v12388_v26 = vadd.f32 %v12387_v15, %v19034_v2  ;;  %12644 = vst [vmem:[#allocation5 + $0x1d] sm:$0x1] %v12643_v38 }
 0x6b7   :  { %12648 = vst [vmem:[#allocation5 + $0x2d] sm:$0x1] %v12647_v1  ;;  %12646 = vst [vmem:[#allocation5 + $0x25] sm:$0x1] %v12645_v60  ;;  %v16381_v18 = vpop.f32.mrf.mxu0 }
 0x6b8   :  { %v12483_v11 = vmax.f32 %v12388_v26, 0.0  ;;  %v12635_v18 = vld [vmem:[#allocation2 + $0xd4] sm:$0x1] }
 0x6b9   :  { %v12390_v36 = vpop.f32.mrf.mxu0  ;;  %v12651_v17 = vld [vmem:[#allocation2 + $0x104] sm:$0x1]  ;;  %v12649_v39 = vld [vmem:[#allocation2 + $0x103] sm:$0x1]  ;;  %12636 = vst [vmem:[#allocation5 + $0x44] sm:$0x1] %v12635_v18 }
 0x6ba   :  { %12532 = vst [vmem:[#allocation2 + $0x110] sm:$0xff] %v12483_v11  ;;  %v12391_v42 = vadd.f32 %v12390_v36, %v19037_v37  ;;  %12652 = vst [vmem:[#allocation5 + $0x3d] sm:$0x1] %v12651_v17  ;;  %v17345_v18 = vld [vmem:[%s19353_s7 + $0x148] sm:$0xff]  }
 0x6bb   :  { %v16382_v51 = vpop.f32.mrf.mxu0  ;;  %12650 = vst [vmem:[#allocation5 + $0x35] sm:$0x1] %v12649_v39  ;;  %v17324_v39 = vld [vmem:[%s19353_s7 + $0xa0] sm:$0xff]  }
 0x6bc   :  { %v12484_v28 = vmax.f32 %v12391_v42, 0.0 }
 0x6bd   :  { %v12395_v5 = vpop.f32.mrf.mxu0 }
 0x6be   :  { %12533 = vst [vmem:[#allocation2 + $0x118] sm:$0xff] %v12484_v28  ;;  %v12396_v62 = vadd.f32 %v12395_v5, %v19048_v63 }
 0x6bf   :  { %v16385_v47 = vpop.f32.mrf.mxu0 }
 0x6c0   :  { %v12485_v3 = vmax.f32 %v12396_v62, 0.0 }
 0x6c1   :  { %v12398_v2 = vpop.f32.mrf.mxu0 }
 0x6c2   :  { %12534 = vst [vmem:[#allocation2 + $0x120] sm:$0xff] %v12485_v3  ;;  %v12399_v24 = vadd.f32 %v12398_v2, %v19051_v50 }
 0x6c3   :  { %v16386_v22 = vpop.f32.mrf.mxu0 }
 0x6c4   :  { %v12486_v16 = vmax.f32 %v12399_v24, 0.0 }
 0x6c5   :  { %v12403_v32 = vpop.f32.mrf.mxu0 }
 0x6c6   :  { %12535 = vst [vmem:[#allocation2 + $0x128] sm:$0xff] %v12486_v16  ;;  %v12404_v12 = vadd.f32 %v12403_v32, %v19056_v20 }
 0x6c7   :  { %v16389_v37 = vpop.f32.mrf.mxu0 }
 0x6c8   :  { %v12487_v45 = vmax.f32 %v12404_v12, 0.0  ;;  %v19384_v37 = vld [vmem:[#allocation8_spill] sm:$0xff] }
 0x6c9   :  { %v12406_v46 = vpop.f32.mrf.mxu0  ;;  %v12657_v8 = vld [vmem:[#allocation2 + $0x127] sm:$0x1]  ;;  %v12655_v0 = vld [vmem:[#allocation2 + $0x126] sm:$0x1] }
 0x6ca   :  { %12536 = vst [vmem:[#allocation2 + $0x130] sm:$0xff] %v12487_v45  ;;  %v12407_v63 = vadd.f32 %v12406_v46, %v19059_v14  ;;  %12658 = vst [vmem:[#allocation5 + $0xe] sm:$0x1] %v12657_v8  ;;  %v12631_v14 = vld [vmem:[#allocation2 + $0xd2] sm:$0x1]  ;;  %v17318_v8 = vld [vmem:[%s19353_s7 + $0xb8] sm:$0xff]  }
 0x6cb   :  { %12656 = vst [vmem:[#allocation5 + $0x6] sm:$0x1] %v12655_v0  ;;  %v16390_v40 = vpop.f32.mrf.mxu0  ;;  %12632 = vst [vmem:[#allocation5 + $0x34] sm:$0x1] %v12631_v14  ;;  %v12653_v0 = vld [vmem:[#allocation2 + $0x105] sm:$0x1] }
 0x6cc   :  { %v12488_v50 = vmax.f32 %v12407_v63, 0.0  ;;  %v17319_v40 = vld [vmem:[%s19353_s7 + $0xf0] sm:$0xff]   ;;  %12654 = vst [vmem:[#allocation5 + $0x45] sm:$0x1] %v12653_v0  ;;  %v17323_v14 = vld [vmem:[%s19353_s7 + $0xe0] sm:$0xff]   ;;  %v17365_v0 = vld [vmem:[%s19353_s7 + $0x238] sm:$0xff]  }
 0x6cd   :  { %v12411_v54 = vpop.f32.mrf.mxu0  ;;  %v12661_v19 = vld [vmem:[#allocation2 + $0x12d] sm:$0x1]  ;;  %v12659_v4 = vld [vmem:[#allocation2 + $0x128] sm:$0x1]  ;;  %v12665_v20 = vld [vmem:[#allocation2 + $0x12f] sm:$0x1] }
 0x6ce   :  { %12537 = vst [vmem:[#allocation2 + $0x138] sm:$0xff] %v12488_v50  ;;  %v12412_v23 = vadd.f32 %v12411_v54, %v19064_v55  ;;  %12662 = vst [vmem:[#allocation5 + $0x1e] sm:$0x1] %v12661_v19  ;;  %v12663_v27 = vld [vmem:[#allocation2 + $0x12e] sm:$0x1] }
 0x6cf   :  { %12660 = vst [vmem:[#allocation5 + $0x16] sm:$0x1] %v12659_v4  ;;  %12666 = vst [vmem:[#allocation5 + $0x2e] sm:$0x1] %v12665_v20  ;;  %v16393_v43 = vpop.f32.mrf.mxu0  ;;  %v17320_v4 = vld [vmem:[%s19353_s7 + $0xb0] sm:$0xff]   ;;  %v17321_v20 = vld [vmem:[%s19353_s7 + $0xe8] sm:$0xff]  }
 0x6d0   :  { %12664 = vst [vmem:[#allocation5 + $0x26] sm:$0x1] %v12663_v27  ;;  %v12489_v59 = vmax.f32 %v12412_v23, 0.0  ;;  %v17322_v27 = vld [vmem:[%s19353_s7 + $0xa8] sm:$0xff]   ;;  %v17325_v43 = vld [vmem:[%s19353_s7 + $0xd8] sm:$0xff]  }
 0x6d1   :  { %v12414_v31 = vpop.f32.mrf.mxu0  ;;  %v12669_v6 = vld [vmem:[#allocation2 + $0x135] sm:$0x1]  ;;  %v12667_v10 = vld [vmem:[#allocation2 + $0x134] sm:$0x1] }
 0x6d2   :  { %12538 = vst [vmem:[#allocation2 + $0x140] sm:$0xff] %v12489_v59  ;;  %v12415_v61 = vadd.f32 %v12414_v31, %v19067_v52  ;;  %12670 = vst [vmem:[#allocation5 + $0x3e] sm:$0x1] %v12669_v6  ;;  %v17326_v59 = vld [vmem:[%s19353_s7 + $0x98] sm:$0xff]   ;;  %v17327_v31 = vld [vmem:[%s19353_s7 + $0xd0] sm:$0xff]  }
 0x6d3   :  { %12668 = vst [vmem:[#allocation5 + $0x36] sm:$0x1] %v12667_v10  ;;  %v16394_v55 = vpop.f32.mrf.mxu0  ;;  %v17328_v6 = vld [vmem:[%s19353_s7 + $0x90] sm:$0xff]   ;;  %v17329_v10 = vld [vmem:[%s19353_s7 + $0xc8] sm:$0xff]  }
 0x6d4   :  { %v12490_v13 = vmax.f32 %v12415_v61, 0.0  ;;  %v17330_v61 = vld [vmem:[%s19353_s7 + $0x88] sm:$0xff]   ;;  %v17331_v55 = vld [vmem:[%s19353_s7 + $0xc0] sm:$0xff]  }
 0x6d5   :  { %v12419_v56 = vpop.f32.mrf.mxu0 }
 0x6d6   :  { %12539 = vst [vmem:[#allocation2 + $0x148] sm:$0xff] %v12490_v13  ;;  %v12420_v57 = vadd.f32 %v12419_v56, %v19075_v35  ;;  %v17332_v13 = vld [vmem:[%s19353_s7 + $0x80] sm:$0xff]   ;;  %v17333_v56 = vld [vmem:[%s19353_s7 + $0x178] sm:$0xff]  }
 0x6d7   :  { %v16397_v34 = vpop.f32.mrf.mxu0 }
 0x6d8   :  { %v12491_v29 = vmax.f32 %v12420_v57, 0.0 }
 0x6d9   :  { %v12422_v58 = vpop.f32.mrf.mxu0 }
 0x6da   :  { %12540 = vst [vmem:[#allocation2 + $0x150] sm:$0xff] %v12491_v29  ;;  %v12423_v30 = vadd.f32 %v12422_v58, %v19081_v33  ;;  %v17334_v29 = vld [vmem:[%s19353_s7 + $0x138] sm:$0xff]  }
 0x6db   :  { %v16398_v48 = vpop.f32.mrf.mxu0 }
 0x6dc   :  { %v12492_v41 = vmax.f32 %v12423_v30, 0.0  ;;  %v17335_v30 = vld [vmem:[%s19353_s7 + $0x170] sm:$0xff]  }
 0x6dd   :  { %v12427_v49 = vpop.f32.mrf.mxu0 }
 0x6de   :  { %12541 = vst [vmem:[#allocation2 + $0x158] sm:$0xff] %v12492_v41  ;;  %v12428_v52 = vadd.f32 %v12427_v49, %v19086_v25  ;;  %v17336_v41 = vld [vmem:[%s19353_s7 + $0x130] sm:$0xff]   ;;  %v17337_v49 = vld [vmem:[%s19353_s7 + $0x168] sm:$0xff]  }
 0x6df   :  { %v16401_v15 = vpop.f32.mrf.mxu0 }
 0x6e0   :  { %v12493_v38 = vmax.f32 %v12428_v52, 0.0  ;;  %v17338_v52 = vld [vmem:[%s19353_s7 + $0x128] sm:$0xff]   ;;  %v17339_v15 = vld [vmem:[%s19353_s7 + $0x160] sm:$0xff]  }
 0x6e1   :  { %v12430_v1 = vpop.f32.mrf.mxu0  ;;  %v12673_v60 = vld [vmem:[#allocation2 + $0x157] sm:$0x1] }
 0x6e2   :  { %12542 = vst [vmem:[#allocation2 + $0x160] sm:$0xff] %v12493_v38  ;;  %v12431_v26 = vadd.f32 %v12430_v1, %v19089_v53  ;;  %12674 = vst [vmem:[#allocation5 + $0x7] sm:$0x1] %v12673_v60  ;;  %v17340_v38 = vld [vmem:[%s19353_s7 + $0x120] sm:$0xff]   ;;  %v17341_v1 = vld [vmem:[%s19353_s7 + $0x158] sm:$0xff]  }
 0x6e3   :  { %v16402_v35 = vpop.f32.mrf.mxu0  ;;  %v17342_v60 = vld [vmem:[%s19353_s7 + $0x118] sm:$0xff]  }
 0x6e4   :  { %v12494_v11 = vmax.f32 %v12431_v26, 0.0  ;;  %v17343_v26 = vld [vmem:[%s19353_s7 + $0x150] sm:$0xff]  }
 0x6e5   :  { %v12435_v36 = vpop.f32.mrf.mxu0  ;;  %v12675_v33 = vld [vmem:[#allocation2 + $0x158] sm:$0x1]  ;;  %v12679_v17 = vld [vmem:[#allocation2 + $0x15e] sm:$0x1]  ;;  %v12677_v42 = vld [vmem:[#allocation2 + $0x159] sm:$0x1] }
 0x6e6   :  { %12543 = vst [vmem:[#allocation2 + $0x168] sm:$0xff] %v12494_v11  ;;  %v12436_v51 = vadd.f32 %v12435_v36, %v19094_v7  ;;  %12676 = vst [vmem:[#allocation5 + $0xf] sm:$0x1] %v12675_v33  ;;  %v12681_v25 = vld [vmem:[#allocation2 + $0x15f] sm:$0x1]  ;;  %v17344_v35 = vld [vmem:[%s19353_s7 + $0x110] sm:$0xff]  }
 0x6e7   :  { %12680 = vst [vmem:[#allocation5 + $0x1f] sm:$0x1] %v12679_v17  ;;  %12678 = vst [vmem:[#allocation5 + $0x17] sm:$0x1] %v12677_v42  ;;  %v16405_v28 = vpop.f32.mrf.mxu0  ;;  %v17346_v11 = vld [vmem:[%s19353_s7 + $0x108] sm:$0xff]   ;;  %v17347_v36 = vld [vmem:[%s19353_s7 + $0x140] sm:$0xff]  }
 0x6e8   :  { %12682 = vst [vmem:[#allocation5 + $0x27] sm:$0x1] %v12681_v25  ;;  %v12495_v5 = vmax.f32 %v12436_v51, 0.0  ;;  %v17348_v33 = vld [vmem:[%s19353_s7 + $0x100] sm:$0xff]   ;;  %v17349_v17 = vld [vmem:[%s19353_s7 + $0x1f8] sm:$0xff]  }
 0x6e9   :  { %v12438_v53 = vpop.f32.mrf.mxu0  ;;  %v12683_v62 = vld [vmem:[#allocation2 + $0x160] sm:$0x1]  ;;  %v12687_v47 = vld [vmem:[#allocation2 + $0x166] sm:$0x1]  ;;  %v12685_v2 = vld [vmem:[#allocation2 + $0x165] sm:$0x1] }
 0x6ea   :  { %12544 = vst [vmem:[#allocation2 + $0x170] sm:$0xff] %v12495_v5  ;;  %v12439_v3 = vadd.f32 %v12438_v53, %v19097_v9  ;;  %12684 = vst [vmem:[#allocation5 + $0x2f] sm:$0x1] %v12683_v62  ;;  %v12691_v7 = vld [vmem:[#allocation5] sm:$0xff]  ;;  %v12689_v44 = vld [vmem:[#allocation2 + $0x167] sm:$0x1] }
 0x6eb   :  { %12688 = vst [vmem:[#allocation5 + $0x3f] sm:$0x1] %v12687_v47  ;;  %v16406_v24 = vpop.f32.mrf.mxu0  ;;  %12686 = vst [vmem:[#allocation5 + $0x37] sm:$0x1] %v12685_v2  ;;  %v12671_v9 = vld [vmem:[#allocation2 + $0x136] sm:$0x1]  ;;  %v12700_v63 = vpack.c.bf16 %v12691_v7, %v12691_v7 }
 0x6ec   :  { %v12496_v22 = vmax.f32 %v12439_v3, 0.0  ;;  %12672 = vst [vmem:[#allocation5 + $0x46] sm:$0x1] %v12671_v9  ;;  %12690 = vst [vmem:[#allocation5 + $0x47] sm:$0x1] %v12689_v44  ;;  %v17350_v25 = vld [vmem:[%s19353_s7 + $0x1b8] sm:$0xff]  }
 0x6ed   :  { %v12443_v16 = vpop.f32.mrf.mxu0  ;;  %v12692_v32 = vld [vmem:[#allocation5 + $0x8] sm:$0xff]  ;;  %v17351_v5 = vld [vmem:[%s19353_s7 + $0x1f0] sm:$0xff]   ;;  %v17353_v47 = vld [vmem:[%s19353_s7 + $0x1e8] sm:$0xff]  }
 0x6ee   :  { %v12694_v12 = vld [vmem:[#allocation5 + $0x18] sm:$0xff]  ;;  %12545 = vst [vmem:[#allocation2 + $0x178] sm:$0xff] %v12496_v22  ;;  %v12444_v45 = vadd.f32 %v12443_v16, %v19384_v37  ;;  %v12701_v46 = vpack.c.bf16 %v12692_v32, %v12692_v32  ;;  %v12693_v57 = vld [vmem:[#allocation5 + $0x10] sm:$0xff]  ;;  %v17357_v22 = vld [vmem:[%s19353_s7 + $0x1d8] sm:$0xff]  }
 0x6ef   :  { %v16409_v21 = vpop.f32.mrf.mxu0  ;;  %v12703_v54 = vpack.c.bf16 %v12694_v12, %v12694_v12  ;;  %v12702_v58 = vpack.c.bf16 %v12693_v57, %v12693_v57  ;;  %v12695_v42 = vld [vmem:[#allocation5 + $0x20] sm:$0xff]  ;;  %v17354_v3 = vld [vmem:[%s19353_s7 + $0x1a8] sm:$0xff]   ;;  %v17355_v2 = vld [vmem:[%s19353_s7 + $0x1e0] sm:$0xff]  }
 0x6f0   :  { %v12497_v50 = vmax.f32 %v12444_v45, 0.0  ;;  %13324 = vmatprep.mubr.bf16.mxu1 %v12701_v46  ;;  %v12704_v28 = vpack.c.bf16 %v12695_v42, %v12695_v42  ;;  %v17352_v62 = vld [vmem:[%s19353_s7 + $0x1b0] sm:$0xff]   ;;  %v17356_v24 = vld [vmem:[%s19353_s7 + $0x1a0] sm:$0xff]   ;;  %v17358_v7 = vld [vmem:[%s19353_s7 + $0x198] sm:$0xff]  }
 0x6f1   :  { %13325 = vmatmul.mubr.bf16.vlgmr.msra.gmra.mxu1 %v12700_v63  ;;  %v12446_v19 = vpop.f32.mrf.mxu0  ;;  %v12696_v34 = vld [vmem:[#allocation5 + $0x28] sm:$0xff]  ;;  %v17359_v16 = vld [vmem:[%s19353_s7 + $0x1d0] sm:$0xff]   ;;  %v17361_v12 = vld [vmem:[%s19353_s7 + $0x1c8] sm:$0xff]  }
 0x6f2   :  { %12546 = vst [vmem:[#allocation2 + $0x180] sm:$0xff] %v12497_v50  ;;  %16105 = vmatpush3.bf16.msra.mxu1 %v17318_v8  ;;  %13364 = vmatprep.mubr.bf16.mxu1 %v12703_v54  ;;  %v12705_v48 = vpack.c.bf16 %v12696_v34, %v12696_v34  ;;  %v12698_v51 = vld [vmem:[#allocation5 + $0x38] sm:$0xff]  ;;  %v17363_v45 = vld [vmem:[%s19353_s7 + $0x1c0] sm:$0xff]   ;;  %v17369_v50 = vld [vmem:[%s19353_s7 + $0x218] sm:$0xff]  }
 0x6f3   :  { %16106 = vmatprep.subr.bf16.mxu1 %v17319_v40  ;;  %v16410_v23 = vpop.f32.mrf.mxu0  ;;  %v12707_v53 = vpack.c.bf16 %v12698_v51, %v12698_v51  ;;  %v17360_v32 = vld [vmem:[%s19353_s7 + $0x190] sm:$0xff]   ;;  %v17362_v37 = vld [vmem:[%s19353_s7 + $0x188] sm:$0xff]   ;;  %v17364_v46 = vld [vmem:[%s19353_s7 + $0x180] sm:$0xff]  }
 0x6f4   :  { %v12697_v8 = vld [vmem:[#allocation5 + $0x30] sm:$0xff]  ;;  %v17366_v40 = vld [vmem:[%s19353_s7 + $0x230] sm:$0xff]  }
 0x6f5   :  { %v12706_v9 = vpack.c.bf16 %v12697_v8, %v12697_v8  ;;  %v17382_v63 = vld [vmem:[#allocation2 + $0x188] sm:$0xff]  ;;  %v17368_v21 = vld [vmem:[%s19353_s7 + $0x220] sm:$0xff]   ;;  %v17370_v54 = vld [vmem:[%s19353_s7 + $0x210] sm:$0xff]  }
 0x6f6   :  { %16107 = vmatpush3.bf16.msra.mxu1 %v17320_v4  ;;  %v17367_v44 = vld [vmem:[%s19353_s7 + $0x228] sm:$0xff]   ;;  %v17372_v4 = vld [vmem:[%s19353_s7 + $0x200] sm:$0xff]  }
 0x6f7   :  { %16108 = vmatprep.subr.bf16.mxu1 %v17321_v20  ;;  %v17371_v19 = vld [vmem:[%s19353_s7 + $0x208] sm:$0xff]   ;;  %v12699_v20 = vld [vmem:[#allocation5 + $0x40] sm:$0xff] }
 0x6f8   :  { %v12708_v23 = vpack.c.bf16 %v12699_v20, %v12699_v20 }
 0x6fa   :  { %16109 = vmatpush3.bf16.msra.mxu1 %v17322_v27 }
 0x6fb   :  { %16110 = vmatprep.subr.bf16.mxu1 %v17323_v14 }
 0x6fe   :  { %16111 = vmatpush3.bf16.msra.mxu1 %v17324_v39 }
 0x6ff   :  { %16112 = vmatprep.subr.bf16.mxu1 %v17325_v43 }
 0x702   :  { %16113 = vmatpush3.bf16.msra.mxu1 %v17326_v59 }
 0x703   :  { %16114 = vmatprep.subr.bf16.mxu1 %v17327_v31  ;;  %v15061_v31 = vld [vmem:[%s19354_s8] ss:$0 sm:$0xff] }
 0x706   :  { %16115 = vmatpush3.bf16.msra.mxu1 %v17328_v6 }
 0x707   :  { %16116 = vmatprep.subr.bf16.mxu1 %v17329_v10 }
 0x70a   :  { %16117 = vmatpush3.bf16.msra.mxu1 %v17330_v61 }
 0x70b   :  { %16118 = vmatprep.subr.bf16.mxu1 %v17331_v55 }
 0x70e   :  { %16119 = vmatpush3.bf16.msra.mxu1 %v17332_v13 }
 0x70f   :  { %16126 = vmatprep.subr.bf16.mxu1 %v17333_v56 }
 0x711   :  { %13365 = vmatmul.mubr.bf16.vlgmr.msra.gmra.mxu1 %v12702_v58 }
 0x712   :  { %16127 = vmatpush3.bf16.msra.mxu1 %v17334_v29  ;;  %13404 = vmatprep.mubr.bf16.mxu1 %v12705_v48 }
 0x713   :  { %16128 = vmatprep.subr.bf16.mxu1 %v17335_v30 }
 0x716   :  { %16129 = vmatpush3.bf16.msra.mxu1 %v17336_v41 }
 0x717   :  { %16130 = vmatprep.subr.bf16.mxu1 %v17337_v49 }
 0x71a   :  { %16131 = vmatpush3.bf16.msra.mxu1 %v17338_v52 }
 0x71b   :  { %16132 = vmatprep.subr.bf16.mxu1 %v17339_v15 }
 0x71e   :  { %16133 = vmatpush3.bf16.msra.mxu1 %v17340_v38 }
 0x71f   :  { %16134 = vmatprep.subr.bf16.mxu1 %v17341_v1 }
 0x722   :  { %16135 = vmatpush3.bf16.msra.mxu1 %v17342_v60 }
 0x723   :  { %16136 = vmatprep.subr.bf16.mxu1 %v17343_v26 }
 0x726   :  { %16137 = vmatpush3.bf16.msra.mxu1 %v17344_v35 }
 0x727   :  { %16138 = vmatprep.subr.bf16.mxu1 %v17345_v18 }
 0x72a   :  { %16139 = vmatpush3.bf16.msra.mxu1 %v17346_v11 }
 0x72b   :  { %16140 = vmatprep.subr.bf16.mxu1 %v17347_v36 }
 0x72e   :  { %16141 = vmatpush3.bf16.msra.mxu1 %v17348_v33 }
 0x72f   :  { %16148 = vmatprep.subr.bf16.mxu1 %v17349_v17 }
 0x731   :  { %13405 = vmatmul.mubr.bf16.vlgmr.msra.gmra.mxu1 %v12704_v28 }
 0x732   :  { %16149 = vmatpush3.bf16.msra.mxu1 %v17350_v25  ;;  %13444 = vmatprep.mubr.bf16.mxu1 %v12707_v53 }
 0x733   :  { %16150 = vmatprep.subr.bf16.mxu1 %v17351_v5 }
 0x736   :  { %16151 = vmatpush3.bf16.msra.mxu1 %v17352_v62 }
 0x737   :  { %16152 = vmatprep.subr.bf16.mxu1 %v17353_v47 }
 0x73a   :  { %16153 = vmatpush3.bf16.msra.mxu1 %v17354_v3 }
 0x73b   :  { %16154 = vmatprep.subr.bf16.mxu1 %v17355_v2 }
 0x73e   :  { %16155 = vmatpush3.bf16.msra.mxu1 %v17356_v24 }
 0x73f   :  { %16156 = vmatprep.subr.bf16.mxu1 %v17357_v22 }
 0x742   :  { %16157 = vmatpush3.bf16.msra.mxu1 %v17358_v7 }
 0x743   :  { %16158 = vmatprep.subr.bf16.mxu1 %v17359_v16 }
 0x746   :  { %16159 = vmatpush3.bf16.msra.mxu1 %v17360_v32 }
 0x747   :  { %16160 = vmatprep.subr.bf16.mxu1 %v17361_v12 }
 0x74a   :  { %16161 = vmatpush3.bf16.msra.mxu1 %v17362_v37 }
 0x74b   :  { %16162 = vmatprep.subr.bf16.mxu1 %v17363_v45 }
 0x74e   :  { %16163 = vmatpush3.bf16.msra.mxu1 %v17364_v46 }
 0x74f   :  { %16411 = vmatprep.subr.bf16.mxu1 %v17382_v63 }
 0x751   :  { %13445 = vmatmul.mubr.bf16.vlgmr.msra.gmra.mxu1 %v12706_v9 }
 0x752   :  { %16412 = vmatpush3.bf16.msra.mxu1 %v17365_v0  ;;  %16427 = vmatprep.mubr.msk.bf16.mxu1 %vm17385_vm1, %v17382_v63 }
 0x753   :  { %16413 = vmatprep.subr.bf16.mxu1 %v17382_v63 }
 0x756   :  { %16414 = vmatpush3.bf16.msra.mxu1 %v17366_v40 }
 0x757   :  { %16415 = vmatprep.subr.bf16.mxu1 %v17382_v63 }
 0x75a   :  { %16416 = vmatpush3.bf16.msra.mxu1 %v17367_v44 }
 0x75b   :  { %16417 = vmatprep.subr.bf16.mxu1 %v17382_v63 }
 0x75e   :  { %16418 = vmatpush3.bf16.msra.mxu1 %v17368_v21 }
 0x75f   :  { %16419 = vmatprep.subr.bf16.mxu1 %v17382_v63 }
 0x762   :  { %16420 = vmatpush3.bf16.msra.mxu1 %v17369_v50 }
 0x763   :  { %16421 = vmatprep.subr.bf16.mxu1 %v17382_v63 }
 0x766   :  { %16422 = vmatpush3.bf16.msra.mxu1 %v17370_v54 }
 0x767   :  { %16423 = vmatprep.subr.bf16.mxu1 %v17382_v63 }
 0x76a   :  { %16424 = vmatpush3.bf16.msra.mxu1 %v17371_v19 }
 0x76b   :  { %16425 = vmatprep.subr.bf16.mxu1 %v17382_v63 }
 0x76e   :  { %16426 = vmatpush3.bf16.msra.mxu1 %v17372_v4 }
 0x771   :  { %16428 = vmatmul.mubr.bf16.vlgmr.msra.gmra.mxu1 %v12708_v23 }
 0x7b1   :  { %v16098_v27 = vpop.f32.mrf.mxu1 }
 0x7b3   :  { %v16099_v14 = vpop.f32.mrf.mxu1 }
 0x7b4   :  { %v16100_v39 = vadd.f32 %v16099_v14, %v16098_v27 }
 0x7b5   :  { %v16101_v43 = vpop.f32.mrf.mxu1 }
 0x7b6   :  { %v13327_v61 = vadd.f32 %v16100_v39, %v15061_v31 }
 0x7b7   :  { %v16102_v59 = vpop.f32.mrf.mxu1 }
 0x7d1   :  { %v16120_v6 = vpop.f32.mrf.mxu1 }
 0x7d3   :  { %v16121_v10 = vpop.f32.mrf.mxu1 }
 0x7d4   :  { %v16122_v55 = vadd.f32 %v16121_v10, %v16120_v6 }
 0x7d5   :  { %v16123_v13 = vpop.f32.mrf.mxu1 }
 0x7d6   :  { %v13367_v56 = vadd.f32 %v16122_v55, %v13327_v61 }
 0x7d7   :  { %v16124_v57 = vpop.f32.mrf.mxu1 }
 0x7f1   :  { %v16142_v34 = vpop.f32.mrf.mxu1 }
 0x7f3   :  { %v16143_v29 = vpop.f32.mrf.mxu1 }
 0x7f4   :  { %v16144_v15 = vadd.f32 %v16143_v29, %v16142_v34 }
 0x7f5   :  { %v16145_v58 = vpop.f32.mrf.mxu1 }
 0x7f6   :  { %v13407_v1 = vadd.f32 %v16144_v15, %v13367_v56 }
 0x7f7   :  { %v16146_v30 = vpop.f32.mrf.mxu1 }
 0x811   :  { %v16164_v48 = vpop.f32.mrf.mxu1 }
 0x813   :  { %v16165_v41 = vpop.f32.mrf.mxu1 }
 0x814   :  { %v16166_v38 = vadd.f32 %v16165_v41, %v16164_v48 }
 0x815   :  { %v16167_v49 = vpop.f32.mrf.mxu1 }
 0x816   :  { %v13447_v60 = vadd.f32 %v16166_v38, %v13407_v1 }
 0x817   :  { %v16168_v52 = vpop.f32.mrf.mxu1 }
 0x831   :  { %v13486_v26 = vpop.f32.mrf.mxu1 }
 0x832   :  { %v13487_v35 = vadd.f32 %v13486_v26, %v13447_v60 }
 0x833   :  { %v16429_v18 = vpop.f32.mrf.mxu1 }
 0x834   :  { %v13492_v11 = vmax.f32 %v13487_v35, 0.0 }
 0x835   :  { %v13489_v36 = vpop.f32.mrf.mxu1 }
 0x836   :  { %13493 = vst [vmem:[%s19355_s9] sm:$0xff] %v13492_v11 }
 0x837   :  { %v16430_v33 = vpop.f32.mrf.mxu1 }

</bundles_post_ra>
